<compile_context>
chip_gen: v6e
topology: v6e:2x2x1
jax: 0.10.0
libtpu: 0.0.40
codegen_flags: <defaults>
</compile_context>

<pallas_src>
import functools

import jax
import jax.numpy as jnp
import numpy as np
from jax.experimental import pallas as pl
from jax.experimental.pallas import tpu as pltpu

EPS = 1e-5  # PyTorch BatchNorm default


def _round_up(x, m):
    return (x + m - 1) // m * m


# ----------------------------------------------------------------------------
# Pallas kernel 1: conv-as-GEMM with folded BN: out = relu(x @ w + shift)
# ----------------------------------------------------------------------------
def _matmul_shift_relu_kernel(x_ref, w_ref, s_ref, o_ref):
    acc = jnp.dot(x_ref[...], w_ref[...], preferred_element_type=jnp.float32)
    o_ref[...] = jnp.maximum(acc + s_ref[...], 0.0)


def matmul_shift_relu(x_bf16, w_bf16, shift):
    """x: (M, K) bf16, w: (K, N) bf16, shift: (1, N) f32.  Returns relu(x@w+shift) f32."""
    M, K = x_bf16.shape
    N = w_bf16.shape[1]
    tm = 512 if M >= 512 else _round_up(M, 8)
    M_pad = _round_up(M, tm)
    x_p = jnp.pad(x_bf16, ((0, M_pad - M), (0, 0)))

    out = pl.pallas_call(
        _matmul_shift_relu_kernel,
        out_shape=jax.ShapeDtypeStruct((M_pad, N), jnp.float32),
        grid_spec=pltpu.PrefetchScalarGridSpec(
            num_scalar_prefetch=0,
            grid=(M_pad // tm,),
            in_specs=[
                pl.BlockSpec((tm, K), lambda i: (i, 0)),
                pl.BlockSpec((K, N), lambda i: (0, 0)),   # tiny, constant across grid
                pl.BlockSpec((1, N), lambda i: (0, 0)),
            ],
            out_specs=pl.BlockSpec((tm, N), lambda i: (i, 0)),
        ),
        compiler_params=pltpu.CompilerParams(
            dimension_semantics=("parallel",),
            vmem_limit_bytes=32 * 1024 * 1024,  # actual need ~2 MiB; safe on v5e/v6e/v7x
        ),
    )(x_p, w_bf16, shift)
    return out[:M]


# ----------------------------------------------------------------------------
# Pallas kernel 2: fused MLP head  relu(x@W1+b1) -> relu(.@W2+b2) -> .@W3+b3
# Single launch, no grid: all weights resident in VMEM (~4.4 MiB bf16).
# ----------------------------------------------------------------------------
def _mlp_head_kernel(x_ref, w1_ref, b1_ref, w2_ref, b2_ref, w3_ref, b3_ref, o_ref):
    h = jnp.dot(x_ref[...], w1_ref[...], preferred_element_type=jnp.float32) + b1_ref[...]
    h = jnp.maximum(h, 0.0).astype(jnp.bfloat16)
    h = jnp.dot(h, w2_ref[...], preferred_element_type=jnp.float32) + b2_ref[...]
    h = jnp.maximum(h, 0.0).astype(jnp.bfloat16)
    o_ref[...] = jnp.dot(h, w3_ref[...], preferred_element_type=jnp.float32) + b3_ref[...]


def mlp_head(x, w1, b1, w2, b2, w3, b3):
    """x: (M, 2048) f32.  Weights pre-transposed (K, N) bf16; biases (1, N) f32.
    fc3 is padded to 128 output lanes (lane-dense store); caller slices [:7]."""
    M = x.shape[0]
    M_pad = _round_up(M, 8)
    x_p = jnp.pad(x.astype(jnp.bfloat16), ((0, M_pad - M), (0, 0)))
    out = pl.pallas_call(
        _mlp_head_kernel,
        out_shape=jax.ShapeDtypeStruct((M_pad, w3.shape[1]), jnp.float32),
    )(x_p, w1, b1, w2, b2, w3, b3)
    return out[:M]


# ----------------------------------------------------------------------------
# Glue: im2col conv wrapper, max-pool
# ----------------------------------------------------------------------------
def conv3x3_bn_relu(x_nhwc, wm_bf16, shift):
    """x_nhwc: (N,H,W,Ci) f32; wm: (9*Ci, Co) bf16 with BN folded; shift: (1, Co) f32."""
    N, H, W, C = x_nhwc.shape
    KHW, Co = wm_bf16.shape
    Ho, Wo = H - 2, W - 2
    xb = x_nhwc.astype(jnp.bfloat16)
    # Patch ordering (dy, dx, c_in) matches the reshaped weight produced in fold_conv.
    # TODO(synk): could fold im2col into the kernel via a (dy,dx) accumulation grid axis.
    patches = jnp.concatenate(
        [xb[:, dy:dy + Ho, dx:dx + Wo, :] for dy in range(3) for dx in range(3)],
        axis=-1,
    )
    pm = patches.reshape(N * Ho * Wo, KHW)
    out = matmul_shift_relu(pm, wm_bf16, shift)
    return out.reshape(N, Ho, Wo, Co)


def maxpool2_nhwc(x):
    N, H, W, C = x.shape
    return x.reshape(N, H // 2, 2, W // 2, 2, C).max(axis=(2, 4))


# ----------------------------------------------------------------------------
# One-time parameter preparation: fold BN + conv bias into weights, pre-transpose
# FC weights, cast everything the MXU touches to bf16.
# ----------------------------------------------------------------------------
def fold_conv(w_oihw, b, gamma, beta, mean, var):
    scale = gamma / jnp.sqrt(var + EPS)                 # (Co,)
    shift = b * scale + beta - mean * scale             # (Co,)
    w_f = w_oihw * scale[:, None, None, None]           # fold per-output-channel
    Co, Ci, kh, kw = w_oihw.shape
    wm = jnp.transpose(w_f, (2, 3, 1, 0)).reshape(kh * kw * Ci, Co)   # (dy,dx,ci) -> Co
    return wm.astype(jnp.bfloat16), shift.reshape(1, Co).astype(jnp.float32)


def prepare(params):
    prep = {
        "c1": fold_conv(params["conv1_w"], params["conv1_b"], *params["bn16"]),
        "c2": fold_conv(params["conv2_w"], params["conv2_b"], *params["bn32"]),
        "c3": fold_conv(params["conv3_w"], params["conv3_b"], *params["bn64"]),
        # bn32 is reused for conv4, exactly as in the PyTorch module
        "c4": fold_conv(params["conv4_w"], params["conv4_b"], *params["bn32"]),
        # FC weights: transpose ONCE here (no runtime .T), bf16 for the MXU.
        "w1": params["fc1_w"].T.astype(jnp.bfloat16),
        "b1": params["fc1_b"].reshape(1, -1).astype(jnp.float32),
        "w2": params["fc2_w"].T.astype(jnp.bfloat16),
        "b2": params["fc2_b"].reshape(1, -1).astype(jnp.float32),
        # fc3 padded from 7 to 128 output lanes for a lane-dense (unmasked) store.
        "w3": jnp.pad(params["fc3_w"].T, ((0, 0), (0, 128 - 7))).astype(jnp.bfloat16),
        "b3": jnp.pad(params["fc3_b"], (0, 128 - 7)).reshape(1, -1).astype(jnp.float32),
    }
    return prep


# ----------------------------------------------------------------------------
# Forward pass (eval mode)
# ----------------------------------------------------------------------------
def forward(prep, x_nchw):
    x = jnp.transpose(x_nchw, (0, 2, 3, 1))              # NCHW -> NHWC
    x = conv3x3_bn_relu(x, *prep["c1"])                  # 46x46x16
    x = conv3x3_bn_relu(x, *prep["c2"])                  # 44x44x32
    x = maxpool2_nhwc(x)                                 # 22x22x32
    x = conv3x3_bn_relu(x, *prep["c3"])                  # 20x20x64
    x = maxpool2_nhwc(x)                                 # 10x10x64
    x = conv3x3_bn_relu(x, *prep["c4"])                  # 8x8x32
    # Flatten exactly like torch .view(-1, 2048) on an NCHW tensor.
    N = x.shape[0]
    x = jnp.transpose(x, (0, 3, 1, 2)).reshape(N, 2048)
    out = mlp_head(x, prep["w1"], prep["b1"], prep["w2"], prep["b2"],
                   prep["w3"], prep["b3"])
    return out[:, :7]


# ----------------------------------------------------------------------------
# Pure-JAX reference (NCHW, mirrors the PyTorch forward in eval mode, f32)
# ----------------------------------------------------------------------------
def reference(params, x):
    def conv(x, w, b):
        y = jax.lax.conv_general_dilated(
            x, w, (1, 1), "VALID", dimension_numbers=("NCHW", "OIHW", "NCHW"))
        return y + b[None, :, None, None]

    def bn(x, gamma, beta, mean, var):
        inv = 1.0 / jnp.sqrt(var + EPS)
        return ((x - mean[None, :, None, None]) * inv[None, :, None, None]
                * gamma[None, :, None, None] + beta[None, :, None, None])

    def pool(x):
        N, C, H, W = x.shape
        return x.reshape(N, C, H // 2, 2, W // 2, 2).max(axis=(3, 5))

    relu = jax.nn.relu
    x = relu(bn(conv(x, params["conv1_w"], params["conv1_b"]), *params["bn16"]))
    x = relu(pool(bn(conv(x, params["conv2_w"], params["conv2_b"]), *params["bn32"])))
    x = relu(pool(bn(conv(x, params["conv3_w"], params["conv3_b"]), *params["bn64"])))
    x = relu(bn(conv(x, params["conv4_w"], params["conv4_b"]), *params["bn32"]))
    x = x.reshape(x.shape[0], -1)
    x = relu(x @ params["fc1_w"].T + params["fc1_b"])
    x = relu(x @ params["fc2_w"].T + params["fc2_b"])
    x = x @ params["fc3_w"].T + params["fc3_b"]
    return x


# ----------------------------------------------------------------------------
# Deterministic parameter init (synthetic; matches the PyTorch module's shapes)
# ----------------------------------------------------------------------------
def init_params(key):
    ks = jax.random.split(key, 24)

    def nrm(k, shape, scale=0.1):
        return scale * jax.random.normal(k, shape, jnp.float32)

    def bn_params(kg, kb, km, n):
        gamma = 1.0 + 0.1 * jax.random.normal(kg, (n,), jnp.float32)
        beta = 0.1 * jax.random.normal(kb, (n,), jnp.float32)
        mean = 0.05 * jax.random.normal(km, (n,), jnp.float32)
        var = jnp.full((n,), 1.2, jnp.float32)
        return (gamma, beta, mean, var)

    return {
        "conv1_w": nrm(ks[0], (16, 1, 3, 3)),   "conv1_b": nrm(ks[1], (16,)),
        "conv2_w": nrm(ks[2], (32, 16, 3, 3)),  "conv2_b": nrm(ks[3], (32,)),
        "conv3_w": nrm(ks[4], (64, 32, 3, 3)),  "conv3_b": nrm(ks[5], (64,)),
        "conv4_w": nrm(ks[6], (32, 64, 3, 3)),  "conv4_b": nrm(ks[7], (32,)),
        "fc1_w": nrm(ks[8], (1024, 2048), 0.02), "fc1_b": nrm(ks[9], (1024,)),
        "fc2_w": nrm(ks[10], (128, 1024), 0.02), "fc2_b": nrm(ks[11], (128,)),
        "fc3_w": nrm(ks[12], (7, 128), 0.02),    "fc3_b": nrm(ks[13], (7,)),
        "bn16": bn_params(ks[14], ks[15], ks[16], 16),
        "bn32": bn_params(ks[17], ks[18], ks[19], 32),
        "bn64": bn_params(ks[20], ks[21], ks[22], 64),
    }


if __name__ == "__main__":
    key = jax.random.PRNGKey(0)
    kp, kx = jax.random.split(key)
    params = init_params(kp)
    # fc1 in_features=2048 = 32 channels * 8 * 8 => input must be (N, 1, 48, 48)
    x = jax.random.normal(kx, (2, 1, 48, 48), jnp.float32)

    prep = prepare(params)            # one-time: BN fold, transpose, bf16 cast
    fwd = jax.jit(forward)
    out = jax.block_until_ready(fwd(prep, x))
    ref = jax.block_until_ready(reference(params, x))

    assert out.shape == (2, 7), out.shape
    # bf16 MXU inputs (f32 accumulation) vs full-f32 reference => 2e-2 tolerance.
    np.testing.assert_allclose(np.asarray(out), np.asarray(ref), rtol=2e-2, atol=2e-2)
    print("KERNEL_OK")
</pallas_src>

<mosaic_0001>
module attributes {stable_mosaic.version = 11 : i64} {
  func.func @_matmul_shift_relu_kernel(%arg0: i32, %arg1: memref<512x9xbf16, #tpu.memory_space<vmem>>, %arg2: memref<9x16xbf16, #tpu.memory_space<vmem>>, %arg3: memref<1x16xf32, #tpu.memory_space<vmem>>, %arg4: memref<512x16xf32, #tpu.memory_space<vmem>>) attributes {dimension_semantics = [#tpu.dimension_semantics<parallel>], iteration_bounds = array<i64: 9>, scalar_prefetch = 0 : i64, scratch_operands = 0 : i64, tpu.core_type = #tpu.core_type<tc>, window_params = [{transform_indices = @transform_0, window_bounds = array<i64: 512, 9>}, {pipeline_mode = #tpu.pipeline_mode<synchronous>, transform_indices = @transform_1, window_bounds = array<i64: 9, 16>}, {pipeline_mode = #tpu.pipeline_mode<synchronous>, transform_indices = @transform_2, window_bounds = array<i64: 1, 16>}, {transform_indices = @transform_3, window_bounds = array<i64: 512, 16>}]} {
    %c0 = arith.constant 0 : index
    %c0_0 = arith.constant 0 : index
    %0 = vector.load %arg1[%c0, %c0_0] : memref<512x9xbf16, #tpu.memory_space<vmem>>, vector<512x9xbf16>
    %c0_1 = arith.constant 0 : index
    %c0_2 = arith.constant 0 : index
    %1 = vector.load %arg2[%c0_1, %c0_2] : memref<9x16xbf16, #tpu.memory_space<vmem>>, vector<9x16xbf16>
    %cst = arith.constant dense<0.000000e+00> : vector<512x16xf32>
    %2 = tpu.matmul %0, %1, %cst {dimension_numbers = #tpu.dot_dimension_numbers<[1], [0], [0], [1], [0, 0, 1, 1], [], []>} : vector<512x9xbf16>, vector<9x16xbf16>, vector<512x16xf32> -> vector<512x16xf32>
    %c0_3 = arith.constant 0 : index
    %c0_4 = arith.constant 0 : index
    %3 = vector.load %arg3[%c0_3, %c0_4] : memref<1x16xf32, #tpu.memory_space<vmem>>, vector<1x16xf32>
    %4 = vector.broadcast %3 : vector<1x16xf32> to vector<512x16xf32>
    %5 = arith.addf %2, %4 : vector<512x16xf32>
    %cst_5 = arith.constant 0.000000e+00 : f32
    %6 = vector.broadcast %cst_5 : f32 to vector<512x16xf32>
    %7 = arith.maximumf %5, %6 : vector<512x16xf32>
    %c0_6 = arith.constant 0 : index
    %c0_7 = arith.constant 0 : index
    %8 = vector.load %arg4[%c0_6, %c0_7] : memref<512x16xf32, #tpu.memory_space<vmem>>, vector<512x16xf32>
    tpu.vector_store %arg4[%c0_6, %c0_7], %7 {strides = array<i32>} : memref<512x16xf32, #tpu.memory_space<vmem>>, vector<512x16xf32>,
    return
  }
  func.func @transform_0(%arg0: i32) -> (i32, i32) {
    %c0_i32 = arith.constant 0 : i32
    %c0_i32_0 = arith.constant 0 : i32
    return %arg0, %c0_i32 : i32, i32
  }
  func.func @transform_1(%arg0: i32) -> (i32, i32) {
    %c0_i32 = arith.constant 0 : i32
    %c0_i32_0 = arith.constant 0 : i32
    %c0_i32_1 = arith.constant 0 : i32
    return %c0_i32, %c0_i32_0 : i32, i32
  }
  func.func @transform_2(%arg0: i32) -> (i32, i32) {
    %c0_i32 = arith.constant 0 : i32
    %c0_i32_0 = arith.constant 0 : i32
    %c0_i32_1 = arith.constant 0 : i32
    return %c0_i32, %c0_i32_0 : i32, i32
  }
  func.func @transform_3(%arg0: i32) -> (i32, i32) {
    %c0_i32 = arith.constant 0 : i32
    %c0_i32_0 = arith.constant 0 : i32
    return %arg0, %c0_i32 : i32, i32
  }
}

module attributes {stable_mosaic.version = 11 : i64} {
  func.func @_matmul_shift_relu_kernel(%arg0: i32, %arg1: memref<512x144xbf16, #tpu.memory_space<vmem>>, %arg2: memref<144x32xbf16, #tpu.memory_space<vmem>>, %arg3: memref<1x32xf32, #tpu.memory_space<vmem>>, %arg4: memref<512x32xf32, #tpu.memory_space<vmem>>) attributes {dimension_semantics = [#tpu.dimension_semantics<parallel>], iteration_bounds = array<i64: 8>, scalar_prefetch = 0 : i64, scratch_operands = 0 : i64, tpu.core_type = #tpu.core_type<tc>, window_params = [{transform_indices = @transform_0, window_bounds = array<i64: 512, 144>}, {pipeline_mode = #tpu.pipeline_mode<synchronous>, transform_indices = @transform_1, window_bounds = array<i64: 144, 32>}, {pipeline_mode = #tpu.pipeline_mode<synchronous>, transform_indices = @transform_2, window_bounds = array<i64: 1, 32>}, {transform_indices = @transform_3, window_bounds = array<i64: 512, 32>}]} {
    %c0 = arith.constant 0 : index
    %c0_0 = arith.constant 0 : index
    %0 = vector.load %arg1[%c0, %c0_0] : memref<512x144xbf16, #tpu.memory_space<vmem>>, vector<512x144xbf16>
    %c0_1 = arith.constant 0 : index
    %c0_2 = arith.constant 0 : index
    %1 = vector.load %arg2[%c0_1, %c0_2] : memref<144x32xbf16, #tpu.memory_space<vmem>>, vector<144x32xbf16>
    %cst = arith.constant dense<0.000000e+00> : vector<512x32xf32>
    %2 = tpu.matmul %0, %1, %cst {dimension_numbers = #tpu.dot_dimension_numbers<[1], [0], [0], [1], [0, 0, 1, 1], [], []>} : vector<512x144xbf16>, vector<144x32xbf16>, vector<512x32xf32> -> vector<512x32xf32>
    %c0_3 = arith.constant 0 : index
    %c0_4 = arith.constant 0 : index
    %3 = vector.load %arg3[%c0_3, %c0_4] : memref<1x32xf32, #tpu.memory_space<vmem>>, vector<1x32xf32>
    %4 = vector.broadcast %3 : vector<1x32xf32> to vector<512x32xf32>
    %5 = arith.addf %2, %4 : vector<512x32xf32>
    %cst_5 = arith.constant 0.000000e+00 : f32
    %6 = vector.broadcast %cst_5 : f32 to vector<512x32xf32>
    %7 = arith.maximumf %5, %6 : vector<512x32xf32>
    %c0_6 = arith.constant 0 : index
    %c0_7 = arith.constant 0 : index
    %8 = vector.load %arg4[%c0_6, %c0_7] : memref<512x32xf32, #tpu.memory_space<vmem>>, vector<512x32xf32>
    tpu.vector_store %arg4[%c0_6, %c0_7], %7 {strides = array<i32>} : memref<512x32xf32, #tpu.memory_space<vmem>>, vector<512x32xf32>,
    return
  }
  func.func @transform_0(%arg0: i32) -> (i32, i32) {
    %c0_i32 = arith.constant 0 : i32
    %c0_i32_0 = arith.constant 0 : i32
    return %arg0, %c0_i32 : i32, i32
  }
  func.func @transform_1(%arg0: i32) -> (i32, i32) {
    %c0_i32 = arith.constant 0 : i32
    %c0_i32_0 = arith.constant 0 : i32
    %c0_i32_1 = arith.constant 0 : i32
    return %c0_i32, %c0_i32_0 : i32, i32
  }
  func.func @transform_2(%arg0: i32) -> (i32, i32) {
    %c0_i32 = arith.constant 0 : i32
    %c0_i32_0 = arith.constant 0 : i32
    %c0_i32_1 = arith.constant 0 : i32
    return %c0_i32, %c0_i32_0 : i32, i32
  }
  func.func @transform_3(%arg0: i32) -> (i32, i32) {
    %c0_i32 = arith.constant 0 : i32
    %c0_i32_0 = arith.constant 0 : i32
    return %arg0, %c0_i32 : i32, i32
  }
}

module attributes {stable_mosaic.version = 11 : i64} {
  func.func @_matmul_shift_relu_kernel(%arg0: i32, %arg1: memref<512x288xbf16, #tpu.memory_space<vmem>>, %arg2: memref<288x64xbf16, #tpu.memory_space<vmem>>, %arg3: memref<1x64xf32, #tpu.memory_space<vmem>>, %arg4: memref<512x64xf32, #tpu.memory_space<vmem>>) attributes {dimension_semantics = [#tpu.dimension_semantics<parallel>], iteration_bounds = array<i64: 2>, scalar_prefetch = 0 : i64, scratch_operands = 0 : i64, tpu.core_type = #tpu.core_type<tc>, window_params = [{transform_indices = @transform_0, window_bounds = array<i64: 512, 288>}, {pipeline_mode = #tpu.pipeline_mode<synchronous>, transform_indices = @transform_1, window_bounds = array<i64: 288, 64>}, {pipeline_mode = #tpu.pipeline_mode<synchronous>, transform_indices = @transform_2, window_bounds = array<i64: 1, 64>}, {transform_indices = @transform_3, window_bounds = array<i64: 512, 64>}]} {
    %c0 = arith.constant 0 : index
    %c0_0 = arith.constant 0 : index
    %0 = vector.load %arg1[%c0, %c0_0] : memref<512x288xbf16, #tpu.memory_space<vmem>>, vector<512x288xbf16>
    %c0_1 = arith.constant 0 : index
    %c0_2 = arith.constant 0 : index
    %1 = vector.load %arg2[%c0_1, %c0_2] : memref<288x64xbf16, #tpu.memory_space<vmem>>, vector<288x64xbf16>
    %cst = arith.constant dense<0.000000e+00> : vector<512x64xf32>
    %2 = tpu.matmul %0, %1, %cst {dimension_numbers = #tpu.dot_dimension_numbers<[1], [0], [0], [1], [0, 0, 1, 1], [], []>} : vector<512x288xbf16>, vector<288x64xbf16>, vector<512x64xf32> -> vector<512x64xf32>
    %c0_3 = arith.constant 0 : index
    %c0_4 = arith.constant 0 : index
    %3 = vector.load %arg3[%c0_3, %c0_4] : memref<1x64xf32, #tpu.memory_space<vmem>>, vector<1x64xf32>
    %4 = vector.broadcast %3 : vector<1x64xf32> to vector<512x64xf32>
    %5 = arith.addf %2, %4 : vector<512x64xf32>
    %cst_5 = arith.constant 0.000000e+00 : f32
    %6 = vector.broadcast %cst_5 : f32 to vector<512x64xf32>
    %7 = arith.maximumf %5, %6 : vector<512x64xf32>
    %c0_6 = arith.constant 0 : index
    %c0_7 = arith.constant 0 : index
    %8 = vector.load %arg4[%c0_6, %c0_7] : memref<512x64xf32, #tpu.memory_space<vmem>>, vector<512x64xf32>
    tpu.vector_store %arg4[%c0_6, %c0_7], %7 {strides = array<i32>} : memref<512x64xf32, #tpu.memory_space<vmem>>, vector<512x64xf32>,
    return
  }
  func.func @transform_0(%arg0: i32) -> (i32, i32) {
    %c0_i32 = arith.constant 0 : i32
    %c0_i32_0 = arith.constant 0 : i32
    return %arg0, %c0_i32 : i32, i32
  }
  func.func @transform_1(%arg0: i32) -> (i32, i32) {
    %c0_i32 = arith.constant 0 : i32
    %c0_i32_0 = arith.constant 0 : i32
    %c0_i32_1 = arith.constant 0 : i32
    return %c0_i32, %c0_i32_0 : i32, i32
  }
  func.func @transform_2(%arg0: i32) -> (i32, i32) {
    %c0_i32 = arith.constant 0 : i32
    %c0_i32_0 = arith.constant 0 : i32
    %c0_i32_1 = arith.constant 0 : i32
    return %c0_i32, %c0_i32_0 : i32, i32
  }
  func.func @transform_3(%arg0: i32) -> (i32, i32) {
    %c0_i32 = arith.constant 0 : i32
    %c0_i32_0 = arith.constant 0 : i32
    return %arg0, %c0_i32 : i32, i32
  }
}

module attributes {stable_mosaic.version = 11 : i64} {
  func.func @_matmul_shift_relu_kernel(%arg0: i32, %arg1: memref<128x576xbf16, #tpu.memory_space<vmem>>, %arg2: memref<576x32xbf16, #tpu.memory_space<vmem>>, %arg3: memref<1x32xf32, #tpu.memory_space<vmem>>, %arg4: memref<128x32xf32, #tpu.memory_space<vmem>>) attributes {dimension_semantics = [#tpu.dimension_semantics<parallel>], iteration_bounds = array<i64: 1>, scalar_prefetch = 0 : i64, scratch_operands = 0 : i64, tpu.core_type = #tpu.core_type<tc>, window_params = [{transform_indices = @transform_0, window_bounds = array<i64: 128, 576>}, {pipeline_mode = #tpu.pipeline_mode<synchronous>, transform_indices = @transform_1, window_bounds = array<i64: 576, 32>}, {pipeline_mode = #tpu.pipeline_mode<synchronous>, transform_indices = @transform_2, window_bounds = array<i64: 1, 32>}, {transform_indices = @transform_3, window_bounds = array<i64: 128, 32>}]} {
    %c0 = arith.constant 0 : index
    %c0_0 = arith.constant 0 : index
    %0 = vector.load %arg1[%c0, %c0_0] : memref<128x576xbf16, #tpu.memory_space<vmem>>, vector<128x576xbf16>
    %c0_1 = arith.constant 0 : index
    %c0_2 = arith.constant 0 : index
    %1 = vector.load %arg2[%c0_1, %c0_2] : memref<576x32xbf16, #tpu.memory_space<vmem>>, vector<576x32xbf16>
    %cst = arith.constant dense<0.000000e+00> : vector<128x32xf32>
    %2 = tpu.matmul %0, %1, %cst {dimension_numbers = #tpu.dot_dimension_numbers<[1], [0], [0], [1], [0, 0, 1, 1], [], []>} : vector<128x576xbf16>, vector<576x32xbf16>, vector<128x32xf32> -> vector<128x32xf32>
    %c0_3 = arith.constant 0 : index
    %c0_4 = arith.constant 0 : index
    %3 = vector.load %arg3[%c0_3, %c0_4] : memref<1x32xf32, #tpu.memory_space<vmem>>, vector<1x32xf32>
    %4 = vector.broadcast %3 : vector<1x32xf32> to vector<128x32xf32>
    %5 = arith.addf %2, %4 : vector<128x32xf32>
    %cst_5 = arith.constant 0.000000e+00 : f32
    %6 = vector.broadcast %cst_5 : f32 to vector<128x32xf32>
    %7 = arith.maximumf %5, %6 : vector<128x32xf32>
    %c0_6 = arith.constant 0 : index
    %c0_7 = arith.constant 0 : index
    %8 = vector.load %arg4[%c0_6, %c0_7] : memref<128x32xf32, #tpu.memory_space<vmem>>, vector<128x32xf32>
    tpu.vector_store %arg4[%c0_6, %c0_7], %7 {strides = array<i32>} : memref<128x32xf32, #tpu.memory_space<vmem>>, vector<128x32xf32>,
    return
  }
  func.func @transform_0(%arg0: i32) -> (i32, i32) {
    %c0_i32 = arith.constant 0 : i32
    %c0_i32_0 = arith.constant 0 : i32
    return %arg0, %c0_i32 : i32, i32
  }
  func.func @transform_1(%arg0: i32) -> (i32, i32) {
    %c0_i32 = arith.constant 0 : i32
    %c0_i32_0 = arith.constant 0 : i32
    %c0_i32_1 = arith.constant 0 : i32
    return %c0_i32, %c0_i32_0 : i32, i32
  }
  func.func @transform_2(%arg0: i32) -> (i32, i32) {
    %c0_i32 = arith.constant 0 : i32
    %c0_i32_0 = arith.constant 0 : i32
    %c0_i32_1 = arith.constant 0 : i32
    return %c0_i32, %c0_i32_0 : i32, i32
  }
  func.func @transform_3(%arg0: i32) -> (i32, i32) {
    %c0_i32 = arith.constant 0 : i32
    %c0_i32_0 = arith.constant 0 : i32
    return %arg0, %c0_i32 : i32, i32
  }
}

module attributes {stable_mosaic.version = 11 : i64} {
  func.func @_mlp_head_kernel(%arg0: memref<8x2048xbf16, #tpu.memory_space<vmem>>, %arg1: memref<2048x1024xbf16, #tpu.memory_space<vmem>>, %arg2: memref<1x1024xf32, #tpu.memory_space<vmem>>, %arg3: memref<1024x128xbf16, #tpu.memory_space<vmem>>, %arg4: memref<1x128xf32, #tpu.memory_space<vmem>>, %arg5: memref<128x128xbf16, #tpu.memory_space<vmem>>, %arg6: memref<1x128xf32, #tpu.memory_space<vmem>>, %arg7: memref<8x128xf32, #tpu.memory_space<vmem>>) attributes {dimension_semantics = [], scalar_prefetch = 0 : i64, scratch_operands = 0 : i64, tpu.core_type = #tpu.core_type<tc>} {
    %c0 = arith.constant 0 : index
    %c0_0 = arith.constant 0 : index
    %0 = vector.load %arg0[%c0, %c0_0] : memref<8x2048xbf16, #tpu.memory_space<vmem>>, vector<8x2048xbf16>
    %c0_1 = arith.constant 0 : index
    %c0_2 = arith.constant 0 : index
    %1 = vector.load %arg1[%c0_1, %c0_2] : memref<2048x1024xbf16, #tpu.memory_space<vmem>>, vector<2048x1024xbf16>
    %cst = arith.constant dense<0.000000e+00> : vector<8x1024xf32>
    %2 = tpu.matmul %0, %1, %cst {dimension_numbers = #tpu.dot_dimension_numbers<[1], [0], [0], [1], [0, 0, 1, 1], [], []>} : vector<8x2048xbf16>, vector<2048x1024xbf16>, vector<8x1024xf32> -> vector<8x1024xf32>
    %c0_3 = arith.constant 0 : index
    %c0_4 = arith.constant 0 : index
    %3 = vector.load %arg2[%c0_3, %c0_4] : memref<1x1024xf32, #tpu.memory_space<vmem>>, vector<1x1024xf32>
    %4 = vector.broadcast %3 : vector<1x1024xf32> to vector<8x1024xf32>
    %5 = arith.addf %2, %4 : vector<8x1024xf32>
    %cst_5 = arith.constant 0.000000e+00 : f32
    %6 = vector.broadcast %cst_5 : f32 to vector<8x1024xf32>
    %7 = arith.maximumf %5, %6 : vector<8x1024xf32>
    %8 = arith.truncf %7 : vector<8x1024xf32> to vector<8x1024xbf16>
    %c0_6 = arith.constant 0 : index
    %c0_7 = arith.constant 0 : index
    %9 = vector.load %arg3[%c0_6, %c0_7] : memref<1024x128xbf16, #tpu.memory_space<vmem>>, vector<1024x128xbf16>
    %cst_8 = arith.constant dense<0.000000e+00> : vector<8x128xf32>
    %10 = tpu.matmul %8, %9, %cst_8 {dimension_numbers = #tpu.dot_dimension_numbers<[1], [0], [0], [1], [0, 0, 1, 1], [], []>} : vector<8x1024xbf16>, vector<1024x128xbf16>, vector<8x128xf32> -> vector<8x128xf32>
    %c0_9 = arith.constant 0 : index
    %c0_10 = arith.constant 0 : index
    %11 = vector.load %arg4[%c0_9, %c0_10] : memref<1x128xf32, #tpu.memory_space<vmem>>, vector<1x128xf32>
    %12 = vector.broadcast %11 : vector<1x128xf32> to vector<8x128xf32>
    %13 = arith.addf %10, %12 : vector<8x128xf32>
    %cst_11 = arith.constant 0.000000e+00 : f32
    %14 = vector.broadcast %cst_11 : f32 to vector<8x128xf32>
    %15 = arith.maximumf %13, %14 : vector<8x128xf32>
    %16 = arith.truncf %15 : vector<8x128xf32> to vector<8x128xbf16>
    %c0_12 = arith.constant 0 : index
    %c0_13 = arith.constant 0 : index
    %17 = vector.load %arg5[%c0_12, %c0_13] : memref<128x128xbf16, #tpu.memory_space<vmem>>, vector<128x128xbf16>
    %cst_14 = arith.constant dense<0.000000e+00> : vector<8x128xf32>
    %18 = tpu.matmul %16, %17, %cst_14 {dimension_numbers = #tpu.dot_dimension_numbers<[1], [0], [0], [1], [0, 0, 1, 1], [], []>} : vector<8x128xbf16>, vector<128x128xbf16>, vector<8x128xf32> -> vector<8x128xf32>
    %c0_15 = arith.constant 0 : index
    %c0_16 = arith.constant 0 : index
    %19 = vector.load %arg6[%c0_15, %c0_16] : memref<1x128xf32, #tpu.memory_space<vmem>>, vector<1x128xf32>
    %20 = vector.broadcast %19 : vector<1x128xf32> to vector<8x128xf32>
    %21 = arith.addf %18, %20 : vector<8x128xf32>
    %c0_17 = arith.constant 0 : index
    %c0_18 = arith.constant 0 : index
    %22 = vector.load %arg7[%c0_17, %c0_18] : memref<8x128xf32, #tpu.memory_space<vmem>>, vector<8x128xf32>
    tpu.vector_store %arg7[%c0_17, %c0_18], %21 {strides = array<i32>} : memref<8x128xf32, #tpu.memory_space<vmem>>, vector<8x128xf32>,
    return
  }
}

</mosaic_0001>

<bundles_post_ra>
// kernel: forward.5
= control target key start
LH: loop header
LB: loop body
LE: loop exit
PB: predicated region body
PF: predicated region fallthrough
CT: control target
= control target key end

     0   :  { %s1240_s12 = smov 0   ;;  %s1529_s0 = inlined_call_operand.vmem [shape: bf16[4608,9], index: 0, kind: input, shape index: {}]   ;;  %s1530_s1 = inlined_call_operand.vmem [shape: bf16[9,16], index: 1, kind: input, shape index: {}]   ;;  %s1531_s2 = inlined_call_operand.vmem [shape: f32[1,16], index: 2, kind: input, shape index: {}]   ;;  %s1532_s3 = inlined_call_operand.vmem [shape: f32[4608,16], index: 3, kind: output, shape index: {}]  }
   0x1 LB: > { %s991_s13 = sadd.s32 4294967295, %s1217_s12   ;;  %p995_p0 = scmp.ge.s32.totalorder %s1217_s12, 1  ;;  %s1217_s12 = sphi %s1240_s12, %s13_s12  }
   0x2   : > { %p138_p1 = scmp.lt.s32.totalorder %s1217_s12, 10 }
   0x4   : > { %p139_p2 = pnand %p995_p0, %p138_p1 }
   0x5   : > { %s996_s16 = sshll.u32 (!%p139_p2), %s991_s13, 6 }
   0x6   : > { %142 = sbr.rel (%p139_p2) target bundleno = 280 (0x118), region = 32  ;;  %p163_p3 = scmp.lt.s32.totalorder (!%p139_p2), %s996_s16, 575 }
   0xb   : > { %v1178_v0 = vld [vmem:[%s1530_s1] sm:$0x1f]   ;;  %vm510_vm0 = vcmask 1043456   ;;  %vm511_vm1 = vcmask 1044480   ;;  %v1219_v1 = vmov 65535   ;;  %s1534_s16 = smov (!%p163_p3, %s996_s16), 575 }
   0xc   : > { %v512_v2 = vsel %vm510_vm0, 4294967295, %v1219_v1  ;;  %s997_s17 = sshll.u32 %s1534_s16, 2  ;;  %vm413_vm2 = vcmask 72704   ;;  %v1326_v37 = vld [vmem:[%s1531_s2] ss:$0 sm:$0xff]  ;;  %s999_s23 = sshll.u32 %s1534_s16, 3 }
   0xd   : > { %v513_v3 = vsel %vm511_vm1, %v512_v2, 0  ;;  %s1257_s20 = scalar_lea.vmem %s1529_s0, %s997_s17  ;;  %s1333_s26 = scalar_lea.vmem %s1532_s3, %s999_s23  ;;  %vm870_vm3 = vcmask 130048  }
   0xe   : > { %v515_v4 = vand.u32 %v1178_v0, %v513_v3  ;;  %v1179_v5 = vld [vmem:[%s1257_s20] sm:$0xff]   ;;  %v1181_v7 = vld [vmem:[%s1257_s20 + $0x8] sm:$0xff]   ;;  %v1183_v9 = vld [vmem:[%s1257_s20 + $0x10] sm:$0xff]  }
   0xf   : > { %v1180_v6 = vld [vmem:[%s1257_s20 + $0x80] sm:$0xff]   ;;  %1103 = vmatprep.mubr.msk.bf16.mxu0 %vm413_vm2, %v1179_v5  ;;  %v1182_v8 = vld [vmem:[%s1257_s20 + $0x88] sm:$0xff]   ;;  %v1184_v10 = vld [vmem:[%s1257_s20 + $0x90] sm:$0xff]  }
  0x10   : > { %1101 = vmatprep.subr.bf16.mxu0 %v515_v4  ;;  %1167 = vmatprep.subr.bf16.mxu1 %v515_v4  ;;  %v1185_v11 = vld [vmem:[%s1257_s20 + $0x18] sm:$0xff]   ;;  %v1187_v13 = vld [vmem:[%s1257_s20 + $0x20] sm:$0xff]   ;;  %v1189_v15 = vld [vmem:[%s1257_s20 + $0x28] sm:$0xff]  }
  0x11   : > { %1102 = vmatpush3.bf16.msra.mxu0 %v515_v4  ;;  %1168 = vmatpush3.bf16.msra.mxu1 %v515_v4  ;;  %v1186_v12 = vld [vmem:[%s1257_s20 + $0x98] sm:$0xff]   ;;  %v1188_v14 = vld [vmem:[%s1257_s20 + $0xa0] sm:$0xff]   ;;  %v1190_v16 = vld [vmem:[%s1257_s20 + $0xa8] sm:$0xff]  }
  0x12   : > { %1135 = vmatprep.mubr.msk.bf16.mxu1 %vm413_vm2, %v1180_v6  ;;  %v1191_v17 = vld [vmem:[%s1257_s20 + $0x30] sm:$0xff]   ;;  %v1193_v19 = vld [vmem:[%s1257_s20 + $0x38] sm:$0xff]   ;;  %v1195_v21 = vld [vmem:[%s1257_s20 + $0x40] sm:$0xff]  }
  0x13   : > { %v1192_v18 = vld [vmem:[%s1257_s20 + $0xb0] sm:$0xff]   ;;  %v1194_v20 = vld [vmem:[%s1257_s20 + $0xb8] sm:$0xff]   ;;  %v1196_v22 = vld [vmem:[%s1257_s20 + $0xc0] sm:$0xff]  }
  0x14   : > { %1104 = vmatmul.mubr.msk.bf16.vlgmr.msra.gmra.mxu0 %vm413_vm2, %v1181_v7  ;;  %1136 = vmatmul.mubr.msk.bf16.vlgmr.msra.gmra.mxu1 %vm413_vm2, %v1182_v8  ;;  %v1197_v23 = vld [vmem:[%s1257_s20 + $0x48] sm:$0xff]   ;;  %v1199_v25 = vld [vmem:[%s1257_s20 + $0x50] sm:$0xff]   ;;  %v1201_v27 = vld [vmem:[%s1257_s20 + $0x58] sm:$0xff]  }
  0x15   : > { %1107 = vmatprep.mubr.msk.bf16.mxu0 %vm413_vm2, %v1183_v9  ;;  %1139 = vmatprep.mubr.msk.bf16.mxu1 %vm413_vm2, %v1184_v10  ;;  %v1198_v24 = vld [vmem:[%s1257_s20 + $0xc8] sm:$0xff]   ;;  %v1200_v26 = vld [vmem:[%s1257_s20 + $0xd0] sm:$0xff]   ;;  %v1202_v28 = vld [vmem:[%s1257_s20 + $0xd8] sm:$0xff]  }
  0x16   : > { %v1203_v29 = vld [vmem:[%s1257_s20 + $0x60] sm:$0xff]   ;;  %v1205_v31 = vld [vmem:[%s1257_s20 + $0x68] sm:$0xff]   ;;  %v1207_v33 = vld [vmem:[%s1257_s20 + $0x70] sm:$0xff]  }
  0x17   : > { %v1204_v30 = vld [vmem:[%s1257_s20 + $0xe0] sm:$0xff]   ;;  %v1206_v32 = vld [vmem:[%s1257_s20 + $0xe8] sm:$0xff]   ;;  %v1208_v34 = vld [vmem:[%s1257_s20 + $0xf0] sm:$0xff]  }
  0x18   : > { %v1209_v35 = vld [vmem:[%s1257_s20 + $0x78] sm:$0xff]  }
  0x19   : > { %v1210_v36 = vld [vmem:[%s1257_s20 + $0xf8] sm:$0xff]  }
  0x1c   : > { %1108 = vmatmul.mubr.msk.bf16.gmra.mxu0 %vm413_vm2, %v1185_v11  ;;  %1140 = vmatmul.mubr.msk.bf16.gmra.mxu1 %vm413_vm2, %v1186_v12 }
  0x1d   : > { %1111 = vmatprep.mubr.msk.bf16.mxu0 %vm413_vm2, %v1187_v13  ;;  %1143 = vmatprep.mubr.msk.bf16.mxu1 %vm413_vm2, %v1188_v14 }
  0x24   : > { %1112 = vmatmul.mubr.msk.bf16.gmra.mxu0 %vm413_vm2, %v1189_v15  ;;  %1144 = vmatmul.mubr.msk.bf16.gmra.mxu1 %vm413_vm2, %v1190_v16 }
  0x25   : > { %1115 = vmatprep.mubr.msk.bf16.mxu0 %vm413_vm2, %v1191_v17  ;;  %1147 = vmatprep.mubr.msk.bf16.mxu1 %vm413_vm2, %v1192_v18 }
  0x2c   : > { %1116 = vmatmul.mubr.msk.bf16.gmra.mxu0 %vm413_vm2, %v1193_v19  ;;  %1148 = vmatmul.mubr.msk.bf16.gmra.mxu1 %vm413_vm2, %v1194_v20 }
  0x2d   : > { %1119 = vmatprep.mubr.msk.bf16.mxu0 %vm413_vm2, %v1195_v21  ;;  %1151 = vmatprep.mubr.msk.bf16.mxu1 %vm413_vm2, %v1196_v22 }
  0x34   : > { %1120 = vmatmul.mubr.msk.bf16.gmra.mxu0 %vm413_vm2, %v1197_v23  ;;  %1152 = vmatmul.mubr.msk.bf16.gmra.mxu1 %vm413_vm2, %v1198_v24 }
  0x35   : > { %1123 = vmatprep.mubr.msk.bf16.mxu0 %vm413_vm2, %v1199_v25  ;;  %1155 = vmatprep.mubr.msk.bf16.mxu1 %vm413_vm2, %v1200_v26 }
  0x3c   : > { %1124 = vmatmul.mubr.msk.bf16.gmra.mxu0 %vm413_vm2, %v1201_v27  ;;  %1156 = vmatmul.mubr.msk.bf16.gmra.mxu1 %vm413_vm2, %v1202_v28 }
  0x3d   : > { %1127 = vmatprep.mubr.msk.bf16.mxu0 %vm413_vm2, %v1203_v29  ;;  %1159 = vmatprep.mubr.msk.bf16.mxu1 %vm413_vm2, %v1204_v30 }
  0x44   : > { %1128 = vmatmul.mubr.msk.bf16.gmra.mxu0 %vm413_vm2, %v1205_v31  ;;  %1160 = vmatmul.mubr.msk.bf16.gmra.mxu1 %vm413_vm2, %v1206_v32 }
  0x45   : > { %1131 = vmatprep.mubr.msk.bf16.mxu0 %vm413_vm2, %v1207_v33  ;;  %1163 = vmatprep.mubr.msk.bf16.mxu1 %vm413_vm2, %v1208_v34 }
  0x4c   : > { %1132 = vmatmul.mubr.msk.bf16.gmra.mxu0 %vm413_vm2, %v1209_v35  ;;  %1164 = vmatmul.mubr.msk.bf16.gmra.mxu1 %vm413_vm2, %v1210_v36 }
  0xd4   : > { %v1105_v38 = vpop.f32.mrf.mxu0  ;;  %v1137_v40 = vpop.f32.mrf.mxu1 }
  0xd5   : > { %v560_v39 = vadd.f32 %v1105_v38, %v1326_v37  ;;  %v688_v41 = vadd.f32 %v1137_v40, %v1326_v37 }
  0xd6   : > { %v551_v42 = vpop.f32.mrf.mxu0  ;;  %v679_v45 = vpop.f32.mrf.mxu1 }
  0xd7   : > { %v808_v43 = vmax.f32 %v560_v39, 0.0  ;;  %v552_v44 = vadd.f32 %v1326_v37, %v551_v42  ;;  %v840_v46 = vmax.f32 %v688_v41, 0.0  ;;  %v680_v47 = vadd.f32 %v1326_v37, %v679_v45 }
  0xd8   : > { %v1106_v48 = vpop.f32.mrf.mxu0  ;;  %v1138_v51 = vpop.f32.mrf.mxu1 }
  0xd9   : > { %873 = vst.msk [vmem:[%s1333_s26 + $0x10] sm:$0xff] %vm870_vm3, %v808_v43  ;;  %v806_v49 = vmax.f32 %v552_v44, 0.0  ;;  %v563_v50 = vadd.f32 %v1106_v48, %v1326_v37  ;;  %905 = vst.msk [vmem:[%s1333_s26 + $0x110] sm:$0xff] %vm870_vm3, %v840_v46  ;;  %v838_v52 = vmax.f32 %v680_v47, 0.0  ;;  %v691_v53 = vadd.f32 %v1138_v51, %v1326_v37 }
  0xda   : > { %v554_v54 = vpop.f32.mrf.mxu0  ;;  %v682_v57 = vpop.f32.mrf.mxu1 }
  0xdb   : > { %871 = vst.msk [vmem:[%s1333_s26] sm:$0xff] %vm870_vm3, %v806_v49  ;;  %v809_v55 = vmax.f32 %v563_v50, 0.0  ;;  %v555_v56 = vadd.f32 %v1326_v37, %v554_v54  ;;  %903 = vst.msk [vmem:[%s1333_s26 + $0x100] sm:$0xff] %vm870_vm3, %v838_v52  ;;  %v841_v58 = vmax.f32 %v691_v53, 0.0  ;;  %v683_v59 = vadd.f32 %v1326_v37, %v682_v57 }
  0xdc   : > { %v1109_v60 = vpop.f32.mrf.mxu0  ;;  %v1141_v63 = vpop.f32.mrf.mxu1 }
  0xdd   : > { %874 = vst.msk [vmem:[%s1333_s26 + $0x18] sm:$0xff] %vm870_vm3, %v809_v55  ;;  %v807_v61 = vmax.f32 %v555_v56, 0.0  ;;  %v576_v62 = vadd.f32 %v1109_v60, %v1326_v37  ;;  %906 = vst.msk [vmem:[%s1333_s26 + $0x118] sm:$0xff] %vm870_vm3, %v841_v58  ;;  %v839_v0 = vmax.f32 %v683_v59, 0.0  ;;  %v704_v1 = vadd.f32 %v1141_v63, %v1326_v37 }
  0xde   : > { %v567_v2 = vpop.f32.mrf.mxu0  ;;  %v695_v5 = vpop.f32.mrf.mxu1 }
  0xdf   : > { %872 = vst.msk [vmem:[%s1333_s26 + $0x8] sm:$0xff] %vm870_vm3, %v807_v61  ;;  %v812_v3 = vmax.f32 %v576_v62, 0.0  ;;  %v568_v4 = vadd.f32 %v1326_v37, %v567_v2  ;;  %904 = vst.msk [vmem:[%s1333_s26 + $0x108] sm:$0xff] %vm870_vm3, %v839_v0  ;;  %v844_v6 = vmax.f32 %v704_v1, 0.0  ;;  %v696_v7 = vadd.f32 %v1326_v37, %v695_v5 }
  0xe0   : > { %v1110_v8 = vpop.f32.mrf.mxu0  ;;  %v1142_v11 = vpop.f32.mrf.mxu1 }
  0xe1   : > { %877 = vst.msk [vmem:[%s1333_s26 + $0x30] sm:$0xff] %vm870_vm3, %v812_v3  ;;  %v810_v9 = vmax.f32 %v568_v4, 0.0  ;;  %v579_v10 = vadd.f32 %v1110_v8, %v1326_v37  ;;  %909 = vst.msk [vmem:[%s1333_s26 + $0x130] sm:$0xff] %vm870_vm3, %v844_v6  ;;  %v842_v12 = vmax.f32 %v696_v7, 0.0  ;;  %v707_v13 = vadd.f32 %v1142_v11, %v1326_v37 }
  0xe2   : > { %v570_v14 = vpop.f32.mrf.mxu0  ;;  %v698_v17 = vpop.f32.mrf.mxu1 }
  0xe3   : > { %875 = vst.msk [vmem:[%s1333_s26 + $0x20] sm:$0xff] %vm870_vm3, %v810_v9  ;;  %v813_v15 = vmax.f32 %v579_v10, 0.0  ;;  %v571_v16 = vadd.f32 %v1326_v37, %v570_v14  ;;  %907 = vst.msk [vmem:[%s1333_s26 + $0x120] sm:$0xff] %vm870_vm3, %v842_v12  ;;  %v845_v18 = vmax.f32 %v707_v13, 0.0  ;;  %v699_v19 = vadd.f32 %v1326_v37, %v698_v17 }
  0xe4   : > { %v1113_v20 = vpop.f32.mrf.mxu0  ;;  %v1145_v23 = vpop.f32.mrf.mxu1 }
  0xe5   : > { %878 = vst.msk [vmem:[%s1333_s26 + $0x38] sm:$0xff] %vm870_vm3, %v813_v15  ;;  %v811_v21 = vmax.f32 %v571_v16, 0.0  ;;  %v592_v22 = vadd.f32 %v1113_v20, %v1326_v37  ;;  %910 = vst.msk [vmem:[%s1333_s26 + $0x138] sm:$0xff] %vm870_vm3, %v845_v18  ;;  %v843_v24 = vmax.f32 %v699_v19, 0.0  ;;  %v720_v25 = vadd.f32 %v1145_v23, %v1326_v37 }
  0xe6   : > { %v583_v26 = vpop.f32.mrf.mxu0  ;;  %v711_v29 = vpop.f32.mrf.mxu1 }
  0xe7   : > { %876 = vst.msk [vmem:[%s1333_s26 + $0x28] sm:$0xff] %vm870_vm3, %v811_v21  ;;  %v816_v27 = vmax.f32 %v592_v22, 0.0  ;;  %v584_v28 = vadd.f32 %v1326_v37, %v583_v26  ;;  %908 = vst.msk [vmem:[%s1333_s26 + $0x128] sm:$0xff] %vm870_vm3, %v843_v24  ;;  %v848_v30 = vmax.f32 %v720_v25, 0.0  ;;  %v712_v31 = vadd.f32 %v1326_v37, %v711_v29 }
  0xe8   : > { %v1114_v32 = vpop.f32.mrf.mxu0  ;;  %v1146_v35 = vpop.f32.mrf.mxu1 }
  0xe9   : > { %881 = vst.msk [vmem:[%s1333_s26 + $0x50] sm:$0xff] %vm870_vm3, %v816_v27  ;;  %v814_v33 = vmax.f32 %v584_v28, 0.0  ;;  %v595_v34 = vadd.f32 %v1114_v32, %v1326_v37  ;;  %913 = vst.msk [vmem:[%s1333_s26 + $0x150] sm:$0xff] %vm870_vm3, %v848_v30  ;;  %v846_v36 = vmax.f32 %v712_v31, 0.0  ;;  %v723_v38 = vadd.f32 %v1146_v35, %v1326_v37 }
  0xea   : > { %v586_v39 = vpop.f32.mrf.mxu0  ;;  %v714_v42 = vpop.f32.mrf.mxu1 }
  0xeb   : > { %879 = vst.msk [vmem:[%s1333_s26 + $0x40] sm:$0xff] %vm870_vm3, %v814_v33  ;;  %v817_v40 = vmax.f32 %v595_v34, 0.0  ;;  %v587_v41 = vadd.f32 %v1326_v37, %v586_v39  ;;  %911 = vst.msk [vmem:[%s1333_s26 + $0x140] sm:$0xff] %vm870_vm3, %v846_v36  ;;  %v849_v43 = vmax.f32 %v723_v38, 0.0  ;;  %v715_v44 = vadd.f32 %v1326_v37, %v714_v42 }
  0xec   : > { %v1117_v45 = vpop.f32.mrf.mxu0  ;;  %v1149_v48 = vpop.f32.mrf.mxu1 }
  0xed   : > { %882 = vst.msk [vmem:[%s1333_s26 + $0x58] sm:$0xff] %vm870_vm3, %v817_v40  ;;  %v815_v46 = vmax.f32 %v587_v41, 0.0  ;;  %v608_v47 = vadd.f32 %v1117_v45, %v1326_v37  ;;  %914 = vst.msk [vmem:[%s1333_s26 + $0x158] sm:$0xff] %vm870_vm3, %v849_v43  ;;  %v847_v49 = vmax.f32 %v715_v44, 0.0  ;;  %v736_v50 = vadd.f32 %v1149_v48, %v1326_v37 }
  0xee   : > { %v599_v51 = vpop.f32.mrf.mxu0  ;;  %v727_v54 = vpop.f32.mrf.mxu1 }
  0xef   : > { %880 = vst.msk [vmem:[%s1333_s26 + $0x48] sm:$0xff] %vm870_vm3, %v815_v46  ;;  %v820_v52 = vmax.f32 %v608_v47, 0.0  ;;  %v600_v53 = vadd.f32 %v1326_v37, %v599_v51  ;;  %912 = vst.msk [vmem:[%s1333_s26 + $0x148] sm:$0xff] %vm870_vm3, %v847_v49  ;;  %v852_v55 = vmax.f32 %v736_v50, 0.0  ;;  %v728_v56 = vadd.f32 %v1326_v37, %v727_v54 }
  0xf0   : > { %v1118_v57 = vpop.f32.mrf.mxu0  ;;  %v1150_v60 = vpop.f32.mrf.mxu1 }
  0xf1   : > { %885 = vst.msk [vmem:[%s1333_s26 + $0x70] sm:$0xff] %vm870_vm3, %v820_v52  ;;  %v818_v58 = vmax.f32 %v600_v53, 0.0  ;;  %v611_v59 = vadd.f32 %v1118_v57, %v1326_v37  ;;  %917 = vst.msk [vmem:[%s1333_s26 + $0x170] sm:$0xff] %vm870_vm3, %v852_v55  ;;  %v850_v61 = vmax.f32 %v728_v56, 0.0  ;;  %v739_v62 = vadd.f32 %v1150_v60, %v1326_v37 }
  0xf2   : > { %v602_v63 = vpop.f32.mrf.mxu0  ;;  %v730_v2 = vpop.f32.mrf.mxu1 }
  0xf3   : > { %883 = vst.msk [vmem:[%s1333_s26 + $0x60] sm:$0xff] %vm870_vm3, %v818_v58  ;;  %v821_v0 = vmax.f32 %v611_v59, 0.0  ;;  %v603_v1 = vadd.f32 %v1326_v37, %v602_v63  ;;  %915 = vst.msk [vmem:[%s1333_s26 + $0x160] sm:$0xff] %vm870_vm3, %v850_v61  ;;  %v853_v3 = vmax.f32 %v739_v62, 0.0  ;;  %v731_v4 = vadd.f32 %v1326_v37, %v730_v2 }
  0xf4   : > { %v1121_v5 = vpop.f32.mrf.mxu0  ;;  %v1153_v8 = vpop.f32.mrf.mxu1 }
  0xf5   : > { %886 = vst.msk [vmem:[%s1333_s26 + $0x78] sm:$0xff] %vm870_vm3, %v821_v0  ;;  %v819_v6 = vmax.f32 %v603_v1, 0.0  ;;  %v624_v7 = vadd.f32 %v1121_v5, %v1326_v37  ;;  %918 = vst.msk [vmem:[%s1333_s26 + $0x178] sm:$0xff] %vm870_vm3, %v853_v3  ;;  %v851_v9 = vmax.f32 %v731_v4, 0.0  ;;  %v752_v10 = vadd.f32 %v1153_v8, %v1326_v37 }
  0xf6   : > { %v615_v11 = vpop.f32.mrf.mxu0  ;;  %v743_v14 = vpop.f32.mrf.mxu1 }
  0xf7   : > { %884 = vst.msk [vmem:[%s1333_s26 + $0x68] sm:$0xff] %vm870_vm3, %v819_v6  ;;  %v824_v12 = vmax.f32 %v624_v7, 0.0  ;;  %v616_v13 = vadd.f32 %v1326_v37, %v615_v11  ;;  %916 = vst.msk [vmem:[%s1333_s26 + $0x168] sm:$0xff] %vm870_vm3, %v851_v9  ;;  %v856_v15 = vmax.f32 %v752_v10, 0.0  ;;  %v744_v16 = vadd.f32 %v1326_v37, %v743_v14 }
  0xf8   : > { %v1122_v17 = vpop.f32.mrf.mxu0  ;;  %v1154_v20 = vpop.f32.mrf.mxu1 }
  0xf9   : > { %889 = vst.msk [vmem:[%s1333_s26 + $0x90] sm:$0xff] %vm870_vm3, %v824_v12  ;;  %v822_v18 = vmax.f32 %v616_v13, 0.0  ;;  %v627_v19 = vadd.f32 %v1122_v17, %v1326_v37  ;;  %921 = vst.msk [vmem:[%s1333_s26 + $0x190] sm:$0xff] %vm870_vm3, %v856_v15  ;;  %v854_v21 = vmax.f32 %v744_v16, 0.0  ;;  %v755_v22 = vadd.f32 %v1154_v20, %v1326_v37 }
  0xfa   : > { %v618_v23 = vpop.f32.mrf.mxu0  ;;  %v746_v26 = vpop.f32.mrf.mxu1 }
  0xfb   : > { %887 = vst.msk [vmem:[%s1333_s26 + $0x80] sm:$0xff] %vm870_vm3, %v822_v18  ;;  %v825_v24 = vmax.f32 %v627_v19, 0.0  ;;  %v619_v25 = vadd.f32 %v1326_v37, %v618_v23  ;;  %919 = vst.msk [vmem:[%s1333_s26 + $0x180] sm:$0xff] %vm870_vm3, %v854_v21  ;;  %v857_v27 = vmax.f32 %v755_v22, 0.0  ;;  %v747_v28 = vadd.f32 %v1326_v37, %v746_v26 }
  0xfc   : > { %v1125_v29 = vpop.f32.mrf.mxu0  ;;  %v1157_v32 = vpop.f32.mrf.mxu1 }
  0xfd   : > { %890 = vst.msk [vmem:[%s1333_s26 + $0x98] sm:$0xff] %vm870_vm3, %v825_v24  ;;  %v823_v30 = vmax.f32 %v619_v25, 0.0  ;;  %v640_v31 = vadd.f32 %v1125_v29, %v1326_v37  ;;  %922 = vst.msk [vmem:[%s1333_s26 + $0x198] sm:$0xff] %vm870_vm3, %v857_v27  ;;  %v855_v33 = vmax.f32 %v747_v28, 0.0  ;;  %v768_v34 = vadd.f32 %v1157_v32, %v1326_v37 }
  0xfe   : > { %v631_v35 = vpop.f32.mrf.mxu0  ;;  %v759_v39 = vpop.f32.mrf.mxu1 }
  0xff   : > { %888 = vst.msk [vmem:[%s1333_s26 + $0x88] sm:$0xff] %vm870_vm3, %v823_v30  ;;  %v828_v36 = vmax.f32 %v640_v31, 0.0  ;;  %v632_v38 = vadd.f32 %v1326_v37, %v631_v35  ;;  %920 = vst.msk [vmem:[%s1333_s26 + $0x188] sm:$0xff] %vm870_vm3, %v855_v33  ;;  %v860_v40 = vmax.f32 %v768_v34, 0.0  ;;  %v760_v41 = vadd.f32 %v1326_v37, %v759_v39 }
 0x100   : > { %v1126_v42 = vpop.f32.mrf.mxu0  ;;  %v1158_v45 = vpop.f32.mrf.mxu1 }
 0x101   : > { %893 = vst.msk [vmem:[%s1333_s26 + $0xb0] sm:$0xff] %vm870_vm3, %v828_v36  ;;  %v826_v43 = vmax.f32 %v632_v38, 0.0  ;;  %v643_v44 = vadd.f32 %v1126_v42, %v1326_v37  ;;  %925 = vst.msk [vmem:[%s1333_s26 + $0x1b0] sm:$0xff] %vm870_vm3, %v860_v40  ;;  %v858_v46 = vmax.f32 %v760_v41, 0.0  ;;  %v771_v47 = vadd.f32 %v1158_v45, %v1326_v37 }
 0x102   : > { %v634_v48 = vpop.f32.mrf.mxu0  ;;  %v762_v51 = vpop.f32.mrf.mxu1 }
 0x103   : > { %891 = vst.msk [vmem:[%s1333_s26 + $0xa0] sm:$0xff] %vm870_vm3, %v826_v43  ;;  %v829_v49 = vmax.f32 %v643_v44, 0.0  ;;  %v635_v50 = vadd.f32 %v1326_v37, %v634_v48  ;;  %923 = vst.msk [vmem:[%s1333_s26 + $0x1a0] sm:$0xff] %vm870_vm3, %v858_v46  ;;  %v861_v52 = vmax.f32 %v771_v47, 0.0  ;;  %v763_v53 = vadd.f32 %v1326_v37, %v762_v51 }
 0x104   : > { %v1129_v54 = vpop.f32.mrf.mxu0  ;;  %v1161_v57 = vpop.f32.mrf.mxu1 }
 0x105   : > { %894 = vst.msk [vmem:[%s1333_s26 + $0xb8] sm:$0xff] %vm870_vm3, %v829_v49  ;;  %v827_v55 = vmax.f32 %v635_v50, 0.0  ;;  %v656_v56 = vadd.f32 %v1129_v54, %v1326_v37  ;;  %926 = vst.msk [vmem:[%s1333_s26 + $0x1b8] sm:$0xff] %vm870_vm3, %v861_v52  ;;  %v859_v58 = vmax.f32 %v763_v53, 0.0  ;;  %v784_v59 = vadd.f32 %v1161_v57, %v1326_v37 }
 0x106   : > { %v647_v60 = vpop.f32.mrf.mxu0  ;;  %v775_v63 = vpop.f32.mrf.mxu1 }
 0x107   : > { %892 = vst.msk [vmem:[%s1333_s26 + $0xa8] sm:$0xff] %vm870_vm3, %v827_v55  ;;  %v832_v61 = vmax.f32 %v656_v56, 0.0  ;;  %v648_v62 = vadd.f32 %v1326_v37, %v647_v60  ;;  %924 = vst.msk [vmem:[%s1333_s26 + $0x1a8] sm:$0xff] %vm870_vm3, %v859_v58  ;;  %v864_v0 = vmax.f32 %v784_v59, 0.0  ;;  %v776_v1 = vadd.f32 %v1326_v37, %v775_v63 }
 0x108   : > { %v1130_v2 = vpop.f32.mrf.mxu0  ;;  %v1162_v5 = vpop.f32.mrf.mxu1 }
 0x109   : > { %897 = vst.msk [vmem:[%s1333_s26 + $0xd0] sm:$0xff] %vm870_vm3, %v832_v61  ;;  %v830_v3 = vmax.f32 %v648_v62, 0.0  ;;  %v659_v4 = vadd.f32 %v1130_v2, %v1326_v37  ;;  %929 = vst.msk [vmem:[%s1333_s26 + $0x1d0] sm:$0xff] %vm870_vm3, %v864_v0  ;;  %v862_v6 = vmax.f32 %v776_v1, 0.0  ;;  %v787_v7 = vadd.f32 %v1162_v5, %v1326_v37 }
 0x10a   : > { %v650_v8 = vpop.f32.mrf.mxu0  ;;  %v778_v11 = vpop.f32.mrf.mxu1 }
 0x10b   : > { %895 = vst.msk [vmem:[%s1333_s26 + $0xc0] sm:$0xff] %vm870_vm3, %v830_v3  ;;  %v833_v9 = vmax.f32 %v659_v4, 0.0  ;;  %v651_v10 = vadd.f32 %v1326_v37, %v650_v8  ;;  %927 = vst.msk [vmem:[%s1333_s26 + $0x1c0] sm:$0xff] %vm870_vm3, %v862_v6  ;;  %v865_v12 = vmax.f32 %v787_v7, 0.0  ;;  %v779_v13 = vadd.f32 %v1326_v37, %v778_v11 }
 0x10c   : > { %v1133_v14 = vpop.f32.mrf.mxu0  ;;  %v1165_v17 = vpop.f32.mrf.mxu1 }
 0x10d   : > { %898 = vst.msk [vmem:[%s1333_s26 + $0xd8] sm:$0xff] %vm870_vm3, %v833_v9  ;;  %v831_v15 = vmax.f32 %v651_v10, 0.0  ;;  %v672_v16 = vadd.f32 %v1133_v14, %v1326_v37  ;;  %930 = vst.msk [vmem:[%s1333_s26 + $0x1d8] sm:$0xff] %vm870_vm3, %v865_v12  ;;  %v863_v18 = vmax.f32 %v779_v13, 0.0  ;;  %v800_v19 = vadd.f32 %v1165_v17, %v1326_v37 }
 0x10e   : > { %v663_v20 = vpop.f32.mrf.mxu0  ;;  %v791_v23 = vpop.f32.mrf.mxu1 }
 0x10f   : > { %896 = vst.msk [vmem:[%s1333_s26 + $0xc8] sm:$0xff] %vm870_vm3, %v831_v15  ;;  %v836_v21 = vmax.f32 %v672_v16, 0.0  ;;  %v664_v22 = vadd.f32 %v1326_v37, %v663_v20  ;;  %928 = vst.msk [vmem:[%s1333_s26 + $0x1c8] sm:$0xff] %vm870_vm3, %v863_v18  ;;  %v868_v24 = vmax.f32 %v800_v19, 0.0  ;;  %v792_v25 = vadd.f32 %v1326_v37, %v791_v23 }
 0x110   : > { %v1134_v26 = vpop.f32.mrf.mxu0  ;;  %v1166_v29 = vpop.f32.mrf.mxu1 }
 0x111   : > { %901 = vst.msk [vmem:[%s1333_s26 + $0xf0] sm:$0xff] %vm870_vm3, %v836_v21  ;;  %v834_v27 = vmax.f32 %v664_v22, 0.0  ;;  %v675_v28 = vadd.f32 %v1134_v26, %v1326_v37  ;;  %933 = vst.msk [vmem:[%s1333_s26 + $0x1f0] sm:$0xff] %vm870_vm3, %v868_v24  ;;  %v866_v30 = vmax.f32 %v792_v25, 0.0  ;;  %v803_v31 = vadd.f32 %v1166_v29, %v1326_v37 }
 0x112   : > { %v666_v32 = vpop.f32.mrf.mxu0  ;;  %v794_v35 = vpop.f32.mrf.mxu1 }
 0x113   : > { %899 = vst.msk [vmem:[%s1333_s26 + $0xe0] sm:$0xff] %vm870_vm3, %v834_v27  ;;  %v837_v33 = vmax.f32 %v675_v28, 0.0  ;;  %v667_v34 = vadd.f32 %v1326_v37, %v666_v32  ;;  %931 = vst.msk [vmem:[%s1333_s26 + $0x1e0] sm:$0xff] %vm870_vm3, %v866_v30  ;;  %v869_v36 = vmax.f32 %v803_v31, 0.0  ;;  %v795_v38 = vadd.f32 %v1326_v37, %v794_v35 }
 0x115   : > { %902 = vst.msk [vmem:[%s1333_s26 + $0xf8] sm:$0xff] %vm870_vm3, %v837_v33  ;;  %v835_v39 = vmax.f32 %v667_v34, 0.0  ;;  %934 = vst.msk [vmem:[%s1333_s26 + $0x1f8] sm:$0xff] %vm870_vm3, %v869_v36  ;;  %v867_v40 = vmax.f32 %v795_v38, 0.0 }
 0x117   : > { %900 = vst.msk [vmem:[%s1333_s26 + $0xe8] sm:$0xff] %vm870_vm3, %v835_v39  ;;  %932 = vst.msk [vmem:[%s1333_s26 + $0x1e8] sm:$0xff] %vm870_vm3, %v867_v40 }
 0x118 PF: > { %s13_s12 = sadd.s32 1, %s1217_s12  }
 0x119   : > { %p10_p4 = scmp.ge.s32.totalorder %s13_s12, 11  }
 0x11b   :  { %12 = sbr.rel (!%p10_p4) target bundleno = 1 (0x1), region = 62 }

// kernel: forward.6
= control target key start
LH: loop header
LB: loop body
LE: loop exit
PB: predicated region body
PF: predicated region fallthrough
CT: control target
= control target key end

     0   :  { %s1460_s12 = smov 0   ;;  %s1808_s0 = inlined_call_operand.vmem [shape: bf16[4096,144], index: 0, kind: input, shape index: {}]   ;;  %s1809_s1 = inlined_call_operand.vmem [shape: bf16[144,32], index: 1, kind: input, shape index: {}]   ;;  %s1810_s2 = inlined_call_operand.vmem [shape: f32[1,32], index: 2, kind: input, shape index: {}]   ;;  %s1811_s3 = inlined_call_operand.vmem [shape: f32[4096,32], index: 3, kind: output, shape index: {}]  }
   0x1 LB: > { %s1180_s13 = sadd.s32 4294967295, %s1437_s12   ;;  %p1184_p0 = scmp.ge.s32.totalorder %s1437_s12, 1  ;;  %s1437_s12 = sphi %s1460_s12, %s13_s12  }
   0x2   : > { %p139_p1 = scmp.lt.s32.totalorder %s1437_s12, 9 }
   0x4   : > { %p140_p2 = pnand %p1184_p0, %p139_p1 }
   0x5   : > { %s1185_s16 = sshll.u32 (!%p140_p2), %s1180_s13, 6 }
   0x6   : > { %143 = sbr.rel (%p140_p2) target bundleno = 370 (0x172), region = 32  ;;  %p165_p3 = scmp.lt.s32.totalorder (!%p140_p2), %s1185_s16, 511 }
   0xb   : > { %v1326_v0 = vld [vmem:[%s1809_s1 + $0x38] sm:$0xff]   ;;  %v1439_v1 = vmov 0   ;;  %v1327_v2 = vld [vmem:[%s1809_s1 + $0x30] sm:$0xff]   ;;  %s1813_s16 = smov (!%p165_p3, %s1185_s16), 511  ;;  %v1328_v3 = vld [vmem:[%s1809_s1 + $0x28] sm:$0xff]   ;;  %vm609_vm0 = vcmask 130048  }
   0xc   : > { %706 = vmatprep.subr.bf16.mxu0 %v1439_v1  ;;  %1299 = vmatprep.subr.bf16.mxu1 %v1439_v1  ;;  %s1298_s21 = sshll.u32 %s1813_s16, 3  ;;  %v1329_v4 = vld [vmem:[%s1809_s1 + $0x20] sm:$0xff]   ;;  %v1330_v7 = vld [vmem:[%s1809_s1 + $0x18] sm:$0xff]   ;;  %v1331_v8 = vld [vmem:[%s1809_s1 + $0x10] sm:$0xff]   ;;  %vm1059_vm1 = vcmask 261120  }
   0xd   : > { %707 = vmatpush1.bf16.msra.mxu0 %v1326_v0  ;;  %1308 = vmatpush1.bf16.msra.mxu1 %v1326_v0  ;;  %s1485_s24 = scalar_lea.vmem %s1808_s0, %s1298_s21  ;;  %v1332_v9 = vld [vmem:[%s1809_s1 + $0x8] sm:$0xff]   ;;  %v1333_v10 = vld [vmem:[%s1809_s1] sm:$0xff]   ;;  %s1613_s15 = scalar_lea.vmem %s1811_s3, %s1298_s21 }
   0xe   : > { %708 = vmatprep.subr.bf16.mxu0 %v1439_v1  ;;  %1300 = vmatprep.subr.bf16.mxu1 %v1439_v1  ;;  %v1337_v5 = vld [vmem:[%s1485_s24 + $0x4] ss:$8 sps:$4 sm:$0xff]   ;;  %v1335_v12 = vld [vmem:[%s1485_s24] ss:$8 sps:$4 sm:$0xff]   ;;  %v1341_v14 = vld [vmem:[%s1485_s24 + $0x14] ss:$8 sps:$4 sm:$0xff]  }
   0xf   : > { %v1340_v6 = vld [vmem:[%s1485_s24 + $0x104] ss:$8 sps:$4 sm:$0xff]   ;;  %1264 = vmatprep.mubr.msk.bf16.mxu0 %vm609_vm0, %v1337_v5  ;;  %v1338_v13 = vld [vmem:[%s1485_s24 + $0x100] ss:$8 sps:$4 sm:$0xff]   ;;  %v1343_v15 = vld [vmem:[%s1485_s24 + $0x114] ss:$8 sps:$4 sm:$0xff]  }
  0x10   : > { %1280 = vmatprep.mubr.msk.bf16.mxu1 %vm609_vm0, %v1340_v6  ;;  %v1334_v11 = vld [vmem:[%s1809_s1 + $0x40] sm:$0xff]   ;;  %v1345_v16 = vld [vmem:[%s1485_s24 + $0x10] ss:$8 sps:$4 sm:$0xff]   ;;  %v1353_v22 = vld [vmem:[%s1485_s24 + $0x34] ss:$8 sps:$4 sm:$0xff]  }
  0x11   : > { %709 = vmatpush1.bf16.msra.mxu0 %v1327_v2  ;;  %1309 = vmatpush1.bf16.msra.mxu1 %v1327_v2  ;;  %v1346_v17 = vld [vmem:[%s1485_s24 + $0x110] ss:$8 sps:$4 sm:$0xff]   ;;  %v1347_v18 = vld [vmem:[%s1485_s24 + $0x24] ss:$8 sps:$4 sm:$0xff]   ;;  %v1351_v20 = vld [vmem:[%s1485_s24 + $0x20] ss:$8 sps:$4 sm:$0xff]  }
  0x12   : > { %710 = vmatprep.subr.bf16.mxu0 %v1439_v1  ;;  %1301 = vmatprep.subr.bf16.mxu1 %v1439_v1  ;;  %v1349_v19 = vld [vmem:[%s1485_s24 + $0x124] ss:$8 sps:$4 sm:$0xff]   ;;  %v1352_v21 = vld [vmem:[%s1485_s24 + $0x120] ss:$8 sps:$4 sm:$0xff]   ;;  %v1355_v23 = vld [vmem:[%s1485_s24 + $0x134] ss:$8 sps:$4 sm:$0xff]  }
  0x13   : > { %v1357_v24 = vld [vmem:[%s1485_s24 + $0x30] ss:$8 sps:$4 sm:$0xff]   ;;  %v1359_v26 = vld [vmem:[%s1485_s24 + $0x44] ss:$8 sps:$4 sm:$0xff]   ;;  %v1363_v28 = vld [vmem:[%s1485_s24 + $0x40] ss:$8 sps:$4 sm:$0xff]  }
  0x14   : > { %v1358_v25 = vld [vmem:[%s1485_s24 + $0x130] ss:$8 sps:$4 sm:$0xff]   ;;  %v1361_v27 = vld [vmem:[%s1485_s24 + $0x144] ss:$8 sps:$4 sm:$0xff]   ;;  %v1364_v29 = vld [vmem:[%s1485_s24 + $0x140] ss:$8 sps:$4 sm:$0xff]  }
  0x15   : > { %711 = vmatpush1.bf16.msra.mxu0 %v1328_v3  ;;  %1310 = vmatpush1.bf16.msra.mxu1 %v1328_v3  ;;  %v1365_v30 = vld [vmem:[%s1485_s24 + $0x54] ss:$8 sps:$4 sm:$0xff]   ;;  %v1369_v32 = vld [vmem:[%s1485_s24 + $0x50] ss:$8 sps:$4 sm:$0xff]   ;;  %v1371_v34 = vld [vmem:[%s1485_s24 + $0x64] ss:$8 sps:$4 sm:$0xff]  }
  0x16   : > { %712 = vmatprep.subr.bf16.mxu0 %v1439_v1  ;;  %1302 = vmatprep.subr.bf16.mxu1 %v1439_v1  ;;  %v1367_v31 = vld [vmem:[%s1485_s24 + $0x154] ss:$8 sps:$4 sm:$0xff]   ;;  %v1370_v33 = vld [vmem:[%s1485_s24 + $0x150] ss:$8 sps:$4 sm:$0xff]   ;;  %v1373_v35 = vld [vmem:[%s1485_s24 + $0x164] ss:$8 sps:$4 sm:$0xff]  }
  0x17   : > { %v1375_v36 = vld [vmem:[%s1485_s24 + $0x60] ss:$8 sps:$4 sm:$0xff]   ;;  %v1377_v38 = vld [vmem:[%s1485_s24 + $0x74] ss:$8 sps:$4 sm:$0xff]   ;;  %v1381_v40 = vld [vmem:[%s1485_s24 + $0x70] ss:$8 sps:$4 sm:$0xff]  }
  0x18   : > { %v1376_v37 = vld [vmem:[%s1485_s24 + $0x160] ss:$8 sps:$4 sm:$0xff]   ;;  %v1379_v39 = vld [vmem:[%s1485_s24 + $0x174] ss:$8 sps:$4 sm:$0xff]   ;;  %v1382_v41 = vld [vmem:[%s1485_s24 + $0x170] ss:$8 sps:$4 sm:$0xff]  }
  0x19   : > { %713 = vmatpush1.bf16.msra.mxu0 %v1329_v4  ;;  %1311 = vmatpush1.bf16.msra.mxu1 %v1329_v4  ;;  %v1383_v42 = vld [vmem:[%s1485_s24 + $0x84] ss:$8 sps:$4 sm:$0xff]   ;;  %v1387_v44 = vld [vmem:[%s1485_s24 + $0x80] ss:$8 sps:$4 sm:$0xff]   ;;  %v1389_v46 = vld [vmem:[%s1485_s24 + $0x94] ss:$8 sps:$4 sm:$0xff]  }
  0x1a   : > { %714 = vmatprep.subr.bf16.mxu0 %v1439_v1  ;;  %1303 = vmatprep.subr.bf16.mxu1 %v1439_v1  ;;  %v1385_v43 = vld [vmem:[%s1485_s24 + $0x184] ss:$8 sps:$4 sm:$0xff]   ;;  %v1388_v45 = vld [vmem:[%s1485_s24 + $0x180] ss:$8 sps:$4 sm:$0xff]   ;;  %v1391_v47 = vld [vmem:[%s1485_s24 + $0x194] ss:$8 sps:$4 sm:$0xff]  }
  0x1b   : > { %v1393_v48 = vld [vmem:[%s1485_s24 + $0x90] ss:$8 sps:$4 sm:$0xff]   ;;  %v1395_v50 = vld [vmem:[%s1485_s24 + $0xa4] ss:$8 sps:$4 sm:$0xff]   ;;  %v1399_v52 = vld [vmem:[%s1485_s24 + $0xa0] ss:$8 sps:$4 sm:$0xff]  }
  0x1c   : > { %v1394_v49 = vld [vmem:[%s1485_s24 + $0x190] ss:$8 sps:$4 sm:$0xff]   ;;  %v1397_v51 = vld [vmem:[%s1485_s24 + $0x1a4] ss:$8 sps:$4 sm:$0xff]   ;;  %v1400_v53 = vld [vmem:[%s1485_s24 + $0x1a0] ss:$8 sps:$4 sm:$0xff]  }
  0x1d   : > { %715 = vmatpush1.bf16.msra.mxu0 %v1330_v7  ;;  %1312 = vmatpush1.bf16.msra.mxu1 %v1330_v7  ;;  %v1401_v54 = vld [vmem:[%s1485_s24 + $0xb4] ss:$8 sps:$4 sm:$0xff]   ;;  %v1405_v56 = vld [vmem:[%s1485_s24 + $0xb0] ss:$8 sps:$4 sm:$0xff]   ;;  %v1407_v58 = vld [vmem:[%s1485_s24 + $0xc4] ss:$8 sps:$4 sm:$0xff]  }
  0x1e   : > { %716 = vmatprep.subr.bf16.mxu0 %v1439_v1  ;;  %1304 = vmatprep.subr.bf16.mxu1 %v1439_v1  ;;  %v1403_v55 = vld [vmem:[%s1485_s24 + $0x1b4] ss:$8 sps:$4 sm:$0xff]   ;;  %v1406_v57 = vld [vmem:[%s1485_s24 + $0x1b0] ss:$8 sps:$4 sm:$0xff]   ;;  %v1409_v59 = vld [vmem:[%s1485_s24 + $0x1c4] ss:$8 sps:$4 sm:$0xff]  }
  0x1f   : > { %v1411_v60 = vld [vmem:[%s1485_s24 + $0xc0] ss:$8 sps:$4 sm:$0xff]   ;;  %v1413_v62 = vld [vmem:[%s1485_s24 + $0xd4] ss:$8 sps:$4 sm:$0xff]   ;;  %v1417_v0 = vld [vmem:[%s1485_s24 + $0xd0] ss:$8 sps:$4 sm:$0xff]  }
  0x20   : > { %v1412_v61 = vld [vmem:[%s1485_s24 + $0x1c0] ss:$8 sps:$4 sm:$0xff]   ;;  %v1415_v63 = vld [vmem:[%s1485_s24 + $0x1d4] ss:$8 sps:$4 sm:$0xff]   ;;  %v1419_v2 = vld [vmem:[%s1485_s24 + $0xe4] ss:$8 sps:$4 sm:$0xff]  }
  0x21   : > { %717 = vmatpush1.bf16.msra.mxu0 %v1331_v8  ;;  %1313 = vmatpush1.bf16.msra.mxu1 %v1331_v8  ;;  %v1421_v3 = vld [vmem:[%s1485_s24 + $0x1e4] ss:$8 sps:$4 sm:$0xff]   ;;  %v1423_v4 = vld [vmem:[%s1485_s24 + $0xe0] ss:$8 sps:$4 sm:$0xff]   ;;  %v1425_v6 = vld [vmem:[%s1485_s24 + $0xf4] ss:$8 sps:$4 sm:$0xff]  }
  0x22   : > { %718 = vmatprep.subr.bf16.mxu0 %v1439_v1  ;;  %1305 = vmatprep.subr.bf16.mxu1 %v1439_v1  ;;  %v1424_v5 = vld [vmem:[%s1485_s24 + $0x1e0] ss:$8 sps:$4 sm:$0xff]   ;;  %v1427_v7 = vld [vmem:[%s1485_s24 + $0x1f4] ss:$8 sps:$4 sm:$0xff]   ;;  %v1429_v8 = vld [vmem:[%s1485_s24 + $0xf0] ss:$8 sps:$4 sm:$0xff]  }
  0x25   : > { %719 = vmatpush1.bf16.msra.mxu0 %v1332_v9  ;;  %1314 = vmatpush1.bf16.msra.mxu1 %v1332_v9  ;;  %v1430_v9 = vld [vmem:[%s1485_s24 + $0x1f0] ss:$8 sps:$4 sm:$0xff]  }
  0x26   : > { %720 = vmatprep.subr.bf16.mxu0 %v1439_v1  ;;  %1306 = vmatprep.subr.bf16.mxu1 %v1439_v1 }
  0x29   : > { %721 = vmatpush1.bf16.msra.mxu0 %v1333_v10  ;;  %1315 = vmatpush1.bf16.msra.mxu1 %v1333_v10  ;;  %v1604_v10 = vld [vmem:[%s1810_s2] ss:$0 sm:$0xff] }
  0x2a   : > { %736 = vmatprep.subr.bf16.mxu0 %v1439_v1  ;;  %1307 = vmatprep.subr.bf16.mxu1 %v1439_v1  ;;  %v1418_v1 = vld [vmem:[%s1485_s24 + $0x1d0] ss:$8 sps:$4 sm:$0xff]  }
  0x2d   : > { %737 = vmatpush2.bf16.msra.mxu0 %v1334_v11  ;;  %1316 = vmatpush2.bf16.msra.mxu1 %v1334_v11 }
  0x30   : > { %739 = vmatmul.mubr.bf16.vlgmr.msra.gmra.mxu0 %v1335_v12  ;;  %867 = vmatmul.mubr.bf16.vlgmr.msra.gmra.mxu1 %v1338_v13 }
  0x31   : > { %1265 = vmatprep.mubr.msk.bf16.mxu0 %vm609_vm0, %v1341_v14  ;;  %1281 = vmatprep.mubr.msk.bf16.mxu1 %vm609_vm0, %v1343_v15 }
  0x38   : > { %747 = vmatmul.mubr.bf16.gmra.mxu0 %v1345_v16  ;;  %875 = vmatmul.mubr.bf16.gmra.mxu1 %v1346_v17 }
  0x39   : > { %1266 = vmatprep.mubr.msk.bf16.mxu0 %vm609_vm0, %v1347_v18  ;;  %1282 = vmatprep.mubr.msk.bf16.mxu1 %vm609_vm0, %v1349_v19 }
  0x40   : > { %755 = vmatmul.mubr.bf16.gmra.mxu0 %v1351_v20  ;;  %883 = vmatmul.mubr.bf16.gmra.mxu1 %v1352_v21 }
  0x41   : > { %1267 = vmatprep.mubr.msk.bf16.mxu0 %vm609_vm0, %v1353_v22  ;;  %1283 = vmatprep.mubr.msk.bf16.mxu1 %vm609_vm0, %v1355_v23 }
  0x48   : > { %763 = vmatmul.mubr.bf16.gmra.mxu0 %v1357_v24  ;;  %891 = vmatmul.mubr.bf16.gmra.mxu1 %v1358_v25 }
  0x49   : > { %1268 = vmatprep.mubr.msk.bf16.mxu0 %vm609_vm0, %v1359_v26  ;;  %1284 = vmatprep.mubr.msk.bf16.mxu1 %vm609_vm0, %v1361_v27 }
  0x50   : > { %771 = vmatmul.mubr.bf16.gmra.mxu0 %v1363_v28  ;;  %899 = vmatmul.mubr.bf16.gmra.mxu1 %v1364_v29 }
  0x51   : > { %1269 = vmatprep.mubr.msk.bf16.mxu0 %vm609_vm0, %v1365_v30  ;;  %1285 = vmatprep.mubr.msk.bf16.mxu1 %vm609_vm0, %v1367_v31 }
  0x58   : > { %779 = vmatmul.mubr.bf16.gmra.mxu0 %v1369_v32  ;;  %907 = vmatmul.mubr.bf16.gmra.mxu1 %v1370_v33 }
  0x59   : > { %1270 = vmatprep.mubr.msk.bf16.mxu0 %vm609_vm0, %v1371_v34  ;;  %1286 = vmatprep.mubr.msk.bf16.mxu1 %vm609_vm0, %v1373_v35 }
  0x60   : > { %787 = vmatmul.mubr.bf16.gmra.mxu0 %v1375_v36  ;;  %915 = vmatmul.mubr.bf16.gmra.mxu1 %v1376_v37 }
  0x61   : > { %1271 = vmatprep.mubr.msk.bf16.mxu0 %vm609_vm0, %v1377_v38  ;;  %1287 = vmatprep.mubr.msk.bf16.mxu1 %vm609_vm0, %v1379_v39 }
  0x68   : > { %795 = vmatmul.mubr.bf16.gmra.mxu0 %v1381_v40  ;;  %923 = vmatmul.mubr.bf16.gmra.mxu1 %v1382_v41 }
  0x69   : > { %1272 = vmatprep.mubr.msk.bf16.mxu0 %vm609_vm0, %v1383_v42  ;;  %1288 = vmatprep.mubr.msk.bf16.mxu1 %vm609_vm0, %v1385_v43 }
  0x70   : > { %803 = vmatmul.mubr.bf16.gmra.mxu0 %v1387_v44  ;;  %931 = vmatmul.mubr.bf16.gmra.mxu1 %v1388_v45 }
  0x71   : > { %1273 = vmatprep.mubr.msk.bf16.mxu0 %vm609_vm0, %v1389_v46  ;;  %1289 = vmatprep.mubr.msk.bf16.mxu1 %vm609_vm0, %v1391_v47 }
  0x78   : > { %811 = vmatmul.mubr.bf16.gmra.mxu0 %v1393_v48  ;;  %939 = vmatmul.mubr.bf16.gmra.mxu1 %v1394_v49 }
  0x79   : > { %1274 = vmatprep.mubr.msk.bf16.mxu0 %vm609_vm0, %v1395_v50  ;;  %1290 = vmatprep.mubr.msk.bf16.mxu1 %vm609_vm0, %v1397_v51 }
  0x80   : > { %819 = vmatmul.mubr.bf16.gmra.mxu0 %v1399_v52  ;;  %947 = vmatmul.mubr.bf16.gmra.mxu1 %v1400_v53 }
  0x81   : > { %1275 = vmatprep.mubr.msk.bf16.mxu0 %vm609_vm0, %v1401_v54  ;;  %1291 = vmatprep.mubr.msk.bf16.mxu1 %vm609_vm0, %v1403_v55 }
  0x88   : > { %827 = vmatmul.mubr.bf16.gmra.mxu0 %v1405_v56  ;;  %955 = vmatmul.mubr.bf16.gmra.mxu1 %v1406_v57 }
  0x89   : > { %1276 = vmatprep.mubr.msk.bf16.mxu0 %vm609_vm0, %v1407_v58  ;;  %1292 = vmatprep.mubr.msk.bf16.mxu1 %vm609_vm0, %v1409_v59 }
  0x90   : > { %835 = vmatmul.mubr.bf16.gmra.mxu0 %v1411_v60  ;;  %963 = vmatmul.mubr.bf16.gmra.mxu1 %v1412_v61 }
  0x91   : > { %1277 = vmatprep.mubr.msk.bf16.mxu0 %vm609_vm0, %v1413_v62  ;;  %1293 = vmatprep.mubr.msk.bf16.mxu1 %vm609_vm0, %v1415_v63 }
  0x98   : > { %843 = vmatmul.mubr.bf16.gmra.mxu0 %v1417_v0  ;;  %971 = vmatmul.mubr.bf16.gmra.mxu1 %v1418_v1 }
  0x99   : > { %1278 = vmatprep.mubr.msk.bf16.mxu0 %vm609_vm0, %v1419_v2  ;;  %1294 = vmatprep.mubr.msk.bf16.mxu1 %vm609_vm0, %v1421_v3 }
  0xa0   : > { %851 = vmatmul.mubr.bf16.gmra.mxu0 %v1423_v4  ;;  %979 = vmatmul.mubr.bf16.gmra.mxu1 %v1424_v5 }
  0xa1   : > { %1279 = vmatprep.mubr.msk.bf16.mxu0 %vm609_vm0, %v1425_v6  ;;  %1295 = vmatprep.mubr.msk.bf16.mxu1 %vm609_vm0, %v1427_v7 }
  0xa8   : > { %859 = vmatmul.mubr.bf16.gmra.mxu0 %v1429_v8  ;;  %987 = vmatmul.mubr.bf16.gmra.mxu1 %v1430_v9 }
  0xf0   : > { %v740_v11 = vpop.f32.mrf.mxu0  ;;  %v868_v12 = vpop.f32.mrf.mxu1 }
  0xf1   : > { %v741_v13 = vadd.f32 %v1604_v10, %v740_v11  ;;  %v869_v14 = vadd.f32 %v1604_v10, %v868_v12 }
  0xf2   : > { %v742_v15 = vpop.f32.mrf.mxu0  ;;  %v870_v16 = vpop.f32.mrf.mxu1 }
  0xf3   : > { %v995_v17 = vmax.f32 %v741_v13, 0.0  ;;  %v1027_v18 = vmax.f32 %v869_v14, 0.0 }
  0xf4   : > { %v743_v19 = vpop.f32.mrf.mxu0  ;;  %v871_v20 = vpop.f32.mrf.mxu1 }
  0xf5   : > { %1060 = vst.msk [vmem:[%s1613_s15] sm:$0xff] %vm1059_vm1, %v995_v17  ;;  %1092 = vst.msk [vmem:[%s1613_s15 + $0x100] sm:$0xff] %vm1059_vm1, %v1027_v18  ;;  %v744_v21 = vadd.f32 %v1604_v10, %v743_v19  ;;  %v872_v22 = vadd.f32 %v1604_v10, %v871_v20 }
  0xf6   : > { %v745_v23 = vpop.f32.mrf.mxu0  ;;  %v873_v24 = vpop.f32.mrf.mxu1 }
  0xf7   : > { %v996_v25 = vmax.f32 %v744_v21, 0.0  ;;  %v1028_v26 = vmax.f32 %v872_v22, 0.0 }
  0xf8   : > { %v748_v27 = vpop.f32.mrf.mxu0  ;;  %v876_v28 = vpop.f32.mrf.mxu1 }
  0xf9   : > { %1061 = vst.msk [vmem:[%s1613_s15 + $0x8] sm:$0xff] %vm1059_vm1, %v996_v25  ;;  %1093 = vst.msk [vmem:[%s1613_s15 + $0x108] sm:$0xff] %vm1059_vm1, %v1028_v26  ;;  %v749_v29 = vadd.f32 %v1604_v10, %v748_v27  ;;  %v877_v30 = vadd.f32 %v1604_v10, %v876_v28 }
  0xfa   : > { %v750_v31 = vpop.f32.mrf.mxu0  ;;  %v878_v32 = vpop.f32.mrf.mxu1 }
  0xfb   : > { %v997_v33 = vmax.f32 %v749_v29, 0.0  ;;  %v1029_v34 = vmax.f32 %v877_v30, 0.0 }
  0xfc   : > { %v751_v35 = vpop.f32.mrf.mxu0  ;;  %v879_v36 = vpop.f32.mrf.mxu1 }
  0xfd   : > { %1062 = vst.msk [vmem:[%s1613_s15 + $0x10] sm:$0xff] %vm1059_vm1, %v997_v33  ;;  %1094 = vst.msk [vmem:[%s1613_s15 + $0x110] sm:$0xff] %vm1059_vm1, %v1029_v34  ;;  %v752_v37 = vadd.f32 %v1604_v10, %v751_v35  ;;  %v880_v38 = vadd.f32 %v1604_v10, %v879_v36 }
  0xfe   : > { %v753_v39 = vpop.f32.mrf.mxu0  ;;  %v881_v40 = vpop.f32.mrf.mxu1 }
  0xff   : > { %v998_v41 = vmax.f32 %v752_v37, 0.0  ;;  %v1030_v42 = vmax.f32 %v880_v38, 0.0 }
 0x100   : > { %v756_v43 = vpop.f32.mrf.mxu0  ;;  %v884_v44 = vpop.f32.mrf.mxu1 }
 0x101   : > { %1063 = vst.msk [vmem:[%s1613_s15 + $0x18] sm:$0xff] %vm1059_vm1, %v998_v41  ;;  %1095 = vst.msk [vmem:[%s1613_s15 + $0x118] sm:$0xff] %vm1059_vm1, %v1030_v42  ;;  %v757_v45 = vadd.f32 %v1604_v10, %v756_v43  ;;  %v885_v46 = vadd.f32 %v1604_v10, %v884_v44 }
 0x102   : > { %v758_v47 = vpop.f32.mrf.mxu0  ;;  %v886_v48 = vpop.f32.mrf.mxu1 }
 0x103   : > { %v999_v49 = vmax.f32 %v757_v45, 0.0  ;;  %v1031_v50 = vmax.f32 %v885_v46, 0.0 }
 0x104   : > { %v759_v51 = vpop.f32.mrf.mxu0  ;;  %v887_v52 = vpop.f32.mrf.mxu1 }
 0x105   : > { %1064 = vst.msk [vmem:[%s1613_s15 + $0x20] sm:$0xff] %vm1059_vm1, %v999_v49  ;;  %1096 = vst.msk [vmem:[%s1613_s15 + $0x120] sm:$0xff] %vm1059_vm1, %v1031_v50  ;;  %v760_v53 = vadd.f32 %v1604_v10, %v759_v51  ;;  %v888_v54 = vadd.f32 %v1604_v10, %v887_v52 }
 0x106   : > { %v761_v55 = vpop.f32.mrf.mxu0  ;;  %v889_v56 = vpop.f32.mrf.mxu1 }
 0x107   : > { %v1000_v57 = vmax.f32 %v760_v53, 0.0  ;;  %v1032_v58 = vmax.f32 %v888_v54, 0.0 }
 0x108   : > { %v764_v59 = vpop.f32.mrf.mxu0  ;;  %v892_v60 = vpop.f32.mrf.mxu1 }
 0x109   : > { %1065 = vst.msk [vmem:[%s1613_s15 + $0x28] sm:$0xff] %vm1059_vm1, %v1000_v57  ;;  %1097 = vst.msk [vmem:[%s1613_s15 + $0x128] sm:$0xff] %vm1059_vm1, %v1032_v58  ;;  %v765_v61 = vadd.f32 %v1604_v10, %v764_v59  ;;  %v893_v62 = vadd.f32 %v1604_v10, %v892_v60 }
 0x10a   : > { %v766_v63 = vpop.f32.mrf.mxu0  ;;  %v894_v0 = vpop.f32.mrf.mxu1 }
 0x10b   : > { %v1001_v1 = vmax.f32 %v765_v61, 0.0  ;;  %v1033_v2 = vmax.f32 %v893_v62, 0.0 }
 0x10c   : > { %v767_v3 = vpop.f32.mrf.mxu0  ;;  %v895_v4 = vpop.f32.mrf.mxu1 }
 0x10d   : > { %1066 = vst.msk [vmem:[%s1613_s15 + $0x30] sm:$0xff] %vm1059_vm1, %v1001_v1  ;;  %1098 = vst.msk [vmem:[%s1613_s15 + $0x130] sm:$0xff] %vm1059_vm1, %v1033_v2  ;;  %v768_v5 = vadd.f32 %v1604_v10, %v767_v3  ;;  %v896_v6 = vadd.f32 %v1604_v10, %v895_v4 }
 0x10e   : > { %v769_v7 = vpop.f32.mrf.mxu0  ;;  %v897_v8 = vpop.f32.mrf.mxu1 }
 0x10f   : > { %v1002_v9 = vmax.f32 %v768_v5, 0.0  ;;  %v1034_v11 = vmax.f32 %v896_v6, 0.0 }
 0x110   : > { %v772_v12 = vpop.f32.mrf.mxu0  ;;  %v900_v13 = vpop.f32.mrf.mxu1 }
 0x111   : > { %1067 = vst.msk [vmem:[%s1613_s15 + $0x38] sm:$0xff] %vm1059_vm1, %v1002_v9  ;;  %1099 = vst.msk [vmem:[%s1613_s15 + $0x138] sm:$0xff] %vm1059_vm1, %v1034_v11  ;;  %v773_v14 = vadd.f32 %v1604_v10, %v772_v12  ;;  %v901_v15 = vadd.f32 %v1604_v10, %v900_v13 }
 0x112   : > { %v774_v16 = vpop.f32.mrf.mxu0  ;;  %v902_v17 = vpop.f32.mrf.mxu1 }
 0x113   : > { %v1003_v18 = vmax.f32 %v773_v14, 0.0  ;;  %v1035_v19 = vmax.f32 %v901_v15, 0.0 }
 0x114   : > { %v775_v20 = vpop.f32.mrf.mxu0  ;;  %v903_v21 = vpop.f32.mrf.mxu1 }
 0x115   : > { %1068 = vst.msk [vmem:[%s1613_s15 + $0x40] sm:$0xff] %vm1059_vm1, %v1003_v18  ;;  %1100 = vst.msk [vmem:[%s1613_s15 + $0x140] sm:$0xff] %vm1059_vm1, %v1035_v19  ;;  %v776_v22 = vadd.f32 %v1604_v10, %v775_v20  ;;  %v904_v23 = vadd.f32 %v1604_v10, %v903_v21 }
 0x116   : > { %v777_v24 = vpop.f32.mrf.mxu0  ;;  %v905_v25 = vpop.f32.mrf.mxu1 }
 0x117   : > { %v1004_v26 = vmax.f32 %v776_v22, 0.0  ;;  %v1036_v27 = vmax.f32 %v904_v23, 0.0 }
 0x118   : > { %v780_v28 = vpop.f32.mrf.mxu0  ;;  %v908_v29 = vpop.f32.mrf.mxu1 }
 0x119   : > { %1069 = vst.msk [vmem:[%s1613_s15 + $0x48] sm:$0xff] %vm1059_vm1, %v1004_v26  ;;  %1101 = vst.msk [vmem:[%s1613_s15 + $0x148] sm:$0xff] %vm1059_vm1, %v1036_v27  ;;  %v781_v30 = vadd.f32 %v1604_v10, %v780_v28  ;;  %v909_v31 = vadd.f32 %v1604_v10, %v908_v29 }
 0x11a   : > { %v782_v32 = vpop.f32.mrf.mxu0  ;;  %v910_v33 = vpop.f32.mrf.mxu1 }
 0x11b   : > { %v1005_v34 = vmax.f32 %v781_v30, 0.0  ;;  %v1037_v35 = vmax.f32 %v909_v31, 0.0 }
 0x11c   : > { %v783_v36 = vpop.f32.mrf.mxu0  ;;  %v911_v37 = vpop.f32.mrf.mxu1 }
 0x11d   : > { %1070 = vst.msk [vmem:[%s1613_s15 + $0x50] sm:$0xff] %vm1059_vm1, %v1005_v34  ;;  %1102 = vst.msk [vmem:[%s1613_s15 + $0x150] sm:$0xff] %vm1059_vm1, %v1037_v35  ;;  %v784_v38 = vadd.f32 %v1604_v10, %v783_v36  ;;  %v912_v39 = vadd.f32 %v1604_v10, %v911_v37 }
 0x11e   : > { %v785_v40 = vpop.f32.mrf.mxu0  ;;  %v913_v41 = vpop.f32.mrf.mxu1 }
 0x11f   : > { %v1006_v42 = vmax.f32 %v784_v38, 0.0  ;;  %v1038_v43 = vmax.f32 %v912_v39, 0.0 }
 0x120   : > { %v788_v44 = vpop.f32.mrf.mxu0  ;;  %v916_v45 = vpop.f32.mrf.mxu1 }
 0x121   : > { %1071 = vst.msk [vmem:[%s1613_s15 + $0x58] sm:$0xff] %vm1059_vm1, %v1006_v42  ;;  %1103 = vst.msk [vmem:[%s1613_s15 + $0x158] sm:$0xff] %vm1059_vm1, %v1038_v43  ;;  %v789_v46 = vadd.f32 %v1604_v10, %v788_v44  ;;  %v917_v47 = vadd.f32 %v1604_v10, %v916_v45 }
 0x122   : > { %v790_v48 = vpop.f32.mrf.mxu0  ;;  %v918_v49 = vpop.f32.mrf.mxu1 }
 0x123   : > { %v1007_v50 = vmax.f32 %v789_v46, 0.0  ;;  %v1039_v51 = vmax.f32 %v917_v47, 0.0 }
 0x124   : > { %v791_v52 = vpop.f32.mrf.mxu0  ;;  %v919_v53 = vpop.f32.mrf.mxu1 }
 0x125   : > { %1072 = vst.msk [vmem:[%s1613_s15 + $0x60] sm:$0xff] %vm1059_vm1, %v1007_v50  ;;  %1104 = vst.msk [vmem:[%s1613_s15 + $0x160] sm:$0xff] %vm1059_vm1, %v1039_v51  ;;  %v792_v54 = vadd.f32 %v1604_v10, %v791_v52  ;;  %v920_v55 = vadd.f32 %v1604_v10, %v919_v53 }
 0x126   : > { %v793_v56 = vpop.f32.mrf.mxu0  ;;  %v921_v57 = vpop.f32.mrf.mxu1 }
 0x127   : > { %v1008_v58 = vmax.f32 %v792_v54, 0.0  ;;  %v1040_v59 = vmax.f32 %v920_v55, 0.0 }
 0x128   : > { %v796_v60 = vpop.f32.mrf.mxu0  ;;  %v924_v61 = vpop.f32.mrf.mxu1 }
 0x129   : > { %1073 = vst.msk [vmem:[%s1613_s15 + $0x68] sm:$0xff] %vm1059_vm1, %v1008_v58  ;;  %1105 = vst.msk [vmem:[%s1613_s15 + $0x168] sm:$0xff] %vm1059_vm1, %v1040_v59  ;;  %v797_v62 = vadd.f32 %v1604_v10, %v796_v60  ;;  %v925_v63 = vadd.f32 %v1604_v10, %v924_v61 }
 0x12a   : > { %v798_v0 = vpop.f32.mrf.mxu0  ;;  %v926_v1 = vpop.f32.mrf.mxu1 }
 0x12b   : > { %v1009_v2 = vmax.f32 %v797_v62, 0.0  ;;  %v1041_v3 = vmax.f32 %v925_v63, 0.0 }
 0x12c   : > { %v799_v4 = vpop.f32.mrf.mxu0  ;;  %v927_v5 = vpop.f32.mrf.mxu1 }
 0x12d   : > { %1074 = vst.msk [vmem:[%s1613_s15 + $0x70] sm:$0xff] %vm1059_vm1, %v1009_v2  ;;  %1106 = vst.msk [vmem:[%s1613_s15 + $0x170] sm:$0xff] %vm1059_vm1, %v1041_v3  ;;  %v800_v6 = vadd.f32 %v1604_v10, %v799_v4  ;;  %v928_v7 = vadd.f32 %v1604_v10, %v927_v5 }
 0x12e   : > { %v801_v8 = vpop.f32.mrf.mxu0  ;;  %v929_v9 = vpop.f32.mrf.mxu1 }
 0x12f   : > { %v1010_v11 = vmax.f32 %v800_v6, 0.0  ;;  %v1042_v12 = vmax.f32 %v928_v7, 0.0 }
 0x130   : > { %v804_v13 = vpop.f32.mrf.mxu0  ;;  %v932_v14 = vpop.f32.mrf.mxu1 }
 0x131   : > { %1075 = vst.msk [vmem:[%s1613_s15 + $0x78] sm:$0xff] %vm1059_vm1, %v1010_v11  ;;  %1107 = vst.msk [vmem:[%s1613_s15 + $0x178] sm:$0xff] %vm1059_vm1, %v1042_v12  ;;  %v805_v15 = vadd.f32 %v1604_v10, %v804_v13  ;;  %v933_v16 = vadd.f32 %v1604_v10, %v932_v14 }
 0x132   : > { %v806_v17 = vpop.f32.mrf.mxu0  ;;  %v934_v18 = vpop.f32.mrf.mxu1 }
 0x133   : > { %v1011_v19 = vmax.f32 %v805_v15, 0.0  ;;  %v1043_v20 = vmax.f32 %v933_v16, 0.0 }
 0x134   : > { %v807_v21 = vpop.f32.mrf.mxu0  ;;  %v935_v22 = vpop.f32.mrf.mxu1 }
 0x135   : > { %1076 = vst.msk [vmem:[%s1613_s15 + $0x80] sm:$0xff] %vm1059_vm1, %v1011_v19  ;;  %1108 = vst.msk [vmem:[%s1613_s15 + $0x180] sm:$0xff] %vm1059_vm1, %v1043_v20  ;;  %v808_v23 = vadd.f32 %v1604_v10, %v807_v21  ;;  %v936_v24 = vadd.f32 %v1604_v10, %v935_v22 }
 0x136   : > { %v809_v25 = vpop.f32.mrf.mxu0  ;;  %v937_v26 = vpop.f32.mrf.mxu1 }
 0x137   : > { %v1012_v27 = vmax.f32 %v808_v23, 0.0  ;;  %v1044_v28 = vmax.f32 %v936_v24, 0.0 }
 0x138   : > { %v812_v29 = vpop.f32.mrf.mxu0  ;;  %v940_v30 = vpop.f32.mrf.mxu1 }
 0x139   : > { %1077 = vst.msk [vmem:[%s1613_s15 + $0x88] sm:$0xff] %vm1059_vm1, %v1012_v27  ;;  %1109 = vst.msk [vmem:[%s1613_s15 + $0x188] sm:$0xff] %vm1059_vm1, %v1044_v28  ;;  %v813_v31 = vadd.f32 %v1604_v10, %v812_v29  ;;  %v941_v32 = vadd.f32 %v1604_v10, %v940_v30 }
 0x13a   : > { %v814_v33 = vpop.f32.mrf.mxu0  ;;  %v942_v34 = vpop.f32.mrf.mxu1 }
 0x13b   : > { %v1013_v35 = vmax.f32 %v813_v31, 0.0  ;;  %v1045_v36 = vmax.f32 %v941_v32, 0.0 }
 0x13c   : > { %v815_v37 = vpop.f32.mrf.mxu0  ;;  %v943_v38 = vpop.f32.mrf.mxu1 }
 0x13d   : > { %1078 = vst.msk [vmem:[%s1613_s15 + $0x90] sm:$0xff] %vm1059_vm1, %v1013_v35  ;;  %1110 = vst.msk [vmem:[%s1613_s15 + $0x190] sm:$0xff] %vm1059_vm1, %v1045_v36  ;;  %v816_v39 = vadd.f32 %v1604_v10, %v815_v37  ;;  %v944_v40 = vadd.f32 %v1604_v10, %v943_v38 }
 0x13e   : > { %v817_v41 = vpop.f32.mrf.mxu0  ;;  %v945_v42 = vpop.f32.mrf.mxu1 }
 0x13f   : > { %v1014_v43 = vmax.f32 %v816_v39, 0.0  ;;  %v1046_v44 = vmax.f32 %v944_v40, 0.0 }
 0x140   : > { %v820_v45 = vpop.f32.mrf.mxu0  ;;  %v948_v46 = vpop.f32.mrf.mxu1 }
 0x141   : > { %1079 = vst.msk [vmem:[%s1613_s15 + $0x98] sm:$0xff] %vm1059_vm1, %v1014_v43  ;;  %1111 = vst.msk [vmem:[%s1613_s15 + $0x198] sm:$0xff] %vm1059_vm1, %v1046_v44  ;;  %v821_v47 = vadd.f32 %v1604_v10, %v820_v45  ;;  %v949_v48 = vadd.f32 %v1604_v10, %v948_v46 }
 0x142   : > { %v822_v49 = vpop.f32.mrf.mxu0  ;;  %v950_v50 = vpop.f32.mrf.mxu1 }
 0x143   : > { %v1015_v51 = vmax.f32 %v821_v47, 0.0  ;;  %v1047_v52 = vmax.f32 %v949_v48, 0.0 }
 0x144   : > { %v823_v53 = vpop.f32.mrf.mxu0  ;;  %v951_v54 = vpop.f32.mrf.mxu1 }
 0x145   : > { %1080 = vst.msk [vmem:[%s1613_s15 + $0xa0] sm:$0xff] %vm1059_vm1, %v1015_v51  ;;  %1112 = vst.msk [vmem:[%s1613_s15 + $0x1a0] sm:$0xff] %vm1059_vm1, %v1047_v52  ;;  %v824_v55 = vadd.f32 %v1604_v10, %v823_v53  ;;  %v952_v56 = vadd.f32 %v1604_v10, %v951_v54 }
 0x146   : > { %v825_v57 = vpop.f32.mrf.mxu0  ;;  %v953_v58 = vpop.f32.mrf.mxu1 }
 0x147   : > { %v1016_v59 = vmax.f32 %v824_v55, 0.0  ;;  %v1048_v60 = vmax.f32 %v952_v56, 0.0 }
 0x148   : > { %v828_v61 = vpop.f32.mrf.mxu0  ;;  %v956_v62 = vpop.f32.mrf.mxu1 }
 0x149   : > { %1081 = vst.msk [vmem:[%s1613_s15 + $0xa8] sm:$0xff] %vm1059_vm1, %v1016_v59  ;;  %1113 = vst.msk [vmem:[%s1613_s15 + $0x1a8] sm:$0xff] %vm1059_vm1, %v1048_v60  ;;  %v829_v63 = vadd.f32 %v1604_v10, %v828_v61  ;;  %v957_v0 = vadd.f32 %v1604_v10, %v956_v62 }
 0x14a   : > { %v830_v1 = vpop.f32.mrf.mxu0  ;;  %v958_v2 = vpop.f32.mrf.mxu1 }
 0x14b   : > { %v1017_v3 = vmax.f32 %v829_v63, 0.0  ;;  %v1049_v4 = vmax.f32 %v957_v0, 0.0 }
 0x14c   : > { %v831_v5 = vpop.f32.mrf.mxu0  ;;  %v959_v6 = vpop.f32.mrf.mxu1 }
 0x14d   : > { %1082 = vst.msk [vmem:[%s1613_s15 + $0xb0] sm:$0xff] %vm1059_vm1, %v1017_v3  ;;  %1114 = vst.msk [vmem:[%s1613_s15 + $0x1b0] sm:$0xff] %vm1059_vm1, %v1049_v4  ;;  %v832_v7 = vadd.f32 %v1604_v10, %v831_v5  ;;  %v960_v8 = vadd.f32 %v1604_v10, %v959_v6 }
 0x14e   : > { %v833_v9 = vpop.f32.mrf.mxu0  ;;  %v961_v11 = vpop.f32.mrf.mxu1 }
 0x14f   : > { %v1018_v12 = vmax.f32 %v832_v7, 0.0  ;;  %v1050_v13 = vmax.f32 %v960_v8, 0.0 }
 0x150   : > { %v836_v14 = vpop.f32.mrf.mxu0  ;;  %v964_v15 = vpop.f32.mrf.mxu1 }
 0x151   : > { %1083 = vst.msk [vmem:[%s1613_s15 + $0xb8] sm:$0xff] %vm1059_vm1, %v1018_v12  ;;  %1115 = vst.msk [vmem:[%s1613_s15 + $0x1b8] sm:$0xff] %vm1059_vm1, %v1050_v13  ;;  %v837_v16 = vadd.f32 %v1604_v10, %v836_v14  ;;  %v965_v17 = vadd.f32 %v1604_v10, %v964_v15 }
 0x152   : > { %v838_v18 = vpop.f32.mrf.mxu0  ;;  %v966_v19 = vpop.f32.mrf.mxu1 }
 0x153   : > { %v1019_v20 = vmax.f32 %v837_v16, 0.0  ;;  %v1051_v21 = vmax.f32 %v965_v17, 0.0 }
 0x154   : > { %v839_v22 = vpop.f32.mrf.mxu0  ;;  %v967_v23 = vpop.f32.mrf.mxu1 }
 0x155   : > { %1084 = vst.msk [vmem:[%s1613_s15 + $0xc0] sm:$0xff] %vm1059_vm1, %v1019_v20  ;;  %1116 = vst.msk [vmem:[%s1613_s15 + $0x1c0] sm:$0xff] %vm1059_vm1, %v1051_v21  ;;  %v840_v24 = vadd.f32 %v1604_v10, %v839_v22  ;;  %v968_v25 = vadd.f32 %v1604_v10, %v967_v23 }
 0x156   : > { %v841_v26 = vpop.f32.mrf.mxu0  ;;  %v969_v27 = vpop.f32.mrf.mxu1 }
 0x157   : > { %v1020_v28 = vmax.f32 %v840_v24, 0.0  ;;  %v1052_v29 = vmax.f32 %v968_v25, 0.0 }
 0x158   : > { %v844_v30 = vpop.f32.mrf.mxu0  ;;  %v972_v31 = vpop.f32.mrf.mxu1 }
 0x159   : > { %1085 = vst.msk [vmem:[%s1613_s15 + $0xc8] sm:$0xff] %vm1059_vm1, %v1020_v28  ;;  %1117 = vst.msk [vmem:[%s1613_s15 + $0x1c8] sm:$0xff] %vm1059_vm1, %v1052_v29  ;;  %v845_v32 = vadd.f32 %v1604_v10, %v844_v30  ;;  %v973_v33 = vadd.f32 %v1604_v10, %v972_v31 }
 0x15a   : > { %v846_v34 = vpop.f32.mrf.mxu0  ;;  %v974_v35 = vpop.f32.mrf.mxu1 }
 0x15b   : > { %v1021_v36 = vmax.f32 %v845_v32, 0.0  ;;  %v1053_v37 = vmax.f32 %v973_v33, 0.0 }
 0x15c   : > { %v847_v38 = vpop.f32.mrf.mxu0  ;;  %v975_v39 = vpop.f32.mrf.mxu1 }
 0x15d   : > { %1086 = vst.msk [vmem:[%s1613_s15 + $0xd0] sm:$0xff] %vm1059_vm1, %v1021_v36  ;;  %1118 = vst.msk [vmem:[%s1613_s15 + $0x1d0] sm:$0xff] %vm1059_vm1, %v1053_v37  ;;  %v848_v40 = vadd.f32 %v1604_v10, %v847_v38  ;;  %v976_v41 = vadd.f32 %v1604_v10, %v975_v39 }
 0x15e   : > { %v849_v42 = vpop.f32.mrf.mxu0  ;;  %v977_v43 = vpop.f32.mrf.mxu1 }
 0x15f   : > { %v1022_v44 = vmax.f32 %v848_v40, 0.0  ;;  %v1054_v45 = vmax.f32 %v976_v41, 0.0 }
 0x160   : > { %v852_v46 = vpop.f32.mrf.mxu0  ;;  %v980_v47 = vpop.f32.mrf.mxu1 }
 0x161   : > { %1087 = vst.msk [vmem:[%s1613_s15 + $0xd8] sm:$0xff] %vm1059_vm1, %v1022_v44  ;;  %1119 = vst.msk [vmem:[%s1613_s15 + $0x1d8] sm:$0xff] %vm1059_vm1, %v1054_v45  ;;  %v853_v48 = vadd.f32 %v1604_v10, %v852_v46  ;;  %v981_v49 = vadd.f32 %v1604_v10, %v980_v47 }
 0x162   : > { %v854_v50 = vpop.f32.mrf.mxu0  ;;  %v982_v51 = vpop.f32.mrf.mxu1 }
 0x163   : > { %v1023_v52 = vmax.f32 %v853_v48, 0.0  ;;  %v1055_v53 = vmax.f32 %v981_v49, 0.0 }
 0x164   : > { %v855_v54 = vpop.f32.mrf.mxu0  ;;  %v983_v55 = vpop.f32.mrf.mxu1 }
 0x165   : > { %1088 = vst.msk [vmem:[%s1613_s15 + $0xe0] sm:$0xff] %vm1059_vm1, %v1023_v52  ;;  %1120 = vst.msk [vmem:[%s1613_s15 + $0x1e0] sm:$0xff] %vm1059_vm1, %v1055_v53  ;;  %v856_v56 = vadd.f32 %v1604_v10, %v855_v54  ;;  %v984_v57 = vadd.f32 %v1604_v10, %v983_v55 }
 0x166   : > { %v857_v58 = vpop.f32.mrf.mxu0  ;;  %v985_v59 = vpop.f32.mrf.mxu1 }
 0x167   : > { %v1024_v60 = vmax.f32 %v856_v56, 0.0  ;;  %v1056_v61 = vmax.f32 %v984_v57, 0.0 }
 0x168   : > { %v860_v62 = vpop.f32.mrf.mxu0  ;;  %v988_v63 = vpop.f32.mrf.mxu1 }
 0x169   : > { %1089 = vst.msk [vmem:[%s1613_s15 + $0xe8] sm:$0xff] %vm1059_vm1, %v1024_v60  ;;  %1121 = vst.msk [vmem:[%s1613_s15 + $0x1e8] sm:$0xff] %vm1059_vm1, %v1056_v61  ;;  %v861_v0 = vadd.f32 %v1604_v10, %v860_v62  ;;  %v989_v1 = vadd.f32 %v1604_v10, %v988_v63 }
 0x16a   : > { %v862_v2 = vpop.f32.mrf.mxu0  ;;  %v990_v3 = vpop.f32.mrf.mxu1 }
 0x16b   : > { %v1025_v4 = vmax.f32 %v861_v0, 0.0  ;;  %v1057_v5 = vmax.f32 %v989_v1, 0.0 }
 0x16c   : > { %v863_v6 = vpop.f32.mrf.mxu0  ;;  %v991_v7 = vpop.f32.mrf.mxu1 }
 0x16d   : > { %1090 = vst.msk [vmem:[%s1613_s15 + $0xf0] sm:$0xff] %vm1059_vm1, %v1025_v4  ;;  %1122 = vst.msk [vmem:[%s1613_s15 + $0x1f0] sm:$0xff] %vm1059_vm1, %v1057_v5  ;;  %v864_v8 = vadd.f32 %v1604_v10, %v863_v6  ;;  %v992_v9 = vadd.f32 %v1604_v10, %v991_v7 }
 0x16e   : > { %v865_v11 = vpop.f32.mrf.mxu0  ;;  %v993_v12 = vpop.f32.mrf.mxu1 }
 0x16f   : > { %v1026_v13 = vmax.f32 %v864_v8, 0.0  ;;  %v1058_v14 = vmax.f32 %v992_v9, 0.0 }
 0x171   : > { %1091 = vst.msk [vmem:[%s1613_s15 + $0xf8] sm:$0xff] %vm1059_vm1, %v1026_v13  ;;  %1123 = vst.msk [vmem:[%s1613_s15 + $0x1f8] sm:$0xff] %vm1059_vm1, %v1058_v14 }
 0x172 PF: > { %s13_s12 = sadd.s32 1, %s1437_s12  }
 0x173   : > { %p10_p4 = scmp.ge.s32.totalorder %s13_s12, 10  }
 0x175   :  { %12 = sbr.rel (!%p10_p4) target bundleno = 1 (0x1), region = 62 }

// kernel: forward.7
= control target key start
LH: loop header
LB: loop body
LE: loop exit
PB: predicated region body
PF: predicated region fallthrough
CT: control target
= control target key end

     0   :  { %s2274_s12 = smov 0   ;;  %s2836_s0 = inlined_call_operand.vmem [shape: bf16[1024,288], index: 0, kind: input, shape index: {}]   ;;  %s2837_s1 = inlined_call_operand.vmem [shape: bf16[288,64], index: 1, kind: input, shape index: {}]   ;;  %s2838_s2 = inlined_call_operand.vmem [shape: f32[1,64], index: 2, kind: input, shape index: {}]   ;;  %s2839_s3 = inlined_call_operand.vmem [shape: f32[1024,64], index: 3, kind: output, shape index: {}]  }
   0x1 LB: > { %s1797_s13 = sadd.s32 4294967295, %s2251_s12   ;;  %p1801_p0 = scmp.ge.s32.totalorder %s2251_s12, 1  ;;  %s2251_s12 = sphi %s2274_s12, %s13_s12  }
   0x2   : > { %p139_p1 = scmp.lt.s32.totalorder %s2251_s12, 3 }
   0x4   : > { %p140_p2 = pnand %p1801_p0, %p139_p1 }
   0x5   : > { %s1802_s16 = sshll.u32 (!%p140_p2), %s1797_s13, 6 }
   0x6   : > { %143 = sbr.rel (%p140_p2) target bundleno = 464 (0x1d0), region = 32  ;;  %p165_p3 = scmp.lt.s32.totalorder (!%p140_p2), %s1802_s16, 127 }
   0xb   : > { %v2099_v0 = vld [vmem:[%s2837_s1 + $0x38] sm:$0xff]   ;;  %v2253_v1 = vmov 0   ;;  %v2100_v2 = vld [vmem:[%s2837_s1 + $0x30] sm:$0xff]   ;;  %v2101_v3 = vld [vmem:[%s2837_s1 + $0x28] sm:$0xff]   ;;  %s2841_s16 = smov (!%p165_p3, %s1802_s16), 127  ;;  %vm937_vm0 = vcmask 261120  }
   0xc   : > { %1034 = vmatprep.subr.bf16.mxu0 %v2253_v1  ;;  %2057 = vmatprep.subr.bf16.mxu1 %v2253_v1  ;;  %v2102_v4 = vld [vmem:[%s2837_s1 + $0x20] sm:$0xff]   ;;  %s2089_s23 = smul.u32 12, %s2841_s16  ;;  %v2103_v5 = vld [vmem:[%s2837_s1 + $0x18] sm:$0xff]   ;;  %v2104_v7 = vld [vmem:[%s2837_s1 + $0x10] sm:$0xff]   ;;  %s1805_s5 = sshll.u32 %s2841_s16, 3  ;;  %vm1676_vm1 = vcmask 523264  }
   0xd   : > { %1035 = vmatpush1.bf16.msra.mxu0 %v2099_v0  ;;  %2073 = vmatpush1.bf16.msra.mxu1 %v2099_v0  ;;  %v2105_v9 = vld [vmem:[%s2837_s1 + $0x8] sm:$0xff]   ;;  %v2106_v10 = vld [vmem:[%s2837_s1] sm:$0xff]   ;;  %v2107_v11 = vld [vmem:[%s2837_s1 + $0x78] sm:$0xff]   ;;  %s2578_s8 = scalar_lea.vmem %s2839_s3, %s1805_s5 }
   0xe   : > { %1036 = vmatprep.subr.bf16.mxu0 %v2253_v1  ;;  %2058 = vmatprep.subr.bf16.mxu1 %v2253_v1  ;;  %s2311_s28 = scalar_lea.vmem %s2836_s0, %s2089_s23  ;;  %v2108_v12 = vld [vmem:[%s2837_s1 + $0x70] sm:$0xff]   ;;  %v2109_v13 = vld [vmem:[%s2837_s1 + $0x68] sm:$0xff]   ;;  %v2110_v14 = vld [vmem:[%s2837_s1 + $0x60] sm:$0xff]  }
   0xf   : > { %v2117_v6 = vld [vmem:[%s2311_s28 + $0x4] ss:$12 sps:$4 sm:$0xff]   ;;  %v2111_v15 = vld [vmem:[%s2837_s1 + $0x58] sm:$0xff]   ;;  %v2113_v17 = vld [vmem:[%s2837_s1 + $0x48] sm:$0xff]  }
  0x10   : > { %v2120_v8 = vld [vmem:[%s2311_s28 + $0x244] ss:$12 sps:$4 sm:$0xff]   ;;  %1066 = vmatprep.mubr.bf16.mxu0 %v2117_v6  ;;  %v2121_v19 = vld [vmem:[%s2837_s1 + $0x88] sm:$0xff]   ;;  %v2128_v27 = vld [vmem:[%s2311_s28 + $0x34] ss:$12 sps:$4 sm:$0xff]  }
  0x11   : > { %1037 = vmatpush1.bf16.msra.mxu0 %v2100_v2  ;;  %2074 = vmatpush1.bf16.msra.mxu1 %v2100_v2  ;;  %v2112_v16 = vld [vmem:[%s2837_s1 + $0x50] sm:$0xff]   ;;  %v2114_v18 = vld [vmem:[%s2837_s1 + $0x40] sm:$0xff]   ;;  %v2122_v22 = vld [vmem:[%s2311_s28 + $0x1c] ss:$12 sps:$4 sm:$0xff]  }
  0x12   : > { %1038 = vmatprep.subr.bf16.mxu0 %v2253_v1  ;;  %2059 = vmatprep.subr.bf16.mxu1 %v2253_v1  ;;  %v2115_v20 = vld [vmem:[%s2311_s28] ss:$12 sps:$4 sm:$0xff]   ;;  %v2124_v23 = vld [vmem:[%s2311_s28 + $0x25c] ss:$12 sps:$4 sm:$0xff]   ;;  %v2126_v25 = vld [vmem:[%s2311_s28 + $0x18] ss:$12 sps:$4 sm:$0xff]  }
  0x13   : > { %1258 = vmatprep.mubr.bf16.mxu1 %v2120_v8  ;;  %v2118_v21 = vld [vmem:[%s2311_s28 + $0x240] ss:$12 sps:$4 sm:$0xff]   ;;  %v2127_v26 = vld [vmem:[%s2311_s28 + $0x258] ss:$12 sps:$4 sm:$0xff]   ;;  %v2132_v29 = vld [vmem:[%s2311_s28 + $0x30] ss:$12 sps:$4 sm:$0xff]  }
  0x14   : > { %v2146_v24 = vld [vmem:[%s2837_s1 + $0x80] sm:$0xff]   ;;  %v2133_v30 = vld [vmem:[%s2311_s28 + $0x270] ss:$12 sps:$4 sm:$0xff]   ;;  %v2134_v31 = vld [vmem:[%s2311_s28 + $0x4c] ss:$12 sps:$4 sm:$0xff]  }
  0x15   : > { %1039 = vmatpush1.bf16.msra.mxu0 %v2101_v3  ;;  %2075 = vmatpush1.bf16.msra.mxu1 %v2101_v3  ;;  %v2130_v28 = vld [vmem:[%s2311_s28 + $0x274] ss:$12 sps:$4 sm:$0xff]   ;;  %v2136_v32 = vld [vmem:[%s2311_s28 + $0x28c] ss:$12 sps:$4 sm:$0xff]   ;;  %v2140_v35 = vld [vmem:[%s2311_s28 + $0x64] ss:$12 sps:$4 sm:$0xff]  }
  0x16   : > { %1040 = vmatprep.subr.bf16.mxu0 %v2253_v1  ;;  %2060 = vmatprep.subr.bf16.mxu1 %v2253_v1  ;;  %v2138_v33 = vld [vmem:[%s2311_s28 + $0x48] ss:$12 sps:$4 sm:$0xff]   ;;  %v2142_v36 = vld [vmem:[%s2311_s28 + $0x2a4] ss:$12 sps:$4 sm:$0xff]   ;;  %v2144_v37 = vld [vmem:[%s2311_s28 + $0x60] ss:$12 sps:$4 sm:$0xff]  }
  0x17   : > { %v2139_v34 = vld [vmem:[%s2311_s28 + $0x288] ss:$12 sps:$4 sm:$0xff]   ;;  %v2145_v38 = vld [vmem:[%s2311_s28 + $0x2a0] ss:$12 sps:$4 sm:$0xff]   ;;  %v2151_v41 = vld [vmem:[%s2311_s28 + $0x78] ss:$12 sps:$4 sm:$0xff]  }
  0x18   : > { %v2147_v39 = vld [vmem:[%s2311_s28 + $0x7c] ss:$12 sps:$4 sm:$0xff]   ;;  %v2152_v42 = vld [vmem:[%s2311_s28 + $0x2b8] ss:$12 sps:$4 sm:$0xff]   ;;  %v2153_v43 = vld [vmem:[%s2311_s28 + $0x94] ss:$12 sps:$4 sm:$0xff]  }
  0x19   : > { %1041 = vmatpush1.bf16.msra.mxu0 %v2102_v4  ;;  %2076 = vmatpush1.bf16.msra.mxu1 %v2102_v4  ;;  %v2149_v40 = vld [vmem:[%s2311_s28 + $0x2bc] ss:$12 sps:$4 sm:$0xff]   ;;  %v2155_v44 = vld [vmem:[%s2311_s28 + $0x2d4] ss:$12 sps:$4 sm:$0xff]   ;;  %v2159_v47 = vld [vmem:[%s2311_s28 + $0xac] ss:$12 sps:$4 sm:$0xff]  }
  0x1a   : > { %1042 = vmatprep.subr.bf16.mxu0 %v2253_v1  ;;  %2061 = vmatprep.subr.bf16.mxu1 %v2253_v1  ;;  %v2157_v45 = vld [vmem:[%s2311_s28 + $0x90] ss:$12 sps:$4 sm:$0xff]   ;;  %v2161_v48 = vld [vmem:[%s2311_s28 + $0x2ec] ss:$12 sps:$4 sm:$0xff]   ;;  %v2163_v49 = vld [vmem:[%s2311_s28 + $0xa8] ss:$12 sps:$4 sm:$0xff]  }
  0x1b   : > { %v2158_v46 = vld [vmem:[%s2311_s28 + $0x2d0] ss:$12 sps:$4 sm:$0xff]   ;;  %v2164_v50 = vld [vmem:[%s2311_s28 + $0x2e8] ss:$12 sps:$4 sm:$0xff]   ;;  %v2168_v53 = vld [vmem:[%s2311_s28 + $0xc0] ss:$12 sps:$4 sm:$0xff]  }
  0x1c   : > { %v2165_v51 = vld [vmem:[%s2311_s28 + $0xc4] ss:$12 sps:$4 sm:$0xff]   ;;  %v2167_v52 = vld [vmem:[%s2311_s28 + $0x8] ss:$12 sps:$4 sm:$0xff]   ;;  %v2169_v54 = vld [vmem:[%s2311_s28 + $0x20] ss:$12 sps:$4 sm:$0xff]  }
  0x1d   : > { %1043 = vmatpush1.bf16.msra.mxu0 %v2103_v5  ;;  %2077 = vmatpush1.bf16.msra.mxu1 %v2103_v5  ;;  %v2170_v55 = vld [vmem:[%s2311_s28 + $0xdc] ss:$12 sps:$4 sm:$0xff]   ;;  %v2172_v56 = vld [vmem:[%s2311_s28 + $0x38] ss:$12 sps:$4 sm:$0xff]   ;;  %v2175_v59 = vld [vmem:[%s2311_s28 + $0xf4] ss:$12 sps:$4 sm:$0xff]  }
  0x1e   : > { %1044 = vmatprep.subr.bf16.mxu0 %v2253_v1  ;;  %2062 = vmatprep.subr.bf16.mxu1 %v2253_v1  ;;  %v2173_v57 = vld [vmem:[%s2311_s28 + $0xd8] ss:$12 sps:$4 sm:$0xff]   ;;  %v2174_v58 = vld [vmem:[%s2311_s28 + $0x50] ss:$12 sps:$4 sm:$0xff]   ;;  %v2177_v60 = vld [vmem:[%s2311_s28 + $0x68] ss:$12 sps:$4 sm:$0xff]  }
  0x1f   : > { %v2178_v61 = vld [vmem:[%s2311_s28 + $0xf0] ss:$12 sps:$4 sm:$0xff]   ;;  %v2179_v62 = vld [vmem:[%s2311_s28 + $0x80] ss:$12 sps:$4 sm:$0xff]   ;;  %v2182_v0 = vld [vmem:[%s2311_s28 + $0x98] ss:$12 sps:$4 sm:$0xff]  }
  0x20   : > { %v2180_v63 = vld [vmem:[%s2311_s28 + $0x10c] ss:$12 sps:$4 sm:$0xff]   ;;  %v2184_v2 = vld [vmem:[%s2311_s28 + $0xb0] ss:$12 sps:$4 sm:$0xff]   ;;  %v2187_v4 = vld [vmem:[%s2311_s28 + $0xc8] ss:$12 sps:$4 sm:$0xff]  }
  0x21   : > { %1045 = vmatpush1.bf16.msra.mxu0 %v2104_v7  ;;  %2078 = vmatpush1.bf16.msra.mxu1 %v2104_v7  ;;  %v2185_v3 = vld [vmem:[%s2311_s28 + $0x124] ss:$12 sps:$4 sm:$0xff]   ;;  %v2188_v5 = vld [vmem:[%s2311_s28 + $0x120] ss:$12 sps:$4 sm:$0xff]   ;;  %v2190_v7 = vld [vmem:[%s2311_s28 + $0x13c] ss:$12 sps:$4 sm:$0xff]  }
  0x22   : > { %1046 = vmatprep.subr.bf16.mxu0 %v2253_v1  ;;  %2063 = vmatprep.subr.bf16.mxu1 %v2253_v1  ;;  %v2189_v6 = vld [vmem:[%s2311_s28 + $0xe0] ss:$12 sps:$4 sm:$0xff]   ;;  %v2192_v8 = vld [vmem:[%s2311_s28 + $0xf8] ss:$12 sps:$4 sm:$0xff]  }
  0x25   : > { %1047 = vmatpush1.bf16.msra.mxu0 %v2105_v9  ;;  %2079 = vmatpush1.bf16.msra.mxu1 %v2105_v9  ;;  %v2193_v9 = vld [vmem:[%s2311_s28 + $0x138] ss:$12 sps:$4 sm:$0xff]  }
  0x26   : > { %1048 = vmatprep.subr.bf16.mxu0 %v2253_v1  ;;  %2064 = vmatprep.subr.bf16.mxu1 %v2253_v1 }
  0x29   : > { %1049 = vmatpush1.bf16.msra.mxu0 %v2106_v10  ;;  %2080 = vmatpush1.bf16.msra.mxu1 %v2106_v10  ;;  %v2194_v10 = vld [vmem:[%s2311_s28 + $0x110] ss:$12 sps:$4 sm:$0xff]  }
  0x2a   : > { %1050 = vmatprep.subr.bf16.mxu0 %v2253_v1  ;;  %2065 = vmatprep.subr.bf16.mxu1 %v2253_v1 }
  0x2d   : > { %1051 = vmatpush2.bf16.msra.mxu0 %v2107_v11  ;;  %2081 = vmatpush2.bf16.msra.mxu1 %v2107_v11  ;;  %v2195_v11 = vld [vmem:[%s2311_s28 + $0x154] ss:$12 sps:$4 sm:$0xff]  }
  0x2e   : > { %1052 = vmatprep.subr.bf16.mxu0 %v2253_v1  ;;  %2066 = vmatprep.subr.bf16.mxu1 %v2253_v1 }
  0x31   : > { %1053 = vmatpush2.bf16.msra.mxu0 %v2108_v12  ;;  %2082 = vmatpush2.bf16.msra.mxu1 %v2108_v12  ;;  %v2197_v12 = vld [vmem:[%s2311_s28 + $0x128] ss:$12 sps:$4 sm:$0xff]  }
  0x32   : > { %1054 = vmatprep.subr.bf16.mxu0 %v2253_v1  ;;  %2067 = vmatprep.subr.bf16.mxu1 %v2253_v1 }
  0x35   : > { %1055 = vmatpush2.bf16.msra.mxu0 %v2109_v13  ;;  %2083 = vmatpush2.bf16.msra.mxu1 %v2109_v13  ;;  %v2198_v13 = vld [vmem:[%s2311_s28 + $0x150] ss:$12 sps:$4 sm:$0xff]  }
  0x36   : > { %1056 = vmatprep.subr.bf16.mxu0 %v2253_v1  ;;  %2068 = vmatprep.subr.bf16.mxu1 %v2253_v1 }
  0x39   : > { %1057 = vmatpush2.bf16.msra.mxu0 %v2110_v14  ;;  %2084 = vmatpush2.bf16.msra.mxu1 %v2110_v14  ;;  %v2199_v14 = vld [vmem:[%s2311_s28 + $0x140] ss:$12 sps:$4 sm:$0xff]  }
  0x3a   : > { %1058 = vmatprep.subr.bf16.mxu0 %v2253_v1  ;;  %2069 = vmatprep.subr.bf16.mxu1 %v2253_v1 }
  0x3d   : > { %1059 = vmatpush2.bf16.msra.mxu0 %v2111_v15  ;;  %2085 = vmatpush2.bf16.msra.mxu1 %v2111_v15  ;;  %v2200_v15 = vld [vmem:[%s2311_s28 + $0x16c] ss:$12 sps:$4 sm:$0xff]  }
  0x3e   : > { %1060 = vmatprep.subr.bf16.mxu0 %v2253_v1  ;;  %2070 = vmatprep.subr.bf16.mxu1 %v2253_v1 }
  0x41   : > { %1061 = vmatpush2.bf16.msra.mxu0 %v2112_v16  ;;  %2086 = vmatpush2.bf16.msra.mxu1 %v2112_v16  ;;  %v2202_v16 = vld [vmem:[%s2311_s28 + $0x158] ss:$12 sps:$4 sm:$0xff]  }
  0x42   : > { %1062 = vmatprep.subr.bf16.mxu0 %v2253_v1  ;;  %2071 = vmatprep.subr.bf16.mxu1 %v2253_v1 }
  0x45   : > { %1063 = vmatpush2.bf16.msra.mxu0 %v2113_v17  ;;  %2087 = vmatpush2.bf16.msra.mxu1 %v2113_v17  ;;  %v2203_v17 = vld [vmem:[%s2311_s28 + $0x168] ss:$12 sps:$4 sm:$0xff]  }
  0x46   : > { %1064 = vmatprep.subr.bf16.mxu0 %v2253_v1  ;;  %2072 = vmatprep.subr.bf16.mxu1 %v2253_v1  ;;  %v2183_v1 = vld [vmem:[%s2311_s28 + $0x108] ss:$12 sps:$4 sm:$0xff]  }
  0x49   : > { %1065 = vmatpush2.bf16.msra.mxu0 %v2114_v18  ;;  %2088 = vmatpush2.bf16.msra.mxu1 %v2114_v18  ;;  %v2204_v18 = vld [vmem:[%s2311_s28 + $0x170] ss:$12 sps:$4 sm:$0xff]  }
  0x4a   : > { %1989 = vmatprep.subr.bf16.mxu1 %v2121_v19 }
  0x4c   : > { %1067 = vmatmul.mubr.bf16.vlgmr.msra.gmra.mxu0 %v2115_v20  ;;  %1259 = vmatmul.mubr.bf16.vlgmr.msra.gmra.mxu1 %v2118_v21  ;;  %v2207_v20 = vld [vmem:[%s2311_s28 + $0x188] ss:$12 sps:$4 sm:$0xff]   ;;  %v2208_v21 = vld [vmem:[%s2311_s28 + $0x180] ss:$12 sps:$4 sm:$0xff]  }
  0x4d   : > { %1990 = vmatpush3.bf16.msra.mxu1 %v2121_v19  ;;  %1074 = vmatprep.mubr.bf16.mxu0 %v2122_v22  ;;  %v2205_v19 = vld [vmem:[%s2311_s28 + $0x184] ss:$12 sps:$4 sm:$0xff]   ;;  %v2209_v22 = vld [vmem:[%s2311_s28 + $0x1a0] ss:$12 sps:$4 sm:$0xff]  }
  0x4e   : > { %1266 = vmatprep.mubr.bf16.mxu1 %v2124_v23  ;;  %1991 = vmatprep.subr.bf16.mxu1 %v2146_v24  ;;  %v2210_v23 = vld [vmem:[%s2311_s28 + $0x19c] ss:$12 sps:$4 sm:$0xff]  }
  0x51   : > { %1992 = vmatpush3.bf16.msra.mxu1 %v2146_v24  ;;  %v2212_v24 = vld [vmem:[%s2311_s28 + $0x1b8] ss:$12 sps:$4 sm:$0xff]  }
  0x54   : > { %1075 = vmatmul.mubr.bf16.gmra.mxu0 %v2126_v25  ;;  %1267 = vmatmul.mubr.bf16.gmra.mxu1 %v2127_v26  ;;  %v2213_v25 = vld [vmem:[%s2311_s28 + $0x198] ss:$12 sps:$4 sm:$0xff]   ;;  %v2214_v26 = vld [vmem:[%s2311_s28 + $0x1d0] ss:$12 sps:$4 sm:$0xff]  }
  0x55   : > { %1082 = vmatprep.mubr.bf16.mxu0 %v2128_v27  ;;  %1274 = vmatprep.mubr.bf16.mxu1 %v2130_v28  ;;  %v2215_v27 = vld [vmem:[%s2311_s28 + $0x1b4] ss:$12 sps:$4 sm:$0xff]  }
  0x56   : > { %v2217_v28 = vld [vmem:[%s2311_s28 + $0x1e8] ss:$12 sps:$4 sm:$0xff]  }
  0x5c   : > { %1083 = vmatmul.mubr.bf16.gmra.mxu0 %v2132_v29  ;;  %1275 = vmatmul.mubr.bf16.gmra.mxu1 %v2133_v30  ;;  %v2218_v29 = vld [vmem:[%s2311_s28 + $0x1b0] ss:$12 sps:$4 sm:$0xff]   ;;  %v2219_v30 = vld [vmem:[%s2311_s28 + $0x200] ss:$12 sps:$4 sm:$0xff]  }
  0x5d   : > { %1090 = vmatprep.mubr.bf16.mxu0 %v2134_v31  ;;  %1282 = vmatprep.mubr.bf16.mxu1 %v2136_v32  ;;  %v2220_v31 = vld [vmem:[%s2311_s28 + $0x1cc] ss:$12 sps:$4 sm:$0xff]  }
  0x5e   : > { %v2222_v32 = vld [vmem:[%s2311_s28 + $0x218] ss:$12 sps:$4 sm:$0xff]  }
  0x64   : > { %1091 = vmatmul.mubr.bf16.gmra.mxu0 %v2138_v33  ;;  %1283 = vmatmul.mubr.bf16.gmra.mxu1 %v2139_v34  ;;  %v2223_v33 = vld [vmem:[%s2311_s28 + $0x1c8] ss:$12 sps:$4 sm:$0xff]   ;;  %v2224_v34 = vld [vmem:[%s2311_s28 + $0x230] ss:$12 sps:$4 sm:$0xff]  }
  0x65   : > { %1098 = vmatprep.mubr.bf16.mxu0 %v2140_v35  ;;  %1290 = vmatprep.mubr.bf16.mxu1 %v2142_v36  ;;  %v2225_v35 = vld [vmem:[%s2311_s28 + $0x1e4] ss:$12 sps:$4 sm:$0xff]   ;;  %v2227_v36 = vld [vmem:[%s2311_s28 + $0x248] ss:$12 sps:$4 sm:$0xff]  }
  0x6c   : > { %1099 = vmatmul.mubr.bf16.gmra.mxu0 %v2144_v37  ;;  %1291 = vmatmul.mubr.bf16.gmra.mxu1 %v2145_v38  ;;  %v2228_v37 = vld [vmem:[%s2311_s28 + $0x1e0] ss:$12 sps:$4 sm:$0xff]  }
  0x6d   : > { %1106 = vmatprep.mubr.bf16.mxu0 %v2147_v39  ;;  %1298 = vmatprep.mubr.bf16.mxu1 %v2149_v40  ;;  %v2229_v38 = vld [vmem:[%s2311_s28 + $0x260] ss:$12 sps:$4 sm:$0xff]   ;;  %v2230_v39 = vld [vmem:[%s2311_s28 + $0x1fc] ss:$12 sps:$4 sm:$0xff]   ;;  %v2232_v40 = vld [vmem:[%s2311_s28 + $0x278] ss:$12 sps:$4 sm:$0xff]  }
  0x74   : > { %1107 = vmatmul.mubr.bf16.gmra.mxu0 %v2151_v41  ;;  %1299 = vmatmul.mubr.bf16.gmra.mxu1 %v2152_v42  ;;  %v2233_v41 = vld [vmem:[%s2311_s28 + $0x1f8] ss:$12 sps:$4 sm:$0xff]   ;;  %v2234_v42 = vld [vmem:[%s2311_s28 + $0x290] ss:$12 sps:$4 sm:$0xff]  }
  0x75   : > { %1114 = vmatprep.mubr.bf16.mxu0 %v2153_v43  ;;  %1306 = vmatprep.mubr.bf16.mxu1 %v2155_v44  ;;  %v2235_v43 = vld [vmem:[%s2311_s28 + $0x214] ss:$12 sps:$4 sm:$0xff]  }
  0x76   : > { %v2237_v44 = vld [vmem:[%s2311_s28 + $0x2a8] ss:$12 sps:$4 sm:$0xff]  }
  0x7c   : > { %1115 = vmatmul.mubr.bf16.gmra.mxu0 %v2157_v45  ;;  %1307 = vmatmul.mubr.bf16.gmra.mxu1 %v2158_v46  ;;  %v2238_v45 = vld [vmem:[%s2311_s28 + $0x210] ss:$12 sps:$4 sm:$0xff]   ;;  %v2239_v46 = vld [vmem:[%s2311_s28 + $0x2c0] ss:$12 sps:$4 sm:$0xff]  }
  0x7d   : > { %1122 = vmatprep.mubr.bf16.mxu0 %v2159_v47  ;;  %1314 = vmatprep.mubr.bf16.mxu1 %v2161_v48  ;;  %v2240_v47 = vld [vmem:[%s2311_s28 + $0x22c] ss:$12 sps:$4 sm:$0xff]  }
  0x7e   : > { %v2242_v48 = vld [vmem:[%s2311_s28 + $0x2d8] ss:$12 sps:$4 sm:$0xff]  }
  0x84   : > { %1123 = vmatmul.mubr.bf16.gmra.mxu0 %v2163_v49  ;;  %1315 = vmatmul.mubr.bf16.gmra.mxu1 %v2164_v50  ;;  %v2243_v49 = vld [vmem:[%s2311_s28 + $0x228] ss:$12 sps:$4 sm:$0xff]   ;;  %v2244_v50 = vld [vmem:[%s2311_s28 + $0x2f0] ss:$12 sps:$4 sm:$0xff]  }
  0x85   : > { %1130 = vmatprep.mubr.bf16.mxu0 %v2165_v51  ;;  %1993 = vmatprep.mubr.msk.bf16.mxu1 %vm937_vm0, %v2167_v52 }
  0x8c   : > { %1131 = vmatmul.mubr.bf16.gmra.mxu0 %v2168_v53  ;;  %1994 = vmatmul.mubr.msk.bf16.vlgmr.msra.gmra.mxu1 %vm937_vm0, %v2169_v54 }
  0x8d   : > { %1138 = vmatprep.mubr.bf16.mxu0 %v2170_v55  ;;  %1997 = vmatprep.mubr.msk.bf16.mxu1 %vm937_vm0, %v2172_v56 }
  0x94   : > { %1139 = vmatmul.mubr.bf16.gmra.mxu0 %v2173_v57  ;;  %1998 = vmatmul.mubr.msk.bf16.gmra.mxu1 %vm937_vm0, %v2174_v58 }
  0x95   : > { %1146 = vmatprep.mubr.bf16.mxu0 %v2175_v59  ;;  %2001 = vmatprep.mubr.msk.bf16.mxu1 %vm937_vm0, %v2177_v60 }
  0x9c   : > { %1147 = vmatmul.mubr.bf16.gmra.mxu0 %v2178_v61  ;;  %2002 = vmatmul.mubr.msk.bf16.gmra.mxu1 %vm937_vm0, %v2179_v62 }
  0x9d   : > { %1154 = vmatprep.mubr.bf16.mxu0 %v2180_v63  ;;  %2005 = vmatprep.mubr.msk.bf16.mxu1 %vm937_vm0, %v2182_v0 }
  0xa4   : > { %1155 = vmatmul.mubr.bf16.gmra.mxu0 %v2183_v1  ;;  %2006 = vmatmul.mubr.msk.bf16.gmra.mxu1 %vm937_vm0, %v2184_v2 }
  0xa5   : > { %1162 = vmatprep.mubr.bf16.mxu0 %v2185_v3  ;;  %2009 = vmatprep.mubr.msk.bf16.mxu1 %vm937_vm0, %v2187_v4 }
  0xac   : > { %1163 = vmatmul.mubr.bf16.gmra.mxu0 %v2188_v5  ;;  %2010 = vmatmul.mubr.msk.bf16.gmra.mxu1 %vm937_vm0, %v2189_v6 }
  0xad   : > { %1170 = vmatprep.mubr.bf16.mxu0 %v2190_v7  ;;  %2013 = vmatprep.mubr.msk.bf16.mxu1 %vm937_vm0, %v2192_v8 }
  0xb4   : > { %1171 = vmatmul.mubr.bf16.gmra.mxu0 %v2193_v9  ;;  %2014 = vmatmul.mubr.msk.bf16.gmra.mxu1 %vm937_vm0, %v2194_v10 }
  0xb5   : > { %1178 = vmatprep.mubr.bf16.mxu0 %v2195_v11  ;;  %2017 = vmatprep.mubr.msk.bf16.mxu1 %vm937_vm0, %v2197_v12 }
  0xbc   : > { %1179 = vmatmul.mubr.bf16.gmra.mxu0 %v2198_v13  ;;  %2018 = vmatmul.mubr.msk.bf16.gmra.mxu1 %vm937_vm0, %v2199_v14 }
  0xbd   : > { %1186 = vmatprep.mubr.bf16.mxu0 %v2200_v15  ;;  %2021 = vmatprep.mubr.msk.bf16.mxu1 %vm937_vm0, %v2202_v16 }
  0xc4   : > { %1187 = vmatmul.mubr.bf16.gmra.mxu0 %v2203_v17  ;;  %2022 = vmatmul.mubr.msk.bf16.gmra.mxu1 %vm937_vm0, %v2204_v18 }
  0xc5   : > { %1194 = vmatprep.mubr.bf16.mxu0 %v2205_v19  ;;  %2025 = vmatprep.mubr.msk.bf16.mxu1 %vm937_vm0, %v2207_v20 }
  0xcc   : > { %1195 = vmatmul.mubr.bf16.gmra.mxu0 %v2208_v21  ;;  %2026 = vmatmul.mubr.msk.bf16.gmra.mxu1 %vm937_vm0, %v2209_v22 }
  0xcd   : > { %1202 = vmatprep.mubr.bf16.mxu0 %v2210_v23  ;;  %2029 = vmatprep.mubr.msk.bf16.mxu1 %vm937_vm0, %v2212_v24 }
  0xd4   : > { %1203 = vmatmul.mubr.bf16.gmra.mxu0 %v2213_v25  ;;  %2030 = vmatmul.mubr.msk.bf16.gmra.mxu1 %vm937_vm0, %v2214_v26 }
  0xd5   : > { %1210 = vmatprep.mubr.bf16.mxu0 %v2215_v27  ;;  %2033 = vmatprep.mubr.msk.bf16.mxu1 %vm937_vm0, %v2217_v28 }
  0xdc   : > { %1211 = vmatmul.mubr.bf16.gmra.mxu0 %v2218_v29  ;;  %2034 = vmatmul.mubr.msk.bf16.gmra.mxu1 %vm937_vm0, %v2219_v30 }
  0xdd   : > { %1218 = vmatprep.mubr.bf16.mxu0 %v2220_v31  ;;  %2037 = vmatprep.mubr.msk.bf16.mxu1 %vm937_vm0, %v2222_v32 }
  0xe4   : > { %1219 = vmatmul.mubr.bf16.gmra.mxu0 %v2223_v33  ;;  %2038 = vmatmul.mubr.msk.bf16.gmra.mxu1 %vm937_vm0, %v2224_v34 }
  0xe5   : > { %1226 = vmatprep.mubr.bf16.mxu0 %v2225_v35  ;;  %2041 = vmatprep.mubr.msk.bf16.mxu1 %vm937_vm0, %v2227_v36 }
  0xec   : > { %1227 = vmatmul.mubr.bf16.gmra.mxu0 %v2228_v37  ;;  %2042 = vmatmul.mubr.msk.bf16.gmra.mxu1 %vm937_vm0, %v2229_v38 }
  0xed   : > { %1234 = vmatprep.mubr.bf16.mxu0 %v2230_v39  ;;  %2045 = vmatprep.mubr.msk.bf16.mxu1 %vm937_vm0, %v2232_v40 }
  0xf4   : > { %1235 = vmatmul.mubr.bf16.gmra.mxu0 %v2233_v41  ;;  %2046 = vmatmul.mubr.msk.bf16.gmra.mxu1 %vm937_vm0, %v2234_v42 }
  0xf5   : > { %1242 = vmatprep.mubr.bf16.mxu0 %v2235_v43  ;;  %2049 = vmatprep.mubr.msk.bf16.mxu1 %vm937_vm0, %v2237_v44 }
  0xfc   : > { %1243 = vmatmul.mubr.bf16.gmra.mxu0 %v2238_v45  ;;  %2050 = vmatmul.mubr.msk.bf16.gmra.mxu1 %vm937_vm0, %v2239_v46 }
  0xfd   : > { %1250 = vmatprep.mubr.bf16.mxu0 %v2240_v47  ;;  %2053 = vmatprep.mubr.msk.bf16.mxu1 %vm937_vm0, %v2242_v48 }
 0x104   : > { %1251 = vmatmul.mubr.bf16.gmra.mxu0 %v2243_v49  ;;  %2054 = vmatmul.mubr.msk.bf16.gmra.mxu1 %vm937_vm0, %v2244_v50  ;;  %v2567_v49 = vld [vmem:[%s2838_s2] ss:$0 sm:$0xff] }
 0x10c   : > { %v2504_v51 = vpop.f32.mrf.mxu0  ;;  %v2506_v52 = vpop.f32.mrf.mxu1 }
 0x10e   : > { %v1070_v53 = vpop.f32.mrf.mxu0  ;;  %v1262_v54 = vpop.f32.mrf.mxu1 }
 0x110   : > { %v2508_v55 = vpop.f32.mrf.mxu0  ;;  %v2510_v56 = vpop.f32.mrf.mxu1 }
 0x112   : > { %v1073_v57 = vpop.f32.mrf.mxu0  ;;  %v1265_v58 = vpop.f32.mrf.mxu1 }
 0x114   : > { %v1076_v59 = vpop.f32.mrf.mxu0  ;;  %v2512_v60 = vpop.f32.mrf.mxu1 }
 0x115   : > { %v1077_v54 = vadd.f32 %v2567_v49, %v1076_v59 }
 0x116   : > { %v1078_v61 = vpop.f32.mrf.mxu0  ;;  %v1270_v62 = vpop.f32.mrf.mxu1 }
 0x117   : > { %v1069_v61 = vadd.f32 %v2567_v49, %v2504_v51 }
 0x118   : > { %v2514_v63 = vpop.f32.mrf.mxu0  ;;  %v2516_v0 = vpop.f32.mrf.mxu1 }
 0x119   : > { %v1080_v59 = vadd.f32 %v2567_v49, %v2514_v63 }
 0x11a   : > { %v1081_v1 = vpop.f32.mrf.mxu0  ;;  %v1273_v2 = vpop.f32.mrf.mxu1 }
 0x11c   : > { %v2518_v3 = vpop.f32.mrf.mxu0  ;;  %v2520_v4 = vpop.f32.mrf.mxu1 }
 0x11e   : > { %v1086_v5 = vpop.f32.mrf.mxu0  ;;  %v1278_v6 = vpop.f32.mrf.mxu1 }
 0x120   : > { %v2522_v7 = vpop.f32.mrf.mxu0  ;;  %v2524_v8 = vpop.f32.mrf.mxu1 }
 0x122   : > { %v1089_v9 = vpop.f32.mrf.mxu0  ;;  %v1281_v10 = vpop.f32.mrf.mxu1 }
 0x123   : > { %v1072_v10 = vadd.f32 %v2567_v49, %v2508_v55  ;;  %v1085_v55 = vadd.f32 %v2567_v49, %v2518_v3  ;;  %v1088_v3 = vadd.f32 %v2567_v49, %v2522_v7 }
 0x124   : > { %v1092_v11 = vpop.f32.mrf.mxu0  ;;  %v2526_v12 = vpop.f32.mrf.mxu1 }
 0x126   : > { %v1094_v13 = vpop.f32.mrf.mxu0  ;;  %v1286_v14 = vpop.f32.mrf.mxu1 }
 0x128   : > { %v2528_v15 = vpop.f32.mrf.mxu0  ;;  %v2530_v16 = vpop.f32.mrf.mxu1 }
 0x12a   : > { %v1097_v17 = vpop.f32.mrf.mxu0  ;;  %v1289_v18 = vpop.f32.mrf.mxu1 }
 0x12c   : > { %v2532_v19 = vpop.f32.mrf.mxu0  ;;  %v2534_v20 = vpop.f32.mrf.mxu1 }
 0x12d   : > { %v1101_v7 = vadd.f32 %v2567_v49, %v2532_v19 }
 0x12e   : > { %v1102_v21 = vpop.f32.mrf.mxu0  ;;  %v1294_v22 = vpop.f32.mrf.mxu1 }
 0x12f   : > { %v1093_v21 = vadd.f32 %v2567_v49, %v1092_v11  ;;  %v1096_v11 = vadd.f32 %v2567_v49, %v2528_v15 }
 0x130   : > { %v2536_v23 = vpop.f32.mrf.mxu0  ;;  %v2538_v24 = vpop.f32.mrf.mxu1 }
 0x131   : > { %v1104_v19 = vadd.f32 %v2567_v49, %v2536_v23 }
 0x132   : > { %v1105_v25 = vpop.f32.mrf.mxu0  ;;  %v1297_v26 = vpop.f32.mrf.mxu1 }
 0x134   : > { %v2540_v27 = vpop.f32.mrf.mxu0  ;;  %v2542_v28 = vpop.f32.mrf.mxu1 }
 0x135   : > { %v1109_v15 = vadd.f32 %v2567_v49, %v2540_v27 }
 0x136   : > { %v1110_v29 = vpop.f32.mrf.mxu0  ;;  %v1302_v30 = vpop.f32.mrf.mxu1 }
 0x138   : > { %v2544_v31 = vpop.f32.mrf.mxu0  ;;  %v2546_v32 = vpop.f32.mrf.mxu1 }
 0x139   : > { %v1112_v27 = vadd.f32 %v2567_v49, %v2544_v31 }
 0x13a   : > { %v1113_v33 = vpop.f32.mrf.mxu0  ;;  %v1305_v34 = vpop.f32.mrf.mxu1 }
 0x13c   : > { %v2548_v35 = vpop.f32.mrf.mxu0  ;;  %v2550_v36 = vpop.f32.mrf.mxu1 }
 0x13d   : > { %v1117_v23 = vadd.f32 %v2567_v49, %v2548_v35 }
 0x13e   : > { %v1118_v37 = vpop.f32.mrf.mxu0  ;;  %v1310_v38 = vpop.f32.mrf.mxu1 }
 0x140   : > { %v2552_v39 = vpop.f32.mrf.mxu0  ;;  %v2554_v40 = vpop.f32.mrf.mxu1 }
 0x141   : > { %v1120_v35 = vadd.f32 %v2567_v49, %v2552_v39 }
 0x142   : > { %v1121_v41 = vpop.f32.mrf.mxu0  ;;  %v1313_v42 = vpop.f32.mrf.mxu1 }
 0x144   : > { %v2556_v43 = vpop.f32.mrf.mxu0  ;;  %v2558_v44 = vpop.f32.mrf.mxu1 }
 0x145   : > { %v1125_v31 = vadd.f32 %v2567_v49, %v2556_v43 }
 0x146   : > { %v1126_v45 = vpop.f32.mrf.mxu0  ;;  %v1318_v46 = vpop.f32.mrf.mxu1 }
 0x148   : > { %v2560_v47 = vpop.f32.mrf.mxu0  ;;  %v2562_v48 = vpop.f32.mrf.mxu1 }
 0x149   : > { %v1128_v43 = vadd.f32 %v2567_v49, %v2560_v47 }
 0x14a   : > { %v1129_v50 = vpop.f32.mrf.mxu0  ;;  %v1321_v53 = vpop.f32.mrf.mxu1 }
 0x14c   : > { %v2571_v57 = vpop.f32.mrf.mxu0  ;;  %v1995_v58 = vpop.f32.mrf.mxu1 }
 0x14d   : > { %v1366_v62 = vadd.f32 %v1995_v58, %v1077_v54  ;;  %v1133_v39 = vadd.f32 %v2567_v49, %v2571_v57 }
 0x14e   : > { %v1134_v1 = vpop.f32.mrf.mxu0  ;;  %v1357_v2 = vpop.f32.mrf.mxu1 }
 0x14f   : > { %v1614_v5 = vmax.f32 %v1366_v62, 0.0  ;;  %v1358_v6 = vadd.f32 %v1357_v2, %v1069_v61 }
 0x150   : > { %v2582_v9 = vpop.f32.mrf.mxu0  ;;  %v1996_v51 = vpop.f32.mrf.mxu1 }
 0x151   : > { %1679 = vst.msk [vmem:[%s2578_s8 + $0x10] sm:$0xff] %vm1676_vm1, %v1614_v5  ;;  %v1612_v13 = vmax.f32 %v1358_v6, 0.0  ;;  %v1369_v14 = vadd.f32 %v1996_v51, %v1080_v59  ;;  %v1136_v57 = vadd.f32 %v2567_v49, %v2582_v9 }
 0x152   : > { %v1137_v17 = vpop.f32.mrf.mxu0  ;;  %v1360_v18 = vpop.f32.mrf.mxu1 }
 0x153   : > { %1677 = vst.msk [vmem:[%s2578_s8] sm:$0xff] %vm1676_vm1, %v1612_v13  ;;  %v1615_v63 = vmax.f32 %v1369_v14, 0.0  ;;  %v1361_v22 = vadd.f32 %v1360_v18, %v1072_v10 }
 0x154   : > { %v2591_v25 = vpop.f32.mrf.mxu0  ;;  %v1999_v26 = vpop.f32.mrf.mxu1 }
 0x155   : > { %1680 = vst.msk [vmem:[%s2578_s8 + $0x18] sm:$0xff] %vm1676_vm1, %v1615_v63  ;;  %v1613_v29 = vmax.f32 %v1361_v22, 0.0  ;;  %v1382_v30 = vadd.f32 %v1999_v26, %v1093_v21  ;;  %v1141_v47 = vadd.f32 %v2567_v49, %v2591_v25 }
 0x156   : > { %v1142_v33 = vpop.f32.mrf.mxu0  ;;  %v1373_v34 = vpop.f32.mrf.mxu1 }
 0x157   : > { %1678 = vst.msk [vmem:[%s2578_s8 + $0x8] sm:$0xff] %vm1676_vm1, %v1613_v29  ;;  %v1618_v37 = vmax.f32 %v1382_v30, 0.0  ;;  %v1374_v38 = vadd.f32 %v1373_v34, %v1085_v55 }
 0x158   : > { %v2601_v41 = vpop.f32.mrf.mxu0  ;;  %v2000_v42 = vpop.f32.mrf.mxu1 }
 0x159   : > { %1683 = vst.msk [vmem:[%s2578_s8 + $0x30] sm:$0xff] %vm1676_vm1, %v1618_v37  ;;  %v1616_v45 = vmax.f32 %v1374_v38, 0.0  ;;  %v1385_v46 = vadd.f32 %v2000_v42, %v1096_v11  ;;  %v1144_v25 = vadd.f32 %v2567_v49, %v2601_v41 }
 0x15a   : > { %v1145_v50 = vpop.f32.mrf.mxu0  ;;  %v1376_v53 = vpop.f32.mrf.mxu1 }
 0x15b   : > { %1681 = vst.msk [vmem:[%s2578_s8 + $0x20] sm:$0xff] %vm1676_vm1, %v1616_v45  ;;  %v1619_v54 = vmax.f32 %v1385_v46, 0.0  ;;  %v1377_v58 = vadd.f32 %v1376_v53, %v1088_v3 }
 0x15c   : > { %v2611_v61 = vpop.f32.mrf.mxu0  ;;  %v2003_v62 = vpop.f32.mrf.mxu1 }
 0x15d   : > { %1684 = vst.msk [vmem:[%s2578_s8 + $0x38] sm:$0xff] %vm1676_vm1, %v1619_v54  ;;  %v1617_v1 = vmax.f32 %v1377_v58, 0.0  ;;  %v1398_v2 = vadd.f32 %v2003_v62, %v1109_v15 }
 0x15e   : > { %v1150_v59 = vpop.f32.mrf.mxu0  ;;  %v1389_v5 = vpop.f32.mrf.mxu1 }
 0x15f   : > { %1682 = vst.msk [vmem:[%s2578_s8 + $0x28] sm:$0xff] %vm1676_vm1, %v1617_v1  ;;  %v1622_v6 = vmax.f32 %v1398_v2, 0.0  ;;  %v1390_v51 = vadd.f32 %v1389_v5, %v1101_v7 }
 0x160   : > { %v2621_v10 = vpop.f32.mrf.mxu0  ;;  %v2004_v13 = vpop.f32.mrf.mxu1 }
 0x161   : > { %1687 = vst.msk [vmem:[%s2578_s8 + $0x50] sm:$0xff] %vm1676_vm1, %v1622_v6  ;;  %v1620_v14 = vmax.f32 %v1390_v51, 0.0  ;;  %v1401_v17 = vadd.f32 %v2004_v13, %v1112_v27 }
 0x162   : > { %v1153_v18 = vpop.f32.mrf.mxu0  ;;  %v1392_v21 = vpop.f32.mrf.mxu1 }
 0x163   : > { %1685 = vst.msk [vmem:[%s2578_s8 + $0x40] sm:$0xff] %vm1676_vm1, %v1620_v14  ;;  %v1623_v63 = vmax.f32 %v1401_v17, 0.0  ;;  %v1393_v22 = vadd.f32 %v1392_v21, %v1104_v19 }
 0x164   : > { %v1156_v26 = vpop.f32.mrf.mxu0  ;;  %v2007_v55 = vpop.f32.mrf.mxu1 }
 0x165   : > { %1688 = vst.msk [vmem:[%s2578_s8 + $0x58] sm:$0xff] %vm1676_vm1, %v1623_v63  ;;  %v1621_v29 = vmax.f32 %v1393_v22, 0.0  ;;  %v1414_v30 = vadd.f32 %v2007_v55, %v1125_v31  ;;  %v1157_v17 = vadd.f32 %v2567_v49, %v1156_v26  ;;  %v1149_v63 = vadd.f32 %v2567_v49, %v2611_v61 }
 0x166   : > { %v1158_v33 = vpop.f32.mrf.mxu0  ;;  %v1405_v34 = vpop.f32.mrf.mxu1 }
 0x167   : > { %1686 = vst.msk [vmem:[%s2578_s8 + $0x48] sm:$0xff] %vm1676_vm1, %v1621_v29  ;;  %v1626_v11 = vmax.f32 %v1414_v30, 0.0  ;;  %v1406_v37 = vadd.f32 %v1405_v34, %v1117_v23 }
 0x168   : > { %v1159_v38 = vpop.f32.mrf.mxu0  ;;  %v2008_v42 = vpop.f32.mrf.mxu1 }
 0x169   : > { %1691 = vst.msk [vmem:[%s2578_s8 + $0x70] sm:$0xff] %vm1676_vm1, %v1626_v11  ;;  %v1624_v3 = vmax.f32 %v1406_v37, 0.0  ;;  %v1417_v45 = vadd.f32 %v2008_v42, %v1128_v43  ;;  %v1160_v29 = vadd.f32 %v2567_v49, %v1159_v38  ;;  %v1152_v43 = vadd.f32 %v2567_v49, %v2621_v10 }
 0x16a   : > { %v1161_v46 = vpop.f32.mrf.mxu0  ;;  %v1408_v50 = vpop.f32.mrf.mxu1 }
 0x16b   : > { %1689 = vst.msk [vmem:[%s2578_s8 + $0x60] sm:$0xff] %vm1676_vm1, %v1624_v3  ;;  %v1627_v53 = vmax.f32 %v1417_v45, 0.0  ;;  %v1409_v15 = vadd.f32 %v1408_v50, %v1120_v35 }
 0x16c   : > { %v1164_v54 = vpop.f32.mrf.mxu0  ;;  %v2011_v58 = vpop.f32.mrf.mxu1 }
 0x16d   : > { %1692 = vst.msk [vmem:[%s2578_s8 + $0x78] sm:$0xff] %vm1676_vm1, %v1627_v53  ;;  %v1625_v62 = vmax.f32 %v1409_v15, 0.0  ;;  %v1430_v7 = vadd.f32 %v2011_v58, %v1141_v47  ;;  %v1165_v50 = vadd.f32 %v2567_v49, %v1164_v54 }
 0x16e   : > { %v1166_v1 = vpop.f32.mrf.mxu0  ;;  %v1421_v2 = vpop.f32.mrf.mxu1 }
 0x16f   : > { %1690 = vst.msk [vmem:[%s2578_s8 + $0x68] sm:$0xff] %vm1676_vm1, %v1625_v62  ;;  %v1630_v59 = vmax.f32 %v1430_v7, 0.0  ;;  %v1422_v5 = vadd.f32 %v1421_v2, %v1133_v39 }
 0x170   : > { %v1167_v27 = vpop.f32.mrf.mxu0  ;;  %v2012_v6 = vpop.f32.mrf.mxu1 }
 0x171   : > { %1695 = vst.msk [vmem:[%s2578_s8 + $0x90] sm:$0xff] %vm1676_vm1, %v1630_v59  ;;  %v1628_v51 = vmax.f32 %v1422_v5, 0.0  ;;  %v1433_v13 = vadd.f32 %v2012_v6, %v1144_v25  ;;  %v1168_v2 = vadd.f32 %v2567_v49, %v1167_v27 }
 0x172   : > { %v1169_v19 = vpop.f32.mrf.mxu0  ;;  %v1424_v14 = vpop.f32.mrf.mxu1 }
 0x173   : > { %1693 = vst.msk [vmem:[%s2578_s8 + $0x80] sm:$0xff] %vm1676_vm1, %v1628_v51  ;;  %v1631_v41 = vmax.f32 %v1433_v13, 0.0  ;;  %v1425_v18 = vadd.f32 %v1424_v14, %v1136_v57 }
 0x174   : > { %v1172_v21 = vpop.f32.mrf.mxu0  ;;  %v2015_v31 = vpop.f32.mrf.mxu1 }
 0x175   : > { %1696 = vst.msk [vmem:[%s2578_s8 + $0x98] sm:$0xff] %vm1676_vm1, %v1631_v41  ;;  %v1629_v9 = vmax.f32 %v1425_v18, 0.0  ;;  %v1446_v22 = vadd.f32 %v2015_v31, %v1157_v17  ;;  %v1173_v35 = vadd.f32 %v2567_v49, %v1172_v21 }
 0x176   : > { %v1174_v55 = vpop.f32.mrf.mxu0  ;;  %v1437_v23 = vpop.f32.mrf.mxu1 }
 0x177   : > { %1694 = vst.msk [vmem:[%s2578_s8 + $0x88] sm:$0xff] %vm1676_vm1, %v1629_v9  ;;  %v1634_v26 = vmax.f32 %v1446_v22, 0.0  ;;  %v1438_v30 = vadd.f32 %v1437_v23, %v1149_v63 }
 0x178   : > { %v1175_v33 = vpop.f32.mrf.mxu0  ;;  %v2016_v34 = vpop.f32.mrf.mxu1 }
 0x179   : > { %1699 = vst.msk [vmem:[%s2578_s8 + $0xb0] sm:$0xff] %vm1676_vm1, %v1634_v26  ;;  %v1632_v61 = vmax.f32 %v1438_v30, 0.0  ;;  %v1449_v11 = vadd.f32 %v2016_v34, %v1160_v29  ;;  %v1176_v58 = vadd.f32 %v2567_v49, %v1175_v33 }
 0x17a   : > { %v1177_v37 = vpop.f32.mrf.mxu0  ;;  %v1440_v42 = vpop.f32.mrf.mxu1 }
 0x17b   : > { %1697 = vst.msk [vmem:[%s2578_s8 + $0xa0] sm:$0xff] %vm1676_vm1, %v1632_v61  ;;  %v1635_v38 = vmax.f32 %v1449_v11, 0.0  ;;  %v1441_v3 = vadd.f32 %v1440_v42, %v1152_v43 }
 0x17c   : > { %v1180_v45 = vpop.f32.mrf.mxu0  ;;  %v2019_v46 = vpop.f32.mrf.mxu1 }
 0x17d   : > { %1700 = vst.msk [vmem:[%s2578_s8 + $0xb8] sm:$0xff] %vm1676_vm1, %v1635_v38  ;;  %v1633_v10 = vmax.f32 %v1441_v3, 0.0  ;;  %v1462_v47 = vadd.f32 %v2019_v46, %v1173_v35  ;;  %v1181_v19 = vadd.f32 %v2567_v49, %v1180_v45 }
 0x17e   : > { %v1182_v53 = vpop.f32.mrf.mxu0  ;;  %v1453_v15 = vpop.f32.mrf.mxu1 }
 0x17f   : > { %1698 = vst.msk [vmem:[%s2578_s8 + $0xa8] sm:$0xff] %vm1676_vm1, %v1633_v10  ;;  %v1638_v39 = vmax.f32 %v1462_v47, 0.0  ;;  %v1454_v62 = vadd.f32 %v1453_v15, %v1165_v50 }
 0x180   : > { %v1183_v7 = vpop.f32.mrf.mxu0  ;;  %v2020_v1 = vpop.f32.mrf.mxu1 }
 0x181   : > { %1703 = vst.msk [vmem:[%s2578_s8 + $0xd0] sm:$0xff] %vm1676_vm1, %v1638_v39  ;;  %v1636_v54 = vmax.f32 %v1454_v62, 0.0  ;;  %v1465_v25 = vadd.f32 %v2020_v1, %v1176_v58  ;;  %v1184_v9 = vadd.f32 %v2567_v49, %v1183_v7 }
 0x182   : > { %v1185_v59 = vpop.f32.mrf.mxu0  ;;  %v1456_v5 = vpop.f32.mrf.mxu1 }
 0x183   : > { %1701 = vst.msk [vmem:[%s2578_s8 + $0xc0] sm:$0xff] %vm1676_vm1, %v1636_v54  ;;  %v1639_v6 = vmax.f32 %v1465_v25, 0.0  ;;  %v1457_v57 = vadd.f32 %v1456_v5, %v1168_v2 }
 0x184   : > { %v1188_v51 = vpop.f32.mrf.mxu0  ;;  %v2023_v13 = vpop.f32.mrf.mxu1 }
 0x185   : > { %1704 = vst.msk [vmem:[%s2578_s8 + $0xd8] sm:$0xff] %vm1676_vm1, %v1639_v6  ;;  %v1637_v14 = vmax.f32 %v1457_v57, 0.0  ;;  %v1189_v27 = vadd.f32 %v2567_v49, %v1188_v51 }
 0x186   : > { %v1190_v17 = vpop.f32.mrf.mxu0  ;;  %v1469_v41 = vpop.f32.mrf.mxu1 }
 0x187   : > { %1702 = vst.msk [vmem:[%s2578_s8 + $0xc8] sm:$0xff] %vm1676_vm1, %v1637_v14  ;;  %v1478_v18 = vadd.f32 %v2023_v13, %v1189_v27  ;;  %v1470_v21 = vadd.f32 %v1469_v41, %v1181_v19 }
 0x188   : > { %v1191_v31 = vpop.f32.mrf.mxu0  ;;  %v2024_v63 = vpop.f32.mrf.mxu1 }
 0x189   : > { %v1642_v22 = vmax.f32 %v1478_v18, 0.0  ;;  %v1640_v55 = vmax.f32 %v1470_v21, 0.0  ;;  %v1192_v23 = vadd.f32 %v2567_v49, %v1191_v31 }
 0x18a   : > { %v1193_v29 = vpop.f32.mrf.mxu0  ;;  %v1472_v26 = vpop.f32.mrf.mxu1 }
 0x18b   : > { %1707 = vst.msk [vmem:[%s2578_s8 + $0xf0] sm:$0xff] %vm1676_vm1, %v1642_v22  ;;  %1705 = vst.msk [vmem:[%s2578_s8 + $0xe0] sm:$0xff] %vm1676_vm1, %v1640_v55  ;;  %v1481_v30 = vadd.f32 %v2024_v63, %v1192_v23  ;;  %v1473_v33 = vadd.f32 %v1472_v26, %v1184_v9 }
 0x18c   : > { %v1196_v34 = vpop.f32.mrf.mxu0  ;;  %v2027_v43 = vpop.f32.mrf.mxu1 }
 0x18d   : > { %v1643_v61 = vmax.f32 %v1481_v30, 0.0  ;;  %v1641_v11 = vmax.f32 %v1473_v33, 0.0  ;;  %v1197_v37 = vadd.f32 %v2567_v49, %v1196_v34 }
 0x18e   : > { %v1198_v42 = vpop.f32.mrf.mxu0  ;;  %v1485_v35 = vpop.f32.mrf.mxu1 }
 0x18f   : > { %1708 = vst.msk [vmem:[%s2578_s8 + $0xf8] sm:$0xff] %vm1676_vm1, %v1643_v61  ;;  %1706 = vst.msk [vmem:[%s2578_s8 + $0xe8] sm:$0xff] %vm1676_vm1, %v1641_v11  ;;  %v1486_v38 = vadd.f32 %v1485_v35, %v1197_v37 }
 0x190   : > { %v1199_v3 = vpop.f32.mrf.mxu0  ;;  %v2028_v45 = vpop.f32.mrf.mxu1 }
 0x191   : > { %v1644_v46 = vmax.f32 %v1486_v38, 0.0  ;;  %v1200_v50 = vadd.f32 %v2567_v49, %v1199_v3 }
 0x192   : > { %v1201_v10 = vpop.f32.mrf.mxu0  ;;  %v1488_v47 = vpop.f32.mrf.mxu1 }
 0x193   : > { %1709 = vst.msk [vmem:[%s2578_s8 + $0x100] sm:$0xff] %vm1676_vm1, %v1644_v46  ;;  %v1489_v53 = vadd.f32 %v1488_v47, %v1200_v50  ;;  %v1261_v47 = vadd.f32 %v2567_v49, %v2506_v52 }
 0x194   : > { %v1204_v15 = vpop.f32.mrf.mxu0  ;;  %v2031_v58 = vpop.f32.mrf.mxu1 }
 0x195   : > { %v1645_v39 = vmax.f32 %v1489_v53, 0.0  ;;  %v1205_v62 = vadd.f32 %v2567_v49, %v1204_v15 }
 0x196   : > { %v1206_v7 = vpop.f32.mrf.mxu0  ;;  %v1501_v1 = vpop.f32.mrf.mxu1 }
 0x197   : > { %1710 = vst.msk [vmem:[%s2578_s8 + $0x108] sm:$0xff] %vm1676_vm1, %v1645_v39  ;;  %v1494_v2 = vadd.f32 %v2027_v43, %v1205_v62  ;;  %v1272_v7 = vadd.f32 %v2567_v49, %v2516_v0 }
 0x198   : > { %v1207_v54 = vpop.f32.mrf.mxu0  ;;  %v2032_v25 = vpop.f32.mrf.mxu1 }
 0x199   : > { %v1646_v59 = vmax.f32 %v1494_v2, 0.0  ;;  %v1208_v5 = vadd.f32 %v2567_v49, %v1207_v54  ;;  %v1264_v54 = vadd.f32 %v2567_v49, %v2510_v56 }
 0x19a   : > { %v1209_v6 = vpop.f32.mrf.mxu0  ;;  %v1504_v57 = vpop.f32.mrf.mxu1 }
 0x19b   : > { %1711 = vst.msk [vmem:[%s2578_s8 + $0x110] sm:$0xff] %vm1676_vm1, %v1646_v59  ;;  %v1497_v51 = vadd.f32 %v2028_v45, %v1208_v5  ;;  %v1269_v45 = vadd.f32 %v2567_v49, %v2512_v60 }
 0x19c   : > { %v1212_v13 = vpop.f32.mrf.mxu0  ;;  %v2713_v19 = vpop.f32.mrf.mxu1 }
 0x19d   : > { %v1647_v14 = vmax.f32 %v1497_v51, 0.0  ;;  %v1213_v27 = vadd.f32 %v2567_v49, %v1212_v13  ;;  %v1285_v13 = vadd.f32 %v2567_v49, %v2526_v12 }
 0x19e   : > { %v1214_v17 = vpop.f32.mrf.mxu0  ;;  %v1517_v41 = vpop.f32.mrf.mxu1 }
 0x19f   : > { %1712 = vst.msk [vmem:[%s2578_s8 + $0x118] sm:$0xff] %vm1676_vm1, %v1647_v14  ;;  %v1502_v18 = vadd.f32 %v1501_v1, %v1213_v27  ;;  %v1277_v17 = vadd.f32 %v2567_v49, %v2520_v4 }
 0x1a0   : > { %v1215_v21 = vpop.f32.mrf.mxu0  ;;  %v2718_v31 = vpop.f32.mrf.mxu1 }
 0x1a1   : > { %v1648_v63 = vmax.f32 %v1502_v18, 0.0  ;;  %v1216_v9 = vadd.f32 %v2567_v49, %v1215_v21 }
 0x1a2   : > { %v1217_v22 = vpop.f32.mrf.mxu0  ;;  %v1520_v55 = vpop.f32.mrf.mxu1 }
 0x1a3   : > { %1713 = vst.msk [vmem:[%s2578_s8 + $0x120] sm:$0xff] %vm1676_vm1, %v1648_v63  ;;  %v1505_v23 = vadd.f32 %v1504_v57, %v1216_v9 }
 0x1a4   : > { %v1220_v29 = vpop.f32.mrf.mxu0  ;;  %v2723_v26 = vpop.f32.mrf.mxu1 }
 0x1a5   : > { %v1649_v30 = vmax.f32 %v1505_v23, 0.0  ;;  %v1221_v33 = vadd.f32 %v2567_v49, %v1220_v29 }
 0x1a6   : > { %v1222_v34 = vpop.f32.mrf.mxu0  ;;  %v2726_v43 = vpop.f32.mrf.mxu1 }
 0x1a7   : > { %1714 = vst.msk [vmem:[%s2578_s8 + $0x128] sm:$0xff] %vm1676_vm1, %v1649_v30  ;;  %v1510_v61 = vadd.f32 %v2031_v58, %v1221_v33  ;;  %v1280_v33 = vadd.f32 %v2567_v49, %v2524_v8 }
 0x1a8   : > { %v1223_v11 = vpop.f32.mrf.mxu0  ;;  %v2730_v37 = vpop.f32.mrf.mxu1 }
 0x1a9   : > { %v1650_v42 = vmax.f32 %v1510_v61, 0.0  ;;  %v1224_v35 = vadd.f32 %v2567_v49, %v1223_v11 }
 0x1aa   : > { %v1225_v38 = vpop.f32.mrf.mxu0  ;;  %v2733_v3 = vpop.f32.mrf.mxu1 }
 0x1ab   : > { %1715 = vst.msk [vmem:[%s2578_s8 + $0x130] sm:$0xff] %vm1676_vm1, %v1650_v42  ;;  %v1513_v46 = vadd.f32 %v2032_v25, %v1224_v35 }
 0x1ac   : > { %v1228_v50 = vpop.f32.mrf.mxu0  ;;  %v2043_v10 = vpop.f32.mrf.mxu1 }
 0x1ad   : > { %v1651_v53 = vmax.f32 %v1513_v46, 0.0  ;;  %v1229_v15 = vadd.f32 %v2567_v49, %v1228_v50  ;;  %v1558_v58 = vadd.f32 %v2043_v10, %v1269_v45  ;;  %v1293_v10 = vadd.f32 %v2567_v49, %v2534_v20 }
 0x1ae   : > { %v1230_v39 = vpop.f32.mrf.mxu0  ;;  %v1549_v62 = vpop.f32.mrf.mxu1 }
 0x1af   : > { %1716 = vst.msk [vmem:[%s2578_s8 + $0x138] sm:$0xff] %vm1676_vm1, %v1651_v53  ;;  %v1518_v60 = vadd.f32 %v1517_v41, %v1229_v15  ;;  %v1662_v1 = vmax.f32 %v1558_v58, 0.0  ;;  %v1550_v2 = vadd.f32 %v1549_v62, %v1261_v47 }
 0x1b0   : > { %v1231_v52 = vpop.f32.mrf.mxu0  ;;  %v2044_v25 = vpop.f32.mrf.mxu1 }
 0x1b1   : > { %v1652_v59 = vmax.f32 %v1518_v60, 0.0  ;;  %1727 = vst.msk [vmem:[%s2578_s8 + $0x190] sm:$0xff] %vm1676_vm1, %v1662_v1  ;;  %v1660_v5 = vmax.f32 %v1550_v2, 0.0  ;;  %v1232_v6 = vadd.f32 %v2567_v49, %v1231_v52  ;;  %v1561_v0 = vadd.f32 %v2044_v25, %v1272_v7 }
 0x1b2   : > { %v1233_v57 = vpop.f32.mrf.mxu0  ;;  %v1552_v51 = vpop.f32.mrf.mxu1  ;;  %v1296_v2 = vadd.f32 %v2567_v49, %v2538_v24 }
 0x1b3   : > { %1717 = vst.msk [vmem:[%s2578_s8 + $0x140] sm:$0xff] %vm1676_vm1, %v1652_v59  ;;  %1725 = vst.msk [vmem:[%s2578_s8 + $0x180] sm:$0xff] %vm1676_vm1, %v1660_v5  ;;  %v1521_v56 = vadd.f32 %v1520_v55, %v1232_v6  ;;  %v1663_v14 = vmax.f32 %v1561_v0, 0.0  ;;  %v1553_v27 = vadd.f32 %v1552_v51, %v1264_v54  ;;  %v1288_v55 = vadd.f32 %v2567_v49, %v2530_v16 }
 0x1b4   : > { %v1236_v41 = vpop.f32.mrf.mxu0  ;;  %v2047_v18 = vpop.f32.mrf.mxu1 }
 0x1b5   : > { %v1653_v21 = vmax.f32 %v1521_v56, 0.0  ;;  %1728 = vst.msk [vmem:[%s2578_s8 + $0x198] sm:$0xff] %vm1676_vm1, %v1663_v14  ;;  %v1661_v63 = vmax.f32 %v1553_v27, 0.0  ;;  %v1237_v12 = vadd.f32 %v2567_v49, %v1236_v41  ;;  %v1574_v9 = vadd.f32 %v2047_v18, %v1285_v13 }
 0x1b6   : > { %v1238_v22 = vpop.f32.mrf.mxu0  ;;  %v1565_v23 = vpop.f32.mrf.mxu1  ;;  %v1309_v13 = vadd.f32 %v2567_v49, %v2550_v36 }
 0x1b7   : > { %1718 = vst.msk [vmem:[%s2578_s8 + $0x148] sm:$0xff] %vm1676_vm1, %v1653_v21  ;;  %1726 = vst.msk [vmem:[%s2578_s8 + $0x188] sm:$0xff] %vm1676_vm1, %v1661_v63  ;;  %v1526_v4 = vadd.f32 %v2713_v19, %v1237_v12  ;;  %v1666_v29 = vmax.f32 %v1574_v9, 0.0  ;;  %v1566_v30 = vadd.f32 %v1565_v23, %v1277_v17  ;;  %v1301_v19 = vadd.f32 %v2567_v49, %v2542_v28 }
 0x1b8   : > { %v1239_v34 = vpop.f32.mrf.mxu0  ;;  %v2048_v61 = vpop.f32.mrf.mxu1  ;;  %v1312_v9 = vadd.f32 %v2567_v49, %v2554_v40 }
 0x1b9   : > { %v1654_v11 = vmax.f32 %v1526_v4, 0.0  ;;  %1731 = vst.msk [vmem:[%s2578_s8 + $0x1b0] sm:$0xff] %vm1676_vm1, %v1666_v29  ;;  %v1664_v16 = vmax.f32 %v1566_v30, 0.0  ;;  %v1240_v42 = vadd.f32 %v2567_v49, %v1239_v34  ;;  %v1577_v35 = vadd.f32 %v2048_v61, %v1288_v55 }
 0x1ba   : > { %v1241_v38 = vpop.f32.mrf.mxu0  ;;  %v1568_v45 = vpop.f32.mrf.mxu1 }
 0x1bb   : > { %1719 = vst.msk [vmem:[%s2578_s8 + $0x150] sm:$0xff] %vm1676_vm1, %v1654_v11  ;;  %1729 = vst.msk [vmem:[%s2578_s8 + $0x1a0] sm:$0xff] %vm1676_vm1, %v1664_v16  ;;  %v1529_v8 = vadd.f32 %v2718_v31, %v1240_v42  ;;  %v1667_v46 = vmax.f32 %v1577_v35, 0.0  ;;  %v1569_v50 = vadd.f32 %v1568_v45, %v1280_v33  ;;  %v1304_v31 = vadd.f32 %v2567_v49, %v2546_v32 }
 0x1bc   : > { %v1244_v47 = vpop.f32.mrf.mxu0  ;;  %v2051_v53 = vpop.f32.mrf.mxu1 }
 0x1bd   : > { %v1655_v15 = vmax.f32 %v1529_v8, 0.0  ;;  %1732 = vst.msk [vmem:[%s2578_s8 + $0x1b8] sm:$0xff] %vm1676_vm1, %v1667_v46  ;;  %v1665_v28 = vmax.f32 %v1569_v50, 0.0  ;;  %v1245_v58 = vadd.f32 %v2567_v49, %v1244_v47  ;;  %v1590_v39 = vadd.f32 %v2051_v53, %v1301_v19 }
 0x1be   : > { %v1246_v62 = vpop.f32.mrf.mxu0  ;;  %v1581_v7 = vpop.f32.mrf.mxu1 }
 0x1bf   : > { %1720 = vst.msk [vmem:[%s2578_s8 + $0x158] sm:$0xff] %vm1676_vm1, %v1655_v15  ;;  %1730 = vst.msk [vmem:[%s2578_s8 + $0x1a8] sm:$0xff] %vm1676_vm1, %v1665_v28  ;;  %v1534_v20 = vadd.f32 %v2726_v43, %v1245_v58  ;;  %v1670_v60 = vmax.f32 %v1590_v39, 0.0  ;;  %v1582_v1 = vadd.f32 %v1581_v7, %v1293_v10  ;;  %v1317_v43 = vadd.f32 %v2567_v49, %v2558_v44 }
 0x1c0   : > { %v1247_v54 = vpop.f32.mrf.mxu0  ;;  %v2052_v52 = vpop.f32.mrf.mxu1 }
 0x1c1   : > { %v1656_v25 = vmax.f32 %v1534_v20, 0.0  ;;  %1735 = vst.msk [vmem:[%s2578_s8 + $0x1d0] sm:$0xff] %vm1676_vm1, %v1670_v60  ;;  %v1668_v32 = vmax.f32 %v1582_v1, 0.0  ;;  %v1248_v59 = vadd.f32 %v2567_v49, %v1247_v54  ;;  %v1593_v5 = vadd.f32 %v2052_v52, %v1304_v31 }
 0x1c2   : > { %v1249_v6 = vpop.f32.mrf.mxu0  ;;  %v1584_v0 = vpop.f32.mrf.mxu1 }
 0x1c3   : > { %1721 = vst.msk [vmem:[%s2578_s8 + $0x160] sm:$0xff] %vm1676_vm1, %v1656_v25  ;;  %1733 = vst.msk [vmem:[%s2578_s8 + $0x1c0] sm:$0xff] %vm1676_vm1, %v1668_v32  ;;  %v1537_v24 = vadd.f32 %v2733_v3, %v1248_v59  ;;  %v1671_v57 = vmax.f32 %v1593_v5, 0.0  ;;  %v1585_v51 = vadd.f32 %v1584_v0, %v1296_v2  ;;  %v1320_v3 = vadd.f32 %v2567_v49, %v2562_v48 }
 0x1c4   : > { %v1252_v56 = vpop.f32.mrf.mxu0  ;;  %v2055_v14 = vpop.f32.mrf.mxu1 }
 0x1c5   : > { %v1657_v27 = vmax.f32 %v1537_v24, 0.0  ;;  %1736 = vst.msk [vmem:[%s2578_s8 + $0x1d8] sm:$0xff] %vm1676_vm1, %v1671_v57  ;;  %v1669_v44 = vmax.f32 %v1585_v51, 0.0  ;;  %v1253_v17 = vadd.f32 %v2567_v49, %v1252_v56  ;;  %v1606_v41 = vadd.f32 %v2055_v14, %v1317_v43 }
 0x1c6   : > { %v1254_v18 = vpop.f32.mrf.mxu0  ;;  %v1597_v21 = vpop.f32.mrf.mxu1 }
 0x1c7   : > { %1722 = vst.msk [vmem:[%s2578_s8 + $0x168] sm:$0xff] %vm1676_vm1, %v1657_v27  ;;  %1734 = vst.msk [vmem:[%s2578_s8 + $0x1c8] sm:$0xff] %vm1676_vm1, %v1669_v44  ;;  %v1542_v36 = vadd.f32 %v2723_v26, %v1253_v17  ;;  %v1674_v63 = vmax.f32 %v1606_v41, 0.0  ;;  %v1598_v12 = vadd.f32 %v1597_v21, %v1309_v13 }
 0x1c8   : > { %v1255_v22 = vpop.f32.mrf.mxu0  ;;  %v2056_v23 = vpop.f32.mrf.mxu1 }
 0x1c9   : > { %v1658_v55 = vmax.f32 %v1542_v36, 0.0  ;;  %1739 = vst.msk [vmem:[%s2578_s8 + $0x1f0] sm:$0xff] %vm1676_vm1, %v1674_v63  ;;  %v1672_v48 = vmax.f32 %v1598_v12, 0.0  ;;  %v1256_v4 = vadd.f32 %v2567_v49, %v1255_v22  ;;  %v1609_v29 = vadd.f32 %v2056_v23, %v1320_v3 }
 0x1ca   : > { %v1257_v30 = vpop.f32.mrf.mxu0  ;;  %v1600_v33 = vpop.f32.mrf.mxu1 }
 0x1cb   : > { %1723 = vst.msk [vmem:[%s2578_s8 + $0x170] sm:$0xff] %vm1676_vm1, %v1658_v55  ;;  %1737 = vst.msk [vmem:[%s2578_s8 + $0x1e0] sm:$0xff] %vm1676_vm1, %v1672_v48  ;;  %v1545_v40 = vadd.f32 %v2730_v37, %v1256_v4  ;;  %v1675_v26 = vmax.f32 %v1609_v29, 0.0  ;;  %v1601_v34 = vadd.f32 %v1600_v33, %v1312_v9 }
 0x1cd   : > { %v1659_v61 = vmax.f32 %v1545_v40, 0.0  ;;  %1740 = vst.msk [vmem:[%s2578_s8 + $0x1f8] sm:$0xff] %vm1676_vm1, %v1675_v26  ;;  %v1673_v11 = vmax.f32 %v1601_v34, 0.0 }
 0x1cf   : > { %1724 = vst.msk [vmem:[%s2578_s8 + $0x178] sm:$0xff] %vm1676_vm1, %v1659_v61  ;;  %1738 = vst.msk [vmem:[%s2578_s8 + $0x1e8] sm:$0xff] %vm1676_vm1, %v1673_v11 }
 0x1d0 PF: > { %s13_s12 = sadd.s32 1, %s2251_s12  }
 0x1d1   : > { %p10_p4 = scmp.ge.s32.totalorder %s13_s12, 4  }
 0x1d3   :  { %12 = sbr.rel (!%p10_p4) target bundleno = 1 (0x1), region = 62 }

// kernel: forward.8
= control target key start
LH: loop header
LB: loop body
LE: loop exit
PB: predicated region body
PF: predicated region fallthrough
CT: control target
= control target key end

     0   :  { %vm558_vm0 = vcmask 523264   ;;  %vm890_vm1 = vcmask 261120   ;;  %s1694_s1 = inlined_call_operand.vmem [shape: bf16[576,32], index: 1, kind: input, shape index: {}]   ;;  %s1695_s0 = inlined_call_operand.vmem [shape: bf16[128,576], index: 0, kind: input, shape index: {}]   ;;  %s1696_s2 = inlined_call_operand.vmem [shape: f32[1,32], index: 2, kind: input, shape index: {}]   ;;  %s1697_s3 = inlined_call_operand.vmem [shape: f32[128,32], index: 3, kind: output, shape index: {}]  }
   0x1   :  { %v1168_v0 = vld [vmem:[%s1694_s1 + $0x78] sm:$0xff]   ;;  %v1172_v4 = vld [vmem:[%s1694_s1 + $0x70] sm:$0xff]   ;;  %v1176_v8 = vld [vmem:[%s1694_s1 + $0x68] sm:$0xff]  }
   0x2   :  { %v1169_v1 = vld [vmem:[%s1694_s1 + $0xf8] sm:$0xff]   ;;  %996 = vmatprep.subr.bf16.mxu0 %v1168_v0  ;;  %v1173_v5 = vld [vmem:[%s1694_s1 + $0xf0] sm:$0xff]   ;;  %v1177_v9 = vld [vmem:[%s1694_s1 + $0xe8] sm:$0xff]  }
   0x3   :  { %v1170_v2 = vld [vmem:[%s1694_s1 + $0x38] sm:$0xff]   ;;  %1060 = vmatprep.subr.bf16.mxu1 %v1169_v1  ;;  %v1174_v6 = vld [vmem:[%s1694_s1 + $0x30] sm:$0xff]   ;;  %v1178_v10 = vld [vmem:[%s1694_s1 + $0x28] sm:$0xff]  }
   0x4   :  { %v1171_v3 = vld [vmem:[%s1694_s1 + $0xb8] sm:$0xff]   ;;  %997 = vmatpush3.bf16.msra.mxu0 %v1170_v2  ;;  %v1175_v7 = vld [vmem:[%s1694_s1 + $0xb0] sm:$0xff]   ;;  %v1179_v11 = vld [vmem:[%s1694_s1 + $0xa8] sm:$0xff]  }
   0x5   :  { %1061 = vmatpush3.bf16.msra.mxu1 %v1171_v3  ;;  %998 = vmatprep.subr.bf16.mxu0 %v1172_v4  ;;  %v1180_v12 = vld [vmem:[%s1694_s1 + $0x60] sm:$0xff]   ;;  %v1184_v16 = vld [vmem:[%s1694_s1 + $0x58] sm:$0xff]   ;;  %v1188_v20 = vld [vmem:[%s1694_s1 + $0x50] sm:$0xff]  }
   0x6   :  { %1062 = vmatprep.subr.bf16.mxu1 %v1173_v5  ;;  %v1181_v13 = vld [vmem:[%s1694_s1 + $0xe0] sm:$0xff]   ;;  %v1185_v17 = vld [vmem:[%s1694_s1 + $0xd8] sm:$0xff]   ;;  %v1189_v21 = vld [vmem:[%s1694_s1 + $0xd0] sm:$0xff]  }
   0x7   :  { %v1182_v14 = vld [vmem:[%s1694_s1 + $0x20] sm:$0xff]   ;;  %v1186_v18 = vld [vmem:[%s1694_s1 + $0x18] sm:$0xff]   ;;  %v1190_v22 = vld [vmem:[%s1694_s1 + $0x10] sm:$0xff]  }
   0x8   :  { %999 = vmatpush3.bf16.msra.mxu0 %v1174_v6  ;;  %v1183_v15 = vld [vmem:[%s1694_s1 + $0xa0] sm:$0xff]   ;;  %v1187_v19 = vld [vmem:[%s1694_s1 + $0x98] sm:$0xff]   ;;  %v1191_v23 = vld [vmem:[%s1694_s1 + $0x90] sm:$0xff]  }
   0x9   :  { %1063 = vmatpush3.bf16.msra.mxu1 %v1175_v7  ;;  %1000 = vmatprep.subr.bf16.mxu0 %v1176_v8  ;;  %v1192_v24 = vld [vmem:[%s1694_s1 + $0x48] sm:$0xff]   ;;  %v1196_v28 = vld [vmem:[%s1694_s1 + $0x40] sm:$0xff]   ;;  %v1206_v36 = vld [vmem:[%s1694_s1 + $0x118] sm:$0xff]  }
   0xa   :  { %1064 = vmatprep.subr.bf16.mxu1 %v1177_v9  ;;  %v1193_v25 = vld [vmem:[%s1694_s1 + $0xc8] sm:$0xff]   ;;  %v1197_v29 = vld [vmem:[%s1694_s1 + $0xc0] sm:$0xff]   ;;  %v1219_v42 = vld [vmem:[%s1694_s1 + $0x110] sm:$0xff]  }
   0xb   :  { %v1194_v26 = vld [vmem:[%s1694_s1 + $0x8] sm:$0xff]   ;;  %v1198_v30 = vld [vmem:[%s1694_s1] sm:$0xff]   ;;  %v1215_v43 = vld [vmem:[%s1695_s0 + $0x5c] ss:$20 sps:$4 sm:$0xff]  }
   0xc   :  { %1001 = vmatpush3.bf16.msra.mxu0 %v1178_v10  ;;  %v1195_v27 = vld [vmem:[%s1694_s1 + $0x88] sm:$0xff]   ;;  %v1199_v31 = vld [vmem:[%s1694_s1 + $0x80] sm:$0xff]   ;;  %v1220_v47 = vld [vmem:[%s1695_s0 + $0x7c] ss:$20 sps:$4 sm:$0xff]  }
   0xd   :  { %1065 = vmatpush3.bf16.msra.mxu1 %v1179_v11  ;;  %1002 = vmatprep.subr.bf16.mxu0 %v1180_v12  ;;  %v1200_v32 = vld [vmem:[%s1695_s0] ss:$20 sps:$4 sm:$0xff]   ;;  %v1202_v33 = vld [vmem:[%s1695_s0 + $0x4] ss:$20 sps:$4 sm:$0xff]   ;;  %v1203_v34 = vld [vmem:[%s1695_s0 + $0x8] ss:$20 sps:$4 sm:$0xff]  }
   0xe   :  { %1066 = vmatprep.subr.bf16.mxu1 %v1181_v13  ;;  %v1205_v35 = vld [vmem:[%s1695_s0 + $0xc] ss:$20 sps:$4 sm:$0xff]   ;;  %615 = vmatprep.mubr.bf16.mxu0 %v1202_v33  ;;  %v1209_v38 = vld [vmem:[%s1695_s0 + $0x34] ss:$20 sps:$4 sm:$0xff]   ;;  %v1212_v40 = vld [vmem:[%s1695_s0 + $0x30] ss:$20 sps:$4 sm:$0xff]  }
   0xf   :  { %712 = vmatprep.mubr.bf16.mxu1 %v1205_v35  ;;  %v1207_v37 = vld [vmem:[%s1695_s0 + $0x2c] ss:$20 sps:$4 sm:$0xff]   ;;  %v1211_v39 = vld [vmem:[%s1695_s0 + $0x28] ss:$20 sps:$4 sm:$0xff]   ;;  %v1217_v44 = vld [vmem:[%s1695_s0 + $0x50] ss:$20 sps:$4 sm:$0xff]  }
  0x10   :  { %1003 = vmatpush3.bf16.msra.mxu0 %v1182_v14  ;;  %v1213_v41 = vld [vmem:[%s1695_s0 + $0x54] ss:$20 sps:$4 sm:$0xff]   ;;  %v1218_v45 = vld [vmem:[%s1695_s0 + $0x58] ss:$20 sps:$4 sm:$0xff]   ;;  %v1245_v49 = vld [vmem:[%s1694_s1 + $0x100] sm:$0xff]  }
  0x11   :  { %1067 = vmatpush3.bf16.msra.mxu1 %v1183_v15  ;;  %1004 = vmatprep.subr.bf16.mxu0 %v1184_v16  ;;  %v1232_v46 = vld [vmem:[%s1694_s1 + $0x108] sm:$0xff]   ;;  %v1222_v48 = vld [vmem:[%s1695_s0 + $0x84] ss:$20 sps:$4 sm:$0xff]   ;;  %v1225_v51 = vld [vmem:[%s1695_s0 + $0x80] ss:$20 sps:$4 sm:$0xff]  }
  0x12   :  { %1068 = vmatprep.subr.bf16.mxu1 %v1185_v17  ;;  %v1224_v50 = vld [vmem:[%s1695_s0 + $0x78] ss:$20 sps:$4 sm:$0xff]   ;;  %v1230_v54 = vld [vmem:[%s1695_s0 + $0xa0] ss:$20 sps:$4 sm:$0xff]   ;;  %v1231_v55 = vld [vmem:[%s1695_s0 + $0xa8] ss:$20 sps:$4 sm:$0xff]  }
  0x13   :  { %v1226_v52 = vld [vmem:[%s1695_s0 + $0xa4] ss:$20 sps:$4 sm:$0xff]   ;;  %v1228_v53 = vld [vmem:[%s1695_s0 + $0xac] ss:$20 sps:$4 sm:$0xff]   ;;  %v1235_v57 = vld [vmem:[%s1695_s0 + $0xd4] ss:$20 sps:$4 sm:$0xff]  }
  0x14   :  { %1005 = vmatpush3.bf16.msra.mxu0 %v1186_v18  ;;  %v1233_v56 = vld [vmem:[%s1695_s0 + $0xcc] ss:$20 sps:$4 sm:$0xff]   ;;  %v1237_v58 = vld [vmem:[%s1695_s0 + $0xc8] ss:$20 sps:$4 sm:$0xff]   ;;  %v1238_v59 = vld [vmem:[%s1695_s0 + $0xd0] ss:$20 sps:$4 sm:$0xff]  }
  0x15   :  { %1069 = vmatpush3.bf16.msra.mxu1 %v1187_v19  ;;  %1006 = vmatprep.subr.bf16.mxu0 %v1188_v20  ;;  %v1239_v60 = vld [vmem:[%s1695_s0 + $0xf4] ss:$20 sps:$4 sm:$0xff]   ;;  %v1241_v61 = vld [vmem:[%s1695_s0 + $0xfc] ss:$20 sps:$4 sm:$0xff]   ;;  %v1244_v63 = vld [vmem:[%s1695_s0 + $0xf8] ss:$20 sps:$4 sm:$0xff]  }
  0x16   :  { %1070 = vmatprep.subr.bf16.mxu1 %v1189_v21  ;;  %v1243_v62 = vld [vmem:[%s1695_s0 + $0xf0] ss:$20 sps:$4 sm:$0xff]   ;;  %v1250_v2 = vld [vmem:[%s1695_s0 + $0x118] ss:$20 sps:$4 sm:$0xff]   ;;  %v1251_v3 = vld [vmem:[%s1695_s0 + $0x120] ss:$20 sps:$4 sm:$0xff]  }
  0x17   :  { %v1246_v0 = vld [vmem:[%s1695_s0 + $0x11c] ss:$20 sps:$4 sm:$0xff]   ;;  %v1248_v1 = vld [vmem:[%s1695_s0 + $0x124] ss:$20 sps:$4 sm:$0xff]   ;;  %v1256_v8 = vld [vmem:[%s1695_s0 + $0x60] ss:$20 sps:$4 sm:$0xff]  }
  0x18   :  { %1007 = vmatpush3.bf16.msra.mxu0 %v1190_v22  ;;  %v1252_v4 = vld [vmem:[%s1695_s0 + $0x10] ss:$20 sps:$4 sm:$0xff]   ;;  %v1254_v6 = vld [vmem:[%s1695_s0 + $0x38] ss:$20 sps:$4 sm:$0xff]   ;;  %v1257_v9 = vld [vmem:[%s1695_s0 + $0x100] ss:$20 sps:$4 sm:$0xff]  }
  0x19   :  { %1071 = vmatpush3.bf16.msra.mxu1 %v1191_v23  ;;  %1008 = vmatprep.subr.bf16.mxu0 %v1192_v24  ;;  %v1253_v5 = vld [vmem:[%s1695_s0 + $0xb0] ss:$20 sps:$4 sm:$0xff]   ;;  %v1255_v7 = vld [vmem:[%s1695_s0 + $0xd8] ss:$20 sps:$4 sm:$0xff]   ;;  %v1258_v10 = vld [vmem:[%s1695_s0 + $0x88] ss:$20 sps:$4 sm:$0xff]  }
  0x1a   :  { %1072 = vmatprep.subr.bf16.mxu1 %v1193_v25  ;;  %v1259_v11 = vld [vmem:[%s1695_s0 + $0x128] ss:$20 sps:$4 sm:$0xff]  }
  0x1c   :  { %1009 = vmatpush3.bf16.msra.mxu0 %v1194_v26 }
  0x1d   :  { %1073 = vmatpush3.bf16.msra.mxu1 %v1195_v27  ;;  %1010 = vmatprep.subr.bf16.mxu0 %v1196_v28 }
  0x1e   :  { %1074 = vmatprep.subr.bf16.mxu1 %v1197_v29 }
  0x20   :  { %1011 = vmatpush3.bf16.msra.mxu0 %v1198_v30 }
  0x21   :  { %1075 = vmatpush3.bf16.msra.mxu1 %v1199_v31  ;;  %1136 = vmatprep.subr.bf16.mxu0 %v1206_v36 }
  0x22   :  { %1160 = vmatprep.subr.bf16.mxu1 %v1206_v36 }
  0x23   :  { %616 = vmatmul.mubr.bf16.vlgmr.msra.gmra.mxu0 %v1200_v32 }
  0x24   :  { %713 = vmatmul.mubr.bf16.vlgmr.msra.gmra.mxu1 %v1203_v34  ;;  %1137 = vmatpush3.bf16.msra.mxu0 %v1206_v36 }
  0x25   :  { %1164 = vmatpush3.bf16.msra.mxu1 %v1206_v36  ;;  %623 = vmatprep.mubr.bf16.mxu0 %v1207_v37 }
  0x26   :  { %720 = vmatprep.mubr.bf16.mxu1 %v1209_v38  ;;  %1138 = vmatprep.subr.bf16.mxu0 %v1219_v42 }
  0x27   :  { %1161 = vmatprep.subr.bf16.mxu1 %v1219_v42 }
  0x28   :  { %1139 = vmatpush3.bf16.msra.mxu0 %v1219_v42 }
  0x29   :  { %1165 = vmatpush3.bf16.msra.mxu1 %v1219_v42  ;;  %1140 = vmatprep.subr.bf16.mxu0 %v1232_v46 }
  0x2a   :  { %1162 = vmatprep.subr.bf16.mxu1 %v1232_v46 }
  0x2b   :  { %624 = vmatmul.mubr.bf16.gmra.mxu0 %v1211_v39 }
  0x2c   :  { %721 = vmatmul.mubr.bf16.gmra.mxu1 %v1212_v40  ;;  %631 = vmatprep.mubr.bf16.mxu0 %v1213_v41 }
  0x2d   :  { %728 = vmatprep.mubr.bf16.mxu1 %v1215_v43  ;;  %1141 = vmatpush3.bf16.msra.mxu0 %v1232_v46 }
  0x2e   :  { %1166 = vmatpush3.bf16.msra.mxu1 %v1232_v46  ;;  %1142 = vmatprep.subr.bf16.mxu0 %v1245_v49 }
  0x2f   :  { %1163 = vmatprep.subr.bf16.mxu1 %v1245_v49 }
  0x31   :  { %1143 = vmatpush3.bf16.msra.mxu0 %v1245_v49 }
  0x32   :  { %1167 = vmatpush3.bf16.msra.mxu1 %v1245_v49 }
  0x33   :  { %632 = vmatmul.mubr.bf16.gmra.mxu0 %v1217_v44 }
  0x34   :  { %729 = vmatmul.mubr.bf16.gmra.mxu1 %v1218_v45  ;;  %639 = vmatprep.mubr.bf16.mxu0 %v1220_v47 }
  0x35   :  { %736 = vmatprep.mubr.bf16.mxu1 %v1222_v48 }
  0x3b   :  { %640 = vmatmul.mubr.bf16.gmra.mxu0 %v1224_v50 }
  0x3c   :  { %737 = vmatmul.mubr.bf16.gmra.mxu1 %v1225_v51  ;;  %647 = vmatprep.mubr.bf16.mxu0 %v1226_v52 }
  0x3d   :  { %744 = vmatprep.mubr.bf16.mxu1 %v1228_v53 }
  0x43   :  { %648 = vmatmul.mubr.bf16.gmra.mxu0 %v1230_v54 }
  0x44   :  { %745 = vmatmul.mubr.bf16.gmra.mxu1 %v1231_v55  ;;  %655 = vmatprep.mubr.bf16.mxu0 %v1233_v56 }
  0x45   :  { %752 = vmatprep.mubr.bf16.mxu1 %v1235_v57 }
  0x4b   :  { %656 = vmatmul.mubr.bf16.gmra.mxu0 %v1237_v58 }
  0x4c   :  { %753 = vmatmul.mubr.bf16.gmra.mxu1 %v1238_v59  ;;  %663 = vmatprep.mubr.bf16.mxu0 %v1239_v60 }
  0x4d   :  { %760 = vmatprep.mubr.bf16.mxu1 %v1241_v61 }
  0x53   :  { %664 = vmatmul.mubr.bf16.gmra.mxu0 %v1243_v62 }
  0x54   :  { %761 = vmatmul.mubr.bf16.gmra.mxu1 %v1244_v63  ;;  %671 = vmatprep.mubr.bf16.mxu0 %v1246_v0 }
  0x55   :  { %768 = vmatprep.mubr.bf16.mxu1 %v1248_v1 }
  0x5b   :  { %672 = vmatmul.mubr.bf16.gmra.mxu0 %v1250_v2  ;;  %v1567_v2 = vld [vmem:[%s1696_s2] ss:$0 sm:$0xff] }
  0x5c   :  { %769 = vmatmul.mubr.bf16.gmra.mxu1 %v1251_v3  ;;  %1144 = vmatprep.mubr.msk.bf16.mxu0 %vm558_vm0, %v1252_v4 }
  0x5d   :  { %1152 = vmatprep.mubr.msk.bf16.mxu1 %vm558_vm0, %v1253_v5 }
  0x63   :  { %1145 = vmatmul.mubr.msk.bf16.vlgmr.msra.gmra.mxu0 %vm558_vm0, %v1254_v6 }
  0x64   :  { %1153 = vmatmul.mubr.msk.bf16.vlgmr.msra.gmra.mxu1 %vm558_vm0, %v1255_v7  ;;  %1148 = vmatprep.mubr.msk.bf16.mxu0 %vm558_vm0, %v1256_v8 }
  0x65   :  { %1156 = vmatprep.mubr.msk.bf16.mxu1 %vm558_vm0, %v1257_v9 }
  0x6b   :  { %1149 = vmatmul.mubr.msk.bf16.gmra.mxu0 %vm558_vm0, %v1258_v10 }
  0x6c   :  { %1157 = vmatmul.mubr.msk.bf16.gmra.mxu1 %vm558_vm0, %v1259_v11 }
  0xe3   :  { %v1012_v12 = vpop.f32.mrf.mxu0 }
  0xe4   :  { %v1516_v13 = vpop.f32.mrf.mxu1 }
  0xe5   :  { %v1013_v14 = vpop.f32.mrf.mxu0 }
  0xe6   :  { %v1518_v15 = vpop.f32.mrf.mxu1  ;;  %v1014_v0 = vadd.f32 %v1013_v14, %v1012_v12 }
  0xe7   :  { %v1015_v16 = vpop.f32.mrf.mxu0  ;;  %v1078_v14 = vadd.f32 %v1518_v15, %v1516_v13 }
  0xe8   :  { %v1520_v17 = vpop.f32.mrf.mxu1  ;;  %v618_v10 = vadd.f32 %v1014_v0, %v1567_v2 }
  0xe9   :  { %v1016_v18 = vpop.f32.mrf.mxu0 }
  0xea   :  { %v1080_v19 = vpop.f32.mrf.mxu1  ;;  %v1017_v3 = vadd.f32 %v1016_v18, %v1015_v16 }
  0xeb   :  { %v1018_v20 = vpop.f32.mrf.mxu0  ;;  %v1081_v16 = vadd.f32 %v1080_v19, %v1520_v17  ;;  %v715_v17 = vadd.f32 %v1078_v14, %v618_v10 }
  0xec   :  { %v1522_v21 = vpop.f32.mrf.mxu1 }
  0xed   :  { %v1019_v22 = vpop.f32.mrf.mxu0 }
  0xee   :  { %v1524_v23 = vpop.f32.mrf.mxu1  ;;  %v1020_v5 = vadd.f32 %v1019_v22, %v1018_v20 }
  0xef   :  { %v1021_v24 = vpop.f32.mrf.mxu0  ;;  %v1084_v13 = vadd.f32 %v1524_v23, %v1522_v21 }
  0xf0   :  { %v1526_v25 = vpop.f32.mrf.mxu1  ;;  %v626_v18 = vadd.f32 %v1020_v5, %v1567_v2 }
  0xf1   :  { %v1022_v26 = vpop.f32.mrf.mxu0 }
  0xf2   :  { %v1528_v27 = vpop.f32.mrf.mxu1  ;;  %v1023_v7 = vadd.f32 %v1022_v26, %v1021_v24 }
  0xf3   :  { %v1024_v28 = vpop.f32.mrf.mxu0  ;;  %v1087_v19 = vadd.f32 %v1528_v27, %v1526_v25 }
  0xf4   :  { %v1530_v29 = vpop.f32.mrf.mxu1  ;;  %v629_v26 = vadd.f32 %v1023_v7, %v1567_v2 }
  0xf5   :  { %v1025_v30 = vpop.f32.mrf.mxu0 }
  0xf6   :  { %v1532_v31 = vpop.f32.mrf.mxu1  ;;  %v1026_v8 = vadd.f32 %v1025_v30, %v1024_v28  ;;  %v726_v27 = vadd.f32 %v1087_v19, %v629_v26 }
  0xf7   :  { %v1027_v32 = vpop.f32.mrf.mxu0 }
  0xf8   :  { %v1534_v33 = vpop.f32.mrf.mxu1  ;;  %v634_v28 = vadd.f32 %v1026_v8, %v1567_v2 }
  0xf9   :  { %1698 = vst [vmem:[#allocation2_spill] sm:$0xff] %v1534_v33  ;;  %v1028_v34 = vpop.f32.mrf.mxu0 }
  0xfa   :  { %v1536_v35 = vpop.f32.mrf.mxu1  ;;  %v1029_v30 = vadd.f32 %v1028_v34, %v1027_v32 }
  0xfb   :  { %1699 = vst [vmem:[#allocation3_spill] sm:$0xff] %v1536_v35  ;;  %v1030_v36 = vpop.f32.mrf.mxu0  ;;  %v621_v35 = vadd.f32 %v1017_v3, %v1567_v2 }
  0xfc   :  { %v1538_v37 = vpop.f32.mrf.mxu1 }
  0xfd   :  { %v1031_v38 = vpop.f32.mrf.mxu0  ;;  %v718_v32 = vadd.f32 %v1081_v16, %v621_v35 }
  0xfe   :  { %v1540_v39 = vpop.f32.mrf.mxu1  ;;  %v1032_v20 = vadd.f32 %v1031_v38, %v1030_v36  ;;  %v1090_v36 = vadd.f32 %v1532_v31, %v1530_v29 }
  0xff   :  { %v1542_v40 = vpop.f32.mrf.mxu0  ;;  %v1096_v29 = vadd.f32 %v1540_v39, %v1538_v37 }
 0x100   :  { %v1544_v41 = vpop.f32.mrf.mxu1  ;;  %v642_v34 = vadd.f32 %v1032_v20, %v1567_v2  ;;  %v1600_v5 = vadd.f32 %v1090_v36, %v634_v28 }
 0x101   :  { %v1546_v42 = vpop.f32.mrf.mxu0 }
 0x102   :  { %v1548_v43 = vpop.f32.mrf.mxu1  ;;  %v739_v20 = vadd.f32 %v1096_v29, %v642_v34 }
 0x103   :  { %v1036_v44 = vpop.f32.mrf.mxu0 }
 0x104   :  { %v1550_v45 = vpop.f32.mrf.mxu1 }
 0x105   :  { %v1037_v46 = vpop.f32.mrf.mxu0 }
 0x106   :  { %v1552_v47 = vpop.f32.mrf.mxu1  ;;  %v1038_v22 = vadd.f32 %v1037_v46, %v1036_v44 }
 0x107   :  { %v1039_v48 = vpop.f32.mrf.mxu0  ;;  %v1102_v31 = vadd.f32 %v1552_v47, %v1550_v45 }
 0x108   :  { %v1554_v49 = vpop.f32.mrf.mxu1  ;;  %v650_v46 = vadd.f32 %v1038_v22, %v1567_v2 }
 0x109   :  { %v1040_v50 = vpop.f32.mrf.mxu0 }
 0x10a   :  { %v1556_v51 = vpop.f32.mrf.mxu1  ;;  %v1041_v38 = vadd.f32 %v1040_v50, %v1039_v48 }
 0x10b   :  { %v1042_v52 = vpop.f32.mrf.mxu0  ;;  %v1105_v37 = vadd.f32 %v1556_v51, %v1554_v49 }
 0x10c   :  { %v1106_v53 = vpop.f32.mrf.mxu1 }
 0x10d   :  { %v1043_v54 = vpop.f32.mrf.mxu0 }
 0x10e   :  { %v1107_v55 = vpop.f32.mrf.mxu1  ;;  %v1044_v11 = vadd.f32 %v1043_v54, %v1042_v52 }
 0x10f   :  { %v1045_v56 = vpop.f32.mrf.mxu0  ;;  %v1108_v21 = vadd.f32 %v1107_v55, %v1106_v53  ;;  %v653_v53 = vadd.f32 %v1041_v38, %v1567_v2 }
 0x110   :  { %v1109_v57 = vpop.f32.mrf.mxu1  ;;  %v658_v15 = vadd.f32 %v1044_v11, %v1567_v2  ;;  %v1035_v11 = vadd.f32 %v1546_v42, %v1542_v40 }
 0x111   :  { %v1046_v58 = vpop.f32.mrf.mxu0  ;;  %v750_v51 = vadd.f32 %v1105_v37, %v653_v53 }
 0x112   :  { %v1110_v59 = vpop.f32.mrf.mxu1  ;;  %v1047_v52 = vadd.f32 %v1046_v58, %v1045_v56  ;;  %v723_v56 = vadd.f32 %v1084_v13, %v626_v18  ;;  %v1597_v58 = vadd.f32 %v1029_v30, %v1567_v2  ;;  %v755_v50 = vadd.f32 %v1108_v21, %v658_v15 }
 0x113   :  { %v1048_v60 = vpop.f32.mrf.mxu0  ;;  %v1111_v55 = vadd.f32 %v1110_v59, %v1109_v57  ;;  %v747_v18 = vadd.f32 %v1102_v31, %v650_v46  ;;  %v645_v15 = vadd.f32 %v1035_v11, %v1567_v2 }
 0x114   :  { %v1558_v61 = vpop.f32.mrf.mxu1  ;;  %v661_v3 = vadd.f32 %v1047_v52, %v1567_v2 }
 0x115   :  { %v1049_v62 = vpop.f32.mrf.mxu0 }
 0x116   :  { %v1560_v63 = vpop.f32.mrf.mxu1  ;;  %v1050_v7 = vadd.f32 %v1049_v62, %v1048_v60 }
 0x117   :  { %v1562_v1 = vpop.f32.mrf.mxu0 }
 0x118   :  { %v1569_v4 = vpop.f32.mrf.mxu1 }
 0x119   :  { %v1571_v6 = vpop.f32.mrf.mxu0 }
 0x11a   :  { %v1573_v9 = vpop.f32.mrf.mxu1  ;;  %v1053_v26 = vadd.f32 %v1571_v6, %v1562_v1 }
 0x11b   :  { %v1054_v12 = vpop.f32.mrf.mxu0 }
 0x11c   :  { %v1579_v33 = vpop.f32.mrf.mxu1  ;;  %v669_v21 = vadd.f32 %v1053_v26, %v1567_v2 }
 0x11d   :  { %v1055_v24 = vpop.f32.mrf.mxu0 }
 0x11e   :  { %v1119_v54 = vpop.f32.mrf.mxu1  ;;  %v1056_v35 = vadd.f32 %v1055_v24, %v1054_v12  ;;  %v758_v12 = vadd.f32 %v1111_v55, %v661_v3  ;;  %v666_v24 = vadd.f32 %v1050_v7, %v1567_v2  ;;  %v1700_v3 = vld [vmem:[#allocation2_spill] sm:$0xff] }
 0x11f   :  { %v1057_v0 = vpop.f32.mrf.mxu0  ;;  %v1120_v28 = vadd.f32 %v1119_v54, %v1579_v33 }
 0x120   :  { %v1592_v44 = vpop.f32.mrf.mxu1  ;;  %v674_v22 = vadd.f32 %v1056_v35, %v1567_v2  ;;  %v1117_v35 = vadd.f32 %v1573_v9, %v1569_v4 }
 0x121   :  { %v1058_v23 = vpop.f32.mrf.mxu0 }
 0x122   :  { %v1122_v25 = vpop.f32.mrf.mxu1  ;;  %v1059_v57 = vadd.f32 %v1058_v23, %v1057_v0  ;;  %v1114_v0 = vadd.f32 %v1560_v63, %v1558_v61  ;;  %v771_v38 = vadd.f32 %v1120_v28, %v674_v22  ;;  %v1099_v61 = vadd.f32 %v1548_v43, %v1544_v41 }
 0x123   :  { %v1146_v48 = vpop.f32.mrf.mxu0  ;;  %v1123_v23 = vadd.f32 %v1122_v25, %v1592_v44 }
 0x124   :  { %v820_v8 = vadd.f32 %v1146_v48, %v723_v56  ;;  %v1154_v10 = vpop.f32.mrf.mxu1  ;;  %v677_v54 = vadd.f32 %v1059_v57, %v1567_v2  ;;  %v763_v46 = vadd.f32 %v1114_v0, %v666_v24  ;;  %v742_v25 = vadd.f32 %v1099_v61, %v645_v15 }
 0x125   :  { %v852_v14 = vadd.f32 %v1154_v10, %v755_v50  ;;  %v811_v16 = vpop.f32.mrf.mxu0 }
 0x126   :  { %v876_v39 = vmax.f32 %v820_v8, 0.0  ;;  %v812_v45 = vadd.f32 %v811_v16, %v715_v17  ;;  %v843_v47 = vpop.f32.mrf.mxu1  ;;  %v774_v55 = vadd.f32 %v1123_v23, %v677_v54 }
 0x127   :  { %v884_v59 = vmax.f32 %v852_v14, 0.0  ;;  %v844_v60 = vadd.f32 %v843_v47, %v747_v18  ;;  %v1147_v62 = vpop.f32.mrf.mxu0  ;;  %v766_v14 = vadd.f32 %v1117_v35, %v669_v21 }
 0x128   :  { %893 = vst.msk [vmem:[%s1697_s3 + $0x10] sm:$0xff] %vm890_vm1, %v876_v39  ;;  %v874_v40 = vmax.f32 %v812_v45, 0.0  ;;  %v823_v42 = vadd.f32 %v1147_v62, %v726_v27  ;;  %v1155_v49 = vpop.f32.mrf.mxu1  ;;  %v1701_v27 = vld [vmem:[#allocation3_spill] sm:$0xff] }
 0x129   :  { %901 = vst.msk [vmem:[%s1697_s3 + $0x50] sm:$0xff] %vm890_vm1, %v884_v59  ;;  %v882_v30 = vmax.f32 %v844_v60, 0.0  ;;  %v855_v52 = vadd.f32 %v1155_v49, %v758_v12  ;;  %v814_v13 = vpop.f32.mrf.mxu0  ;;  %v1093_v29 = vadd.f32 %v1701_v27, %v1700_v3 }
 0x12a   :  { %891 = vst.msk [vmem:[%s1697_s3] sm:$0xff] %vm890_vm1, %v874_v40  ;;  %v877_v1 = vmax.f32 %v823_v42, 0.0  ;;  %v815_v33 = vadd.f32 %v814_v13, %v718_v32  ;;  %v846_v6 = vpop.f32.mrf.mxu1 }
 0x12b   :  { %899 = vst.msk [vmem:[%s1697_s3 + $0x40] sm:$0xff] %vm890_vm1, %v882_v30  ;;  %v885_v17 = vmax.f32 %v855_v52, 0.0  ;;  %v847_v19 = vadd.f32 %v846_v6, %v750_v51  ;;  %v1150_v36 = vpop.f32.mrf.mxu0  ;;  %v734_v10 = vadd.f32 %v1093_v29, %v1597_v58 }
 0x12c   :  { %894 = vst.msk [vmem:[%s1697_s3 + $0x18] sm:$0xff] %vm890_vm1, %v877_v1  ;;  %v875_v63 = vmax.f32 %v815_v33, 0.0  ;;  %v836_v32 = vadd.f32 %v1150_v36, %v739_v20  ;;  %v1158_v34 = vpop.f32.mrf.mxu1 }
 0x12d   :  { %902 = vst.msk [vmem:[%s1697_s3 + $0x58] sm:$0xff] %vm890_vm1, %v885_v17  ;;  %v883_v56 = vmax.f32 %v847_v19, 0.0  ;;  %v868_v41 = vadd.f32 %v1158_v34, %v771_v38  ;;  %v827_v43 = vpop.f32.mrf.mxu0 }
 0x12e   :  { %892 = vst.msk [vmem:[%s1697_s3 + $0x8] sm:$0xff] %vm890_vm1, %v875_v63  ;;  %v880_v31 = vmax.f32 %v836_v32, 0.0  ;;  %v828_v2 = vadd.f32 %v827_v43, %v1600_v5  ;;  %v859_v44 = vpop.f32.mrf.mxu1 }
 0x12f   :  { %900 = vst.msk [vmem:[%s1697_s3 + $0x48] sm:$0xff] %vm890_vm1, %v883_v56  ;;  %v888_v48 = vmax.f32 %v868_v41, 0.0  ;;  %v860_v50 = vadd.f32 %v859_v44, %v763_v46  ;;  %v1151_v53 = vpop.f32.mrf.mxu0 }
 0x130   :  { %897 = vst.msk [vmem:[%s1697_s3 + $0x30] sm:$0xff] %vm890_vm1, %v880_v31  ;;  %v878_v5 = vmax.f32 %v828_v2, 0.0  ;;  %v839_v7 = vadd.f32 %v1151_v53, %v742_v25  ;;  %v1159_v8 = vpop.f32.mrf.mxu1 }
 0x131   :  { %905 = vst.msk [vmem:[%s1697_s3 + $0x70] sm:$0xff] %vm890_vm1, %v888_v48  ;;  %v886_v4 = vmax.f32 %v860_v50, 0.0  ;;  %v871_v9 = vadd.f32 %v1159_v8, %v774_v55  ;;  %v830_v11 = vpop.f32.mrf.mxu0 }
 0x132   :  { %895 = vst.msk [vmem:[%s1697_s3 + $0x20] sm:$0xff] %vm890_vm1, %v878_v5  ;;  %v881_v16 = vmax.f32 %v839_v7, 0.0  ;;  %v831_v18 = vadd.f32 %v830_v11, %v734_v10  ;;  %v862_v20 = vpop.f32.mrf.mxu1 }
 0x133   :  { %903 = vst.msk [vmem:[%s1697_s3 + $0x60] sm:$0xff] %vm890_vm1, %v886_v4  ;;  %v889_v58 = vmax.f32 %v871_v9, 0.0  ;;  %v863_v37 = vadd.f32 %v862_v20, %v766_v14 }
 0x134   :  { %898 = vst.msk [vmem:[%s1697_s3 + $0x38] sm:$0xff] %vm890_vm1, %v881_v16  ;;  %v879_v39 = vmax.f32 %v831_v18, 0.0 }
 0x135   :  { %906 = vst.msk [vmem:[%s1697_s3 + $0x78] sm:$0xff] %vm890_vm1, %v889_v58  ;;  %v887_v45 = vmax.f32 %v863_v37, 0.0 }
 0x136   :  { %896 = vst.msk [vmem:[%s1697_s3 + $0x28] sm:$0xff] %vm890_vm1, %v879_v39 }
 0x137   :  { %904 = vst.msk [vmem:[%s1697_s3 + $0x68] sm:$0xff] %vm890_vm1, %v887_v45 }

// kernel: forward.9
= control target key start
LH: loop header
LB: loop body
LE: loop exit
PB: predicated region body
PF: predicated region fallthrough
CT: control target
= control target key end

     0   :  { %vm9727_vm0 = vmmov 0   ;;  %s13342_s1 = inlined_call_operand.vmem [shape: bf16[2048,1024], index: 1, kind: input, shape index: {}]   ;;  %s13343_s0 = inlined_call_operand.vmem [shape: bf16[8,2048], index: 0, kind: input, shape index: {}]   ;;  %s13344_s2 = inlined_call_operand.vmem [shape: f32[1,1024], index: 2, kind: input, shape index: {}]   ;;  %s13345_s3 = inlined_call_operand.vmem [shape: bf16[1024,128], index: 3, kind: input, shape index: {}]   ;;  %s13346_s5 = inlined_call_operand.vmem [shape: bf16[128,128], index: 5, kind: input, shape index: {}]   ;;  %s13347_s4 = inlined_call_operand.vmem [shape: f32[1,128], index: 4, kind: input, shape index: {}]   ;;  %s13348_s6 = inlined_call_operand.vmem [shape: f32[1,128], index: 6, kind: input, shape index: {}]   ;;  %s13349_s7 = inlined_call_operand.vmem [shape: f32[8,128], index: 7, kind: output, shape index: {}]  }
   0x1   :  { %v91_v0 = vld [vmem:[%s13342_s1 + $0x1c0] sm:$0xff]  ;;  %v9860_v54 = vld [vmem:[%s13343_s0 + $0x8] sm:$0xff] }
   0x2   :  { %v95_v1 = vld [vmem:[%s13342_s1 + $0x1e0] sm:$0xff]  ;;  %v9874_v59 = vcombine.high %v9860_v54, %v9860_v54 }
   0x3   :  { %v219_v2 = vld [vmem:[%s13342_s1 + $0x5c0] sm:$0xff]  ;;  %v8475_v3 = vcombine.high %v91_v0, %v95_v1  ;;  %v8474_v5 = vcombine.low %v91_v0, %v95_v1 }
   0x4   :  { %v223_v4 = vld [vmem:[%s13342_s1 + $0x5e0] sm:$0xff]  ;;  %6350 = vmatprep.mubr.bf16.mxu1 %v9874_v59 }
   0x5   :  { %v83_v6 = vld [vmem:[%s13342_s1 + $0x180] sm:$0xff]  ;;  %v8603_v8 = vcombine.high %v219_v2, %v223_v4  ;;  %v8602_v9 = vcombine.low %v219_v2, %v223_v4  ;;  %6277 = vmatprep.subr.bf16.mxu0 %v8475_v3 }
   0x6   :  { %v87_v7 = vld [vmem:[%s13342_s1 + $0x1a0] sm:$0xff]  ;;  %6278 = vmatpush1.bf16.msra.mxu0 %v8474_v5 }
   0x7   :  { %v8467_v10 = vcombine.high %v83_v6, %v87_v7  ;;  %v211_v11 = vld [vmem:[%s13342_s1 + $0x580] sm:$0xff]  ;;  %6318 = vmatprep.subr.bf16.mxu1 %v8603_v8  ;;  %v8466_v18 = vcombine.low %v83_v6, %v87_v7 }
   0x8   :  { %v215_v12 = vld [vmem:[%s13342_s1 + $0x5a0] sm:$0xff]  ;;  %6319 = vmatpush1.bf16.msra.mxu1 %v8602_v9 }
   0x9   :  { %v75_v13 = vld [vmem:[%s13342_s1 + $0x140] sm:$0xff]  ;;  %v8595_v14 = vcombine.high %v211_v11, %v215_v12  ;;  %6279 = vmatprep.subr.bf16.mxu0 %v8467_v10  ;;  %v8594_v19 = vcombine.low %v211_v11, %v215_v12 }
   0xa   :  { %v79_v15 = vld [vmem:[%s13342_s1 + $0x160] sm:$0xff]  ;;  %6280 = vmatpush1.bf16.msra.mxu0 %v8466_v18 }
   0xb   :  { %v203_v16 = vld [vmem:[%s13342_s1 + $0x540] sm:$0xff]  ;;  %v8459_v20 = vcombine.high %v75_v13, %v79_v15  ;;  %6320 = vmatprep.subr.bf16.mxu1 %v8595_v14  ;;  %v8458_v26 = vcombine.low %v75_v13, %v79_v15 }
   0xc   :  { %v207_v17 = vld [vmem:[%s13342_s1 + $0x560] sm:$0xff]  ;;  %6321 = vmatpush1.bf16.msra.mxu1 %v8594_v19 }
   0xd   :  { %v8587_v21 = vcombine.high %v203_v16, %v207_v17  ;;  %v67_v22 = vld [vmem:[%s13342_s1 + $0x100] sm:$0xff]  ;;  %6281 = vmatprep.subr.bf16.mxu0 %v8459_v20  ;;  %v8586_v27 = vcombine.low %v203_v16, %v207_v17 }
   0xe   :  { %v71_v23 = vld [vmem:[%s13342_s1 + $0x120] sm:$0xff]  ;;  %6282 = vmatpush1.bf16.msra.mxu0 %v8458_v26 }
   0xf   :  { %v195_v24 = vld [vmem:[%s13342_s1 + $0x500] sm:$0xff]  ;;  %v8451_v28 = vcombine.high %v67_v22, %v71_v23  ;;  %6322 = vmatprep.subr.bf16.mxu1 %v8587_v21  ;;  %v8450_v34 = vcombine.low %v67_v22, %v71_v23 }
  0x10   :  { %v199_v25 = vld [vmem:[%s13342_s1 + $0x520] sm:$0xff]  ;;  %6323 = vmatpush1.bf16.msra.mxu1 %v8586_v27 }
  0x11   :  { %v8579_v29 = vcombine.high %v195_v24, %v199_v25  ;;  %v59_v30 = vld [vmem:[%s13342_s1 + $0xc0] sm:$0xff]  ;;  %6283 = vmatprep.subr.bf16.mxu0 %v8451_v28  ;;  %v8578_v35 = vcombine.low %v195_v24, %v199_v25 }
  0x12   :  { %v63_v31 = vld [vmem:[%s13342_s1 + $0xe0] sm:$0xff]  ;;  %6284 = vmatpush1.bf16.msra.mxu0 %v8450_v34 }
  0x13   :  { %v187_v32 = vld [vmem:[%s13342_s1 + $0x4c0] sm:$0xff]  ;;  %v8443_v36 = vcombine.high %v59_v30, %v63_v31  ;;  %6324 = vmatprep.subr.bf16.mxu1 %v8579_v29  ;;  %v8442_v42 = vcombine.low %v59_v30, %v63_v31 }
  0x14   :  { %v191_v33 = vld [vmem:[%s13342_s1 + $0x4e0] sm:$0xff]  ;;  %6325 = vmatpush1.bf16.msra.mxu1 %v8578_v35 }
  0x15   :  { %v8571_v37 = vcombine.high %v187_v32, %v191_v33  ;;  %v51_v38 = vld [vmem:[%s13342_s1 + $0x80] sm:$0xff]  ;;  %6285 = vmatprep.subr.bf16.mxu0 %v8443_v36  ;;  %v8570_v43 = vcombine.low %v187_v32, %v191_v33 }
  0x16   :  { %v55_v39 = vld [vmem:[%s13342_s1 + $0xa0] sm:$0xff]  ;;  %6286 = vmatpush1.bf16.msra.mxu0 %v8442_v42 }
  0x17   :  { %v179_v40 = vld [vmem:[%s13342_s1 + $0x480] sm:$0xff]  ;;  %v8435_v44 = vcombine.high %v51_v38, %v55_v39  ;;  %6326 = vmatprep.subr.bf16.mxu1 %v8571_v37  ;;  %v8434_v50 = vcombine.low %v51_v38, %v55_v39 }
  0x18   :  { %v183_v41 = vld [vmem:[%s13342_s1 + $0x4a0] sm:$0xff]  ;;  %6327 = vmatpush1.bf16.msra.mxu1 %v8570_v43 }
  0x19   :  { %v8563_v45 = vcombine.high %v179_v40, %v183_v41  ;;  %v43_v46 = vld [vmem:[%s13342_s1 + $0x40] sm:$0xff]  ;;  %6287 = vmatprep.subr.bf16.mxu0 %v8435_v44  ;;  %v8562_v51 = vcombine.low %v179_v40, %v183_v41 }
  0x1a   :  { %v47_v47 = vld [vmem:[%s13342_s1 + $0x60] sm:$0xff]  ;;  %6288 = vmatpush1.bf16.msra.mxu0 %v8434_v50 }
  0x1b   :  { %v171_v48 = vld [vmem:[%s13342_s1 + $0x440] sm:$0xff]  ;;  %v8427_v52 = vcombine.high %v43_v46, %v47_v47  ;;  %6328 = vmatprep.subr.bf16.mxu1 %v8563_v45  ;;  %v8426_v62 = vcombine.low %v43_v46, %v47_v47 }
  0x1c   :  { %v175_v49 = vld [vmem:[%s13342_s1 + $0x460] sm:$0xff]  ;;  %6329 = vmatpush1.bf16.msra.mxu1 %v8562_v51 }
  0x1d   :  { %v9855_v53 = vld [vmem:[%s13343_s0] sm:$0xff]  ;;  %v8555_v55 = vcombine.high %v171_v48, %v175_v49  ;;  %6289 = vmatprep.subr.bf16.mxu0 %v8427_v52  ;;  %v8554_v63 = vcombine.low %v171_v48, %v175_v49 }
  0x1e   :  { %v35_v56 = vld [vmem:[%s13342_s1] sm:$0xff]  ;;  %v9870_v58 = vcombine.high %v9855_v53, %v9855_v53  ;;  %6290 = vmatpush1.bf16.msra.mxu0 %v8426_v62 }
  0x1f   :  { %v39_v57 = vld [vmem:[%s13342_s1 + $0x20] sm:$0xff]  ;;  %6330 = vmatprep.subr.bf16.mxu1 %v8555_v55 }
  0x20   :  { %v163_v60 = vld [vmem:[%s13342_s1 + $0x400] sm:$0xff]  ;;  %6309 = vmatprep.mubr.bf16.mxu0 %v9870_v58  ;;  %v8419_v0 = vcombine.high %v35_v56, %v39_v57  ;;  %v8418_v6 = vcombine.low %v35_v56, %v39_v57  ;;  %6331 = vmatpush1.bf16.msra.mxu1 %v8554_v63 }
  0x21   :  { %v167_v61 = vld [vmem:[%s13342_s1 + $0x420] sm:$0xff] }
  0x22   :  { %v8547_v1 = vcombine.high %v163_v60, %v167_v61  ;;  %v155_v2 = vld [vmem:[%s13342_s1 + $0x3c0] sm:$0xff]  ;;  %6291 = vmatprep.subr.bf16.mxu0 %v8419_v0  ;;  %v8546_v7 = vcombine.low %v163_v60, %v167_v61 }
  0x23   :  { %v159_v3 = vld [vmem:[%s13342_s1 + $0x3e0] sm:$0xff]  ;;  %6292 = vmatpush1.bf16.msra.mxu0 %v8418_v6 }
  0x24   :  { %v283_v4 = vld [vmem:[%s13342_s1 + $0x7c0] sm:$0xff]  ;;  %v8539_v8 = vcombine.high %v155_v2, %v159_v3  ;;  %6332 = vmatprep.subr.bf16.mxu1 %v8547_v1  ;;  %v8538_v14 = vcombine.low %v155_v2, %v159_v3 }
  0x25   :  { %v287_v5 = vld [vmem:[%s13342_s1 + $0x7e0] sm:$0xff]  ;;  %6333 = vmatpush1.bf16.msra.mxu1 %v8546_v7 }
  0x26   :  { %v8667_v9 = vcombine.high %v283_v4, %v287_v5  ;;  %v147_v10 = vld [vmem:[%s13342_s1 + $0x380] sm:$0xff]  ;;  %6293 = vmatprep.subr.bf16.mxu0 %v8539_v8  ;;  %v8666_v15 = vcombine.low %v283_v4, %v287_v5 }
  0x27   :  { %v151_v11 = vld [vmem:[%s13342_s1 + $0x3a0] sm:$0xff]  ;;  %6294 = vmatpush2.bf16.msra.mxu0 %v8538_v14 }
  0x28   :  { %v275_v12 = vld [vmem:[%s13342_s1 + $0x780] sm:$0xff]  ;;  %v8531_v16 = vcombine.high %v147_v10, %v151_v11  ;;  %6334 = vmatprep.subr.bf16.mxu1 %v8667_v9  ;;  %v8530_v22 = vcombine.low %v147_v10, %v151_v11 }
  0x29   :  { %v279_v13 = vld [vmem:[%s13342_s1 + $0x7a0] sm:$0xff]  ;;  %6335 = vmatpush2.bf16.msra.mxu1 %v8666_v15 }
  0x2a   :  { %v8659_v17 = vcombine.high %v275_v12, %v279_v13  ;;  %v139_v18 = vld [vmem:[%s13342_s1 + $0x340] sm:$0xff]  ;;  %6295 = vmatprep.subr.bf16.mxu0 %v8531_v16  ;;  %v8658_v23 = vcombine.low %v275_v12, %v279_v13  ;;  %v10000_v16 = vcombine.low %v9855_v53, %v9855_v53 }
  0x2b   :  { %v143_v19 = vld [vmem:[%s13342_s1 + $0x360] sm:$0xff]  ;;  %6296 = vmatpush2.bf16.msra.mxu0 %v8530_v22 }
  0x2c   :  { %v267_v20 = vld [vmem:[%s13342_s1 + $0x740] sm:$0xff]  ;;  %v8523_v24 = vcombine.high %v139_v18, %v143_v19  ;;  %6336 = vmatprep.subr.bf16.mxu1 %v8659_v17  ;;  %v8522_v30 = vcombine.low %v139_v18, %v143_v19  ;;  %v10011_v19 = vld [vmem:[%s13343_s0 + $0x10] sm:$0xff] }
  0x2d   :  { %v271_v21 = vld [vmem:[%s13342_s1 + $0x760] sm:$0xff]  ;;  %6337 = vmatpush2.bf16.msra.mxu1 %v8658_v23 }
  0x2e   :  { %v8651_v25 = vcombine.high %v267_v20, %v271_v21  ;;  %v131_v26 = vld [vmem:[%s13342_s1 + $0x300] sm:$0xff]  ;;  %6297 = vmatprep.subr.bf16.mxu0 %v8523_v24  ;;  %v8650_v31 = vcombine.low %v267_v20, %v271_v21  ;;  %v10015_v20 = vcombine.low %v9860_v54, %v9860_v54  ;;  %v10020_v21 = vld [vmem:[%s13343_s0 + $0x18] sm:$0xff] }
  0x2f   :  { %v135_v27 = vld [vmem:[%s13342_s1 + $0x320] sm:$0xff]  ;;  %6298 = vmatpush2.bf16.msra.mxu0 %v8522_v30 }
  0x30   :  { %v259_v28 = vld [vmem:[%s13342_s1 + $0x700] sm:$0xff]  ;;  %v8515_v32 = vcombine.high %v131_v26, %v135_v27  ;;  %6338 = vmatprep.subr.bf16.mxu1 %v8651_v25  ;;  %v8514_v38 = vcombine.low %v131_v26, %v135_v27  ;;  %v10030_v26 = vcombine.high %v10011_v19, %v10011_v19 }
  0x31   :  { %v263_v29 = vld [vmem:[%s13342_s1 + $0x720] sm:$0xff]  ;;  %6339 = vmatpush2.bf16.msra.mxu1 %v8650_v31 }
  0x32   :  { %v8643_v33 = vcombine.high %v259_v28, %v263_v29  ;;  %v123_v34 = vld [vmem:[%s13342_s1 + $0x2c0] sm:$0xff]  ;;  %6299 = vmatprep.subr.bf16.mxu0 %v8515_v32  ;;  %v8642_v39 = vcombine.low %v259_v28, %v263_v29  ;;  %v10041_v29 = vcombine.high %v10020_v21, %v10020_v21 }
  0x33   :  { %v127_v35 = vld [vmem:[%s13342_s1 + $0x2e0] sm:$0xff]  ;;  %6300 = vmatpush2.bf16.msra.mxu0 %v8514_v38 }
  0x34   :  { %v251_v36 = vld [vmem:[%s13342_s1 + $0x6c0] sm:$0xff]  ;;  %v8507_v40 = vcombine.high %v123_v34, %v127_v35  ;;  %6340 = vmatprep.subr.bf16.mxu1 %v8643_v33  ;;  %v8506_v46 = vcombine.low %v123_v34, %v127_v35 }
  0x35   :  { %v255_v37 = vld [vmem:[%s13342_s1 + $0x6e0] sm:$0xff]  ;;  %6341 = vmatpush2.bf16.msra.mxu1 %v8642_v39 }
  0x36   :  { %v8635_v41 = vcombine.high %v251_v36, %v255_v37  ;;  %v115_v42 = vld [vmem:[%s13342_s1 + $0x280] sm:$0xff]  ;;  %6301 = vmatprep.subr.bf16.mxu0 %v8507_v40  ;;  %v8634_v47 = vcombine.low %v251_v36, %v255_v37 }
  0x37   :  { %v119_v43 = vld [vmem:[%s13342_s1 + $0x2a0] sm:$0xff]  ;;  %6302 = vmatpush2.bf16.msra.mxu0 %v8506_v46 }
  0x38   :  { %v243_v44 = vld [vmem:[%s13342_s1 + $0x680] sm:$0xff]  ;;  %v8499_v48 = vcombine.high %v115_v42, %v119_v43  ;;  %6342 = vmatprep.subr.bf16.mxu1 %v8635_v41  ;;  %v8498_v56 = vcombine.low %v115_v42, %v119_v43 }
  0x39   :  { %v247_v45 = vld [vmem:[%s13342_s1 + $0x6a0] sm:$0xff]  ;;  %6343 = vmatpush2.bf16.msra.mxu1 %v8634_v47 }
  0x3a   :  { %v8627_v49 = vcombine.high %v243_v44, %v247_v45  ;;  %v107_v50 = vld [vmem:[%s13342_s1 + $0x240] sm:$0xff]  ;;  %6303 = vmatprep.subr.bf16.mxu0 %v8499_v48  ;;  %v8626_v57 = vcombine.low %v243_v44, %v247_v45 }
  0x3b   :  { %v111_v51 = vld [vmem:[%s13342_s1 + $0x260] sm:$0xff]  ;;  %6304 = vmatpush2.bf16.msra.mxu0 %v8498_v56 }
  0x3c   :  { %v235_v52 = vld [vmem:[%s13342_s1 + $0x640] sm:$0xff]  ;;  %v8491_v60 = vcombine.high %v107_v50, %v111_v51  ;;  %6344 = vmatprep.subr.bf16.mxu1 %v8627_v49  ;;  %v8490_v2 = vcombine.low %v107_v50, %v111_v51 }
  0x3d   :  { %v239_v55 = vld [vmem:[%s13342_s1 + $0x660] sm:$0xff]  ;;  %6345 = vmatpush2.bf16.msra.mxu1 %v8626_v57 }
  0x3e   :  { %v8619_v61 = vcombine.high %v235_v52, %v239_v55  ;;  %v99_v62 = vld [vmem:[%s13342_s1 + $0x200] sm:$0xff]  ;;  %6305 = vmatprep.subr.bf16.mxu0 %v8491_v60  ;;  %v8618_v3 = vcombine.low %v235_v52, %v239_v55 }
  0x3f   :  { %v103_v63 = vld [vmem:[%s13342_s1 + $0x220] sm:$0xff]  ;;  %6306 = vmatpush2.bf16.msra.mxu0 %v8490_v2 }
  0x40   :  { %v227_v0 = vld [vmem:[%s13342_s1 + $0x600] sm:$0xff]  ;;  %v8483_v4 = vcombine.high %v99_v62, %v103_v63  ;;  %6346 = vmatprep.subr.bf16.mxu1 %v8619_v61  ;;  %v8482_v10 = vcombine.low %v99_v62, %v103_v63 }
  0x41   :  { %v231_v1 = vld [vmem:[%s13342_s1 + $0x620] sm:$0xff]  ;;  %6347 = vmatpush2.bf16.msra.mxu1 %v8618_v3 }
  0x42   :  { %v8611_v5 = vcombine.high %v227_v0, %v231_v1  ;;  %v347_v6 = vld [vmem:[%s13342_s1 + $0x9c0] sm:$0xff]  ;;  %6307 = vmatprep.subr.bf16.mxu0 %v8483_v4  ;;  %v8610_v11 = vcombine.low %v227_v0, %v231_v1 }
  0x43   :  { %v351_v7 = vld [vmem:[%s13342_s1 + $0x9e0] sm:$0xff]  ;;  %6308 = vmatpush2.bf16.msra.mxu0 %v8482_v10 }
  0x44   :  { %v475_v8 = vld [vmem:[%s13342_s1 + $0xdc0] sm:$0xff]  ;;  %v8731_v12 = vcombine.high %v347_v6, %v351_v7  ;;  %6348 = vmatprep.subr.bf16.mxu1 %v8611_v5  ;;  %v8730_v53 = vcombine.low %v347_v6, %v351_v7 }
  0x45   :  { %v479_v9 = vld [vmem:[%s13342_s1 + $0xde0] sm:$0xff]  ;;  %6349 = vmatpush2.bf16.msra.mxu1 %v8610_v11 }
  0x46   :  { %v8859_v13 = vcombine.high %v475_v8, %v479_v9  ;;  %v339_v14 = vld [vmem:[%s13342_s1 + $0x980] sm:$0xff]  ;;  %6359 = vmatprep.subr.bf16.mxu0 %v8731_v12  ;;  %v8858_v22 = vcombine.low %v475_v8, %v479_v9  ;;  %6310 = vmatmul.mubr.bf16.vlgmr.msra.gmra.mxu0 %v10000_v16 }
  0x47   :  { %v343_v15 = vld [vmem:[%s13342_s1 + $0x9a0] sm:$0xff]  ;;  %6360 = vmatpush1.bf16.msra.mxu0 %v8730_v53  ;;  %6391 = vmatprep.mubr.bf16.mxu0 %v10030_v26 }
  0x48   :  { %v467_v17 = vld [vmem:[%s13342_s1 + $0xd80] sm:$0xff]  ;;  %v8723_v23 = vcombine.high %v339_v14, %v343_v15  ;;  %6400 = vmatprep.subr.bf16.mxu1 %v8859_v13  ;;  %6351 = vmatmul.mubr.bf16.vlgmr.msra.gmra.mxu1 %v10015_v20  ;;  %v8722_v30 = vcombine.low %v339_v14, %v343_v15 }
  0x49   :  { %v471_v18 = vld [vmem:[%s13342_s1 + $0xda0] sm:$0xff]  ;;  %6401 = vmatpush1.bf16.msra.mxu1 %v8858_v22  ;;  %6432 = vmatprep.mubr.bf16.mxu1 %v10041_v29 }
  0x4a   :  { %v8851_v24 = vcombine.high %v467_v17, %v471_v18  ;;  %v331_v25 = vld [vmem:[%s13342_s1 + $0x940] sm:$0xff]  ;;  %6361 = vmatprep.subr.bf16.mxu0 %v8723_v23  ;;  %v8850_v31 = vcombine.low %v467_v17, %v471_v18 }
  0x4b   :  { %v335_v54 = vld [vmem:[%s13342_s1 + $0x960] sm:$0xff]  ;;  %6362 = vmatpush1.bf16.msra.mxu0 %v8722_v30 }
  0x4c   :  { %v459_v27 = vld [vmem:[%s13342_s1 + $0xd40] sm:$0xff]  ;;  %v8715_v32 = vcombine.high %v331_v25, %v335_v54  ;;  %6402 = vmatprep.subr.bf16.mxu1 %v8851_v24  ;;  %v8714_v38 = vcombine.low %v331_v25, %v335_v54 }
  0x4d   :  { %v463_v28 = vld [vmem:[%s13342_s1 + $0xd60] sm:$0xff]  ;;  %6403 = vmatpush1.bf16.msra.mxu1 %v8850_v31 }
  0x4e   :  { %v8843_v33 = vcombine.high %v459_v27, %v463_v28  ;;  %v323_v34 = vld [vmem:[%s13342_s1 + $0x900] sm:$0xff]  ;;  %6363 = vmatprep.subr.bf16.mxu0 %v8715_v32  ;;  %v8842_v39 = vcombine.low %v459_v27, %v463_v28 }
  0x4f   :  { %v327_v35 = vld [vmem:[%s13342_s1 + $0x920] sm:$0xff]  ;;  %6364 = vmatpush1.bf16.msra.mxu0 %v8714_v38 }
  0x50   :  { %v451_v36 = vld [vmem:[%s13342_s1 + $0xd00] sm:$0xff]  ;;  %v8707_v40 = vcombine.high %v323_v34, %v327_v35  ;;  %6404 = vmatprep.subr.bf16.mxu1 %v8843_v33  ;;  %v8706_v46 = vcombine.low %v323_v34, %v327_v35 }
  0x51   :  { %v455_v37 = vld [vmem:[%s13342_s1 + $0xd20] sm:$0xff]  ;;  %6405 = vmatpush1.bf16.msra.mxu1 %v8842_v39 }
  0x52   :  { %v8835_v41 = vcombine.high %v451_v36, %v455_v37  ;;  %v315_v42 = vld [vmem:[%s13342_s1 + $0x8c0] sm:$0xff]  ;;  %6365 = vmatprep.subr.bf16.mxu0 %v8707_v40  ;;  %v8834_v47 = vcombine.low %v451_v36, %v455_v37 }
  0x53   :  { %v319_v43 = vld [vmem:[%s13342_s1 + $0x8e0] sm:$0xff]  ;;  %6366 = vmatpush1.bf16.msra.mxu0 %v8706_v46 }
  0x54   :  { %v443_v44 = vld [vmem:[%s13342_s1 + $0xcc0] sm:$0xff]  ;;  %v8699_v48 = vcombine.high %v315_v42, %v319_v43  ;;  %6406 = vmatprep.subr.bf16.mxu1 %v8835_v41  ;;  %v8698_v56 = vcombine.low %v315_v42, %v319_v43 }
  0x55   :  { %v447_v45 = vld [vmem:[%s13342_s1 + $0xce0] sm:$0xff]  ;;  %6407 = vmatpush1.bf16.msra.mxu1 %v8834_v47 }
  0x56   :  { %v8827_v49 = vcombine.high %v443_v44, %v447_v45  ;;  %v307_v50 = vld [vmem:[%s13342_s1 + $0x880] sm:$0xff]  ;;  %6367 = vmatprep.subr.bf16.mxu0 %v8699_v48  ;;  %v8826_v57 = vcombine.low %v443_v44, %v447_v45 }
  0x57   :  { %v311_v51 = vld [vmem:[%s13342_s1 + $0x8a0] sm:$0xff]  ;;  %6368 = vmatpush1.bf16.msra.mxu0 %v8698_v56 }
  0x58   :  { %v435_v52 = vld [vmem:[%s13342_s1 + $0xc80] sm:$0xff]  ;;  %v8691_v60 = vcombine.high %v307_v50, %v311_v51  ;;  %6408 = vmatprep.subr.bf16.mxu1 %v8827_v49  ;;  %v8690_v2 = vcombine.low %v307_v50, %v311_v51 }
  0x59   :  { %v439_v55 = vld [vmem:[%s13342_s1 + $0xca0] sm:$0xff]  ;;  %6409 = vmatpush1.bf16.msra.mxu1 %v8826_v57 }
  0x5a   :  { %v8819_v61 = vcombine.high %v435_v52, %v439_v55  ;;  %v299_v62 = vld [vmem:[%s13342_s1 + $0x840] sm:$0xff]  ;;  %6369 = vmatprep.subr.bf16.mxu0 %v8691_v60  ;;  %v8818_v3 = vcombine.low %v435_v52, %v439_v55 }
  0x5b   :  { %v303_v63 = vld [vmem:[%s13342_s1 + $0x860] sm:$0xff]  ;;  %6370 = vmatpush1.bf16.msra.mxu0 %v8690_v2 }
  0x5c   :  { %v427_v0 = vld [vmem:[%s13342_s1 + $0xc40] sm:$0xff]  ;;  %v8683_v4 = vcombine.high %v299_v62, %v303_v63  ;;  %6410 = vmatprep.subr.bf16.mxu1 %v8819_v61  ;;  %v8682_v10 = vcombine.low %v299_v62, %v303_v63 }
  0x5d   :  { %v431_v1 = vld [vmem:[%s13342_s1 + $0xc60] sm:$0xff]  ;;  %6411 = vmatpush1.bf16.msra.mxu1 %v8818_v3 }
  0x5e   :  { %v8811_v5 = vcombine.high %v427_v0, %v431_v1  ;;  %v291_v6 = vld [vmem:[%s13342_s1 + $0x800] sm:$0xff]  ;;  %6371 = vmatprep.subr.bf16.mxu0 %v8683_v4  ;;  %v8810_v11 = vcombine.low %v427_v0, %v431_v1 }
  0x5f   :  { %v295_v7 = vld [vmem:[%s13342_s1 + $0x820] sm:$0xff]  ;;  %6372 = vmatpush1.bf16.msra.mxu0 %v8682_v10 }
  0x60   :  { %v419_v8 = vld [vmem:[%s13342_s1 + $0xc00] sm:$0xff]  ;;  %v8675_v12 = vcombine.high %v291_v6, %v295_v7  ;;  %6412 = vmatprep.subr.bf16.mxu1 %v8811_v5  ;;  %v8674_v53 = vcombine.low %v291_v6, %v295_v7 }
  0x61   :  { %v423_v9 = vld [vmem:[%s13342_s1 + $0xc20] sm:$0xff]  ;;  %6413 = vmatpush1.bf16.msra.mxu1 %v8810_v11 }
  0x62   :  { %v8803_v13 = vcombine.high %v419_v8, %v423_v9  ;;  %v411_v14 = vld [vmem:[%s13342_s1 + $0xbc0] sm:$0xff]  ;;  %6373 = vmatprep.subr.bf16.mxu0 %v8675_v12  ;;  %v8802_v22 = vcombine.low %v419_v8, %v423_v9 }
  0x63   :  { %v415_v15 = vld [vmem:[%s13342_s1 + $0xbe0] sm:$0xff]  ;;  %6374 = vmatpush1.bf16.msra.mxu0 %v8674_v53 }
  0x64   :  { %v539_v17 = vld [vmem:[%s13342_s1 + $0xfc0] sm:$0xff]  ;;  %v8795_v23 = vcombine.high %v411_v14, %v415_v15  ;;  %6414 = vmatprep.subr.bf16.mxu1 %v8803_v13  ;;  %v8794_v30 = vcombine.low %v411_v14, %v415_v15 }
  0x65   :  { %v543_v18 = vld [vmem:[%s13342_s1 + $0xfe0] sm:$0xff]  ;;  %6415 = vmatpush1.bf16.msra.mxu1 %v8802_v22 }
  0x66   :  { %v8923_v24 = vcombine.high %v539_v17, %v543_v18  ;;  %v403_v25 = vld [vmem:[%s13342_s1 + $0xb80] sm:$0xff]  ;;  %6375 = vmatprep.subr.bf16.mxu0 %v8795_v23  ;;  %v8922_v31 = vcombine.low %v539_v17, %v543_v18 }
  0x67   :  { %v407_v54 = vld [vmem:[%s13342_s1 + $0xba0] sm:$0xff]  ;;  %6376 = vmatpush2.bf16.msra.mxu0 %v8794_v30 }
  0x68   :  { %v531_v27 = vld [vmem:[%s13342_s1 + $0xf80] sm:$0xff]  ;;  %v8787_v32 = vcombine.high %v403_v25, %v407_v54  ;;  %6416 = vmatprep.subr.bf16.mxu1 %v8923_v24  ;;  %v8786_v38 = vcombine.low %v403_v25, %v407_v54 }
  0x69   :  { %v535_v28 = vld [vmem:[%s13342_s1 + $0xfa0] sm:$0xff]  ;;  %6417 = vmatpush2.bf16.msra.mxu1 %v8922_v31 }
  0x6a   :  { %v8915_v33 = vcombine.high %v531_v27, %v535_v28  ;;  %v395_v34 = vld [vmem:[%s13342_s1 + $0xb40] sm:$0xff]  ;;  %6377 = vmatprep.subr.bf16.mxu0 %v8787_v32  ;;  %v8914_v39 = vcombine.low %v531_v27, %v535_v28 }
  0x6b   :  { %v399_v35 = vld [vmem:[%s13342_s1 + $0xb60] sm:$0xff]  ;;  %6378 = vmatpush2.bf16.msra.mxu0 %v8786_v38 }
  0x6c   :  { %v523_v36 = vld [vmem:[%s13342_s1 + $0xf40] sm:$0xff]  ;;  %v8779_v40 = vcombine.high %v395_v34, %v399_v35  ;;  %6418 = vmatprep.subr.bf16.mxu1 %v8915_v33  ;;  %v8778_v46 = vcombine.low %v395_v34, %v399_v35 }
  0x6d   :  { %v527_v37 = vld [vmem:[%s13342_s1 + $0xf60] sm:$0xff]  ;;  %6419 = vmatpush2.bf16.msra.mxu1 %v8914_v39 }
  0x6e   :  { %v8907_v41 = vcombine.high %v523_v36, %v527_v37  ;;  %v387_v42 = vld [vmem:[%s13342_s1 + $0xb00] sm:$0xff]  ;;  %6379 = vmatprep.subr.bf16.mxu0 %v8779_v40  ;;  %v8906_v47 = vcombine.low %v523_v36, %v527_v37  ;;  %v10222_v36 = vcombine.low %v10011_v19, %v10011_v19  ;;  %v10237_v40 = vcombine.low %v10020_v21, %v10020_v21 }
  0x6f   :  { %v391_v43 = vld [vmem:[%s13342_s1 + $0xb20] sm:$0xff]  ;;  %6380 = vmatpush2.bf16.msra.mxu0 %v8778_v46 }
  0x70   :  { %v515_v44 = vld [vmem:[%s13342_s1 + $0xf00] sm:$0xff]  ;;  %v8771_v48 = vcombine.high %v387_v42, %v391_v43  ;;  %6420 = vmatprep.subr.bf16.mxu1 %v8907_v41  ;;  %v8770_v56 = vcombine.low %v387_v42, %v391_v43  ;;  %v10242_v41 = vld [vmem:[%s13343_s0 + $0x28] sm:$0xff] }
  0x71   :  { %v519_v45 = vld [vmem:[%s13342_s1 + $0xf20] sm:$0xff]  ;;  %6421 = vmatpush2.bf16.msra.mxu1 %v8906_v47 }
  0x72   :  { %v8899_v49 = vcombine.high %v515_v44, %v519_v45  ;;  %v379_v50 = vld [vmem:[%s13342_s1 + $0xac0] sm:$0xff]  ;;  %6381 = vmatprep.subr.bf16.mxu0 %v8771_v48  ;;  %v8898_v57 = vcombine.low %v515_v44, %v519_v45 }
  0x73   :  { %v383_v51 = vld [vmem:[%s13342_s1 + $0xae0] sm:$0xff]  ;;  %6382 = vmatpush2.bf16.msra.mxu0 %v8770_v56 }
  0x74   :  { %v507_v52 = vld [vmem:[%s13342_s1 + $0xec0] sm:$0xff]  ;;  %v8763_v60 = vcombine.high %v379_v50, %v383_v51  ;;  %6422 = vmatprep.subr.bf16.mxu1 %v8899_v49  ;;  %v8762_v2 = vcombine.low %v379_v50, %v383_v51  ;;  %v10263_v49 = vcombine.high %v10242_v41, %v10242_v41 }
  0x75   :  { %v511_v55 = vld [vmem:[%s13342_s1 + $0xee0] sm:$0xff]  ;;  %6423 = vmatpush2.bf16.msra.mxu1 %v8898_v57 }
  0x76   :  { %v8891_v61 = vcombine.high %v507_v52, %v511_v55  ;;  %v371_v62 = vld [vmem:[%s13342_s1 + $0xa80] sm:$0xff]  ;;  %6383 = vmatprep.subr.bf16.mxu0 %v8763_v60  ;;  %v8890_v3 = vcombine.low %v507_v52, %v511_v55 }
  0x77   :  { %v375_v63 = vld [vmem:[%s13342_s1 + $0xaa0] sm:$0xff]  ;;  %6384 = vmatpush2.bf16.msra.mxu0 %v8762_v2 }
  0x78   :  { %v499_v0 = vld [vmem:[%s13342_s1 + $0xe80] sm:$0xff]  ;;  %v8755_v4 = vcombine.high %v371_v62, %v375_v63  ;;  %6424 = vmatprep.subr.bf16.mxu1 %v8891_v61  ;;  %v8754_v10 = vcombine.low %v371_v62, %v375_v63 }
  0x79   :  { %v503_v1 = vld [vmem:[%s13342_s1 + $0xea0] sm:$0xff]  ;;  %6425 = vmatpush2.bf16.msra.mxu1 %v8890_v3 }
  0x7a   :  { %v8883_v5 = vcombine.high %v499_v0, %v503_v1  ;;  %v363_v6 = vld [vmem:[%s13342_s1 + $0xa40] sm:$0xff]  ;;  %6385 = vmatprep.subr.bf16.mxu0 %v8755_v4  ;;  %v8882_v11 = vcombine.low %v499_v0, %v503_v1 }
  0x7b   :  { %v367_v7 = vld [vmem:[%s13342_s1 + $0xa60] sm:$0xff]  ;;  %6386 = vmatpush2.bf16.msra.mxu0 %v8754_v10 }
  0x7c   :  { %v491_v8 = vld [vmem:[%s13342_s1 + $0xe40] sm:$0xff]  ;;  %v8747_v12 = vcombine.high %v363_v6, %v367_v7  ;;  %6426 = vmatprep.subr.bf16.mxu1 %v8883_v5  ;;  %v8746_v53 = vcombine.low %v363_v6, %v367_v7 }
  0x7d   :  { %v495_v9 = vld [vmem:[%s13342_s1 + $0xe60] sm:$0xff]  ;;  %6427 = vmatpush2.bf16.msra.mxu1 %v8882_v11 }
  0x7e   :  { %v8875_v13 = vcombine.high %v491_v8, %v495_v9  ;;  %v355_v14 = vld [vmem:[%s13342_s1 + $0xa00] sm:$0xff]  ;;  %6387 = vmatprep.subr.bf16.mxu0 %v8747_v12  ;;  %v8874_v22 = vcombine.low %v491_v8, %v495_v9 }
  0x7f   :  { %v359_v15 = vld [vmem:[%s13342_s1 + $0xa20] sm:$0xff]  ;;  %6388 = vmatpush2.bf16.msra.mxu0 %v8746_v53 }
  0x80   :  { %v483_v17 = vld [vmem:[%s13342_s1 + $0xe00] sm:$0xff]  ;;  %v8739_v23 = vcombine.high %v355_v14, %v359_v15  ;;  %6428 = vmatprep.subr.bf16.mxu1 %v8875_v13  ;;  %v8738_v30 = vcombine.low %v355_v14, %v359_v15 }
  0x81   :  { %v487_v18 = vld [vmem:[%s13342_s1 + $0xe20] sm:$0xff]  ;;  %6429 = vmatpush2.bf16.msra.mxu1 %v8874_v22 }
  0x82   :  { %v8867_v24 = vcombine.high %v483_v17, %v487_v18  ;;  %v603_v25 = vld [vmem:[%s13342_s1 + $0x11c0] sm:$0xff]  ;;  %6389 = vmatprep.subr.bf16.mxu0 %v8739_v23  ;;  %v8866_v31 = vcombine.low %v483_v17, %v487_v18 }
  0x83   :  { %v607_v54 = vld [vmem:[%s13342_s1 + $0x11e0] sm:$0xff]  ;;  %6390 = vmatpush2.bf16.msra.mxu0 %v8738_v30 }
  0x84   :  { %v731_v27 = vld [vmem:[%s13342_s1 + $0x15c0] sm:$0xff]  ;;  %v8987_v32 = vcombine.high %v603_v25, %v607_v54  ;;  %6430 = vmatprep.subr.bf16.mxu1 %v8867_v24  ;;  %v8986_v19 = vcombine.low %v603_v25, %v607_v54 }
  0x85   :  { %v735_v28 = vld [vmem:[%s13342_s1 + $0x15e0] sm:$0xff]  ;;  %6431 = vmatpush2.bf16.msra.mxu1 %v8866_v31 }
  0x86   :  { %v9115_v33 = vcombine.high %v731_v27, %v735_v28  ;;  %v595_v34 = vld [vmem:[%s13342_s1 + $0x1180] sm:$0xff]  ;;  %6441 = vmatprep.subr.bf16.mxu0 %v8987_v32  ;;  %v9114_v42 = vcombine.low %v731_v27, %v735_v28  ;;  %6392 = vmatmul.mubr.bf16.vlgmr.msra.gmra.mxu0 %v10222_v36 }
  0x87   :  { %v599_v35 = vld [vmem:[%s13342_s1 + $0x11a0] sm:$0xff]  ;;  %6442 = vmatpush1.bf16.msra.mxu0 %v8986_v19 }
  0x88   :  { %v723_v37 = vld [vmem:[%s13342_s1 + $0x1580] sm:$0xff]  ;;  %v8979_v43 = vcombine.high %v595_v34, %v599_v35  ;;  %6482 = vmatprep.subr.bf16.mxu1 %v9115_v33  ;;  %6433 = vmatmul.mubr.bf16.vlgmr.msra.gmra.mxu1 %v10237_v40  ;;  %v8978_v50 = vcombine.low %v595_v34, %v599_v35 }
  0x89   :  { %v727_v38 = vld [vmem:[%s13342_s1 + $0x15a0] sm:$0xff]  ;;  %6483 = vmatpush1.bf16.msra.mxu1 %v9114_v42  ;;  %6514 = vmatprep.mubr.bf16.mxu1 %v10263_v49 }
  0x8a   :  { %v10233_v39 = vld [vmem:[%s13343_s0 + $0x20] sm:$0xff]  ;;  %v9107_v44 = vcombine.high %v723_v37, %v727_v38  ;;  %6443 = vmatprep.subr.bf16.mxu0 %v8979_v43  ;;  %v9106_v51 = vcombine.low %v723_v37, %v727_v38 }
  0x8b   :  { %v587_v45 = vld [vmem:[%s13342_s1 + $0x1140] sm:$0xff]  ;;  %v10252_v46 = vcombine.high %v10233_v39, %v10233_v39  ;;  %6444 = vmatpush1.bf16.msra.mxu0 %v8978_v50 }
  0x8c   :  { %v591_v21 = vld [vmem:[%s13342_s1 + $0x1160] sm:$0xff]  ;;  %6484 = vmatprep.subr.bf16.mxu1 %v9107_v44 }
  0x8d   :  { %v715_v47 = vld [vmem:[%s13342_s1 + $0x1540] sm:$0xff]  ;;  %v8971_v52 = vcombine.high %v587_v45, %v591_v21  ;;  %6473 = vmatprep.mubr.bf16.mxu0 %v10252_v46  ;;  %v8970_v62 = vcombine.low %v587_v45, %v591_v21  ;;  %6485 = vmatpush1.bf16.msra.mxu1 %v9106_v51 }
  0x8e   :  { %v719_v48 = vld [vmem:[%s13342_s1 + $0x1560] sm:$0xff] }
  0x8f   :  { %v9099_v55 = vcombine.high %v715_v47, %v719_v48  ;;  %v579_v56 = vld [vmem:[%s13342_s1 + $0x1100] sm:$0xff]  ;;  %6445 = vmatprep.subr.bf16.mxu0 %v8971_v52  ;;  %v9098_v63 = vcombine.low %v715_v47, %v719_v48 }
  0x90   :  { %v583_v57 = vld [vmem:[%s13342_s1 + $0x1120] sm:$0xff]  ;;  %6446 = vmatpush1.bf16.msra.mxu0 %v8970_v62 }
  0x91   :  { %v707_v60 = vld [vmem:[%s13342_s1 + $0x1500] sm:$0xff]  ;;  %v8963_v0 = vcombine.high %v579_v56, %v583_v57  ;;  %6486 = vmatprep.subr.bf16.mxu1 %v9099_v55  ;;  %v8962_v6 = vcombine.low %v579_v56, %v583_v57 }
  0x92   :  { %v711_v61 = vld [vmem:[%s13342_s1 + $0x1520] sm:$0xff]  ;;  %6487 = vmatpush1.bf16.msra.mxu1 %v9098_v63 }
  0x93   :  { %v9091_v1 = vcombine.high %v707_v60, %v711_v61  ;;  %v571_v2 = vld [vmem:[%s13342_s1 + $0x10c0] sm:$0xff]  ;;  %6447 = vmatprep.subr.bf16.mxu0 %v8963_v0  ;;  %v9090_v7 = vcombine.low %v707_v60, %v711_v61 }
  0x94   :  { %v575_v3 = vld [vmem:[%s13342_s1 + $0x10e0] sm:$0xff]  ;;  %6448 = vmatpush1.bf16.msra.mxu0 %v8962_v6 }
  0x95   :  { %v699_v4 = vld [vmem:[%s13342_s1 + $0x14c0] sm:$0xff]  ;;  %v8955_v8 = vcombine.high %v571_v2, %v575_v3  ;;  %6488 = vmatprep.subr.bf16.mxu1 %v9091_v1  ;;  %v8954_v14 = vcombine.low %v571_v2, %v575_v3 }
  0x96   :  { %v703_v5 = vld [vmem:[%s13342_s1 + $0x14e0] sm:$0xff]  ;;  %6489 = vmatpush1.bf16.msra.mxu1 %v9090_v7 }
  0x97   :  { %v9083_v9 = vcombine.high %v699_v4, %v703_v5  ;;  %v563_v10 = vld [vmem:[%s13342_s1 + $0x1080] sm:$0xff]  ;;  %6449 = vmatprep.subr.bf16.mxu0 %v8955_v8  ;;  %v9082_v15 = vcombine.low %v699_v4, %v703_v5 }
  0x98   :  { %v567_v11 = vld [vmem:[%s13342_s1 + $0x10a0] sm:$0xff]  ;;  %6450 = vmatpush1.bf16.msra.mxu0 %v8954_v14 }
  0x99   :  { %v691_v12 = vld [vmem:[%s13342_s1 + $0x1480] sm:$0xff]  ;;  %v8947_v17 = vcombine.high %v563_v10, %v567_v11  ;;  %6490 = vmatprep.subr.bf16.mxu1 %v9083_v9  ;;  %v8946_v25 = vcombine.low %v563_v10, %v567_v11 }
  0x9a   :  { %v695_v13 = vld [vmem:[%s13342_s1 + $0x14a0] sm:$0xff]  ;;  %6491 = vmatpush1.bf16.msra.mxu1 %v9082_v15 }
  0x9b   :  { %v9075_v18 = vcombine.high %v691_v12, %v695_v13  ;;  %v555_v53 = vld [vmem:[%s13342_s1 + $0x1040] sm:$0xff]  ;;  %6451 = vmatprep.subr.bf16.mxu0 %v8947_v17  ;;  %v9074_v54 = vcombine.low %v691_v12, %v695_v13 }
  0x9c   :  { %v559_v22 = vld [vmem:[%s13342_s1 + $0x1060] sm:$0xff]  ;;  %6452 = vmatpush1.bf16.msra.mxu0 %v8946_v25 }
  0x9d   :  { %v683_v23 = vld [vmem:[%s13342_s1 + $0x1440] sm:$0xff]  ;;  %v8939_v27 = vcombine.high %v555_v53, %v559_v22  ;;  %6492 = vmatprep.subr.bf16.mxu1 %v9075_v18  ;;  %v8938_v34 = vcombine.low %v555_v53, %v559_v22 }
  0x9e   :  { %v687_v24 = vld [vmem:[%s13342_s1 + $0x1460] sm:$0xff]  ;;  %6493 = vmatpush1.bf16.msra.mxu1 %v9074_v54 }
  0x9f   :  { %v9067_v28 = vcombine.high %v683_v23, %v687_v24  ;;  %v547_v30 = vld [vmem:[%s13342_s1 + $0x1000] sm:$0xff]  ;;  %6453 = vmatprep.subr.bf16.mxu0 %v8939_v27  ;;  %v9066_v35 = vcombine.low %v683_v23, %v687_v24 }
  0xa0   :  { %v551_v31 = vld [vmem:[%s13342_s1 + $0x1020] sm:$0xff]  ;;  %6454 = vmatpush1.bf16.msra.mxu0 %v8938_v34 }
  0xa1   :  { %v675_v32 = vld [vmem:[%s13342_s1 + $0x1400] sm:$0xff]  ;;  %v8931_v37 = vcombine.high %v547_v30, %v551_v31  ;;  %6494 = vmatprep.subr.bf16.mxu1 %v9067_v28  ;;  %v8930_v45 = vcombine.low %v547_v30, %v551_v31 }
  0xa2   :  { %v679_v33 = vld [vmem:[%s13342_s1 + $0x1420] sm:$0xff]  ;;  %6495 = vmatpush1.bf16.msra.mxu1 %v9066_v35 }
  0xa3   :  { %v9059_v38 = vcombine.high %v675_v32, %v679_v33  ;;  %v667_v19 = vld [vmem:[%s13342_s1 + $0x13c0] sm:$0xff]  ;;  %6455 = vmatprep.subr.bf16.mxu0 %v8931_v37  ;;  %v9058_v21 = vcombine.low %v675_v32, %v679_v33 }
  0xa4   :  { %v671_v42 = vld [vmem:[%s13342_s1 + $0x13e0] sm:$0xff]  ;;  %6456 = vmatpush1.bf16.msra.mxu0 %v8930_v45 }
  0xa5   :  { %v795_v43 = vld [vmem:[%s13342_s1 + $0x17c0] sm:$0xff]  ;;  %v9051_v47 = vcombine.high %v667_v19, %v671_v42  ;;  %6496 = vmatprep.subr.bf16.mxu1 %v9059_v38  ;;  %v9050_v56 = vcombine.low %v667_v19, %v671_v42 }
  0xa6   :  { %v799_v44 = vld [vmem:[%s13342_s1 + $0x17e0] sm:$0xff]  ;;  %6497 = vmatpush1.bf16.msra.mxu1 %v9058_v21 }
  0xa7   :  { %v9179_v48 = vcombine.high %v795_v43, %v799_v44  ;;  %v659_v50 = vld [vmem:[%s13342_s1 + $0x1380] sm:$0xff]  ;;  %6457 = vmatprep.subr.bf16.mxu0 %v9051_v47  ;;  %v9178_v57 = vcombine.low %v795_v43, %v799_v44 }
  0xa8   :  { %v663_v51 = vld [vmem:[%s13342_s1 + $0x13a0] sm:$0xff]  ;;  %6458 = vmatpush2.bf16.msra.mxu0 %v9050_v56 }
  0xa9   :  { %v787_v52 = vld [vmem:[%s13342_s1 + $0x1780] sm:$0xff]  ;;  %v9043_v60 = vcombine.high %v659_v50, %v663_v51  ;;  %6498 = vmatprep.subr.bf16.mxu1 %v9179_v48  ;;  %v9042_v2 = vcombine.low %v659_v50, %v663_v51 }
  0xaa   :  { %v791_v55 = vld [vmem:[%s13342_s1 + $0x17a0] sm:$0xff]  ;;  %6499 = vmatpush2.bf16.msra.mxu1 %v9178_v57 }
  0xab   :  { %v9171_v61 = vcombine.high %v787_v52, %v791_v55  ;;  %v651_v62 = vld [vmem:[%s13342_s1 + $0x1340] sm:$0xff]  ;;  %6459 = vmatprep.subr.bf16.mxu0 %v9043_v60  ;;  %v9170_v3 = vcombine.low %v787_v52, %v791_v55 }
  0xac   :  { %v655_v63 = vld [vmem:[%s13342_s1 + $0x1360] sm:$0xff]  ;;  %6460 = vmatpush2.bf16.msra.mxu0 %v9042_v2 }
  0xad   :  { %v779_v0 = vld [vmem:[%s13342_s1 + $0x1740] sm:$0xff]  ;;  %v9035_v4 = vcombine.high %v651_v62, %v655_v63  ;;  %6500 = vmatprep.subr.bf16.mxu1 %v9171_v61  ;;  %v9034_v10 = vcombine.low %v651_v62, %v655_v63 }
  0xae   :  { %v783_v1 = vld [vmem:[%s13342_s1 + $0x1760] sm:$0xff]  ;;  %6501 = vmatpush2.bf16.msra.mxu1 %v9170_v3 }
  0xaf   :  { %v9163_v5 = vcombine.high %v779_v0, %v783_v1  ;;  %v643_v6 = vld [vmem:[%s13342_s1 + $0x1300] sm:$0xff]  ;;  %6461 = vmatprep.subr.bf16.mxu0 %v9035_v4  ;;  %v9162_v11 = vcombine.low %v779_v0, %v783_v1  ;;  %v10444_v4 = vcombine.low %v10233_v39, %v10233_v39 }
  0xb0   :  { %v647_v7 = vld [vmem:[%s13342_s1 + $0x1320] sm:$0xff]  ;;  %6462 = vmatpush2.bf16.msra.mxu0 %v9034_v10 }
  0xb1   :  { %v771_v8 = vld [vmem:[%s13342_s1 + $0x1700] sm:$0xff]  ;;  %v9027_v12 = vcombine.high %v643_v6, %v647_v7  ;;  %6502 = vmatprep.subr.bf16.mxu1 %v9163_v5  ;;  %v9026_v53 = vcombine.low %v643_v6, %v647_v7  ;;  %v10455_v7 = vld [vmem:[%s13343_s0 + $0x30] sm:$0xff] }
  0xb2   :  { %v775_v9 = vld [vmem:[%s13342_s1 + $0x1720] sm:$0xff]  ;;  %6503 = vmatpush2.bf16.msra.mxu1 %v9162_v11 }
  0xb3   :  { %v9155_v13 = vcombine.high %v771_v8, %v775_v9  ;;  %v635_v14 = vld [vmem:[%s13342_s1 + $0x12c0] sm:$0xff]  ;;  %6463 = vmatprep.subr.bf16.mxu0 %v9027_v12  ;;  %v9154_v22 = vcombine.low %v771_v8, %v775_v9  ;;  %v10459_v8 = vcombine.low %v10242_v41, %v10242_v41  ;;  %v10464_v9 = vld [vmem:[%s13343_s0 + $0x38] sm:$0xff] }
  0xb4   :  { %v639_v15 = vld [vmem:[%s13342_s1 + $0x12e0] sm:$0xff]  ;;  %6464 = vmatpush2.bf16.msra.mxu0 %v9026_v53 }
  0xb5   :  { %v763_v17 = vld [vmem:[%s13342_s1 + $0x16c0] sm:$0xff]  ;;  %v9019_v23 = vcombine.high %v635_v14, %v639_v15  ;;  %6504 = vmatprep.subr.bf16.mxu1 %v9155_v13  ;;  %v9018_v30 = vcombine.low %v635_v14, %v639_v15  ;;  %v10474_v14 = vcombine.high %v10455_v7, %v10455_v7 }
  0xb6   :  { %v767_v18 = vld [vmem:[%s13342_s1 + $0x16e0] sm:$0xff]  ;;  %6505 = vmatpush2.bf16.msra.mxu1 %v9154_v22 }
  0xb7   :  { %v9147_v24 = vcombine.high %v763_v17, %v767_v18  ;;  %v627_v25 = vld [vmem:[%s13342_s1 + $0x1280] sm:$0xff]  ;;  %6465 = vmatprep.subr.bf16.mxu0 %v9019_v23  ;;  %v9146_v31 = vcombine.low %v763_v17, %v767_v18  ;;  %v10485_v18 = vcombine.high %v10464_v9, %v10464_v9 }
  0xb8   :  { %v631_v54 = vld [vmem:[%s13342_s1 + $0x12a0] sm:$0xff]  ;;  %6466 = vmatpush2.bf16.msra.mxu0 %v9018_v30 }
  0xb9   :  { %v755_v27 = vld [vmem:[%s13342_s1 + $0x1680] sm:$0xff]  ;;  %v9011_v32 = vcombine.high %v627_v25, %v631_v54  ;;  %6506 = vmatprep.subr.bf16.mxu1 %v9147_v24  ;;  %v9010_v19 = vcombine.low %v627_v25, %v631_v54 }
  0xba   :  { %v759_v28 = vld [vmem:[%s13342_s1 + $0x16a0] sm:$0xff]  ;;  %6507 = vmatpush2.bf16.msra.mxu1 %v9146_v31 }
  0xbb   :  { %v9139_v33 = vcombine.high %v755_v27, %v759_v28  ;;  %v619_v34 = vld [vmem:[%s13342_s1 + $0x1240] sm:$0xff]  ;;  %6467 = vmatprep.subr.bf16.mxu0 %v9011_v32  ;;  %v9138_v42 = vcombine.low %v755_v27, %v759_v28 }
  0xbc   :  { %v623_v35 = vld [vmem:[%s13342_s1 + $0x1260] sm:$0xff]  ;;  %6468 = vmatpush2.bf16.msra.mxu0 %v9010_v19 }
  0xbd   :  { %v747_v37 = vld [vmem:[%s13342_s1 + $0x1640] sm:$0xff]  ;;  %v9003_v43 = vcombine.high %v619_v34, %v623_v35  ;;  %6508 = vmatprep.subr.bf16.mxu1 %v9139_v33  ;;  %v9002_v50 = vcombine.low %v619_v34, %v623_v35 }
  0xbe   :  { %v751_v38 = vld [vmem:[%s13342_s1 + $0x1660] sm:$0xff]  ;;  %6509 = vmatpush2.bf16.msra.mxu1 %v9138_v42 }
  0xbf   :  { %v9131_v44 = vcombine.high %v747_v37, %v751_v38  ;;  %v611_v45 = vld [vmem:[%s13342_s1 + $0x1200] sm:$0xff]  ;;  %6469 = vmatprep.subr.bf16.mxu0 %v9003_v43  ;;  %v9130_v51 = vcombine.low %v747_v37, %v751_v38 }
  0xc0   :  { %v615_v21 = vld [vmem:[%s13342_s1 + $0x1220] sm:$0xff]  ;;  %6470 = vmatpush2.bf16.msra.mxu0 %v9002_v50 }
  0xc1   :  { %v739_v47 = vld [vmem:[%s13342_s1 + $0x1600] sm:$0xff]  ;;  %v8995_v52 = vcombine.high %v611_v45, %v615_v21  ;;  %6510 = vmatprep.subr.bf16.mxu1 %v9131_v44  ;;  %v8994_v62 = vcombine.low %v611_v45, %v615_v21 }
  0xc2   :  { %v743_v48 = vld [vmem:[%s13342_s1 + $0x1620] sm:$0xff]  ;;  %6511 = vmatpush2.bf16.msra.mxu1 %v9130_v51 }
  0xc3   :  { %v9123_v55 = vcombine.high %v739_v47, %v743_v48  ;;  %v859_v56 = vld [vmem:[%s13342_s1 + $0x19c0] sm:$0xff]  ;;  %6471 = vmatprep.subr.bf16.mxu0 %v8995_v52  ;;  %v9122_v63 = vcombine.low %v739_v47, %v743_v48 }
  0xc4   :  { %v863_v57 = vld [vmem:[%s13342_s1 + $0x19e0] sm:$0xff]  ;;  %6472 = vmatpush2.bf16.msra.mxu0 %v8994_v62 }
  0xc5   :  { %v987_v60 = vld [vmem:[%s13342_s1 + $0x1dc0] sm:$0xff]  ;;  %v9243_v0 = vcombine.high %v859_v56, %v863_v57  ;;  %6512 = vmatprep.subr.bf16.mxu1 %v9123_v55  ;;  %v9242_v39 = vcombine.low %v859_v56, %v863_v57 }
  0xc6   :  { %v991_v61 = vld [vmem:[%s13342_s1 + $0x1de0] sm:$0xff]  ;;  %6513 = vmatpush2.bf16.msra.mxu1 %v9122_v63 }
  0xc7   :  { %v9371_v1 = vcombine.high %v987_v60, %v991_v61  ;;  %v851_v2 = vld [vmem:[%s13342_s1 + $0x1980] sm:$0xff]  ;;  %6523 = vmatprep.subr.bf16.mxu0 %v9243_v0  ;;  %v9370_v10 = vcombine.low %v987_v60, %v991_v61  ;;  %6474 = vmatmul.mubr.bf16.vlgmr.msra.gmra.mxu0 %v10444_v4 }
  0xc8   :  { %v855_v3 = vld [vmem:[%s13342_s1 + $0x19a0] sm:$0xff]  ;;  %6524 = vmatpush1.bf16.msra.mxu0 %v9242_v39  ;;  %6555 = vmatprep.mubr.bf16.mxu0 %v10474_v14 }
  0xc9   :  { %v979_v5 = vld [vmem:[%s13342_s1 + $0x1d80] sm:$0xff]  ;;  %v9235_v11 = vcombine.high %v851_v2, %v855_v3  ;;  %6564 = vmatprep.subr.bf16.mxu1 %v9371_v1  ;;  %6515 = vmatmul.mubr.bf16.vlgmr.msra.gmra.mxu1 %v10459_v8  ;;  %v9234_v53 = vcombine.low %v851_v2, %v855_v3 }
  0xca   :  { %v983_v6 = vld [vmem:[%s13342_s1 + $0x1da0] sm:$0xff]  ;;  %6565 = vmatpush1.bf16.msra.mxu1 %v9370_v10  ;;  %6596 = vmatprep.mubr.bf16.mxu1 %v10485_v18 }
  0xcb   :  { %v9363_v12 = vcombine.high %v979_v5, %v983_v6  ;;  %v843_v13 = vld [vmem:[%s13342_s1 + $0x1940] sm:$0xff]  ;;  %6525 = vmatprep.subr.bf16.mxu0 %v9235_v11  ;;  %v9362_v22 = vcombine.low %v979_v5, %v983_v6 }
  0xcc   :  { %v847_v41 = vld [vmem:[%s13342_s1 + $0x1960] sm:$0xff]  ;;  %6526 = vmatpush1.bf16.msra.mxu0 %v9234_v53 }
  0xcd   :  { %v971_v15 = vld [vmem:[%s13342_s1 + $0x1d40] sm:$0xff]  ;;  %v9227_v23 = vcombine.high %v843_v13, %v847_v41  ;;  %6566 = vmatprep.subr.bf16.mxu1 %v9363_v12  ;;  %v9226_v30 = vcombine.low %v843_v13, %v847_v41 }
  0xce   :  { %v975_v17 = vld [vmem:[%s13342_s1 + $0x1d60] sm:$0xff]  ;;  %6567 = vmatpush1.bf16.msra.mxu1 %v9362_v22 }
  0xcf   :  { %v9355_v24 = vcombine.high %v971_v15, %v975_v17  ;;  %v835_v25 = vld [vmem:[%s13342_s1 + $0x1900] sm:$0xff]  ;;  %6527 = vmatprep.subr.bf16.mxu0 %v9227_v23  ;;  %v9354_v31 = vcombine.low %v971_v15, %v975_v17 }
  0xd0   :  { %v839_v54 = vld [vmem:[%s13342_s1 + $0x1920] sm:$0xff]  ;;  %6528 = vmatpush1.bf16.msra.mxu0 %v9226_v30 }
  0xd1   :  { %v963_v27 = vld [vmem:[%s13342_s1 + $0x1d00] sm:$0xff]  ;;  %v9219_v32 = vcombine.high %v835_v25, %v839_v54  ;;  %6568 = vmatprep.subr.bf16.mxu1 %v9355_v24  ;;  %v9218_v19 = vcombine.low %v835_v25, %v839_v54 }
  0xd2   :  { %v967_v28 = vld [vmem:[%s13342_s1 + $0x1d20] sm:$0xff]  ;;  %6569 = vmatpush1.bf16.msra.mxu1 %v9354_v31 }
  0xd3   :  { %v9347_v33 = vcombine.high %v963_v27, %v967_v28  ;;  %v827_v34 = vld [vmem:[%s13342_s1 + $0x18c0] sm:$0xff]  ;;  %6529 = vmatprep.subr.bf16.mxu0 %v9219_v32  ;;  %v9346_v42 = vcombine.low %v963_v27, %v967_v28 }
  0xd4   :  { %v831_v35 = vld [vmem:[%s13342_s1 + $0x18e0] sm:$0xff]  ;;  %6530 = vmatpush1.bf16.msra.mxu0 %v9218_v19 }
  0xd5   :  { %v955_v37 = vld [vmem:[%s13342_s1 + $0x1cc0] sm:$0xff]  ;;  %v9211_v43 = vcombine.high %v827_v34, %v831_v35  ;;  %6570 = vmatprep.subr.bf16.mxu1 %v9347_v33  ;;  %v9210_v50 = vcombine.low %v827_v34, %v831_v35 }
  0xd6   :  { %v959_v38 = vld [vmem:[%s13342_s1 + $0x1ce0] sm:$0xff]  ;;  %6571 = vmatpush1.bf16.msra.mxu1 %v9346_v42 }
  0xd7   :  { %v9339_v44 = vcombine.high %v955_v37, %v959_v38  ;;  %v819_v45 = vld [vmem:[%s13342_s1 + $0x1880] sm:$0xff]  ;;  %6531 = vmatprep.subr.bf16.mxu0 %v9211_v43  ;;  %v9338_v51 = vcombine.low %v955_v37, %v959_v38 }
  0xd8   :  { %v823_v21 = vld [vmem:[%s13342_s1 + $0x18a0] sm:$0xff]  ;;  %6532 = vmatpush1.bf16.msra.mxu0 %v9210_v50 }
  0xd9   :  { %v947_v47 = vld [vmem:[%s13342_s1 + $0x1c80] sm:$0xff]  ;;  %v9203_v52 = vcombine.high %v819_v45, %v823_v21  ;;  %6572 = vmatprep.subr.bf16.mxu1 %v9339_v44  ;;  %v9202_v62 = vcombine.low %v819_v45, %v823_v21 }
  0xda   :  { %v951_v48 = vld [vmem:[%s13342_s1 + $0x1ca0] sm:$0xff]  ;;  %6573 = vmatpush1.bf16.msra.mxu1 %v9338_v51 }
  0xdb   :  { %v9331_v55 = vcombine.high %v947_v47, %v951_v48  ;;  %v811_v56 = vld [vmem:[%s13342_s1 + $0x1840] sm:$0xff]  ;;  %6533 = vmatprep.subr.bf16.mxu0 %v9203_v52  ;;  %v9330_v63 = vcombine.low %v947_v47, %v951_v48 }
  0xdc   :  { %v815_v57 = vld [vmem:[%s13342_s1 + $0x1860] sm:$0xff]  ;;  %6534 = vmatpush1.bf16.msra.mxu0 %v9202_v62 }
  0xdd   :  { %v939_v60 = vld [vmem:[%s13342_s1 + $0x1c40] sm:$0xff]  ;;  %v9195_v0 = vcombine.high %v811_v56, %v815_v57  ;;  %6574 = vmatprep.subr.bf16.mxu1 %v9331_v55  ;;  %v9194_v39 = vcombine.low %v811_v56, %v815_v57 }
  0xde   :  { %v943_v61 = vld [vmem:[%s13342_s1 + $0x1c60] sm:$0xff]  ;;  %6575 = vmatpush1.bf16.msra.mxu1 %v9330_v63 }
  0xdf   :  { %v9323_v1 = vcombine.high %v939_v60, %v943_v61  ;;  %v803_v2 = vld [vmem:[%s13342_s1 + $0x1800] sm:$0xff]  ;;  %6535 = vmatprep.subr.bf16.mxu0 %v9195_v0  ;;  %v9322_v10 = vcombine.low %v939_v60, %v943_v61 }
  0xe0   :  { %v807_v3 = vld [vmem:[%s13342_s1 + $0x1820] sm:$0xff]  ;;  %6536 = vmatpush1.bf16.msra.mxu0 %v9194_v39 }
  0xe1   :  { %v931_v5 = vld [vmem:[%s13342_s1 + $0x1c00] sm:$0xff]  ;;  %v9187_v11 = vcombine.high %v803_v2, %v807_v3  ;;  %6576 = vmatprep.subr.bf16.mxu1 %v9323_v1  ;;  %v9186_v53 = vcombine.low %v803_v2, %v807_v3 }
  0xe2   :  { %v935_v6 = vld [vmem:[%s13342_s1 + $0x1c20] sm:$0xff]  ;;  %6577 = vmatpush1.bf16.msra.mxu1 %v9322_v10 }
  0xe3   :  { %v9315_v12 = vcombine.high %v931_v5, %v935_v6  ;;  %v923_v13 = vld [vmem:[%s13342_s1 + $0x1bc0] sm:$0xff]  ;;  %6537 = vmatprep.subr.bf16.mxu0 %v9187_v11  ;;  %v9314_v22 = vcombine.low %v931_v5, %v935_v6 }
  0xe4   :  { %v927_v41 = vld [vmem:[%s13342_s1 + $0x1be0] sm:$0xff]  ;;  %6538 = vmatpush1.bf16.msra.mxu0 %v9186_v53 }
  0xe5   :  { %v1051_v15 = vld [vmem:[%s13342_s1 + $0x1fc0] sm:$0xff]  ;;  %v9307_v23 = vcombine.high %v923_v13, %v927_v41  ;;  %6578 = vmatprep.subr.bf16.mxu1 %v9315_v12  ;;  %v9306_v30 = vcombine.low %v923_v13, %v927_v41 }
  0xe6   :  { %v1055_v17 = vld [vmem:[%s13342_s1 + $0x1fe0] sm:$0xff]  ;;  %6579 = vmatpush1.bf16.msra.mxu1 %v9314_v22  ;;  %v1061_v22 = vlaneseq }
  0xe7   :  { %v9435_v24 = vcombine.high %v1051_v15, %v1055_v17  ;;  %v915_v25 = vld [vmem:[%s13342_s1 + $0x1b80] sm:$0xff]  ;;  %6539 = vmatprep.subr.bf16.mxu0 %v9307_v23  ;;  %v9434_v31 = vcombine.low %v1051_v15, %v1055_v17 }
  0xe8   :  { %v919_v54 = vld [vmem:[%s13342_s1 + $0x1ba0] sm:$0xff]  ;;  %6540 = vmatpush2.bf16.msra.mxu0 %v9306_v30 }
  0xe9   :  { %v1043_v27 = vld [vmem:[%s13342_s1 + $0x1f80] sm:$0xff]  ;;  %v9299_v32 = vcombine.high %v915_v25, %v919_v54  ;;  %6580 = vmatprep.subr.bf16.mxu1 %v9435_v24  ;;  %v9298_v19 = vcombine.low %v915_v25, %v919_v54 }
  0xea   :  { %v1047_v28 = vld [vmem:[%s13342_s1 + $0x1fa0] sm:$0xff]  ;;  %6581 = vmatpush2.bf16.msra.mxu1 %v9434_v31 }
  0xeb   :  { %v9427_v33 = vcombine.high %v1043_v27, %v1047_v28  ;;  %v907_v34 = vld [vmem:[%s13342_s1 + $0x1b40] sm:$0xff]  ;;  %6541 = vmatprep.subr.bf16.mxu0 %v9299_v32  ;;  %v9426_v42 = vcombine.low %v1043_v27, %v1047_v28  ;;  %v10646_v32 = vshrl.u32 %v1061_v22, 7 }
  0xec   :  { %v911_v35 = vld [vmem:[%s13342_s1 + $0x1b60] sm:$0xff]  ;;  %6542 = vmatpush2.bf16.msra.mxu0 %v9298_v19  ;;  %v220_v19 = vld [vmem:[%s13342_s1 + $0x5c8] sm:$0xff] }
  0xed   :  { %v1035_v37 = vld [vmem:[%s13342_s1 + $0x1f40] sm:$0xff]  ;;  %v9291_v43 = vcombine.high %v907_v34, %v911_v35  ;;  %6582 = vmatprep.subr.bf16.mxu1 %v9427_v33  ;;  %v9290_v50 = vcombine.low %v907_v34, %v911_v35 }
  0xee   :  { %v1039_v38 = vld [vmem:[%s13342_s1 + $0x1f60] sm:$0xff]  ;;  %6583 = vmatpush2.bf16.msra.mxu1 %v9426_v42  ;;  %v224_v42 = vld [vmem:[%s13342_s1 + $0x5e8] sm:$0xff] }
  0xef   :  { %v9419_v44 = vcombine.high %v1035_v37, %v1039_v38  ;;  %v899_v45 = vld [vmem:[%s13342_s1 + $0x1b00] sm:$0xff]  ;;  %6543 = vmatprep.subr.bf16.mxu0 %v9291_v43  ;;  %v9418_v51 = vcombine.low %v1035_v37, %v1039_v38  ;;  %v92_v37 = vld [vmem:[%s13342_s1 + $0x1c8] sm:$0xff] }
  0xf0   :  { %v903_v21 = vld [vmem:[%s13342_s1 + $0x1b20] sm:$0xff]  ;;  %6544 = vmatpush2.bf16.msra.mxu0 %v9290_v50  ;;  %v96_v38 = vld [vmem:[%s13342_s1 + $0x1e8] sm:$0xff]  ;;  %v1067_v50 = vsub.s32 1, %v10646_v32 }
  0xf1   :  { %v1027_v47 = vld [vmem:[%s13342_s1 + $0x1f00] sm:$0xff]  ;;  %v9283_v52 = vcombine.high %v899_v45, %v903_v21  ;;  %6584 = vmatprep.subr.bf16.mxu1 %v9419_v44  ;;  %v9282_v62 = vcombine.low %v899_v45, %v903_v21  ;;  %v1063_v44 = vsub.s32 0, %v10646_v32 }
  0xf2   :  { %v1031_v48 = vld [vmem:[%s13342_s1 + $0x1f20] sm:$0xff]  ;;  %6585 = vmatpush2.bf16.msra.mxu1 %v9418_v51  ;;  %v84_v51 = vld [vmem:[%s13342_s1 + $0x188] sm:$0xff] }
  0xf3   :  { %v9411_v55 = vcombine.high %v1027_v47, %v1031_v48  ;;  %v891_v56 = vld [vmem:[%s13342_s1 + $0x1ac0] sm:$0xff]  ;;  %6545 = vmatprep.subr.bf16.mxu0 %v9283_v52  ;;  %v9410_v63 = vcombine.low %v1027_v47, %v1031_v48  ;;  %v8477_v47 = vcombine.high %v92_v37, %v96_v38  ;;  %v8605_v48 = vcombine.high %v220_v19, %v224_v42  ;;  %v88_v52 = vld [vmem:[%s13342_s1 + $0x1a8] sm:$0xff] }
  0xf4   :  { %v895_v57 = vld [vmem:[%s13342_s1 + $0x1ae0] sm:$0xff]  ;;  %6546 = vmatpush2.bf16.msra.mxu0 %v9282_v62  ;;  %v8476_v62 = vcombine.low %v92_v37, %v96_v38 }
  0xf5   :  { %v1019_v60 = vld [vmem:[%s13342_s1 + $0x1ec0] sm:$0xff]  ;;  %v9275_v0 = vcombine.high %v891_v56, %v895_v57  ;;  %6586 = vmatprep.subr.bf16.mxu1 %v9411_v55  ;;  %v9274_v39 = vcombine.low %v891_v56, %v895_v57  ;;  %v10673_v55 = vcombine.low %v10455_v7, %v10455_v7  ;;  %v212_v56 = vld [vmem:[%s13342_s1 + $0x588] sm:$0xff]  ;;  %v8469_v7 = vcombine.high %v84_v51, %v88_v52 }
  0xf6   :  { %v1023_v61 = vld [vmem:[%s13342_s1 + $0x1ee0] sm:$0xff]  ;;  %6587 = vmatpush2.bf16.msra.mxu1 %v9410_v63  ;;  %v216_v57 = vld [vmem:[%s13342_s1 + $0x5a8] sm:$0xff]  ;;  %v8604_v63 = vcombine.low %v220_v19, %v224_v42 }
  0xf7   :  { %v9403_v1 = vcombine.high %v1019_v60, %v1023_v61  ;;  %v883_v2 = vld [vmem:[%s13342_s1 + $0x1a80] sm:$0xff]  ;;  %6547 = vmatprep.subr.bf16.mxu0 %v9275_v0  ;;  %v9402_v10 = vcombine.low %v1019_v60, %v1023_v61  ;;  %v10683_v61 = vcombine.low %v10464_v9, %v10464_v9  ;;  %v204_v9 = vld [vmem:[%s13342_s1 + $0x548] sm:$0xff] }
  0xf8   :  { %v887_v3 = vld [vmem:[%s13342_s1 + $0x1aa0] sm:$0xff]  ;;  %6548 = vmatpush2.bf16.msra.mxu0 %v9274_v39  ;;  %v60_v19 = vld [vmem:[%s13342_s1 + $0xc8] sm:$0xff] }
  0xf9   :  { %v1011_v5 = vld [vmem:[%s13342_s1 + $0x1e80] sm:$0xff]  ;;  %v9267_v11 = vcombine.high %v883_v2, %v887_v3  ;;  %6588 = vmatprep.subr.bf16.mxu1 %v9403_v1  ;;  %v9266_v53 = vcombine.low %v883_v2, %v887_v3  ;;  %v8597_v1 = vcombine.high %v212_v56, %v216_v57  ;;  %v76_v2 = vld [vmem:[%s13342_s1 + $0x148] sm:$0xff] }
  0xfa   :  { %v1015_v6 = vld [vmem:[%s13342_s1 + $0x1ea0] sm:$0xff]  ;;  %6589 = vmatpush2.bf16.msra.mxu1 %v9402_v10  ;;  %v80_v3 = vld [vmem:[%s13342_s1 + $0x168] sm:$0xff] }
  0xfb   :  { %v9395_v12 = vcombine.high %v1011_v5, %v1015_v6  ;;  %v875_v13 = vld [vmem:[%s13342_s1 + $0x1a40] sm:$0xff]  ;;  %6549 = vmatprep.subr.bf16.mxu0 %v9267_v11  ;;  %v9394_v23 = vcombine.low %v1011_v5, %v1015_v6  ;;  %v208_v6 = vld [vmem:[%s13342_s1 + $0x568] sm:$0xff]  ;;  %v8468_v11 = vcombine.low %v84_v51, %v88_v52 }
  0xfc   :  { %v879_v41 = vld [vmem:[%s13342_s1 + $0x1a60] sm:$0xff]  ;;  %6550 = vmatpush2.bf16.msra.mxu0 %v9266_v53  ;;  %v8589_v22 = vcombine.high %v204_v9, %v208_v6  ;;  %v64_v42 = vld [vmem:[%s13342_s1 + $0xe8] sm:$0xff] }
  0xfd   :  { %v1003_v15 = vld [vmem:[%s13342_s1 + $0x1e40] sm:$0xff]  ;;  %v9259_v24 = vcombine.high %v875_v13, %v879_v41  ;;  %6590 = vmatprep.subr.bf16.mxu1 %v9395_v12  ;;  %v9258_v31 = vcombine.low %v875_v13, %v879_v41  ;;  %v8596_v13 = vcombine.low %v212_v56, %v216_v57  ;;  %v8461_v41 = vcombine.high %v76_v2, %v80_v3  ;;  %v56_v51 = vld [vmem:[%s13342_s1 + $0xa8] sm:$0xff] }
  0xfe   :  { %v1007_v17 = vld [vmem:[%s13342_s1 + $0x1e60] sm:$0xff]  ;;  %6591 = vmatpush2.bf16.msra.mxu1 %v9394_v23  ;;  %v68_v23 = vld [vmem:[%s13342_s1 + $0x108] sm:$0xff]  ;;  %v8444_v57 = vcombine.low %v60_v19, %v64_v42 }
  0xff   :  { %v9387_v25 = vcombine.high %v1003_v15, %v1007_v17  ;;  %v867_v54 = vld [vmem:[%s13342_s1 + $0x1a00] sm:$0xff]  ;;  %6551 = vmatprep.subr.bf16.mxu0 %v9259_v24  ;;  %v9386_v33 = vcombine.low %v1003_v15, %v1007_v17  ;;  %v72_v24 = vld [vmem:[%s13342_s1 + $0x128] sm:$0xff] }
 0x100   :  { %v871_v27 = vld [vmem:[%s13342_s1 + $0x1a20] sm:$0xff]  ;;  %6552 = vmatpush2.bf16.msra.mxu0 %v9258_v31  ;;  %v8460_v31 = vcombine.low %v76_v2, %v80_v3  ;;  %v180_v52 = vld [vmem:[%s13342_s1 + $0x488] sm:$0xff] }
 0x101   :  { %v995_v28 = vld [vmem:[%s13342_s1 + $0x1e00] sm:$0xff]  ;;  %v9251_v34 = vcombine.high %v867_v54, %v871_v27  ;;  %6592 = vmatprep.subr.bf16.mxu1 %v9387_v25  ;;  %v9250_v43 = vcombine.low %v867_v54, %v871_v27  ;;  %v196_v54 = vld [vmem:[%s13342_s1 + $0x508] sm:$0xff] }
 0x102   :  { %v999_v30 = vld [vmem:[%s13342_s1 + $0x1e20] sm:$0xff]  ;;  %6593 = vmatpush2.bf16.msra.mxu1 %v9386_v33  ;;  %v200_v27 = vld [vmem:[%s13342_s1 + $0x528] sm:$0xff] }
 0x103   :  { %v9379_v35 = vcombine.high %v995_v28, %v999_v30  ;;  %6553 = vmatprep.subr.bf16.mxu0 %v9251_v34  ;;  %v9378_v45 = vcombine.low %v995_v28, %v999_v30  ;;  %v1059_v21 = vld [vmem:[%s13344_s2] sm:$0xff]  ;;  %v8588_v34 = vcombine.low %v204_v9, %v208_v6  ;;  %v8581_v38 = vcombine.high %v196_v54, %v200_v27  ;;  %v184_v56 = vld [vmem:[%s13342_s1 + $0x4a8] sm:$0xff] }
 0x104   :  { %6554 = vmatpush2.bf16.msra.mxu0 %v9250_v43  ;;  %v1064_v60 = vrot.slane %v1059_v21, %v1063_v44  ;;  %v1068_v0 = vrot.slane %v1059_v21, %v1067_v50  ;;  %v188_v43 = vld [vmem:[%s13342_s1 + $0x4c8] sm:$0xff]  ;;  %v8580_v21 = vcombine.low %v196_v54, %v200_v27 }
 0x105   :  { %6594 = vmatprep.subr.bf16.mxu1 %v9379_v35  ;;  %6605 = vmatprep.subr.bf16.mxu0 %v8477_v47  ;;  %v8453_v35 = vcombine.high %v68_v23, %v72_v24  ;;  %v192_v44 = vld [vmem:[%s13342_s1 + $0x4e8] sm:$0xff]  ;;  %v8445_v47 = vcombine.high %v60_v19, %v64_v42 }
 0x106   :  { %6595 = vmatpush2.bf16.msra.mxu1 %v9378_v45  ;;  %v6311_v5 = vpop.f32.mrf.mxu0  ;;  %v8452_v45 = vcombine.low %v68_v23, %v72_v24  ;;  %v52_v50 = vld [vmem:[%s13342_s1 + $0x88] sm:$0xff] }
 0x107   :  { %6646 = vmatprep.subr.bf16.mxu1 %v8605_v48  ;;  %6556 = vmatmul.mubr.bf16.vlgmr.msra.gmra.mxu0 %v10673_v55  ;;  %v6312_v39 = vadd.f32 %v6311_v5, %v1064_v60  ;;  %v8573_v48 = vcombine.high %v188_v43, %v192_v44  ;;  %v8572_v60 = vcombine.low %v188_v43, %v192_v44  ;;  %v176_v2 = vld [vmem:[%s13342_s1 + $0x468] sm:$0xff] }
 0x108   :  { %v6352_v10 = vpop.f32.mrf.mxu1  ;;  %6606 = vmatpush1.bf16.msra.mxu0 %v8476_v62  ;;  %v6313_v12 = vpop.f32.mrf.mxu0  ;;  %6637 = vmatprep.mubr.bf16.mxu0 %v9870_v58  ;;  %v8437_v62 = vcombine.high %v52_v50, %v56_v51  ;;  %v8436_v3 = vcombine.low %v52_v50, %v56_v51  ;;  %v8564_v5 = vcombine.low %v180_v52, %v184_v56  ;;  %v160_v23 = vld [vmem:[%s13342_s1 + $0x3e8] sm:$0xff] }
 0x109   :  { %6597 = vmatmul.mubr.bf16.vlgmr.msra.gmra.mxu1 %v10683_v61  ;;  %6607 = vmatprep.subr.bf16.mxu0 %v8469_v7  ;;  %v10699_v15 = vadd.f32 %v6352_v10, %v6312_v39  ;;  %v6314_v17 = vadd.f32 %v6313_v12, %v1068_v0  ;;  %v44_v7 = vld [vmem:[%s13342_s1 + $0x48] sm:$0xff] }
 0x10a   :  { %6647 = vmatpush1.bf16.msra.mxu1 %v8604_v63  ;;  %v6354_v53 = vpop.f32.mrf.mxu1  ;;  %v6315_v25 = vpop.f32.mrf.mxu0  ;;  %6678 = vmatprep.mubr.bf16.mxu1 %v9874_v59  ;;  %v8565_v63 = vcombine.high %v180_v52, %v184_v56  ;;  %v48_v0 = vld [vmem:[%s13342_s1 + $0x68] sm:$0xff] }
 0x10b   :  { %6648 = vmatprep.subr.bf16.mxu1 %v8597_v1  ;;  %v10715_v28 = vadd.f32 %v6354_v53, %v6314_v17  ;;  %v172_v1 = vld [vmem:[%s13342_s1 + $0x448] sm:$0xff]  ;;  %v8429_v9 = vcombine.high %v44_v7, %v48_v0 }
 0x10c   :  { %v6356_v30 = vpop.f32.mrf.mxu1  ;;  %6608 = vmatpush1.bf16.msra.mxu0 %v8468_v11  ;;  %v6316_v33 = vpop.f32.mrf.mxu0  ;;  %v8557_v6 = vcombine.high %v172_v1, %v176_v2  ;;  %v36_v39 = vld [vmem:[%s13342_s1 + $0x8] sm:$0xff] }
 0x10d   :  { %6609 = vmatprep.subr.bf16.mxu0 %v8461_v41  ;;  %v40_v10 = vld [vmem:[%s13342_s1 + $0x28] sm:$0xff]  ;;  %v8556_v41 = vcombine.low %v172_v1, %v176_v2 }
 0x10e   :  { %6649 = vmatpush1.bf16.msra.mxu1 %v8596_v13  ;;  %v6357_v37 = vpop.f32.mrf.mxu1  ;;  %v164_v11 = vld [vmem:[%s13342_s1 + $0x408] sm:$0xff]  ;;  %v8428_v13 = vcombine.low %v44_v7, %v48_v0  ;;  %v8421_v17 = vcombine.high %v36_v39, %v40_v10  ;;  %v8420_v54 = vcombine.low %v36_v39, %v40_v10 }
 0x10f   :  { %6650 = vmatprep.subr.bf16.mxu1 %v8589_v22  ;;  %v168_v12 = vld [vmem:[%s13342_s1 + $0x428] sm:$0xff] }
 0x110   :  { %6610 = vmatpush1.bf16.msra.mxu0 %v8460_v31  ;;  %v8549_v53 = vcombine.high %v164_v11, %v168_v12  ;;  %v156_v22 = vld [vmem:[%s13342_s1 + $0x3c8] sm:$0xff]  ;;  %v8548_v27 = vcombine.low %v164_v11, %v168_v12 }
 0x111   :  { %6611 = vmatprep.subr.bf16.mxu0 %v8453_v35  ;;  %v284_v24 = vld [vmem:[%s13342_s1 + $0x7c8] sm:$0xff]  ;;  %v8541_v30 = vcombine.high %v156_v22, %v160_v23 }
 0x112   :  { %6651 = vmatpush1.bf16.msra.mxu1 %v8588_v34  ;;  %v288_v25 = vld [vmem:[%s13342_s1 + $0x7e8] sm:$0xff] }
 0x113   :  { %6652 = vmatprep.subr.bf16.mxu1 %v8581_v38  ;;  %v8669_v31 = vcombine.high %v284_v24, %v288_v25  ;;  %v148_v33 = vld [vmem:[%s13342_s1 + $0x388] sm:$0xff]  ;;  %v8540_v38 = vcombine.low %v156_v22, %v160_v23  ;;  %v8668_v19 = vcombine.low %v284_v24, %v288_v25 }
 0x114   :  { %6612 = vmatpush1.bf16.msra.mxu0 %v8452_v45  ;;  %v152_v34 = vld [vmem:[%s13342_s1 + $0x3a8] sm:$0xff] }
 0x115   :  { %6613 = vmatprep.subr.bf16.mxu0 %v8445_v47  ;;  %v276_v35 = vld [vmem:[%s13342_s1 + $0x788] sm:$0xff]  ;;  %v8533_v42 = vcombine.high %v148_v33, %v152_v34 }
 0x116   :  { %6653 = vmatpush1.bf16.msra.mxu1 %v8580_v21  ;;  %v280_v37 = vld [vmem:[%s13342_s1 + $0x7a8] sm:$0xff] }
 0x117   :  { %6654 = vmatprep.subr.bf16.mxu1 %v8573_v48  ;;  %v8661_v43 = vcombine.high %v276_v35, %v280_v37  ;;  %v140_v44 = vld [vmem:[%s13342_s1 + $0x348] sm:$0xff]  ;;  %v8532_v48 = vcombine.low %v148_v33, %v152_v34  ;;  %v8660_v50 = vcombine.low %v276_v35, %v280_v37 }
 0x118   :  { %6614 = vmatpush1.bf16.msra.mxu0 %v8444_v57  ;;  %v144_v45 = vld [vmem:[%s13342_s1 + $0x368] sm:$0xff] }
 0x119   :  { %6615 = vmatprep.subr.bf16.mxu0 %v8437_v62  ;;  %v268_v21 = vld [vmem:[%s13342_s1 + $0x748] sm:$0xff]  ;;  %v8525_v51 = vcombine.high %v140_v44, %v144_v45 }
 0x11a   :  { %6655 = vmatpush1.bf16.msra.mxu1 %v8572_v60  ;;  %v272_v47 = vld [vmem:[%s13342_s1 + $0x768] sm:$0xff] }
 0x11b   :  { %6656 = vmatprep.subr.bf16.mxu1 %v8565_v63  ;;  %v8653_v52 = vcombine.high %v268_v21, %v272_v47  ;;  %v132_v56 = vld [vmem:[%s13342_s1 + $0x308] sm:$0xff]  ;;  %v8524_v63 = vcombine.low %v140_v44, %v144_v45  ;;  %v8652_v7 = vcombine.low %v268_v21, %v272_v47 }
 0x11c   :  { %6616 = vmatpush1.bf16.msra.mxu0 %v8436_v3  ;;  %v136_v57 = vld [vmem:[%s13342_s1 + $0x328] sm:$0xff] }
 0x11d   :  { %6617 = vmatprep.subr.bf16.mxu0 %v8429_v9  ;;  %v260_v60 = vld [vmem:[%s13342_s1 + $0x708] sm:$0xff]  ;;  %v8517_v0 = vcombine.high %v132_v56, %v136_v57 }
 0x11e   :  { %6657 = vmatpush1.bf16.msra.mxu1 %v8564_v5  ;;  %v264_v62 = vld [vmem:[%s13342_s1 + $0x728] sm:$0xff] }
 0x11f   :  { %6658 = vmatprep.subr.bf16.mxu1 %v8557_v6  ;;  %v8645_v1 = vcombine.high %v260_v60, %v264_v62  ;;  %v124_v2 = vld [vmem:[%s13342_s1 + $0x2c8] sm:$0xff]  ;;  %v8516_v6 = vcombine.low %v132_v56, %v136_v57  ;;  %v8644_v39 = vcombine.low %v260_v60, %v264_v62 }
 0x120   :  { %6618 = vmatpush1.bf16.msra.mxu0 %v8428_v13  ;;  %v128_v3 = vld [vmem:[%s13342_s1 + $0x2e8] sm:$0xff] }
 0x121   :  { %6619 = vmatprep.subr.bf16.mxu0 %v8421_v17  ;;  %v252_v5 = vld [vmem:[%s13342_s1 + $0x6c8] sm:$0xff]  ;;  %v8509_v10 = vcombine.high %v124_v2, %v128_v3 }
 0x122   :  { %6659 = vmatpush1.bf16.msra.mxu1 %v8556_v41  ;;  %v256_v9 = vld [vmem:[%s13342_s1 + $0x6e8] sm:$0xff] }
 0x123   :  { %6660 = vmatprep.subr.bf16.mxu1 %v8549_v53  ;;  %v8637_v11 = vcombine.high %v252_v5, %v256_v9  ;;  %v116_v12 = vld [vmem:[%s13342_s1 + $0x288] sm:$0xff]  ;;  %v8508_v53 = vcombine.low %v124_v2, %v128_v3  ;;  %v8636_v22 = vcombine.low %v252_v5, %v256_v9 }
 0x124   :  { %6620 = vmatpush1.bf16.msra.mxu0 %v8420_v54  ;;  %v120_v13 = vld [vmem:[%s13342_s1 + $0x2a8] sm:$0xff] }
 0x125   :  { %6621 = vmatprep.subr.bf16.mxu0 %v8541_v30  ;;  %v244_v41 = vld [vmem:[%s13342_s1 + $0x688] sm:$0xff]  ;;  %v8501_v23 = vcombine.high %v116_v12, %v120_v13 }
 0x126   :  { %6661 = vmatpush1.bf16.msra.mxu1 %v8548_v27  ;;  %v248_v17 = vld [vmem:[%s13342_s1 + $0x6a8] sm:$0xff] }
 0x127   :  { %6662 = vmatprep.subr.bf16.mxu1 %v8669_v31  ;;  %v8629_v24 = vcombine.high %v244_v41, %v248_v17  ;;  %v108_v25 = vld [vmem:[%s13342_s1 + $0x248] sm:$0xff]  ;;  %v8500_v31 = vcombine.low %v116_v12, %v120_v13  ;;  %v8628_v33 = vcombine.low %v244_v41, %v248_v17 }
 0x128   :  { %6622 = vmatpush2.bf16.msra.mxu0 %v8540_v38  ;;  %v112_v54 = vld [vmem:[%s13342_s1 + $0x268] sm:$0xff] }
 0x129   :  { %6623 = vmatprep.subr.bf16.mxu0 %v8533_v42  ;;  %v236_v27 = vld [vmem:[%s13342_s1 + $0x648] sm:$0xff]  ;;  %v8493_v34 = vcombine.high %v108_v25, %v112_v54 }
 0x12a   :  { %6663 = vmatpush2.bf16.msra.mxu1 %v8668_v19  ;;  %v240_v30 = vld [vmem:[%s13342_s1 + $0x668] sm:$0xff] }
 0x12b   :  { %6664 = vmatprep.subr.bf16.mxu1 %v8661_v43  ;;  %v8621_v35 = vcombine.high %v236_v27, %v240_v30  ;;  %v100_v37 = vld [vmem:[%s13342_s1 + $0x208] sm:$0xff]  ;;  %v8492_v43 = vcombine.low %v108_v25, %v112_v54  ;;  %v8620_v44 = vcombine.low %v236_v27, %v240_v30 }
 0x12c   :  { %6624 = vmatpush2.bf16.msra.mxu0 %v8532_v48  ;;  %v104_v38 = vld [vmem:[%s13342_s1 + $0x228] sm:$0xff] }
 0x12d   :  { %6625 = vmatprep.subr.bf16.mxu0 %v8525_v51  ;;  %v228_v19 = vld [vmem:[%s13342_s1 + $0x608] sm:$0xff]  ;;  %v8485_v45 = vcombine.high %v100_v37, %v104_v38 }
 0x12e   :  { %6665 = vmatpush2.bf16.msra.mxu1 %v8660_v50  ;;  %v232_v42 = vld [vmem:[%s13342_s1 + $0x628] sm:$0xff] }
 0x12f   :  { %6666 = vmatprep.subr.bf16.mxu1 %v8653_v52  ;;  %v8613_v21 = vcombine.high %v228_v19, %v232_v42  ;;  %v348_v47 = vld [vmem:[%s13342_s1 + $0x9c8] sm:$0xff]  ;;  %v8484_v52 = vcombine.low %v100_v37, %v104_v38  ;;  %v8612_v56 = vcombine.low %v228_v19, %v232_v42 }
 0x130   :  { %6626 = vmatpush2.bf16.msra.mxu0 %v8524_v63  ;;  %v352_v48 = vld [vmem:[%s13342_s1 + $0x9e8] sm:$0xff] }
 0x131   :  { %6627 = vmatprep.subr.bf16.mxu0 %v8517_v0  ;;  %v476_v50 = vld [vmem:[%s13342_s1 + $0xdc8] sm:$0xff]  ;;  %v8733_v57 = vcombine.high %v348_v47, %v352_v48 }
 0x132   :  { %6667 = vmatpush2.bf16.msra.mxu1 %v8652_v7  ;;  %v480_v51 = vld [vmem:[%s13342_s1 + $0xde8] sm:$0xff] }
 0x133   :  { %6668 = vmatprep.subr.bf16.mxu1 %v8645_v1  ;;  %v8861_v60 = vcombine.high %v476_v50, %v480_v51  ;;  %v340_v62 = vld [vmem:[%s13342_s1 + $0x988] sm:$0xff]  ;;  %v8732_v1 = vcombine.low %v348_v47, %v352_v48  ;;  %v8860_v2 = vcombine.low %v476_v50, %v480_v51 }
 0x134   :  { %6628 = vmatpush2.bf16.msra.mxu0 %v8516_v6  ;;  %v344_v63 = vld [vmem:[%s13342_s1 + $0x9a8] sm:$0xff] }
 0x135   :  { %6629 = vmatprep.subr.bf16.mxu0 %v8509_v10  ;;  %v468_v7 = vld [vmem:[%s13342_s1 + $0xd88] sm:$0xff]  ;;  %v8725_v3 = vcombine.high %v340_v62, %v344_v63  ;;  %v8724_v41 = vcombine.low %v340_v62, %v344_v63 }
 0x136   :  { %6669 = vmatpush2.bf16.msra.mxu1 %v8644_v39  ;;  %v472_v0 = vld [vmem:[%s13342_s1 + $0xda8] sm:$0xff] }
 0x137   :  { %6670 = vmatprep.subr.bf16.mxu1 %v8637_v11  ;;  %v8853_v5 = vcombine.high %v468_v7, %v472_v0  ;;  %v332_v9 = vld [vmem:[%s13342_s1 + $0x948] sm:$0xff] }
 0x138   :  { %6630 = vmatpush2.bf16.msra.mxu0 %v8508_v53  ;;  %v336_v6 = vld [vmem:[%s13342_s1 + $0x968] sm:$0xff]  ;;  %v8852_v53 = vcombine.low %v468_v7, %v472_v0 }
 0x139   :  { %6631 = vmatprep.subr.bf16.mxu0 %v8501_v23  ;;  %v460_v10 = vld [vmem:[%s13342_s1 + $0xd48] sm:$0xff] }
 0x13a   :  { %6671 = vmatpush2.bf16.msra.mxu1 %v8636_v22  ;;  %v464_v11 = vld [vmem:[%s13342_s1 + $0xd68] sm:$0xff]  ;;  %v8717_v22 = vcombine.high %v332_v9, %v336_v6 }
 0x13b   :  { %6672 = vmatprep.subr.bf16.mxu1 %v8629_v24  ;;  %v8845_v54 = vcombine.high %v460_v10, %v464_v11  ;;  %v328_v27 = vld [vmem:[%s13342_s1 + $0x928] sm:$0xff]  ;;  %v8844_v38 = vcombine.low %v460_v10, %v464_v11 }
 0x13c   :  { %6632 = vmatpush2.bf16.msra.mxu0 %v8500_v31  ;;  %v452_v31 = vld [vmem:[%s13342_s1 + $0xd08] sm:$0xff] }
 0x13d   :  { %6633 = vmatprep.subr.bf16.mxu0 %v8493_v34  ;;  %v448_v47 = vld [vmem:[%s13342_s1 + $0xce8] sm:$0xff] }
 0x13e   :  { %6673 = vmatpush2.bf16.msra.mxu1 %v8628_v33  ;;  %v440_v62 = vld [vmem:[%s13342_s1 + $0xca8] sm:$0xff] }
 0x13f   :  { %6674 = vmatprep.subr.bf16.mxu1 %v8621_v35  ;;  %v8716_v35 = vcombine.low %v332_v9, %v336_v6  ;;  %v432_v9 = vld [vmem:[%s13342_s1 + $0xc68] sm:$0xff] }
 0x140   :  { %6634 = vmatpush2.bf16.msra.mxu0 %v8492_v43 }
 0x141   :  { %6635 = vmatprep.subr.bf16.mxu0 %v8485_v45  ;;  %v320_v45 = vld [vmem:[%s13342_s1 + $0x8e8] sm:$0xff] }
 0x142   :  { %6675 = vmatpush2.bf16.msra.mxu1 %v8620_v44  ;;  %v316_v44 = vld [vmem:[%s13342_s1 + $0x8c8] sm:$0xff] }
 0x143   :  { %6676 = vmatprep.subr.bf16.mxu1 %v8613_v21  ;;  %v444_v21 = vld [vmem:[%s13342_s1 + $0xcc8] sm:$0xff]  ;;  %v8701_v51 = vcombine.high %v316_v44, %v320_v45  ;;  %v8700_v63 = vcombine.low %v316_v44, %v320_v45 }
 0x144   :  { %6636 = vmatpush2.bf16.msra.mxu0 %v8484_v52  ;;  %v8829_v52 = vcombine.high %v444_v21, %v448_v47  ;;  %v8828_v7 = vcombine.low %v444_v21, %v448_v47  ;;  %v396_v47 = vld [vmem:[%s13342_s1 + $0xb48] sm:$0xff] }
 0x145   :  { %6687 = vmatprep.subr.bf16.mxu0 %v8733_v57  ;;  %v312_v57 = vld [vmem:[%s13342_s1 + $0x8a8] sm:$0xff] }
 0x146   :  { %6677 = vmatpush2.bf16.msra.mxu1 %v8612_v56  ;;  %v6393_v39 = vpop.f32.mrf.mxu0  ;;  %v308_v56 = vld [vmem:[%s13342_s1 + $0x888] sm:$0xff] }
 0x147   :  { %6728 = vmatprep.subr.bf16.mxu1 %v8861_v60  ;;  %6638 = vmatmul.mubr.bf16.vlgmr.msra.gmra.mxu0 %v10000_v16  ;;  %v6394_v12 = vadd.f32 %v6393_v39, %v10699_v15  ;;  %v324_v15 = vld [vmem:[%s13342_s1 + $0x908] sm:$0xff]  ;;  %v8693_v0 = vcombine.high %v308_v56, %v312_v57  ;;  %v8692_v6 = vcombine.low %v308_v56, %v312_v57 }
 0x148   :  { %v6434_v13 = vpop.f32.mrf.mxu1  ;;  %6688 = vmatpush1.bf16.msra.mxu0 %v8732_v1  ;;  %v6395_v17 = vpop.f32.mrf.mxu0  ;;  %6719 = vmatprep.mubr.bf16.mxu0 %v10030_v26  ;;  %v8709_v19 = vcombine.high %v324_v15, %v328_v27  ;;  %v8708_v48 = vcombine.low %v324_v15, %v328_v27  ;;  %v436_v60 = vld [vmem:[%s13342_s1 + $0xc88] sm:$0xff] }
 0x149   :  { %6679 = vmatmul.mubr.bf16.vlgmr.msra.gmra.mxu1 %v10015_v20  ;;  %6689 = vmatprep.subr.bf16.mxu0 %v8725_v3  ;;  %v10900_v23 = vadd.f32 %v6434_v13, %v6394_v12  ;;  %v6396_v24 = vadd.f32 %v6395_v17, %v10715_v28  ;;  %v456_v28 = vld [vmem:[%s13342_s1 + $0xd28] sm:$0xff]  ;;  %v8821_v1 = vcombine.high %v436_v60, %v440_v62 }
 0x14a   :  { %6729 = vmatpush1.bf16.msra.mxu1 %v8860_v2  ;;  %v6436_v25 = vpop.f32.mrf.mxu1  ;;  %v6397_v30 = vpop.f32.mrf.mxu0  ;;  %6760 = vmatprep.mubr.bf16.mxu1 %v10041_v29  ;;  %v8837_v43 = vcombine.high %v452_v31, %v456_v28  ;;  %v8836_v50 = vcombine.low %v452_v31, %v456_v28  ;;  %v300_v2 = vld [vmem:[%s13342_s1 + $0x848] sm:$0xff]  ;;  %v8820_v39 = vcombine.low %v436_v60, %v440_v62 }
 0x14b   :  { %6730 = vmatprep.subr.bf16.mxu1 %v8853_v5  ;;  %v10917_v33 = vadd.f32 %v6436_v25, %v6396_v24  ;;  %v304_v3 = vld [vmem:[%s13342_s1 + $0x868] sm:$0xff] }
 0x14c   :  { %v6438_v34 = vpop.f32.mrf.mxu1  ;;  %6690 = vmatpush1.bf16.msra.mxu0 %v8724_v41  ;;  %v6398_v37 = vpop.f32.mrf.mxu0  ;;  %v428_v5 = vld [vmem:[%s13342_s1 + $0xc48] sm:$0xff]  ;;  %v8685_v10 = vcombine.high %v300_v2, %v304_v3 }
 0x14d   :  { %6691 = vmatprep.subr.bf16.mxu0 %v8717_v22  ;;  %v8813_v11 = vcombine.high %v428_v5, %v432_v9  ;;  %v292_v12 = vld [vmem:[%s13342_s1 + $0x808] sm:$0xff]  ;;  %v8812_v22 = vcombine.low %v428_v5, %v432_v9 }
 0x14e   :  { %6731 = vmatpush1.bf16.msra.mxu1 %v8852_v53  ;;  %v6439_v42 = vpop.f32.mrf.mxu1  ;;  %v296_v13 = vld [vmem:[%s13342_s1 + $0x828] sm:$0xff]  ;;  %v8684_v53 = vcombine.low %v300_v2, %v304_v3 }
 0x14f   :  { %6732 = vmatprep.subr.bf16.mxu1 %v8845_v54  ;;  %v420_v41 = vld [vmem:[%s13342_s1 + $0xc08] sm:$0xff]  ;;  %v8677_v24 = vcombine.high %v292_v12, %v296_v13  ;;  %v8676_v31 = vcombine.low %v292_v12, %v296_v13 }
 0x150   :  { %6692 = vmatpush1.bf16.msra.mxu0 %v8716_v35  ;;  %v424_v17 = vld [vmem:[%s13342_s1 + $0xc28] sm:$0xff] }
 0x151   :  { %6693 = vmatprep.subr.bf16.mxu0 %v8709_v19  ;;  %v8805_v25 = vcombine.high %v420_v41, %v424_v17  ;;  %v412_v54 = vld [vmem:[%s13342_s1 + $0xbc8] sm:$0xff]  ;;  %v8804_v28 = vcombine.low %v420_v41, %v424_v17 }
 0x152   :  { %6733 = vmatpush1.bf16.msra.mxu1 %v8844_v38  ;;  %v416_v15 = vld [vmem:[%s13342_s1 + $0xbe8] sm:$0xff] }
 0x153   :  { %6734 = vmatprep.subr.bf16.mxu1 %v8837_v43  ;;  %v540_v27 = vld [vmem:[%s13342_s1 + $0xfc8] sm:$0xff]  ;;  %v8797_v34 = vcombine.high %v412_v54, %v416_v15  ;;  %v8796_v43 = vcombine.low %v412_v54, %v416_v15 }
 0x154   :  { %6694 = vmatpush1.bf16.msra.mxu0 %v8708_v48  ;;  %v544_v30 = vld [vmem:[%s13342_s1 + $0xfe8] sm:$0xff] }
 0x155   :  { %6695 = vmatprep.subr.bf16.mxu0 %v8701_v51  ;;  %v8925_v35 = vcombine.high %v540_v27, %v544_v30  ;;  %v404_v37 = vld [vmem:[%s13342_s1 + $0xb88] sm:$0xff]  ;;  %v8924_v44 = vcombine.low %v540_v27, %v544_v30 }
 0x156   :  { %6735 = vmatpush1.bf16.msra.mxu1 %v8836_v50  ;;  %v408_v38 = vld [vmem:[%s13342_s1 + $0xba8] sm:$0xff] }
 0x157   :  { %6736 = vmatprep.subr.bf16.mxu1 %v8829_v52  ;;  %v532_v19 = vld [vmem:[%s13342_s1 + $0xf88] sm:$0xff]  ;;  %v8789_v45 = vcombine.high %v404_v37, %v408_v38  ;;  %v8788_v52 = vcombine.low %v404_v37, %v408_v38 }
 0x158   :  { %6696 = vmatpush1.bf16.msra.mxu0 %v8700_v63  ;;  %v536_v42 = vld [vmem:[%s13342_s1 + $0xfa8] sm:$0xff] }
 0x159   :  { %6697 = vmatprep.subr.bf16.mxu0 %v8693_v0  ;;  %v8917_v21 = vcombine.high %v532_v19, %v536_v42  ;;  %v400_v48 = vld [vmem:[%s13342_s1 + $0xb68] sm:$0xff]  ;;  %v8916_v56 = vcombine.low %v532_v19, %v536_v42 }
 0x15a   :  { %6737 = vmatpush1.bf16.msra.mxu1 %v8828_v7  ;;  %v524_v50 = vld [vmem:[%s13342_s1 + $0xf48] sm:$0xff]  ;;  %v8781_v57 = vcombine.high %v396_v47, %v400_v48 }
 0x15b   :  { %6738 = vmatprep.subr.bf16.mxu1 %v8821_v1  ;;  %v528_v51 = vld [vmem:[%s13342_s1 + $0xf68] sm:$0xff]  ;;  %v8780_v1 = vcombine.low %v396_v47, %v400_v48 }
 0x15c   :  { %6698 = vmatpush1.bf16.msra.mxu0 %v8692_v6  ;;  %v8909_v60 = vcombine.high %v524_v50, %v528_v51  ;;  %v388_v62 = vld [vmem:[%s13342_s1 + $0xb08] sm:$0xff]  ;;  %v8908_v2 = vcombine.low %v524_v50, %v528_v51 }
 0x15d   :  { %6699 = vmatprep.subr.bf16.mxu0 %v8685_v10  ;;  %v392_v63 = vld [vmem:[%s13342_s1 + $0xb28] sm:$0xff] }
 0x15e   :  { %6739 = vmatpush1.bf16.msra.mxu1 %v8820_v39  ;;  %v516_v7 = vld [vmem:[%s13342_s1 + $0xf08] sm:$0xff]  ;;  %v8773_v3 = vcombine.high %v388_v62, %v392_v63 }
 0x15f   :  { %6740 = vmatprep.subr.bf16.mxu1 %v8813_v11  ;;  %v520_v0 = vld [vmem:[%s13342_s1 + $0xf28] sm:$0xff]  ;;  %v8772_v11 = vcombine.low %v388_v62, %v392_v63 }
 0x160   :  { %6700 = vmatpush1.bf16.msra.mxu0 %v8684_v53  ;;  %v8901_v5 = vcombine.high %v516_v7, %v520_v0  ;;  %v380_v9 = vld [vmem:[%s13342_s1 + $0xac8] sm:$0xff]  ;;  %v8900_v12 = vcombine.low %v516_v7, %v520_v0 }
 0x161   :  { %6701 = vmatprep.subr.bf16.mxu0 %v8677_v24  ;;  %v384_v6 = vld [vmem:[%s13342_s1 + $0xae8] sm:$0xff] }
 0x162   :  { %6741 = vmatpush1.bf16.msra.mxu1 %v8812_v22  ;;  %v508_v39 = vld [vmem:[%s13342_s1 + $0xec8] sm:$0xff]  ;;  %v8765_v13 = vcombine.high %v380_v9, %v384_v6 }
 0x163   :  { %6742 = vmatprep.subr.bf16.mxu1 %v8805_v25  ;;  %v512_v10 = vld [vmem:[%s13342_s1 + $0xee8] sm:$0xff]  ;;  %v8764_v25 = vcombine.low %v380_v9, %v384_v6 }
 0x164   :  { %6702 = vmatpush1.bf16.msra.mxu0 %v8676_v31  ;;  %v8893_v41 = vcombine.high %v508_v39, %v512_v10  ;;  %v372_v17 = vld [vmem:[%s13342_s1 + $0xa88] sm:$0xff]  ;;  %v8892_v54 = vcombine.low %v508_v39, %v512_v10 }
 0x165   :  { %6703 = vmatprep.subr.bf16.mxu0 %v8797_v34  ;;  %v376_v53 = vld [vmem:[%s13342_s1 + $0xaa8] sm:$0xff] }
 0x166   :  { %6743 = vmatpush1.bf16.msra.mxu1 %v8804_v28  ;;  %v500_v22 = vld [vmem:[%s13342_s1 + $0xe88] sm:$0xff]  ;;  %v8757_v15 = vcombine.high %v372_v17, %v376_v53 }
 0x167   :  { %6744 = vmatprep.subr.bf16.mxu1 %v8925_v35  ;;  %v504_v24 = vld [vmem:[%s13342_s1 + $0xea8] sm:$0xff]  ;;  %v8756_v35 = vcombine.low %v372_v17, %v376_v53 }
 0x168   :  { %6704 = vmatpush2.bf16.msra.mxu0 %v8796_v43  ;;  %v8885_v27 = vcombine.high %v500_v22, %v504_v24  ;;  %v364_v30 = vld [vmem:[%s13342_s1 + $0xa48] sm:$0xff]  ;;  %v8884_v37 = vcombine.low %v500_v22, %v504_v24 }
 0x169   :  { %6705 = vmatprep.subr.bf16.mxu0 %v8789_v45  ;;  %v368_v31 = vld [vmem:[%s13342_s1 + $0xa68] sm:$0xff] }
 0x16a   :  { %6745 = vmatpush2.bf16.msra.mxu1 %v8924_v44  ;;  %v492_v28 = vld [vmem:[%s13342_s1 + $0xe48] sm:$0xff]  ;;  %v8749_v38 = vcombine.high %v364_v30, %v368_v31 }
 0x16b   :  { %6746 = vmatprep.subr.bf16.mxu1 %v8917_v21  ;;  %v496_v34 = vld [vmem:[%s13342_s1 + $0xe68] sm:$0xff]  ;;  %v8748_v21 = vcombine.low %v364_v30, %v368_v31 }
 0x16c   :  { %6706 = vmatpush2.bf16.msra.mxu0 %v8788_v52  ;;  %v8877_v19 = vcombine.high %v492_v28, %v496_v34  ;;  %v356_v42 = vld [vmem:[%s13342_s1 + $0xa08] sm:$0xff]  ;;  %v8876_v47 = vcombine.low %v492_v28, %v496_v34 }
 0x16d   :  { %6707 = vmatprep.subr.bf16.mxu0 %v8781_v57  ;;  %v360_v43 = vld [vmem:[%s13342_s1 + $0xa28] sm:$0xff] }
 0x16e   :  { %6747 = vmatpush2.bf16.msra.mxu1 %v8916_v56  ;;  %v484_v44 = vld [vmem:[%s13342_s1 + $0xe08] sm:$0xff]  ;;  %v8741_v48 = vcombine.high %v356_v42, %v360_v43 }
 0x16f   :  { %6748 = vmatprep.subr.bf16.mxu1 %v8909_v60  ;;  %v488_v45 = vld [vmem:[%s13342_s1 + $0xe28] sm:$0xff]  ;;  %v8740_v60 = vcombine.low %v356_v42, %v360_v43 }
 0x170   :  { %6708 = vmatpush2.bf16.msra.mxu0 %v8780_v1  ;;  %v8869_v50 = vcombine.high %v484_v44, %v488_v45  ;;  %v604_v51 = vld [vmem:[%s13342_s1 + $0x11c8] sm:$0xff]  ;;  %v8868_v62 = vcombine.low %v484_v44, %v488_v45 }
 0x171   :  { %6709 = vmatprep.subr.bf16.mxu0 %v8773_v3  ;;  %v608_v52 = vld [vmem:[%s13342_s1 + $0x11e8] sm:$0xff] }
 0x172   :  { %6749 = vmatpush2.bf16.msra.mxu1 %v8908_v2  ;;  %v732_v56 = vld [vmem:[%s13342_s1 + $0x15c8] sm:$0xff]  ;;  %v8989_v63 = vcombine.high %v604_v51, %v608_v52 }
 0x173   :  { %6750 = vmatprep.subr.bf16.mxu1 %v8901_v5  ;;  %v736_v57 = vld [vmem:[%s13342_s1 + $0x15e8] sm:$0xff]  ;;  %v8988_v5 = vcombine.low %v604_v51, %v608_v52 }
 0x174   :  { %6710 = vmatpush2.bf16.msra.mxu0 %v8772_v11  ;;  %v9117_v7 = vcombine.high %v732_v56, %v736_v57  ;;  %v596_v0 = vld [vmem:[%s13342_s1 + $0x1188] sm:$0xff]  ;;  %v9116_v9 = vcombine.low %v732_v56, %v736_v57 }
 0x175   :  { %6711 = vmatprep.subr.bf16.mxu0 %v8765_v13  ;;  %v600_v1 = vld [vmem:[%s13342_s1 + $0x11a8] sm:$0xff] }
 0x176   :  { %6751 = vmatpush2.bf16.msra.mxu1 %v8900_v12  ;;  %v724_v2 = vld [vmem:[%s13342_s1 + $0x1588] sm:$0xff]  ;;  %v8981_v6 = vcombine.high %v596_v0, %v600_v1  ;;  %v8980_v22 = vcombine.low %v596_v0, %v600_v1 }
 0x177   :  { %6752 = vmatprep.subr.bf16.mxu1 %v8893_v41  ;;  %v728_v3 = vld [vmem:[%s13342_s1 + $0x15a8] sm:$0xff] }
 0x178   :  { %6712 = vmatpush2.bf16.msra.mxu0 %v8764_v25  ;;  %v9109_v39 = vcombine.high %v724_v2, %v728_v3  ;;  %v588_v10 = vld [vmem:[%s13342_s1 + $0x1148] sm:$0xff]  ;;  %v9108_v25 = vcombine.low %v724_v2, %v728_v3 }
 0x179   :  { %6713 = vmatprep.subr.bf16.mxu0 %v8757_v15  ;;  %v592_v11 = vld [vmem:[%s13342_s1 + $0x1168] sm:$0xff] }
 0x17a   :  { %6753 = vmatpush2.bf16.msra.mxu1 %v8892_v54  ;;  %v716_v13 = vld [vmem:[%s13342_s1 + $0x1548] sm:$0xff]  ;;  %v8973_v54 = vcombine.high %v588_v10, %v592_v11 }
 0x17b   :  { %6754 = vmatprep.subr.bf16.mxu1 %v8885_v27  ;;  %v720_v41 = vld [vmem:[%s13342_s1 + $0x1568] sm:$0xff] }
 0x17c   :  { %6714 = vmatpush2.bf16.msra.mxu0 %v8756_v35  ;;  %v9101_v31 = vcombine.high %v716_v13, %v720_v41  ;;  %v584_v28 = vld [vmem:[%s13342_s1 + $0x1128] sm:$0xff]  ;;  %v9100_v43 = vcombine.low %v716_v13, %v720_v41 }
 0x17d   :  { %6715 = vmatprep.subr.bf16.mxu0 %v8749_v38  ;;  %v708_v35 = vld [vmem:[%s13342_s1 + $0x1508] sm:$0xff] }
 0x17e   :  { %6755 = vmatpush2.bf16.msra.mxu1 %v8884_v37  ;;  %v704_v51 = vld [vmem:[%s13342_s1 + $0x14e8] sm:$0xff] }
 0x17f   :  { %6756 = vmatprep.subr.bf16.mxu1 %v8877_v19  ;;  %v8972_v19 = vcombine.low %v588_v10, %v592_v11  ;;  %v696_v0 = vld [vmem:[%s13342_s1 + $0x14a8] sm:$0xff] }
 0x180   :  { %6716 = vmatpush2.bf16.msra.mxu0 %v8748_v21  ;;  %v688_v10 = vld [vmem:[%s13342_s1 + $0x1468] sm:$0xff] }
 0x181   :  { %6717 = vmatprep.subr.bf16.mxu0 %v8741_v48  ;;  %v576_v48 = vld [vmem:[%s13342_s1 + $0x10e8] sm:$0xff] }
 0x182   :  { %6757 = vmatpush2.bf16.msra.mxu1 %v8876_v47  ;;  %v572_v47 = vld [vmem:[%s13342_s1 + $0x10c8] sm:$0xff] }
 0x183   :  { %6758 = vmatprep.subr.bf16.mxu1 %v8869_v50  ;;  %v700_v50 = vld [vmem:[%s13342_s1 + $0x14c8] sm:$0xff]  ;;  %v8957_v57 = vcombine.high %v572_v47, %v576_v48  ;;  %v8956_v1 = vcombine.low %v572_v47, %v576_v48 }
 0x184   :  { %6718 = vmatpush2.bf16.msra.mxu0 %v8740_v60  ;;  %v9085_v60 = vcombine.high %v700_v50, %v704_v51  ;;  %v9084_v2 = vcombine.low %v700_v50, %v704_v51  ;;  %v652_v51 = vld [vmem:[%s13342_s1 + $0x1348] sm:$0xff] }
 0x185   :  { %6769 = vmatprep.subr.bf16.mxu0 %v8989_v63  ;;  %v568_v63 = vld [vmem:[%s13342_s1 + $0x10a8] sm:$0xff] }
 0x186   :  { %6759 = vmatpush2.bf16.msra.mxu1 %v8868_v62  ;;  %v564_v62 = vld [vmem:[%s13342_s1 + $0x1088] sm:$0xff] }
 0x187   :  { %6810 = vmatprep.subr.bf16.mxu1 %v9117_v7  ;;  %v6475_v12 = vpop.f32.mrf.mxu0  ;;  %6720 = vmatmul.mubr.bf16.vlgmr.msra.gmra.mxu0 %v10222_v36  ;;  %v692_v7 = vld [vmem:[%s13342_s1 + $0x1488] sm:$0xff]  ;;  %v8949_v3 = vcombine.high %v564_v62, %v568_v63  ;;  %v8948_v11 = vcombine.low %v564_v62, %v568_v63 }
 0x188   :  { %v6476_v17 = vadd.f32 %v6475_v12, %v10900_v23  ;;  %6770 = vmatpush1.bf16.msra.mxu0 %v8988_v5  ;;  %v580_v23 = vld [vmem:[%s13342_s1 + $0x1108] sm:$0xff]  ;;  %6801 = vmatprep.mubr.bf16.mxu0 %v10252_v46  ;;  %v9077_v5 = vcombine.high %v692_v7, %v696_v0  ;;  %v9076_v12 = vcombine.low %v692_v7, %v696_v0 }
 0x189   :  { %v6516_v53 = vpop.f32.mrf.mxu1  ;;  %6761 = vmatmul.mubr.bf16.vlgmr.msra.gmra.mxu1 %v10237_v40  ;;  %v6477_v24 = vpop.f32.mrf.mxu0  ;;  %6771 = vmatprep.subr.bf16.mxu0 %v8981_v6  ;;  %v8965_v44 = vcombine.high %v580_v23, %v584_v28  ;;  %v8964_v52 = vcombine.low %v580_v23, %v584_v28  ;;  %v560_v6 = vld [vmem:[%s13342_s1 + $0x1068] sm:$0xff] }
 0x18a   :  { %6811 = vmatpush1.bf16.msra.mxu1 %v9116_v9  ;;  %v11102_v15 = vadd.f32 %v6516_v53, %v6476_v17  ;;  %v6478_v27 = vadd.f32 %v6477_v24, %v10917_v33  ;;  %v712_v33 = vld [vmem:[%s13342_s1 + $0x1528] sm:$0xff]  ;;  %6842 = vmatprep.mubr.bf16.mxu1 %v10263_v49 }
 0x18b   :  { %v6518_v30 = vpop.f32.mrf.mxu1  ;;  %6812 = vmatprep.subr.bf16.mxu1 %v9109_v39  ;;  %v6479_v34 = vpop.f32.mrf.mxu0  ;;  %v9093_v21 = vcombine.high %v708_v35, %v712_v33  ;;  %v9092_v56 = vcombine.low %v708_v35, %v712_v33  ;;  %v556_v9 = vld [vmem:[%s13342_s1 + $0x1048] sm:$0xff] }
 0x18c   :  { %v11119_v37 = vadd.f32 %v6518_v30, %v6478_v27  ;;  %6772 = vmatpush1.bf16.msra.mxu0 %v8980_v22  ;;  %v684_v39 = vld [vmem:[%s13342_s1 + $0x1448] sm:$0xff]  ;;  %v8941_v13 = vcombine.high %v556_v9, %v560_v6 }
 0x18d   :  { %v6520_v38 = vpop.f32.mrf.mxu1  ;;  %v6480_v42 = vpop.f32.mrf.mxu0  ;;  %6773 = vmatprep.subr.bf16.mxu0 %v8973_v54  ;;  %v9069_v41 = vcombine.high %v684_v39, %v688_v10  ;;  %v548_v17 = vld [vmem:[%s13342_s1 + $0x1008] sm:$0xff]  ;;  %v9068_v54 = vcombine.low %v684_v39, %v688_v10 }
 0x18e   :  { %6813 = vmatpush1.bf16.msra.mxu1 %v9108_v25  ;;  %v552_v53 = vld [vmem:[%s13342_s1 + $0x1028] sm:$0xff]  ;;  %v8940_v25 = vcombine.low %v556_v9, %v560_v6 }
 0x18f   :  { %v6521_v45 = vpop.f32.mrf.mxu1  ;;  %6814 = vmatprep.subr.bf16.mxu1 %v9101_v31  ;;  %v676_v22 = vld [vmem:[%s13342_s1 + $0x1408] sm:$0xff]  ;;  %v8933_v27 = vcombine.high %v548_v17, %v552_v53  ;;  %v8932_v35 = vcombine.low %v548_v17, %v552_v53 }
 0x190   :  { %6774 = vmatpush1.bf16.msra.mxu0 %v8972_v19  ;;  %v680_v24 = vld [vmem:[%s13342_s1 + $0x1428] sm:$0xff] }
 0x191   :  { %6775 = vmatprep.subr.bf16.mxu0 %v8965_v44  ;;  %v9061_v30 = vcombine.high %v676_v22, %v680_v24  ;;  %v668_v31 = vld [vmem:[%s13342_s1 + $0x13c8] sm:$0xff]  ;;  %v9060_v33 = vcombine.low %v676_v22, %v680_v24 }
 0x192   :  { %6815 = vmatpush1.bf16.msra.mxu1 %v9100_v43  ;;  %v672_v23 = vld [vmem:[%s13342_s1 + $0x13e8] sm:$0xff] }
 0x193   :  { %6816 = vmatprep.subr.bf16.mxu1 %v9093_v21  ;;  %v796_v28 = vld [vmem:[%s13342_s1 + $0x17c8] sm:$0xff]  ;;  %v9053_v38 = vcombine.high %v668_v31, %v672_v23  ;;  %v9052_v21 = vcombine.low %v668_v31, %v672_v23 }
 0x194   :  { %6776 = vmatpush1.bf16.msra.mxu0 %v8964_v52  ;;  %v800_v34 = vld [vmem:[%s13342_s1 + $0x17e8] sm:$0xff] }
 0x195   :  { %6777 = vmatprep.subr.bf16.mxu0 %v8957_v57  ;;  %v9181_v19 = vcombine.high %v796_v28, %v800_v34  ;;  %v660_v42 = vld [vmem:[%s13342_s1 + $0x1388] sm:$0xff]  ;;  %v9180_v47 = vcombine.low %v796_v28, %v800_v34 }
 0x196   :  { %6817 = vmatpush1.bf16.msra.mxu1 %v9092_v56  ;;  %v664_v43 = vld [vmem:[%s13342_s1 + $0x13a8] sm:$0xff] }
 0x197   :  { %6818 = vmatprep.subr.bf16.mxu1 %v9085_v60  ;;  %v788_v44 = vld [vmem:[%s13342_s1 + $0x1788] sm:$0xff]  ;;  %v9045_v48 = vcombine.high %v660_v42, %v664_v43  ;;  %v9044_v60 = vcombine.low %v660_v42, %v664_v43 }
 0x198   :  { %6778 = vmatpush1.bf16.msra.mxu0 %v8956_v1  ;;  %v792_v45 = vld [vmem:[%s13342_s1 + $0x17a8] sm:$0xff] }
 0x199   :  { %6779 = vmatprep.subr.bf16.mxu0 %v8949_v3  ;;  %v9173_v50 = vcombine.high %v788_v44, %v792_v45  ;;  %v656_v52 = vld [vmem:[%s13342_s1 + $0x1368] sm:$0xff]  ;;  %v9172_v62 = vcombine.low %v788_v44, %v792_v45 }
 0x19a   :  { %6819 = vmatpush1.bf16.msra.mxu1 %v9084_v2  ;;  %v780_v56 = vld [vmem:[%s13342_s1 + $0x1748] sm:$0xff]  ;;  %v9037_v63 = vcombine.high %v652_v51, %v656_v52 }
 0x19b   :  { %6820 = vmatprep.subr.bf16.mxu1 %v9077_v5  ;;  %v784_v57 = vld [vmem:[%s13342_s1 + $0x1768] sm:$0xff]  ;;  %v9036_v5 = vcombine.low %v652_v51, %v656_v52 }
 0x19c   :  { %6780 = vmatpush1.bf16.msra.mxu0 %v8948_v11  ;;  %v9165_v7 = vcombine.high %v780_v56, %v784_v57  ;;  %v644_v0 = vld [vmem:[%s13342_s1 + $0x1308] sm:$0xff]  ;;  %v9164_v9 = vcombine.low %v780_v56, %v784_v57 }
 0x19d   :  { %6781 = vmatprep.subr.bf16.mxu0 %v8941_v13  ;;  %v648_v1 = vld [vmem:[%s13342_s1 + $0x1328] sm:$0xff] }
 0x19e   :  { %6821 = vmatpush1.bf16.msra.mxu1 %v9076_v12  ;;  %v772_v2 = vld [vmem:[%s13342_s1 + $0x1708] sm:$0xff]  ;;  %v9029_v6 = vcombine.high %v644_v0, %v648_v1 }
 0x19f   :  { %6822 = vmatprep.subr.bf16.mxu1 %v9069_v41  ;;  %v776_v3 = vld [vmem:[%s13342_s1 + $0x1728] sm:$0xff]  ;;  %v9028_v41 = vcombine.low %v644_v0, %v648_v1 }
 0x1a0   :  { %6782 = vmatpush1.bf16.msra.mxu0 %v8940_v25  ;;  %v9157_v39 = vcombine.high %v772_v2, %v776_v3  ;;  %v636_v10 = vld [vmem:[%s13342_s1 + $0x12c8] sm:$0xff]  ;;  %v9156_v17 = vcombine.low %v772_v2, %v776_v3 }
 0x1a1   :  { %6783 = vmatprep.subr.bf16.mxu0 %v8933_v27  ;;  %v640_v11 = vld [vmem:[%s13342_s1 + $0x12e8] sm:$0xff] }
 0x1a2   :  { %6823 = vmatpush1.bf16.msra.mxu1 %v9068_v54  ;;  %v764_v12 = vld [vmem:[%s13342_s1 + $0x16c8] sm:$0xff]  ;;  %v9021_v53 = vcombine.high %v636_v10, %v640_v11 }
 0x1a3   :  { %6824 = vmatprep.subr.bf16.mxu1 %v9061_v30  ;;  %v768_v13 = vld [vmem:[%s13342_s1 + $0x16e8] sm:$0xff]  ;;  %v9020_v30 = vcombine.low %v636_v10, %v640_v11 }
 0x1a4   :  { %6784 = vmatpush1.bf16.msra.mxu0 %v8932_v35  ;;  %v9149_v22 = vcombine.high %v764_v12, %v768_v13  ;;  %v628_v24 = vld [vmem:[%s13342_s1 + $0x1288] sm:$0xff]  ;;  %v9148_v31 = vcombine.low %v764_v12, %v768_v13 }
 0x1a5   :  { %6785 = vmatprep.subr.bf16.mxu0 %v9053_v38  ;;  %v632_v25 = vld [vmem:[%s13342_s1 + $0x12a8] sm:$0xff] }
 0x1a6   :  { %6825 = vmatpush1.bf16.msra.mxu1 %v9060_v33  ;;  %v756_v54 = vld [vmem:[%s13342_s1 + $0x1688] sm:$0xff]  ;;  %v9013_v23 = vcombine.high %v628_v24, %v632_v25 }
 0x1a7   :  { %6826 = vmatprep.subr.bf16.mxu1 %v9181_v19  ;;  %v760_v27 = vld [vmem:[%s13342_s1 + $0x16a8] sm:$0xff]  ;;  %v9012_v19 = vcombine.low %v628_v24, %v632_v25 }
 0x1a8   :  { %6786 = vmatpush2.bf16.msra.mxu0 %v9052_v21  ;;  %v9141_v28 = vcombine.high %v756_v54, %v760_v27  ;;  %v620_v34 = vld [vmem:[%s13342_s1 + $0x1248] sm:$0xff]  ;;  %v9140_v42 = vcombine.low %v756_v54, %v760_v27 }
 0x1a9   :  { %6787 = vmatprep.subr.bf16.mxu0 %v9045_v48  ;;  %v624_v35 = vld [vmem:[%s13342_s1 + $0x1268] sm:$0xff] }
 0x1aa   :  { %6827 = vmatpush2.bf16.msra.mxu1 %v9180_v47  ;;  %v748_v33 = vld [vmem:[%s13342_s1 + $0x1648] sm:$0xff]  ;;  %v9005_v43 = vcombine.high %v620_v34, %v624_v35 }
 0x1ab   :  { %6828 = vmatprep.subr.bf16.mxu1 %v9173_v50  ;;  %v752_v38 = vld [vmem:[%s13342_s1 + $0x1668] sm:$0xff]  ;;  %v9004_v50 = vcombine.low %v620_v34, %v624_v35 }
 0x1ac   :  { %6788 = vmatpush2.bf16.msra.mxu0 %v9044_v60  ;;  %v9133_v44 = vcombine.high %v748_v33, %v752_v38  ;;  %v612_v45 = vld [vmem:[%s13342_s1 + $0x1208] sm:$0xff]  ;;  %v9132_v51 = vcombine.low %v748_v33, %v752_v38 }
 0x1ad   :  { %6789 = vmatprep.subr.bf16.mxu0 %v9037_v63  ;;  %v616_v21 = vld [vmem:[%s13342_s1 + $0x1228] sm:$0xff] }
 0x1ae   :  { %6829 = vmatpush2.bf16.msra.mxu1 %v9172_v62  ;;  %v740_v47 = vld [vmem:[%s13342_s1 + $0x1608] sm:$0xff]  ;;  %v8997_v52 = vcombine.high %v612_v45, %v616_v21 }
 0x1af   :  { %6830 = vmatprep.subr.bf16.mxu1 %v9165_v7  ;;  %v744_v48 = vld [vmem:[%s13342_s1 + $0x1628] sm:$0xff]  ;;  %v8996_v7 = vcombine.low %v612_v45, %v616_v21 }
 0x1b0   :  { %6790 = vmatpush2.bf16.msra.mxu0 %v9036_v5  ;;  %v9125_v56 = vcombine.high %v740_v47, %v744_v48  ;;  %v860_v57 = vld [vmem:[%s13342_s1 + $0x19c8] sm:$0xff]  ;;  %v9124_v0 = vcombine.low %v740_v47, %v744_v48 }
 0x1b1   :  { %6791 = vmatprep.subr.bf16.mxu0 %v9029_v6  ;;  %v864_v60 = vld [vmem:[%s13342_s1 + $0x19e8] sm:$0xff] }
 0x1b2   :  { %6831 = vmatpush2.bf16.msra.mxu1 %v9164_v9  ;;  %v988_v62 = vld [vmem:[%s13342_s1 + $0x1dc8] sm:$0xff]  ;;  %v9245_v1 = vcombine.high %v860_v57, %v864_v60 }
 0x1b3   :  { %6832 = vmatprep.subr.bf16.mxu1 %v9157_v39  ;;  %v992_v63 = vld [vmem:[%s13342_s1 + $0x1de8] sm:$0xff]  ;;  %v9244_v39 = vcombine.low %v860_v57, %v864_v60 }
 0x1b4   :  { %6792 = vmatpush2.bf16.msra.mxu0 %v9028_v41  ;;  %v9373_v2 = vcombine.high %v988_v62, %v992_v63  ;;  %v852_v3 = vld [vmem:[%s13342_s1 + $0x1988] sm:$0xff]  ;;  %v9372_v10 = vcombine.low %v988_v62, %v992_v63 }
 0x1b5   :  { %6793 = vmatprep.subr.bf16.mxu0 %v9021_v53  ;;  %v856_v5 = vld [vmem:[%s13342_s1 + $0x19a8] sm:$0xff] }
 0x1b6   :  { %6833 = vmatpush2.bf16.msra.mxu1 %v9156_v17  ;;  %v980_v9 = vld [vmem:[%s13342_s1 + $0x1d88] sm:$0xff]  ;;  %v9237_v11 = vcombine.high %v852_v3, %v856_v5  ;;  %v9236_v54 = vcombine.low %v852_v3, %v856_v5 }
 0x1b7   :  { %6834 = vmatprep.subr.bf16.mxu1 %v9149_v22  ;;  %v984_v6 = vld [vmem:[%s13342_s1 + $0x1da8] sm:$0xff] }
 0x1b8   :  { %6794 = vmatpush2.bf16.msra.mxu0 %v9020_v30  ;;  %v9365_v12 = vcombine.high %v980_v9, %v984_v6  ;;  %v844_v13 = vld [vmem:[%s13342_s1 + $0x1948] sm:$0xff]  ;;  %v9364_v30 = vcombine.low %v980_v9, %v984_v6 }
 0x1b9   :  { %6795 = vmatprep.subr.bf16.mxu0 %v9013_v23  ;;  %v848_v41 = vld [vmem:[%s13342_s1 + $0x1968] sm:$0xff] }
 0x1ba   :  { %6835 = vmatpush2.bf16.msra.mxu1 %v9148_v31  ;;  %v972_v53 = vld [vmem:[%s13342_s1 + $0x1d48] sm:$0xff]  ;;  %v9229_v31 = vcombine.high %v844_v13, %v848_v41 }
 0x1bb   :  { %6836 = vmatprep.subr.bf16.mxu1 %v9141_v28  ;;  %v976_v22 = vld [vmem:[%s13342_s1 + $0x1d68] sm:$0xff] }
 0x1bc   :  { %6796 = vmatpush2.bf16.msra.mxu0 %v9012_v19  ;;  %v9357_v35 = vcombine.high %v972_v53, %v976_v22  ;;  %v840_v33 = vld [vmem:[%s13342_s1 + $0x1928] sm:$0xff]  ;;  %v9356_v21 = vcombine.low %v972_v53, %v976_v22 }
 0x1bd   :  { %6797 = vmatprep.subr.bf16.mxu0 %v9005_v43  ;;  %v964_v19 = vld [vmem:[%s13342_s1 + $0x1d08] sm:$0xff] }
 0x1be   :  { %6837 = vmatpush2.bf16.msra.mxu1 %v9140_v42  ;;  %v960_v57 = vld [vmem:[%s13342_s1 + $0x1ce8] sm:$0xff] }
 0x1bf   :  { %6838 = vmatprep.subr.bf16.mxu1 %v9133_v44  ;;  %v9228_v44 = vcombine.low %v844_v13, %v848_v41  ;;  %v952_v3 = vld [vmem:[%s13342_s1 + $0x1ca8] sm:$0xff] }
 0x1c0   :  { %6798 = vmatpush2.bf16.msra.mxu0 %v9004_v50  ;;  %v944_v13 = vld [vmem:[%s13342_s1 + $0x1c68] sm:$0xff] }
 0x1c1   :  { %6799 = vmatprep.subr.bf16.mxu0 %v8997_v52  ;;  %v832_v52 = vld [vmem:[%s13342_s1 + $0x18e8] sm:$0xff] }
 0x1c2   :  { %6839 = vmatpush2.bf16.msra.mxu1 %v9132_v51  ;;  %v828_v51 = vld [vmem:[%s13342_s1 + $0x18c8] sm:$0xff] }
 0x1c3   :  { %6840 = vmatprep.subr.bf16.mxu1 %v9125_v56  ;;  %v956_v56 = vld [vmem:[%s13342_s1 + $0x1cc8] sm:$0xff]  ;;  %v9213_v63 = vcombine.high %v828_v51, %v832_v52  ;;  %v9212_v5 = vcombine.low %v828_v51, %v832_v52 }
 0x1c4   :  { %6800 = vmatpush2.bf16.msra.mxu0 %v8996_v7  ;;  %v9341_v7 = vcombine.high %v956_v56, %v960_v57  ;;  %v9340_v9 = vcombine.low %v956_v56, %v960_v57  ;;  %v908_v57 = vld [vmem:[%s13342_s1 + $0x1b48] sm:$0xff] }
 0x1c5   :  { %6851 = vmatprep.subr.bf16.mxu0 %v9245_v1  ;;  %v824_v1 = vld [vmem:[%s13342_s1 + $0x18a8] sm:$0xff] }
 0x1c6   :  { %6841 = vmatpush2.bf16.msra.mxu1 %v9124_v0  ;;  %v820_v0 = vld [vmem:[%s13342_s1 + $0x1888] sm:$0xff] }
 0x1c7   :  { %6892 = vmatprep.subr.bf16.mxu1 %v9373_v2  ;;  %v6557_v17 = vpop.f32.mrf.mxu0  ;;  %6802 = vmatmul.mubr.bf16.vlgmr.msra.gmra.mxu0 %v10444_v4  ;;  %v948_v2 = vld [vmem:[%s13342_s1 + $0x1c88] sm:$0xff]  ;;  %v9205_v6 = vcombine.high %v820_v0, %v824_v1  ;;  %v9204_v41 = vcombine.low %v820_v0, %v824_v1 }
 0x1c8   :  { %v6558_v24 = vadd.f32 %v6557_v17, %v11102_v15  ;;  %6852 = vmatpush1.bf16.msra.mxu0 %v9244_v39  ;;  %v836_v15 = vld [vmem:[%s13342_s1 + $0x1908] sm:$0xff]  ;;  %6883 = vmatprep.mubr.bf16.mxu0 %v10474_v14  ;;  %v9333_v39 = vcombine.high %v948_v2, %v952_v3  ;;  %v9332_v17 = vcombine.low %v948_v2, %v952_v3 }
 0x1c9   :  { %v6598_v25 = vpop.f32.mrf.mxu1  ;;  %6843 = vmatmul.mubr.bf16.vlgmr.msra.gmra.mxu1 %v10459_v8  ;;  %v6559_v27 = vpop.f32.mrf.mxu0  ;;  %6853 = vmatprep.subr.bf16.mxu0 %v9237_v11  ;;  %v9221_v47 = vcombine.high %v836_v15, %v840_v33  ;;  %v9220_v60 = vcombine.low %v836_v15, %v840_v33  ;;  %v816_v11 = vld [vmem:[%s13342_s1 + $0x1868] sm:$0xff] }
 0x1ca   :  { %6893 = vmatpush1.bf16.msra.mxu1 %v9372_v10  ;;  %v11304_v23 = vadd.f32 %v6598_v25, %v6558_v24  ;;  %v6560_v28 = vadd.f32 %v6559_v27, %v11119_v37  ;;  %v968_v37 = vld [vmem:[%s13342_s1 + $0x1d28] sm:$0xff]  ;;  %6924 = vmatprep.mubr.bf16.mxu1 %v10485_v18 }
 0x1cb   :  { %v6600_v34 = vpop.f32.mrf.mxu1  ;;  %6894 = vmatprep.subr.bf16.mxu1 %v9365_v12  ;;  %v6561_v38 = vpop.f32.mrf.mxu0  ;;  %v9349_v50 = vcombine.high %v964_v19, %v968_v37  ;;  %v9348_v62 = vcombine.low %v964_v19, %v968_v37  ;;  %v812_v10 = vld [vmem:[%s13342_s1 + $0x1848] sm:$0xff] }
 0x1cc   :  { %v11321_v42 = vadd.f32 %v6600_v34, %v6560_v28  ;;  %6854 = vmatpush1.bf16.msra.mxu0 %v9236_v54  ;;  %v940_v12 = vld [vmem:[%s13342_s1 + $0x1c48] sm:$0xff]  ;;  %v9197_v53 = vcombine.high %v812_v10, %v816_v11 }
 0x1cd   :  { %v6602_v43 = vpop.f32.mrf.mxu1  ;;  %v6562_v45 = vpop.f32.mrf.mxu0  ;;  %6855 = vmatprep.subr.bf16.mxu0 %v9229_v31  ;;  %v9325_v22 = vcombine.high %v940_v12, %v944_v13  ;;  %v804_v24 = vld [vmem:[%s13342_s1 + $0x1808] sm:$0xff]  ;;  %v9324_v31 = vcombine.low %v940_v12, %v944_v13 }
 0x1ce   :  { %6895 = vmatpush1.bf16.msra.mxu1 %v9364_v30  ;;  %v808_v25 = vld [vmem:[%s13342_s1 + $0x1828] sm:$0xff]  ;;  %v9196_v30 = vcombine.low %v812_v10, %v816_v11 }
 0x1cf   :  { %v6603_v48 = vpop.f32.mrf.mxu1  ;;  %6896 = vmatprep.subr.bf16.mxu1 %v9357_v35  ;;  %v932_v54 = vld [vmem:[%s13342_s1 + $0x1c08] sm:$0xff]  ;;  %v9189_v28 = vcombine.high %v804_v24, %v808_v25  ;;  %v9188_v19 = vcombine.low %v804_v24, %v808_v25 }
 0x1d0   :  { %6856 = vmatpush1.bf16.msra.mxu0 %v9228_v44  ;;  %v936_v27 = vld [vmem:[%s13342_s1 + $0x1c28] sm:$0xff] }
 0x1d1   :  { %6857 = vmatprep.subr.bf16.mxu0 %v9221_v47  ;;  %v9317_v34 = vcombine.high %v932_v54, %v936_v27  ;;  %v924_v35 = vld [vmem:[%s13342_s1 + $0x1bc8] sm:$0xff]  ;;  %v9316_v37 = vcombine.low %v932_v54, %v936_v27 }
 0x1d2   :  { %6897 = vmatpush1.bf16.msra.mxu1 %v9356_v21  ;;  %v928_v15 = vld [vmem:[%s13342_s1 + $0x1be8] sm:$0xff] }
 0x1d3   :  { %6898 = vmatprep.subr.bf16.mxu1 %v9349_v50  ;;  %v1052_v33 = vld [vmem:[%s13342_s1 + $0x1fc8] sm:$0xff]  ;;  %v9309_v43 = vcombine.high %v924_v35, %v928_v15  ;;  %v9308_v50 = vcombine.low %v924_v35, %v928_v15 }
 0x1d4   :  { %6858 = vmatpush1.bf16.msra.mxu0 %v9220_v60  ;;  %v1056_v38 = vld [vmem:[%s13342_s1 + $0x1fe8] sm:$0xff] }
 0x1d5   :  { %6859 = vmatprep.subr.bf16.mxu0 %v9213_v63  ;;  %v9437_v44 = vcombine.high %v1052_v33, %v1056_v38  ;;  %v916_v45 = vld [vmem:[%s13342_s1 + $0x1b88] sm:$0xff]  ;;  %v9436_v51 = vcombine.low %v1052_v33, %v1056_v38 }
 0x1d6   :  { %6899 = vmatpush1.bf16.msra.mxu1 %v9348_v62  ;;  %v920_v21 = vld [vmem:[%s13342_s1 + $0x1ba8] sm:$0xff] }
 0x1d7   :  { %6900 = vmatprep.subr.bf16.mxu1 %v9341_v7  ;;  %v1044_v47 = vld [vmem:[%s13342_s1 + $0x1f88] sm:$0xff]  ;;  %v9301_v52 = vcombine.high %v916_v45, %v920_v21  ;;  %v9300_v7 = vcombine.low %v916_v45, %v920_v21 }
 0x1d8   :  { %6860 = vmatpush1.bf16.msra.mxu0 %v9212_v5  ;;  %v1048_v48 = vld [vmem:[%s13342_s1 + $0x1fa8] sm:$0xff] }
 0x1d9   :  { %6861 = vmatprep.subr.bf16.mxu0 %v9205_v6  ;;  %v9429_v56 = vcombine.high %v1044_v47, %v1048_v48  ;;  %v912_v60 = vld [vmem:[%s13342_s1 + $0x1b68] sm:$0xff]  ;;  %v9428_v0 = vcombine.low %v1044_v47, %v1048_v48 }
 0x1da   :  { %6901 = vmatpush1.bf16.msra.mxu1 %v9340_v9  ;;  %v1036_v62 = vld [vmem:[%s13342_s1 + $0x1f48] sm:$0xff]  ;;  %v9293_v1 = vcombine.high %v908_v57, %v912_v60 }
 0x1db   :  { %6902 = vmatprep.subr.bf16.mxu1 %v9333_v39  ;;  %v1040_v63 = vld [vmem:[%s13342_s1 + $0x1f68] sm:$0xff]  ;;  %v9292_v39 = vcombine.low %v908_v57, %v912_v60 }
 0x1dc   :  { %6862 = vmatpush1.bf16.msra.mxu0 %v9204_v41  ;;  %v9421_v2 = vcombine.high %v1036_v62, %v1040_v63  ;;  %v900_v3 = vld [vmem:[%s13342_s1 + $0x1b08] sm:$0xff]  ;;  %v9420_v10 = vcombine.low %v1036_v62, %v1040_v63  ;;  %v93_v63 = vld [vmem:[%s13342_s1 + $0x1d0] sm:$0xff] }
 0x1dd   :  { %6863 = vmatprep.subr.bf16.mxu0 %v9197_v53  ;;  %v904_v5 = vld [vmem:[%s13342_s1 + $0x1b28] sm:$0xff] }
 0x1de   :  { %6903 = vmatpush1.bf16.msra.mxu1 %v9332_v17  ;;  %v1028_v9 = vld [vmem:[%s13342_s1 + $0x1f08] sm:$0xff]  ;;  %v9285_v11 = vcombine.high %v900_v3, %v904_v5 }
 0x1df   :  { %6904 = vmatprep.subr.bf16.mxu1 %v9325_v22  ;;  %v1032_v6 = vld [vmem:[%s13342_s1 + $0x1f28] sm:$0xff]  ;;  %v9284_v22 = vcombine.low %v900_v3, %v904_v5  ;;  %v1071_v3 = vsub.s32 2, %v10646_v32 }
 0x1e0   :  { %6864 = vmatpush1.bf16.msra.mxu0 %v9196_v30  ;;  %v9413_v12 = vcombine.high %v1028_v9, %v1032_v6  ;;  %v892_v13 = vld [vmem:[%s13342_s1 + $0x1ac8] sm:$0xff]  ;;  %v9412_v24 = vcombine.low %v1028_v9, %v1032_v6 }
 0x1e1   :  { %6865 = vmatprep.subr.bf16.mxu0 %v9189_v28  ;;  %v896_v41 = vld [vmem:[%s13342_s1 + $0x1ae8] sm:$0xff] }
 0x1e2   :  { %6905 = vmatpush1.bf16.msra.mxu1 %v9324_v31  ;;  %v1020_v17 = vld [vmem:[%s13342_s1 + $0x1ec8] sm:$0xff]  ;;  %v9277_v25 = vcombine.high %v892_v13, %v896_v41 }
 0x1e3   :  { %6906 = vmatprep.subr.bf16.mxu1 %v9317_v34  ;;  %v1024_v53 = vld [vmem:[%s13342_s1 + $0x1ee8] sm:$0xff]  ;;  %v9276_v34 = vcombine.low %v892_v13, %v896_v41  ;;  %v217_v13 = vld [vmem:[%s13342_s1 + $0x5b0] sm:$0xff]  ;;  %v9723_v41 = vld [vmem:[%s13344_s2] sm:$0xff] }
 0x1e4   :  { %6866 = vmatpush1.bf16.msra.mxu0 %v9188_v19  ;;  %v9405_v54 = vcombine.high %v1020_v17, %v1024_v53  ;;  %v884_v27 = vld [vmem:[%s13342_s1 + $0x1a88] sm:$0xff]  ;;  %v9404_v35 = vcombine.low %v1020_v17, %v1024_v53  ;;  %v1072_v17 = vrot.slane %v9723_v41, %v1071_v3  ;;  %v65_v3 = vld [vmem:[%s13342_s1 + $0xf0] sm:$0xff] }
 0x1e5   :  { %6867 = vmatprep.subr.bf16.mxu0 %v9309_v43  ;;  %v888_v30 = vld [vmem:[%s13342_s1 + $0x1aa8] sm:$0xff] }
 0x1e6   :  { %6907 = vmatpush1.bf16.msra.mxu1 %v9316_v37  ;;  %v1012_v31 = vld [vmem:[%s13342_s1 + $0x1e88] sm:$0xff]  ;;  %v9269_v15 = vcombine.high %v884_v27, %v888_v30 }
 0x1e7   :  { %6908 = vmatprep.subr.bf16.mxu1 %v9437_v44  ;;  %v1016_v28 = vld [vmem:[%s13342_s1 + $0x1ea8] sm:$0xff]  ;;  %v9268_v44 = vcombine.low %v884_v27, %v888_v30  ;;  %v77_v27 = vld [vmem:[%s13342_s1 + $0x150] sm:$0xff] }
 0x1e8   :  { %6868 = vmatpush2.bf16.msra.mxu0 %v9308_v50  ;;  %v9397_v33 = vcombine.high %v1012_v31, %v1016_v28  ;;  %v876_v38 = vld [vmem:[%s13342_s1 + $0x1a48] sm:$0xff]  ;;  %v9396_v45 = vcombine.low %v1012_v31, %v1016_v28  ;;  %v81_v30 = vld [vmem:[%s13342_s1 + $0x170] sm:$0xff] }
 0x1e9   :  { %6869 = vmatprep.subr.bf16.mxu0 %v9301_v52  ;;  %v880_v19 = vld [vmem:[%s13342_s1 + $0x1a68] sm:$0xff]  ;;  %v205_v28 = vld [vmem:[%s13342_s1 + $0x550] sm:$0xff] }
 0x1ea   :  { %6909 = vmatpush2.bf16.msra.mxu1 %v9436_v51  ;;  %v1004_v37 = vld [vmem:[%s13342_s1 + $0x1e48] sm:$0xff]  ;;  %v9261_v21 = vcombine.high %v876_v38, %v880_v19 }
 0x1eb   :  { %6910 = vmatprep.subr.bf16.mxu1 %v9429_v56  ;;  %v1008_v43 = vld [vmem:[%s13342_s1 + $0x1e68] sm:$0xff]  ;;  %v9260_v56 = vcombine.low %v876_v38, %v880_v19 }
 0x1ec   :  { %6870 = vmatpush2.bf16.msra.mxu0 %v9300_v7  ;;  %v9389_v47 = vcombine.high %v1004_v37, %v1008_v43  ;;  %v868_v48 = vld [vmem:[%s13342_s1 + $0x1a08] sm:$0xff]  ;;  %v9388_v57 = vcombine.low %v1004_v37, %v1008_v43  ;;  %v97_v7 = vld [vmem:[%s13342_s1 + $0x1f0] sm:$0xff]  ;;  %v8463_v37 = vcombine.high %v77_v27, %v81_v30 }
 0x1ed   :  { %6871 = vmatprep.subr.bf16.mxu0 %v9293_v1  ;;  %v872_v50 = vld [vmem:[%s13342_s1 + $0x1a28] sm:$0xff]  ;;  %v225_v1 = vld [vmem:[%s13342_s1 + $0x5f0] sm:$0xff]  ;;  %v8479_v9 = vcombine.high %v93_v63, %v97_v7  ;;  %v8478_v53 = vcombine.low %v93_v63, %v97_v7 }
 0x1ee   :  { %6911 = vmatpush2.bf16.msra.mxu1 %v9428_v0  ;;  %v996_v51 = vld [vmem:[%s13342_s1 + $0x1e08] sm:$0xff]  ;;  %v9253_v60 = vcombine.high %v868_v48, %v872_v50  ;;  %v221_v0 = vld [vmem:[%s13342_s1 + $0x5d0] sm:$0xff] }
 0x1ef   :  { %6912 = vmatprep.subr.bf16.mxu1 %v9421_v2  ;;  %v1000_v52 = vld [vmem:[%s13342_s1 + $0x1e28] sm:$0xff]  ;;  %v9252_v2 = vcombine.low %v868_v48, %v872_v50  ;;  %v8607_v6 = vcombine.high %v221_v0, %v225_v1  ;;  %v73_v48 = vld [vmem:[%s13342_s1 + $0x130] sm:$0xff] }
 0x1f0   :  { %6872 = vmatpush2.bf16.msra.mxu0 %v9292_v39  ;;  %v9381_v62 = vcombine.high %v996_v51, %v1000_v52  ;;  %v9380_v5 = vcombine.low %v996_v51, %v1000_v52  ;;  %v1075_v39 = vsub.s32 3, %v10646_v32  ;;  %v197_v51 = vld [vmem:[%s13342_s1 + $0x510] sm:$0xff] }
 0x1f1   :  { %6873 = vmatprep.subr.bf16.mxu0 %v9285_v11  ;;  %v89_v11 = vld [vmem:[%s13342_s1 + $0x1b0] sm:$0xff] }
 0x1f2   :  { %6913 = vmatpush2.bf16.msra.mxu1 %v9420_v10  ;;  %v85_v10 = vld [vmem:[%s13342_s1 + $0x190] sm:$0xff] }
 0x1f3   :  { %6914 = vmatprep.subr.bf16.mxu1 %v9413_v12  ;;  %v213_v12 = vld [vmem:[%s13342_s1 + $0x590] sm:$0xff] }
 0x1f4   :  { %6874 = vmatpush2.bf16.msra.mxu0 %v9284_v22  ;;  %v8606_v22 = vcombine.low %v221_v0, %v225_v1  ;;  %v8598_v19 = vcombine.low %v213_v12, %v217_v13  ;;  %v201_v52 = vld [vmem:[%s13342_s1 + $0x530] sm:$0xff] }
 0x1f5   :  { %6875 = vmatprep.subr.bf16.mxu0 %v9277_v25  ;;  %v1076_v25 = vrot.slane %v9723_v41, %v1075_v39  ;;  %v8583_v1 = vcombine.high %v197_v51, %v201_v52  ;;  %v8582_v39 = vcombine.low %v197_v51, %v201_v52  ;;  %v181_v41 = vld [vmem:[%s13342_s1 + $0x490] sm:$0xff] }
 0x1f6   :  { %6915 = vmatpush2.bf16.msra.mxu1 %v9412_v24  ;;  %v8471_v24 = vcombine.high %v85_v10, %v89_v11  ;;  %v285_v51 = vld [vmem:[%s13342_s1 + $0x7d0] sm:$0xff] }
 0x1f7   :  { %6916 = vmatprep.subr.bf16.mxu1 %v9405_v54  ;;  %v8599_v54 = vcombine.high %v213_v12, %v217_v13  ;;  %v53_v12 = vld [vmem:[%s13342_s1 + $0x90] sm:$0xff] }
 0x1f8   :  { %6876 = vmatpush2.bf16.msra.mxu0 %v9276_v34  ;;  %v209_v34 = vld [vmem:[%s13342_s1 + $0x570] sm:$0xff] }
 0x1f9   :  { %6877 = vmatprep.subr.bf16.mxu0 %v9269_v15  ;;  %v8590_v63 = vcombine.low %v205_v28, %v209_v34  ;;  %v57_v13 = vld [vmem:[%s13342_s1 + $0xb0] sm:$0xff] }
 0x1fa   :  { %6917 = vmatpush2.bf16.msra.mxu1 %v9404_v35  ;;  %v289_v52 = vld [vmem:[%s13342_s1 + $0x7f0] sm:$0xff] }
 0x1fb   :  { %6918 = vmatprep.subr.bf16.mxu1 %v9397_v33  ;;  %v8470_v33 = vcombine.low %v85_v10, %v89_v11 }
 0x1fc   :  { %6878 = vmatpush2.bf16.msra.mxu0 %v9268_v44 }
 0x1fd   :  { %6879 = vmatprep.subr.bf16.mxu0 %v9261_v21  ;;  %v8591_v21 = vcombine.high %v205_v28, %v209_v34  ;;  %v8438_v28 = vcombine.low %v53_v12, %v57_v13 }
 0x1fe   :  { %6919 = vmatpush2.bf16.msra.mxu1 %v9396_v45 }
 0x1ff   :  { %6920 = vmatprep.subr.bf16.mxu1 %v9389_v47  ;;  %v69_v47 = vld [vmem:[%s13342_s1 + $0x110] sm:$0xff] }
 0x200   :  { %6880 = vmatpush2.bf16.msra.mxu0 %v9260_v56  ;;  %v8455_v7 = vcombine.high %v69_v47, %v73_v48 }
 0x201   :  { %6881 = vmatprep.subr.bf16.mxu0 %v9253_v60  ;;  %v8462_v60 = vcombine.low %v77_v27, %v81_v30  ;;  %v49_v27 = vld [vmem:[%s13342_s1 + $0x70] sm:$0xff] }
 0x202   :  { %6921 = vmatpush2.bf16.msra.mxu1 %v9388_v57  ;;  %v173_v30 = vld [vmem:[%s13342_s1 + $0x450] sm:$0xff] }
 0x203   :  { %6922 = vmatprep.subr.bf16.mxu1 %v9381_v62 }
 0x204   :  { %6882 = vmatpush2.bf16.msra.mxu0 %v9252_v2  ;;  %v61_v2 = vld [vmem:[%s13342_s1 + $0xd0] sm:$0xff] }
 0x205   :  { %6933 = vmatprep.subr.bf16.mxu0 %v8479_v9  ;;  %v193_v9 = vld [vmem:[%s13342_s1 + $0x4f0] sm:$0xff]  ;;  %v8447_v10 = vcombine.high %v61_v2, %v65_v3 }
 0x206   :  { %6923 = vmatpush2.bf16.msra.mxu1 %v9380_v5  ;;  %v189_v5 = vld [vmem:[%s13342_s1 + $0x4d0] sm:$0xff] }
 0x207   :  { %6974 = vmatprep.subr.bf16.mxu1 %v8607_v6  ;;  %v6639_v31 = vpop.f32.mrf.mxu0  ;;  %6884 = vmatmul.mubr.bf16.vlgmr.msra.gmra.mxu0 %v10673_v55  ;;  %v8454_v6 = vcombine.low %v69_v47, %v73_v48  ;;  %v8575_v11 = vcombine.high %v189_v5, %v193_v9  ;;  %v157_v48 = vld [vmem:[%s13342_s1 + $0x3d0] sm:$0xff] }
 0x208   :  { %v6640_v35 = vadd.f32 %v6639_v31, %v1072_v17  ;;  %6934 = vmatpush1.bf16.msra.mxu0 %v8478_v53  ;;  %6965 = vmatprep.mubr.bf16.mxu0 %v9870_v58  ;;  %v185_v17 = vld [vmem:[%s13342_s1 + $0x4b0] sm:$0xff]  ;;  %v8446_v53 = vcombine.low %v61_v2, %v65_v3 }
 0x209   :  { %v6680_v15 = vpop.f32.mrf.mxu1  ;;  %6925 = vmatmul.mubr.bf16.vlgmr.msra.gmra.mxu1 %v10683_v61  ;;  %v6641_v38 = vpop.f32.mrf.mxu0  ;;  %6935 = vmatprep.subr.bf16.mxu0 %v8471_v24  ;;  %v8439_v24 = vcombine.high %v53_v12, %v57_v13  ;;  %v177_v31 = vld [vmem:[%s13342_s1 + $0x470] sm:$0xff]  ;;  %v8566_v34 = vcombine.low %v181_v41, %v185_v17 }
 0x20a   :  { %6975 = vmatpush1.bf16.msra.mxu1 %v8606_v22  ;;  %v11510_v43 = vadd.f32 %v6680_v15, %v6640_v35  ;;  %v6642_v44 = vadd.f32 %v6641_v38, %v1076_v25  ;;  %7006 = vmatprep.mubr.bf16.mxu1 %v9874_v59  ;;  %v8574_v22 = vcombine.low %v189_v5, %v193_v9  ;;  %v41_v38 = vld [vmem:[%s13342_s1 + $0x30] sm:$0xff] }
 0x20b   :  { %v6682_v45 = vpop.f32.mrf.mxu1  ;;  %6976 = vmatprep.subr.bf16.mxu1 %v8599_v54  ;;  %v6643_v50 = vpop.f32.mrf.mxu0  ;;  %v8567_v25 = vcombine.high %v181_v41, %v185_v17  ;;  %v45_v54 = vld [vmem:[%s13342_s1 + $0x50] sm:$0xff]  ;;  %v8559_v15 = vcombine.high %v173_v30, %v177_v31  ;;  %v8670_v5 = vcombine.low %v285_v51, %v289_v52 }
 0x20c   :  { %v11526_v56 = vadd.f32 %v6682_v45, %v6642_v44  ;;  %6936 = vmatpush1.bf16.msra.mxu0 %v8470_v33  ;;  %v8431_v35 = vcombine.high %v45_v54, %v49_v27  ;;  %v37_v33 = vld [vmem:[%s13342_s1 + $0x10] sm:$0xff]  ;;  %v8430_v44 = vcombine.low %v45_v54, %v49_v27  ;;  %v8558_v45 = vcombine.low %v173_v30, %v177_v31 }
 0x20d   :  { %v6684_v57 = vpop.f32.mrf.mxu1  ;;  %v6644_v62 = vpop.f32.mrf.mxu0  ;;  %6937 = vmatprep.subr.bf16.mxu0 %v8463_v37  ;;  %v169_v37 = vld [vmem:[%s13342_s1 + $0x430] sm:$0xff] }
 0x20e   :  { %6977 = vmatpush1.bf16.msra.mxu1 %v8598_v19  ;;  %v165_v19 = vld [vmem:[%s13342_s1 + $0x410] sm:$0xff]  ;;  %v8422_v57 = vcombine.low %v37_v33, %v41_v38 }
 0x20f   :  { %v6685_v0 = vpop.f32.mrf.mxu1  ;;  %6978 = vmatprep.subr.bf16.mxu1 %v8591_v21  ;;  %v8423_v21 = vcombine.high %v37_v33, %v41_v38  ;;  %v8551_v47 = vcombine.high %v165_v19, %v169_v37  ;;  %v161_v50 = vld [vmem:[%s13342_s1 + $0x3f0] sm:$0xff] }
 0x210   :  { %6938 = vmatpush1.bf16.msra.mxu0 %v8462_v60  ;;  %v8550_v60 = vcombine.low %v165_v19, %v169_v37  ;;  %v8543_v62 = vcombine.high %v157_v48, %v161_v50  ;;  %v153_v0 = vld [vmem:[%s13342_s1 + $0x3b0] sm:$0xff]  ;;  %v8542_v3 = vcombine.low %v157_v48, %v161_v50 }
 0x211   :  { %6939 = vmatprep.subr.bf16.mxu0 %v8455_v7  ;;  %v149_v7 = vld [vmem:[%s13342_s1 + $0x390] sm:$0xff] }
 0x212   :  { %6979 = vmatpush1.bf16.msra.mxu1 %v8590_v63  ;;  %v8671_v63 = vcombine.high %v285_v51, %v289_v52  ;;  %v281_v2 = vld [vmem:[%s13342_s1 + $0x7b0] sm:$0xff]  ;;  %v8535_v9 = vcombine.high %v149_v7, %v153_v0  ;;  %v8534_v13 = vcombine.low %v149_v7, %v153_v0 }
 0x213   :  { %6980 = vmatprep.subr.bf16.mxu1 %v8583_v1  ;;  %v277_v1 = vld [vmem:[%s13342_s1 + $0x790] sm:$0xff] }
 0x214   :  { %6940 = vmatpush1.bf16.msra.mxu0 %v8454_v6  ;;  %v8663_v6 = vcombine.high %v277_v1, %v281_v2  ;;  %v273_v12 = vld [vmem:[%s13342_s1 + $0x770] sm:$0xff]  ;;  %v8662_v41 = vcombine.low %v277_v1, %v281_v2 }
 0x215   :  { %6941 = vmatprep.subr.bf16.mxu0 %v8447_v10  ;;  %v145_v10 = vld [vmem:[%s13342_s1 + $0x370] sm:$0xff] }
 0x216   :  { %6981 = vmatpush1.bf16.msra.mxu1 %v8582_v39  ;;  %v141_v39 = vld [vmem:[%s13342_s1 + $0x350] sm:$0xff] }
 0x217   :  { %6982 = vmatprep.subr.bf16.mxu1 %v8575_v11  ;;  %v269_v11 = vld [vmem:[%s13342_s1 + $0x750] sm:$0xff]  ;;  %v8527_v17 = vcombine.high %v141_v39, %v145_v10  ;;  %v8526_v27 = vcombine.low %v141_v39, %v145_v10 }
 0x218   :  { %6942 = vmatpush1.bf16.msra.mxu0 %v8446_v53  ;;  %v8655_v53 = vcombine.high %v269_v11, %v273_v12  ;;  %v265_v54 = vld [vmem:[%s13342_s1 + $0x730] sm:$0xff]  ;;  %v8654_v30 = vcombine.low %v269_v11, %v273_v12 }
 0x219   :  { %6943 = vmatprep.subr.bf16.mxu0 %v8439_v24  ;;  %v137_v24 = vld [vmem:[%s13342_s1 + $0x330] sm:$0xff] }
 0x21a   :  { %6983 = vmatpush1.bf16.msra.mxu1 %v8574_v22  ;;  %v133_v22 = vld [vmem:[%s13342_s1 + $0x310] sm:$0xff] }
 0x21b   :  { %6984 = vmatprep.subr.bf16.mxu1 %v8567_v25  ;;  %v261_v25 = vld [vmem:[%s13342_s1 + $0x710] sm:$0xff]  ;;  %v8519_v31 = vcombine.high %v133_v22, %v137_v24  ;;  %v8518_v38 = vcombine.low %v133_v22, %v137_v24 }
 0x21c   :  { %6944 = vmatpush1.bf16.msra.mxu0 %v8438_v28  ;;  %v8647_v28 = vcombine.high %v261_v25, %v265_v54  ;;  %v257_v33 = vld [vmem:[%s13342_s1 + $0x6f0] sm:$0xff]  ;;  %v8646_v19 = vcombine.low %v261_v25, %v265_v54 }
 0x21d   :  { %6945 = vmatprep.subr.bf16.mxu0 %v8431_v35  ;;  %v129_v35 = vld [vmem:[%s13342_s1 + $0x2f0] sm:$0xff] }
 0x21e   :  { %6985 = vmatpush1.bf16.msra.mxu1 %v8566_v34  ;;  %v125_v34 = vld [vmem:[%s13342_s1 + $0x2d0] sm:$0xff] }
 0x21f   :  { %6986 = vmatprep.subr.bf16.mxu1 %v8559_v15  ;;  %v253_v15 = vld [vmem:[%s13342_s1 + $0x6d0] sm:$0xff]  ;;  %v8511_v37 = vcombine.high %v125_v34, %v129_v35  ;;  %v8510_v50 = vcombine.low %v125_v34, %v129_v35 }
 0x220   :  { %6946 = vmatpush1.bf16.msra.mxu0 %v8430_v44  ;;  %v8639_v44 = vcombine.high %v253_v15, %v257_v33  ;;  %v249_v48 = vld [vmem:[%s13342_s1 + $0x6b0] sm:$0xff]  ;;  %v8638_v51 = vcombine.low %v253_v15, %v257_v33 }
 0x221   :  { %6947 = vmatprep.subr.bf16.mxu0 %v8423_v21  ;;  %v121_v21 = vld [vmem:[%s13342_s1 + $0x2b0] sm:$0xff] }
 0x222   :  { %6987 = vmatpush1.bf16.msra.mxu1 %v8558_v45  ;;  %v117_v45 = vld [vmem:[%s13342_s1 + $0x290] sm:$0xff] }
 0x223   :  { %6988 = vmatprep.subr.bf16.mxu1 %v8551_v47  ;;  %v245_v47 = vld [vmem:[%s13342_s1 + $0x690] sm:$0xff]  ;;  %v8503_v52 = vcombine.high %v117_v45, %v121_v21  ;;  %v8502_v0 = vcombine.low %v117_v45, %v121_v21 }
 0x224   :  { %6948 = vmatpush1.bf16.msra.mxu0 %v8422_v57  ;;  %v8631_v57 = vcombine.high %v245_v47, %v249_v48  ;;  %v241_v7 = vld [vmem:[%s13342_s1 + $0x670] sm:$0xff]  ;;  %v8630_v1 = vcombine.low %v245_v47, %v249_v48 }
 0x225   :  { %6949 = vmatprep.subr.bf16.mxu0 %v8543_v62  ;;  %v113_v62 = vld [vmem:[%s13342_s1 + $0x270] sm:$0xff] }
 0x226   :  { %6989 = vmatpush1.bf16.msra.mxu1 %v8550_v60  ;;  %v109_v60 = vld [vmem:[%s13342_s1 + $0x250] sm:$0xff] }
 0x227   :  { %6990 = vmatprep.subr.bf16.mxu1 %v8671_v63  ;;  %v237_v63 = vld [vmem:[%s13342_s1 + $0x650] sm:$0xff]  ;;  %v8495_v2 = vcombine.high %v109_v60, %v113_v62  ;;  %v8494_v10 = vcombine.low %v109_v60, %v113_v62 }
 0x228   :  { %6950 = vmatpush2.bf16.msra.mxu0 %v8542_v3  ;;  %v8623_v3 = vcombine.high %v237_v63, %v241_v7  ;;  %v233_v39 = vld [vmem:[%s13342_s1 + $0x630] sm:$0xff]  ;;  %v8622_v11 = vcombine.low %v237_v63, %v241_v7 }
 0x229   :  { %6951 = vmatprep.subr.bf16.mxu0 %v8535_v9  ;;  %v105_v9 = vld [vmem:[%s13342_s1 + $0x230] sm:$0xff] }
 0x22a   :  { %6991 = vmatpush2.bf16.msra.mxu1 %v8670_v5  ;;  %v101_v5 = vld [vmem:[%s13342_s1 + $0x210] sm:$0xff] }
 0x22b   :  { %6992 = vmatprep.subr.bf16.mxu1 %v8663_v6  ;;  %v229_v6 = vld [vmem:[%s13342_s1 + $0x610] sm:$0xff]  ;;  %v8487_v12 = vcombine.high %v101_v5, %v105_v9  ;;  %v8486_v24 = vcombine.low %v101_v5, %v105_v9 }
 0x22c   :  { %6952 = vmatpush2.bf16.msra.mxu0 %v8534_v13  ;;  %v8615_v13 = vcombine.high %v229_v6, %v233_v39  ;;  %v481_v22 = vld [vmem:[%s13342_s1 + $0xdf0] sm:$0xff]  ;;  %v8614_v25 = vcombine.low %v229_v6, %v233_v39 }
 0x22d   :  { %6953 = vmatprep.subr.bf16.mxu0 %v8527_v17  ;;  %v353_v17 = vld [vmem:[%s13342_s1 + $0x9f0] sm:$0xff] }
 0x22e   :  { %6993 = vmatpush2.bf16.msra.mxu1 %v8662_v41  ;;  %v349_v41 = vld [vmem:[%s13342_s1 + $0x9d0] sm:$0xff] }
 0x22f   :  { %6994 = vmatprep.subr.bf16.mxu1 %v8655_v53  ;;  %v477_v53 = vld [vmem:[%s13342_s1 + $0xdd0] sm:$0xff]  ;;  %v8735_v54 = vcombine.high %v349_v41, %v353_v17  ;;  %v8734_v35 = vcombine.low %v349_v41, %v353_v17 }
 0x230   :  { %6954 = vmatpush2.bf16.msra.mxu0 %v8526_v27  ;;  %v8863_v27 = vcombine.high %v477_v53, %v481_v22  ;;  %v473_v34 = vld [vmem:[%s13342_s1 + $0xdb0] sm:$0xff]  ;;  %v8862_v15 = vcombine.low %v477_v53, %v481_v22 }
 0x231   :  { %6955 = vmatprep.subr.bf16.mxu0 %v8519_v31  ;;  %v345_v31 = vld [vmem:[%s13342_s1 + $0x9b0] sm:$0xff] }
 0x232   :  { %6995 = vmatpush2.bf16.msra.mxu1 %v8654_v30  ;;  %v341_v30 = vld [vmem:[%s13342_s1 + $0x990] sm:$0xff] }
 0x233   :  { %6996 = vmatprep.subr.bf16.mxu1 %v8647_v28  ;;  %v469_v28 = vld [vmem:[%s13342_s1 + $0xd90] sm:$0xff]  ;;  %v8727_v33 = vcombine.high %v341_v30, %v345_v31 }
 0x234   :  { %6956 = vmatpush2.bf16.msra.mxu0 %v8518_v38  ;;  %v8855_v38 = vcombine.high %v469_v28, %v473_v34  ;;  %v461_v45 = vld [vmem:[%s13342_s1 + $0xd50] sm:$0xff] }
 0x235   :  { %6957 = vmatprep.subr.bf16.mxu0 %v8511_v37  ;;  %v337_v37 = vld [vmem:[%s13342_s1 + $0x970] sm:$0xff] }
 0x236   :  { %6997 = vmatpush2.bf16.msra.mxu1 %v8646_v19  ;;  %v333_v19 = vld [vmem:[%s13342_s1 + $0x950] sm:$0xff] }
 0x237   :  { %6998 = vmatprep.subr.bf16.mxu1 %v8639_v44  ;;  %v465_v21 = vld [vmem:[%s13342_s1 + $0xd70] sm:$0xff]  ;;  %v8718_v9 = vcombine.low %v333_v19, %v337_v37 }
 0x238   :  { %6958 = vmatpush2.bf16.msra.mxu0 %v8510_v50  ;;  %v8726_v50 = vcombine.low %v341_v30, %v345_v31  ;;  %v8847_v7 = vcombine.high %v461_v45, %v465_v21  ;;  %v8846_v39 = vcombine.low %v461_v45, %v465_v21  ;;  %v321_v41 = vld [vmem:[%s13342_s1 + $0x8f0] sm:$0xff] }
 0x239   :  { %6959 = vmatprep.subr.bf16.mxu0 %v8503_v52  ;;  %v8854_v52 = vcombine.low %v469_v28, %v473_v34  ;;  %v445_v17 = vld [vmem:[%s13342_s1 + $0xcd0] sm:$0xff] }
 0x23a   :  { %6999 = vmatpush2.bf16.msra.mxu1 %v8638_v51  ;;  %v449_v53 = vld [vmem:[%s13342_s1 + $0xcf0] sm:$0xff] }
 0x23b   :  { %7000 = vmatprep.subr.bf16.mxu1 %v8631_v57  ;;  %v8719_v57 = vcombine.high %v333_v19, %v337_v37  ;;  %v313_v30 = vld [vmem:[%s13342_s1 + $0x8b0] sm:$0xff] }
 0x23c   :  { %6960 = vmatpush2.bf16.msra.mxu0 %v8502_v0  ;;  %v329_v0 = vld [vmem:[%s13342_s1 + $0x930] sm:$0xff] }
 0x23d   :  { %6961 = vmatprep.subr.bf16.mxu0 %v8495_v2  ;;  %v453_v2 = vld [vmem:[%s13342_s1 + $0xd10] sm:$0xff] }
 0x23e   :  { %7001 = vmatpush2.bf16.msra.mxu1 %v8630_v1  ;;  %v437_v31 = vld [vmem:[%s13342_s1 + $0xc90] sm:$0xff] }
 0x23f   :  { %7002 = vmatprep.subr.bf16.mxu1 %v8623_v3  ;;  %v441_v28 = vld [vmem:[%s13342_s1 + $0xcb0] sm:$0xff] }
 0x240   :  { %6962 = vmatpush2.bf16.msra.mxu0 %v8494_v10  ;;  %v305_v19 = vld [vmem:[%s13342_s1 + $0x870] sm:$0xff]  ;;  %v8822_v21 = vcombine.low %v437_v31, %v441_v28 }
 0x241   :  { %6963 = vmatprep.subr.bf16.mxu0 %v8487_v12  ;;  %v429_v37 = vld [vmem:[%s13342_s1 + $0xc50] sm:$0xff] }
 0x242   :  { %7003 = vmatpush2.bf16.msra.mxu1 %v8622_v11 }
 0x243   :  { %7004 = vmatprep.subr.bf16.mxu1 %v8615_v13  ;;  %v317_v13 = vld [vmem:[%s13342_s1 + $0x8d0] sm:$0xff] }
 0x244   :  { %6964 = vmatpush2.bf16.msra.mxu0 %v8486_v24  ;;  %v8702_v34 = vcombine.low %v317_v13, %v321_v41 }
 0x245   :  { %7015 = vmatprep.subr.bf16.mxu0 %v8735_v54  ;;  %v8831_v54 = vcombine.high %v445_v17, %v449_v53 }
 0x246   :  { %7005 = vmatpush2.bf16.msra.mxu1 %v8614_v25  ;;  %v8703_v25 = vcombine.high %v317_v13, %v321_v41  ;;  %v537_v13 = vld [vmem:[%s13342_s1 + $0xfb0] sm:$0xff] }
 0x247   :  { %7056 = vmatprep.subr.bf16.mxu1 %v8863_v27  ;;  %v6721_v44 = vpop.f32.mrf.mxu0  ;;  %6966 = vmatmul.mubr.bf16.vlgmr.msra.gmra.mxu0 %v10000_v16  ;;  %v309_v27 = vld [vmem:[%s13342_s1 + $0x890] sm:$0xff] }
 0x248   :  { %v6722_v47 = vadd.f32 %v6721_v44, %v11510_v43  ;;  %7016 = vmatpush1.bf16.msra.mxu0 %v8734_v35  ;;  %v325_v43 = vld [vmem:[%s13342_s1 + $0x910] sm:$0xff]  ;;  %7047 = vmatprep.mubr.bf16.mxu0 %v10030_v26  ;;  %v8830_v35 = vcombine.low %v445_v17, %v449_v53  ;;  %v8694_v45 = vcombine.low %v309_v27, %v313_v30 }
 0x249   :  { %v6762_v48 = vpop.f32.mrf.mxu1  ;;  %7007 = vmatmul.mubr.bf16.vlgmr.msra.gmra.mxu1 %v10015_v20  ;;  %v6723_v51 = vpop.f32.mrf.mxu0  ;;  %7017 = vmatprep.subr.bf16.mxu0 %v8727_v33  ;;  %v8711_v10 = vcombine.high %v325_v43, %v329_v0  ;;  %v8710_v22 = vcombine.low %v325_v43, %v329_v0  ;;  %v8823_v33 = vcombine.high %v437_v31, %v441_v28  ;;  %v433_v44 = vld [vmem:[%s13342_s1 + $0xc70] sm:$0xff] }
 0x24a   :  { %7057 = vmatpush1.bf16.msra.mxu1 %v8862_v15  ;;  %v11711_v60 = vadd.f32 %v6762_v48, %v6722_v47  ;;  %v6724_v62 = vadd.f32 %v6723_v51, %v11526_v56  ;;  %v457_v56 = vld [vmem:[%s13342_s1 + $0xd30] sm:$0xff]  ;;  %7088 = vmatprep.mubr.bf16.mxu1 %v10041_v29  ;;  %v8695_v15 = vcombine.high %v309_v27, %v313_v30 }
 0x24b   :  { %v6764_v63 = vpop.f32.mrf.mxu1  ;;  %7058 = vmatprep.subr.bf16.mxu1 %v8855_v38  ;;  %v6725_v1 = vpop.f32.mrf.mxu0  ;;  %v8839_v12 = vcombine.high %v453_v2, %v457_v56  ;;  %v8838_v24 = vcombine.low %v453_v2, %v457_v56  ;;  %v301_v38 = vld [vmem:[%s13342_s1 + $0x850] sm:$0xff]  ;;  %v8815_v48 = vcombine.high %v429_v37, %v433_v44 }
 0x24c   :  { %v11728_v3 = vadd.f32 %v6764_v63, %v6724_v62  ;;  %7018 = vmatpush1.bf16.msra.mxu0 %v8726_v50  ;;  %v8687_v47 = vcombine.high %v301_v38, %v305_v19  ;;  %v293_v50 = vld [vmem:[%s13342_s1 + $0x810] sm:$0xff]  ;;  %v8686_v62 = vcombine.low %v301_v38, %v305_v19  ;;  %v8814_v63 = vcombine.low %v429_v37, %v433_v44 }
 0x24d   :  { %v6766_v5 = vpop.f32.mrf.mxu1  ;;  %v6726_v6 = vpop.f32.mrf.mxu0  ;;  %7019 = vmatprep.subr.bf16.mxu0 %v8719_v57  ;;  %v297_v51 = vld [vmem:[%s13342_s1 + $0x830] sm:$0xff] }
 0x24e   :  { %7059 = vmatpush1.bf16.msra.mxu1 %v8854_v52  ;;  %v421_v52 = vld [vmem:[%s13342_s1 + $0xc10] sm:$0xff]  ;;  %v8678_v5 = vcombine.low %v293_v50, %v297_v51 }
 0x24f   :  { %v6767_v11 = vpop.f32.mrf.mxu1  ;;  %7060 = vmatprep.subr.bf16.mxu1 %v8847_v7  ;;  %v425_v57 = vld [vmem:[%s13342_s1 + $0xc30] sm:$0xff]  ;;  %v8679_v7 = vcombine.high %v293_v50, %v297_v51 }
 0x250   :  { %7020 = vmatpush1.bf16.msra.mxu0 %v8718_v9  ;;  %v8807_v43 = vcombine.high %v421_v52, %v425_v57  ;;  %v413_v0 = vld [vmem:[%s13342_s1 + $0xbd0] sm:$0xff]  ;;  %v8806_v9 = vcombine.low %v421_v52, %v425_v57 }
 0x251   :  { %7021 = vmatprep.subr.bf16.mxu0 %v8711_v10  ;;  %v417_v1 = vld [vmem:[%s13342_s1 + $0xbf0] sm:$0xff] }
 0x252   :  { %7061 = vmatpush1.bf16.msra.mxu1 %v8846_v39  ;;  %v541_v2 = vld [vmem:[%s13342_s1 + $0xfd0] sm:$0xff]  ;;  %v8799_v6 = vcombine.high %v413_v0, %v417_v1  ;;  %v8798_v41 = vcombine.low %v413_v0, %v417_v1 }
 0x253   :  { %7062 = vmatprep.subr.bf16.mxu1 %v8839_v12  ;;  %v545_v56 = vld [vmem:[%s13342_s1 + $0xff0] sm:$0xff] }
 0x254   :  { %7022 = vmatpush1.bf16.msra.mxu0 %v8710_v22  ;;  %v8927_v39 = vcombine.high %v541_v2, %v545_v56  ;;  %v405_v10 = vld [vmem:[%s13342_s1 + $0xb90] sm:$0xff]  ;;  %v8926_v17 = vcombine.low %v541_v2, %v545_v56 }
 0x255   :  { %7023 = vmatprep.subr.bf16.mxu0 %v8703_v25  ;;  %v409_v11 = vld [vmem:[%s13342_s1 + $0xbb0] sm:$0xff] }
 0x256   :  { %7063 = vmatpush1.bf16.msra.mxu1 %v8838_v24  ;;  %v533_v12 = vld [vmem:[%s13342_s1 + $0xf90] sm:$0xff]  ;;  %v8791_v53 = vcombine.high %v405_v10, %v409_v11  ;;  %v8790_v30 = vcombine.low %v405_v10, %v409_v11 }
 0x257   :  { %7064 = vmatprep.subr.bf16.mxu1 %v8831_v54  ;;  %v8919_v22 = vcombine.high %v533_v12, %v537_v13  ;;  %v397_v24 = vld [vmem:[%s13342_s1 + $0xb50] sm:$0xff]  ;;  %v8918_v31 = vcombine.low %v533_v12, %v537_v13 }
 0x258   :  { %7024 = vmatpush1.bf16.msra.mxu0 %v8702_v34  ;;  %v401_v25 = vld [vmem:[%s13342_s1 + $0xb70] sm:$0xff] }
 0x259   :  { %7025 = vmatprep.subr.bf16.mxu0 %v8695_v15  ;;  %v525_v54 = vld [vmem:[%s13342_s1 + $0xf50] sm:$0xff]  ;;  %v8783_v28 = vcombine.high %v397_v24, %v401_v25  ;;  %v8782_v19 = vcombine.low %v397_v24, %v401_v25 }
 0x25a   :  { %7065 = vmatpush1.bf16.msra.mxu1 %v8830_v35  ;;  %v529_v27 = vld [vmem:[%s13342_s1 + $0xf70] sm:$0xff] }
 0x25b   :  { %7066 = vmatprep.subr.bf16.mxu1 %v8823_v33  ;;  %v8911_v34 = vcombine.high %v525_v54, %v529_v27  ;;  %v389_v35 = vld [vmem:[%s13342_s1 + $0xb10] sm:$0xff]  ;;  %v8910_v37 = vcombine.low %v525_v54, %v529_v27 }
 0x25c   :  { %7026 = vmatpush1.bf16.msra.mxu0 %v8694_v45  ;;  %v393_v15 = vld [vmem:[%s13342_s1 + $0xb30] sm:$0xff] }
 0x25d   :  { %7027 = vmatprep.subr.bf16.mxu0 %v8687_v47  ;;  %v517_v33 = vld [vmem:[%s13342_s1 + $0xf10] sm:$0xff]  ;;  %v8775_v44 = vcombine.high %v389_v35, %v393_v15  ;;  %v8774_v51 = vcombine.low %v389_v35, %v393_v15 }
 0x25e   :  { %7067 = vmatpush1.bf16.msra.mxu1 %v8822_v21  ;;  %v521_v38 = vld [vmem:[%s13342_s1 + $0xf30] sm:$0xff] }
 0x25f   :  { %7068 = vmatprep.subr.bf16.mxu1 %v8815_v48  ;;  %v8903_v45 = vcombine.high %v517_v33, %v521_v38  ;;  %v381_v21 = vld [vmem:[%s13342_s1 + $0xad0] sm:$0xff]  ;;  %v8902_v52 = vcombine.low %v517_v33, %v521_v38 }
 0x260   :  { %7028 = vmatpush1.bf16.msra.mxu0 %v8686_v62  ;;  %v385_v47 = vld [vmem:[%s13342_s1 + $0xaf0] sm:$0xff] }
 0x261   :  { %7029 = vmatprep.subr.bf16.mxu0 %v8679_v7  ;;  %v509_v48 = vld [vmem:[%s13342_s1 + $0xed0] sm:$0xff]  ;;  %v8767_v57 = vcombine.high %v381_v21, %v385_v47  ;;  %v8766_v1 = vcombine.low %v381_v21, %v385_v47 }
 0x262   :  { %7069 = vmatpush1.bf16.msra.mxu1 %v8814_v63  ;;  %v513_v50 = vld [vmem:[%s13342_s1 + $0xef0] sm:$0xff] }
 0x263   :  { %7070 = vmatprep.subr.bf16.mxu1 %v8807_v43  ;;  %v8895_v62 = vcombine.high %v509_v48, %v513_v50  ;;  %v373_v63 = vld [vmem:[%s13342_s1 + $0xa90] sm:$0xff]  ;;  %v8894_v2 = vcombine.low %v509_v48, %v513_v50 }
 0x264   :  { %7030 = vmatpush1.bf16.msra.mxu0 %v8678_v5  ;;  %v377_v7 = vld [vmem:[%s13342_s1 + $0xab0] sm:$0xff] }
 0x265   :  { %7031 = vmatprep.subr.bf16.mxu0 %v8799_v6  ;;  %v501_v43 = vld [vmem:[%s13342_s1 + $0xe90] sm:$0xff]  ;;  %v8759_v56 = vcombine.high %v373_v63, %v377_v7  ;;  %v8758_v11 = vcombine.low %v373_v63, %v377_v7 }
 0x266   :  { %7071 = vmatpush1.bf16.msra.mxu1 %v8806_v9  ;;  %v505_v0 = vld [vmem:[%s13342_s1 + $0xeb0] sm:$0xff] }
 0x267   :  { %7072 = vmatprep.subr.bf16.mxu1 %v8927_v39  ;;  %v8887_v5 = vcombine.high %v501_v43, %v505_v0  ;;  %v365_v9 = vld [vmem:[%s13342_s1 + $0xa50] sm:$0xff]  ;;  %v8886_v12 = vcombine.low %v501_v43, %v505_v0 }
 0x268   :  { %7032 = vmatpush2.bf16.msra.mxu0 %v8798_v41  ;;  %v369_v6 = vld [vmem:[%s13342_s1 + $0xa70] sm:$0xff] }
 0x269   :  { %7033 = vmatprep.subr.bf16.mxu0 %v8791_v53  ;;  %v493_v39 = vld [vmem:[%s13342_s1 + $0xe50] sm:$0xff]  ;;  %v8751_v13 = vcombine.high %v365_v9, %v369_v6  ;;  %v8750_v25 = vcombine.low %v365_v9, %v369_v6 }
 0x26a   :  { %7073 = vmatpush2.bf16.msra.mxu1 %v8926_v17  ;;  %v497_v10 = vld [vmem:[%s13342_s1 + $0xe70] sm:$0xff] }
 0x26b   :  { %7074 = vmatprep.subr.bf16.mxu1 %v8919_v22  ;;  %v8879_v41 = vcombine.high %v493_v39, %v497_v10  ;;  %v357_v17 = vld [vmem:[%s13342_s1 + $0xa10] sm:$0xff]  ;;  %v8878_v54 = vcombine.low %v493_v39, %v497_v10 }
 0x26c   :  { %7034 = vmatpush2.bf16.msra.mxu0 %v8790_v30  ;;  %v361_v53 = vld [vmem:[%s13342_s1 + $0xa30] sm:$0xff] }
 0x26d   :  { %7035 = vmatprep.subr.bf16.mxu0 %v8783_v28  ;;  %v485_v22 = vld [vmem:[%s13342_s1 + $0xe10] sm:$0xff]  ;;  %v8743_v27 = vcombine.high %v357_v17, %v361_v53  ;;  %v8742_v15 = vcombine.low %v357_v17, %v361_v53 }
 0x26e   :  { %7075 = vmatpush2.bf16.msra.mxu1 %v8918_v31  ;;  %v489_v24 = vld [vmem:[%s13342_s1 + $0xe30] sm:$0xff] }
 0x26f   :  { %7076 = vmatprep.subr.bf16.mxu1 %v8911_v34  ;;  %v8871_v30 = vcombine.high %v485_v22, %v489_v24  ;;  %v605_v31 = vld [vmem:[%s13342_s1 + $0x11d0] sm:$0xff]  ;;  %v8870_v33 = vcombine.low %v485_v22, %v489_v24 }
 0x270   :  { %7036 = vmatpush2.bf16.msra.mxu0 %v8782_v19  ;;  %v609_v28 = vld [vmem:[%s13342_s1 + $0x11f0] sm:$0xff] }
 0x271   :  { %7037 = vmatprep.subr.bf16.mxu0 %v8775_v44  ;;  %v733_v34 = vld [vmem:[%s13342_s1 + $0x15d0] sm:$0xff]  ;;  %v8991_v38 = vcombine.high %v605_v31, %v609_v28  ;;  %v8990_v47 = vcombine.low %v605_v31, %v609_v28 }
 0x272   :  { %7077 = vmatpush2.bf16.msra.mxu1 %v8910_v37  ;;  %v737_v35 = vld [vmem:[%s13342_s1 + $0x15f0] sm:$0xff] }
 0x273   :  { %7078 = vmatprep.subr.bf16.mxu1 %v8903_v45  ;;  %v9119_v19 = vcombine.high %v733_v34, %v737_v35  ;;  %v597_v37 = vld [vmem:[%s13342_s1 + $0x1190] sm:$0xff]  ;;  %v9118_v48 = vcombine.low %v733_v34, %v737_v35 }
 0x274   :  { %7038 = vmatpush2.bf16.msra.mxu0 %v8774_v51  ;;  %v601_v44 = vld [vmem:[%s13342_s1 + $0x11b0] sm:$0xff] }
 0x275   :  { %7039 = vmatprep.subr.bf16.mxu0 %v8767_v57  ;;  %v725_v45 = vld [vmem:[%s13342_s1 + $0x1590] sm:$0xff]  ;;  %v8983_v50 = vcombine.high %v597_v37, %v601_v44 }
 0x276   :  { %7079 = vmatpush2.bf16.msra.mxu1 %v8902_v52  ;;  %v729_v21 = vld [vmem:[%s13342_s1 + $0x15b0] sm:$0xff] }
 0x277   :  { %7080 = vmatprep.subr.bf16.mxu1 %v8895_v62  ;;  %v9111_v51 = vcombine.high %v725_v45, %v729_v21  ;;  %v589_v52 = vld [vmem:[%s13342_s1 + $0x1150] sm:$0xff] }
 0x278   :  { %7040 = vmatpush2.bf16.msra.mxu0 %v8766_v1  ;;  %v593_v57 = vld [vmem:[%s13342_s1 + $0x1170] sm:$0xff]  ;;  %v8982_v1 = vcombine.low %v597_v37, %v601_v44 }
 0x279   :  { %7041 = vmatprep.subr.bf16.mxu0 %v8759_v56  ;;  %v717_v63 = vld [vmem:[%s13342_s1 + $0x1550] sm:$0xff]  ;;  %v9110_v56 = vcombine.low %v725_v45, %v729_v21  ;;  %v8974_v53 = vcombine.low %v589_v52, %v593_v57 }
 0x27a   :  { %7081 = vmatpush2.bf16.msra.mxu1 %v8894_v2  ;;  %v721_v7 = vld [vmem:[%s13342_s1 + $0x1570] sm:$0xff] }
 0x27b   :  { %7082 = vmatprep.subr.bf16.mxu1 %v8887_v5  ;;  %v8975_v5 = vcombine.high %v589_v52, %v593_v57  ;;  %v9103_v10 = vcombine.high %v717_v63, %v721_v7  ;;  %v9102_v24 = vcombine.low %v717_v63, %v721_v7  ;;  %v577_v31 = vld [vmem:[%s13342_s1 + $0x10f0] sm:$0xff] }
 0x27c   :  { %7042 = vmatpush2.bf16.msra.mxu0 %v8758_v11  ;;  %v585_v11 = vld [vmem:[%s13342_s1 + $0x1130] sm:$0xff] }
 0x27d   :  { %7043 = vmatprep.subr.bf16.mxu0 %v8751_v13  ;;  %v709_v13 = vld [vmem:[%s13342_s1 + $0x1510] sm:$0xff] }
 0x27e   :  { %7083 = vmatpush2.bf16.msra.mxu1 %v8886_v12  ;;  %v701_v28 = vld [vmem:[%s13342_s1 + $0x14d0] sm:$0xff] }
 0x27f   :  { %7084 = vmatprep.subr.bf16.mxu1 %v8879_v41  ;;  %v705_v34 = vld [vmem:[%s13342_s1 + $0x14f0] sm:$0xff] }
 0x280   :  { %7044 = vmatpush2.bf16.msra.mxu0 %v8750_v25  ;;  %v569_v37 = vld [vmem:[%s13342_s1 + $0x10b0] sm:$0xff] }
 0x281   :  { %7045 = vmatprep.subr.bf16.mxu0 %v8743_v27  ;;  %v693_v44 = vld [vmem:[%s13342_s1 + $0x1490] sm:$0xff] }
 0x282   :  { %7085 = vmatpush2.bf16.msra.mxu1 %v8878_v54  ;;  %v697_v45 = vld [vmem:[%s13342_s1 + $0x14b0] sm:$0xff] }
 0x283   :  { %7086 = vmatprep.subr.bf16.mxu1 %v8871_v30  ;;  %v573_v30 = vld [vmem:[%s13342_s1 + $0x10d0] sm:$0xff]  ;;  %v9078_v7 = vcombine.low %v693_v44, %v697_v45 }
 0x284   :  { %7046 = vmatpush2.bf16.msra.mxu0 %v8742_v15  ;;  %v8958_v21 = vcombine.low %v573_v30, %v577_v31  ;;  %v561_v52 = vld [vmem:[%s13342_s1 + $0x1070] sm:$0xff] }
 0x285   :  { %7097 = vmatprep.subr.bf16.mxu0 %v8991_v38  ;;  %v9087_v38 = vcombine.high %v701_v28, %v705_v34  ;;  %v685_v57 = vld [vmem:[%s13342_s1 + $0x1450] sm:$0xff] }
 0x286   :  { %7087 = vmatpush2.bf16.msra.mxu1 %v8870_v33  ;;  %v8959_v33 = vcombine.high %v573_v30, %v577_v31  ;;  %v793_v30 = vld [vmem:[%s13342_s1 + $0x17b0] sm:$0xff] }
 0x287   :  { %7138 = vmatprep.subr.bf16.mxu1 %v9119_v19  ;;  %v6803_v62 = vpop.f32.mrf.mxu0  ;;  %7048 = vmatmul.mubr.bf16.vlgmr.msra.gmra.mxu0 %v10222_v36  ;;  %v565_v19 = vld [vmem:[%s13342_s1 + $0x1090] sm:$0xff] }
 0x288   :  { %v6804_v43 = vadd.f32 %v6803_v62, %v11711_v60  ;;  %7098 = vmatpush1.bf16.msra.mxu0 %v8990_v47  ;;  %v581_v60 = vld [vmem:[%s13342_s1 + $0x1110] sm:$0xff]  ;;  %7129 = vmatprep.mubr.bf16.mxu0 %v10252_v46  ;;  %v9086_v47 = vcombine.low %v701_v28, %v705_v34  ;;  %v8950_v63 = vcombine.low %v565_v19, %v569_v37 }
 0x289   :  { %v6844_v0 = vpop.f32.mrf.mxu1  ;;  %7089 = vmatmul.mubr.bf16.vlgmr.msra.gmra.mxu1 %v10237_v40  ;;  %v6805_v2 = vpop.f32.mrf.mxu0  ;;  %7099 = vmatprep.subr.bf16.mxu0 %v8983_v50  ;;  %v8967_v25 = vcombine.high %v581_v60, %v585_v11  ;;  %v8966_v35 = vcombine.low %v581_v60, %v585_v11  ;;  %v9079_v50 = vcombine.high %v693_v44, %v697_v45  ;;  %v689_v62 = vld [vmem:[%s13342_s1 + $0x1470] sm:$0xff] }
 0x28a   :  { %7139 = vmatpush1.bf16.msra.mxu1 %v9118_v48  ;;  %v11913_v9 = vadd.f32 %v6844_v0, %v6804_v43  ;;  %v6806_v6 = vadd.f32 %v6805_v2, %v11728_v3  ;;  %v713_v3 = vld [vmem:[%s13342_s1 + $0x1530] sm:$0xff]  ;;  %7170 = vmatprep.mubr.bf16.mxu1 %v10263_v49  ;;  %v8951_v48 = vcombine.high %v565_v19, %v569_v37 }
 0x28b   :  { %v6846_v39 = vpop.f32.mrf.mxu1  ;;  %7140 = vmatprep.subr.bf16.mxu1 %v9111_v51  ;;  %v6807_v12 = vpop.f32.mrf.mxu0  ;;  %v9095_v27 = vcombine.high %v709_v13, %v713_v3  ;;  %v9094_v15 = vcombine.low %v709_v13, %v713_v3  ;;  %v557_v51 = vld [vmem:[%s13342_s1 + $0x1050] sm:$0xff]  ;;  %v9071_v0 = vcombine.high %v685_v57, %v689_v62 }
 0x28c   :  { %v11930_v41 = vadd.f32 %v6846_v39, %v6806_v6  ;;  %7100 = vmatpush1.bf16.msra.mxu0 %v8982_v1  ;;  %v8943_v43 = vcombine.high %v557_v51, %v561_v52  ;;  %v549_v1 = vld [vmem:[%s13342_s1 + $0x1010] sm:$0xff]  ;;  %v8942_v6 = vcombine.low %v557_v51, %v561_v52  ;;  %v9070_v39 = vcombine.low %v685_v57, %v689_v62 }
 0x28d   :  { %v6848_v17 = vpop.f32.mrf.mxu1  ;;  %v6808_v22 = vpop.f32.mrf.mxu0  ;;  %7101 = vmatprep.subr.bf16.mxu0 %v8975_v5  ;;  %v553_v2 = vld [vmem:[%s13342_s1 + $0x1030] sm:$0xff] }
 0x28e   :  { %7141 = vmatpush1.bf16.msra.mxu1 %v9110_v56  ;;  %v677_v56 = vld [vmem:[%s13342_s1 + $0x1410] sm:$0xff]  ;;  %v8934_v17 = vcombine.low %v549_v1, %v553_v2 }
 0x28f   :  { %v6849_v54 = vpop.f32.mrf.mxu1  ;;  %7142 = vmatprep.subr.bf16.mxu1 %v9103_v10  ;;  %v681_v5 = vld [vmem:[%s13342_s1 + $0x1430] sm:$0xff]  ;;  %v8935_v10 = vcombine.high %v549_v1, %v553_v2 }
 0x290   :  { %7102 = vmatpush1.bf16.msra.mxu0 %v8974_v53  ;;  %v9063_v60 = vcombine.high %v677_v56, %v681_v5  ;;  %v669_v11 = vld [vmem:[%s13342_s1 + $0x13d0] sm:$0xff]  ;;  %v9062_v53 = vcombine.low %v677_v56, %v681_v5 }
 0x291   :  { %7103 = vmatprep.subr.bf16.mxu0 %v8967_v25  ;;  %v673_v12 = vld [vmem:[%s13342_s1 + $0x13f0] sm:$0xff] }
 0x292   :  { %7143 = vmatpush1.bf16.msra.mxu1 %v9102_v24  ;;  %v797_v13 = vld [vmem:[%s13342_s1 + $0x17d0] sm:$0xff]  ;;  %v9055_v22 = vcombine.high %v669_v11, %v673_v12  ;;  %v9054_v31 = vcombine.low %v669_v11, %v673_v12 }
 0x293   :  { %7144 = vmatprep.subr.bf16.mxu1 %v9095_v27  ;;  %v801_v3 = vld [vmem:[%s13342_s1 + $0x17f0] sm:$0xff] }
 0x294   :  { %7104 = vmatpush1.bf16.msra.mxu0 %v8966_v35  ;;  %v9183_v24 = vcombine.high %v797_v13, %v801_v3  ;;  %v661_v25 = vld [vmem:[%s13342_s1 + $0x1390] sm:$0xff]  ;;  %v9182_v28 = vcombine.low %v797_v13, %v801_v3 }
 0x295   :  { %7105 = vmatprep.subr.bf16.mxu0 %v8959_v33  ;;  %v665_v54 = vld [vmem:[%s13342_s1 + $0x13b0] sm:$0xff] }
 0x296   :  { %7145 = vmatpush1.bf16.msra.mxu1 %v9094_v15  ;;  %v789_v27 = vld [vmem:[%s13342_s1 + $0x1790] sm:$0xff]  ;;  %v9047_v34 = vcombine.high %v661_v25, %v665_v54  ;;  %v9046_v37 = vcombine.low %v661_v25, %v665_v54 }
 0x297   :  { %7146 = vmatprep.subr.bf16.mxu1 %v9087_v38  ;;  %v9175_v35 = vcombine.high %v789_v27, %v793_v30  ;;  %v653_v15 = vld [vmem:[%s13342_s1 + $0x1350] sm:$0xff]  ;;  %v9174_v44 = vcombine.low %v789_v27, %v793_v30 }
 0x298   :  { %7106 = vmatpush1.bf16.msra.mxu0 %v8958_v21  ;;  %v657_v33 = vld [vmem:[%s13342_s1 + $0x1370] sm:$0xff] }
 0x299   :  { %7107 = vmatprep.subr.bf16.mxu0 %v8951_v48  ;;  %v781_v38 = vld [vmem:[%s13342_s1 + $0x1750] sm:$0xff]  ;;  %v9039_v45 = vcombine.high %v653_v15, %v657_v33  ;;  %v9038_v52 = vcombine.low %v653_v15, %v657_v33 }
 0x29a   :  { %7147 = vmatpush1.bf16.msra.mxu1 %v9086_v47  ;;  %v785_v19 = vld [vmem:[%s13342_s1 + $0x1770] sm:$0xff] }
 0x29b   :  { %7148 = vmatprep.subr.bf16.mxu1 %v9079_v50  ;;  %v9167_v21 = vcombine.high %v781_v38, %v785_v19  ;;  %v645_v47 = vld [vmem:[%s13342_s1 + $0x1310] sm:$0xff]  ;;  %v9166_v57 = vcombine.low %v781_v38, %v785_v19 }
 0x29c   :  { %7108 = vmatpush1.bf16.msra.mxu0 %v8950_v63  ;;  %v649_v48 = vld [vmem:[%s13342_s1 + $0x1330] sm:$0xff] }
 0x29d   :  { %7109 = vmatprep.subr.bf16.mxu0 %v8943_v43  ;;  %v773_v50 = vld [vmem:[%s13342_s1 + $0x1710] sm:$0xff]  ;;  %v9031_v62 = vcombine.high %v645_v47, %v649_v48  ;;  %v9030_v2 = vcombine.low %v645_v47, %v649_v48 }
 0x29e   :  { %7149 = vmatpush1.bf16.msra.mxu1 %v9078_v7  ;;  %v777_v51 = vld [vmem:[%s13342_s1 + $0x1730] sm:$0xff] }
 0x29f   :  { %7150 = vmatprep.subr.bf16.mxu1 %v9071_v0  ;;  %v9159_v63 = vcombine.high %v773_v50, %v777_v51  ;;  %v637_v7 = vld [vmem:[%s13342_s1 + $0x12d0] sm:$0xff]  ;;  %v9158_v56 = vcombine.low %v773_v50, %v777_v51 }
 0x2a0   :  { %7110 = vmatpush1.bf16.msra.mxu0 %v8942_v6  ;;  %v641_v43 = vld [vmem:[%s13342_s1 + $0x12f0] sm:$0xff] }
 0x2a1   :  { %7111 = vmatprep.subr.bf16.mxu0 %v8935_v10  ;;  %v765_v0 = vld [vmem:[%s13342_s1 + $0x16d0] sm:$0xff]  ;;  %v9023_v5 = vcombine.high %v637_v7, %v641_v43  ;;  %v9022_v12 = vcombine.low %v637_v7, %v641_v43 }
 0x2a2   :  { %7151 = vmatpush1.bf16.msra.mxu1 %v9070_v39  ;;  %v769_v1 = vld [vmem:[%s13342_s1 + $0x16f0] sm:$0xff] }
 0x2a3   :  { %7152 = vmatprep.subr.bf16.mxu1 %v9063_v60  ;;  %v9151_v6 = vcombine.high %v765_v0, %v769_v1  ;;  %v629_v39 = vld [vmem:[%s13342_s1 + $0x1290] sm:$0xff]  ;;  %v9150_v13 = vcombine.low %v765_v0, %v769_v1 }
 0x2a4   :  { %7112 = vmatpush1.bf16.msra.mxu0 %v8934_v17  ;;  %v633_v10 = vld [vmem:[%s13342_s1 + $0x12b0] sm:$0xff] }
 0x2a5   :  { %7113 = vmatprep.subr.bf16.mxu0 %v9055_v22  ;;  %v757_v60 = vld [vmem:[%s13342_s1 + $0x1690] sm:$0xff]  ;;  %v9015_v3 = vcombine.high %v629_v39, %v633_v10  ;;  %v9014_v54 = vcombine.low %v629_v39, %v633_v10 }
 0x2a6   :  { %7153 = vmatpush1.bf16.msra.mxu1 %v9062_v53  ;;  %v761_v11 = vld [vmem:[%s13342_s1 + $0x16b0] sm:$0xff] }
 0x2a7   :  { %7154 = vmatprep.subr.bf16.mxu1 %v9183_v24  ;;  %v9143_v17 = vcombine.high %v757_v60, %v761_v11  ;;  %v621_v53 = vld [vmem:[%s13342_s1 + $0x1250] sm:$0xff]  ;;  %v9142_v27 = vcombine.low %v757_v60, %v761_v11 }
 0x2a8   :  { %7114 = vmatpush2.bf16.msra.mxu0 %v9054_v31  ;;  %v625_v22 = vld [vmem:[%s13342_s1 + $0x1270] sm:$0xff] }
 0x2a9   :  { %7115 = vmatprep.subr.bf16.mxu0 %v9047_v34  ;;  %v749_v24 = vld [vmem:[%s13342_s1 + $0x1650] sm:$0xff]  ;;  %v9007_v30 = vcombine.high %v621_v53, %v625_v22  ;;  %v9006_v33 = vcombine.low %v621_v53, %v625_v22 }
 0x2aa   :  { %7155 = vmatpush2.bf16.msra.mxu1 %v9182_v28  ;;  %v753_v25 = vld [vmem:[%s13342_s1 + $0x1670] sm:$0xff] }
 0x2ab   :  { %7156 = vmatprep.subr.bf16.mxu1 %v9175_v35  ;;  %v9135_v31 = vcombine.high %v749_v24, %v753_v25  ;;  %v613_v28 = vld [vmem:[%s13342_s1 + $0x1210] sm:$0xff]  ;;  %v9134_v38 = vcombine.low %v749_v24, %v753_v25 }
 0x2ac   :  { %7116 = vmatpush2.bf16.msra.mxu0 %v9046_v37  ;;  %v617_v34 = vld [vmem:[%s13342_s1 + $0x1230] sm:$0xff] }
 0x2ad   :  { %7117 = vmatprep.subr.bf16.mxu0 %v9039_v45  ;;  %v741_v35 = vld [vmem:[%s13342_s1 + $0x1610] sm:$0xff]  ;;  %v8999_v19 = vcombine.high %v613_v28, %v617_v34  ;;  %v8998_v48 = vcombine.low %v613_v28, %v617_v34 }
 0x2ae   :  { %7157 = vmatpush2.bf16.msra.mxu1 %v9174_v44  ;;  %v745_v15 = vld [vmem:[%s13342_s1 + $0x1630] sm:$0xff] }
 0x2af   :  { %7158 = vmatprep.subr.bf16.mxu1 %v9167_v21  ;;  %v9127_v37 = vcombine.high %v741_v35, %v745_v15  ;;  %v861_v44 = vld [vmem:[%s13342_s1 + $0x19d0] sm:$0xff]  ;;  %v9126_v50 = vcombine.low %v741_v35, %v745_v15 }
 0x2b0   :  { %7118 = vmatpush2.bf16.msra.mxu0 %v9038_v52  ;;  %v865_v45 = vld [vmem:[%s13342_s1 + $0x19f0] sm:$0xff] }
 0x2b1   :  { %7119 = vmatprep.subr.bf16.mxu0 %v9031_v62  ;;  %v989_v21 = vld [vmem:[%s13342_s1 + $0x1dd0] sm:$0xff]  ;;  %v9247_v51 = vcombine.high %v861_v44, %v865_v45  ;;  %v9246_v43 = vcombine.low %v861_v44, %v865_v45 }
 0x2b2   :  { %7159 = vmatpush2.bf16.msra.mxu1 %v9166_v57  ;;  %v993_v47 = vld [vmem:[%s13342_s1 + $0x1df0] sm:$0xff] }
 0x2b3   :  { %7160 = vmatprep.subr.bf16.mxu1 %v9159_v63  ;;  %v9375_v52 = vcombine.high %v989_v21, %v993_v47  ;;  %v853_v57 = vld [vmem:[%s13342_s1 + $0x1990] sm:$0xff]  ;;  %v9374_v0 = vcombine.low %v989_v21, %v993_v47 }
 0x2b4   :  { %7120 = vmatpush2.bf16.msra.mxu0 %v9030_v2  ;;  %v857_v62 = vld [vmem:[%s13342_s1 + $0x19b0] sm:$0xff] }
 0x2b5   :  { %7121 = vmatprep.subr.bf16.mxu0 %v9023_v5  ;;  %v981_v63 = vld [vmem:[%s13342_s1 + $0x1d90] sm:$0xff]  ;;  %v9239_v1 = vcombine.high %v853_v57, %v857_v62 }
 0x2b6   :  { %7161 = vmatpush2.bf16.msra.mxu1 %v9158_v56  ;;  %v985_v7 = vld [vmem:[%s13342_s1 + $0x1db0] sm:$0xff] }
 0x2b7   :  { %7162 = vmatprep.subr.bf16.mxu1 %v9151_v6  ;;  %v9367_v2 = vcombine.high %v981_v63, %v985_v7  ;;  %v845_v56 = vld [vmem:[%s13342_s1 + $0x1950] sm:$0xff] }
 0x2b8   :  { %7122 = vmatpush2.bf16.msra.mxu0 %v9022_v12  ;;  %v849_v5 = vld [vmem:[%s13342_s1 + $0x1970] sm:$0xff]  ;;  %v9238_v12 = vcombine.low %v853_v57, %v857_v62 }
 0x2b9   :  { %7123 = vmatprep.subr.bf16.mxu0 %v9015_v3  ;;  %v973_v39 = vld [vmem:[%s13342_s1 + $0x1d50] sm:$0xff]  ;;  %v9366_v3 = vcombine.low %v981_v63, %v985_v7  ;;  %v9230_v34 = vcombine.low %v845_v56, %v849_v5 }
 0x2ba   :  { %7163 = vmatpush2.bf16.msra.mxu1 %v9150_v13  ;;  %v977_v10 = vld [vmem:[%s13342_s1 + $0x1d70] sm:$0xff] }
 0x2bb   :  { %7164 = vmatprep.subr.bf16.mxu1 %v9143_v17  ;;  %v9231_v17 = vcombine.high %v845_v56, %v849_v5  ;;  %v9359_v25 = vcombine.high %v973_v39, %v977_v10  ;;  %v9358_v15 = vcombine.low %v973_v39, %v977_v10  ;;  %v833_v44 = vld [vmem:[%s13342_s1 + $0x18f0] sm:$0xff] }
 0x2bc   :  { %7124 = vmatpush2.bf16.msra.mxu0 %v9014_v54  ;;  %v841_v54 = vld [vmem:[%s13342_s1 + $0x1930] sm:$0xff] }
 0x2bd   :  { %7125 = vmatprep.subr.bf16.mxu0 %v9007_v30  ;;  %v965_v30 = vld [vmem:[%s13342_s1 + $0x1d10] sm:$0xff] }
 0x2be   :  { %7165 = vmatpush2.bf16.msra.mxu1 %v9142_v27  ;;  %v957_v45 = vld [vmem:[%s13342_s1 + $0x1cd0] sm:$0xff] }
 0x2bf   :  { %7166 = vmatprep.subr.bf16.mxu1 %v9135_v31  ;;  %v961_v21 = vld [vmem:[%s13342_s1 + $0x1cf0] sm:$0xff] }
 0x2c0   :  { %7126 = vmatpush2.bf16.msra.mxu0 %v9006_v33  ;;  %v825_v57 = vld [vmem:[%s13342_s1 + $0x18b0] sm:$0xff] }
 0x2c1   :  { %7127 = vmatprep.subr.bf16.mxu0 %v8999_v19  ;;  %v949_v62 = vld [vmem:[%s13342_s1 + $0x1c90] sm:$0xff] }
 0x2c2   :  { %7167 = vmatpush2.bf16.msra.mxu1 %v9134_v38  ;;  %v953_v63 = vld [vmem:[%s13342_s1 + $0x1cb0] sm:$0xff] }
 0x2c3   :  { %7168 = vmatprep.subr.bf16.mxu1 %v9127_v37  ;;  %v829_v37 = vld [vmem:[%s13342_s1 + $0x18d0] sm:$0xff]  ;;  %v9334_v10 = vcombine.low %v949_v62, %v953_v63 }
 0x2c4   :  { %7128 = vmatpush2.bf16.msra.mxu0 %v8998_v48  ;;  %v9214_v7 = vcombine.low %v829_v37, %v833_v44  ;;  %v817_v56 = vld [vmem:[%s13342_s1 + $0x1870] sm:$0xff] }
 0x2c5   :  { %7179 = vmatprep.subr.bf16.mxu0 %v9247_v51  ;;  %v9343_v51 = vcombine.high %v957_v45, %v961_v21  ;;  %v941_v5 = vld [vmem:[%s13342_s1 + $0x1c50] sm:$0xff] }
 0x2c6   :  { %7169 = vmatpush2.bf16.msra.mxu1 %v9126_v50  ;;  %v9215_v50 = vcombine.high %v829_v37, %v833_v44  ;;  %v1049_v37 = vld [vmem:[%s13342_s1 + $0x1fb0] sm:$0xff] }
 0x2c7   :  { %7220 = vmatprep.subr.bf16.mxu1 %v9375_v52  ;;  %v6885_v6 = vpop.f32.mrf.mxu0  ;;  %7130 = vmatmul.mubr.bf16.vlgmr.msra.gmra.mxu0 %v10444_v4  ;;  %v821_v52 = vld [vmem:[%s13342_s1 + $0x1890] sm:$0xff] }
 0x2c8   :  { %v6886_v60 = vadd.f32 %v6885_v6, %v11913_v9  ;;  %7180 = vmatpush1.bf16.msra.mxu0 %v9246_v43  ;;  %v837_v9 = vld [vmem:[%s13342_s1 + $0x1910] sm:$0xff]  ;;  %7211 = vmatprep.mubr.bf16.mxu0 %v10474_v14  ;;  %v9342_v43 = vcombine.low %v957_v45, %v961_v21  ;;  %v9206_v39 = vcombine.low %v821_v52, %v825_v57 }
 0x2c9   :  { %v6926_v11 = vpop.f32.mrf.mxu1  ;;  %7171 = vmatmul.mubr.bf16.vlgmr.msra.gmra.mxu1 %v10459_v8  ;;  %v6887_v13 = vpop.f32.mrf.mxu0  ;;  %7181 = vmatprep.subr.bf16.mxu0 %v9239_v1  ;;  %v9223_v33 = vcombine.high %v837_v9, %v841_v54  ;;  %v9222_v47 = vcombine.low %v837_v9, %v841_v54  ;;  %v9335_v1 = vcombine.high %v949_v62, %v953_v63  ;;  %v945_v6 = vld [vmem:[%s13342_s1 + $0x1c70] sm:$0xff] }
 0x2ca   :  { %7221 = vmatpush1.bf16.msra.mxu1 %v9374_v0  ;;  %v12115_v53 = vadd.f32 %v6926_v11, %v6886_v60  ;;  %v6888_v22 = vadd.f32 %v6887_v13, %v11930_v41  ;;  %v969_v41 = vld [vmem:[%s13342_s1 + $0x1d30] sm:$0xff]  ;;  %7252 = vmatprep.mubr.bf16.mxu1 %v10485_v18  ;;  %v9207_v0 = vcombine.high %v821_v52, %v825_v57 }
 0x2cb   :  { %v6928_v24 = vpop.f32.mrf.mxu1  ;;  %7222 = vmatprep.subr.bf16.mxu1 %v9367_v2  ;;  %v6889_v27 = vpop.f32.mrf.mxu0  ;;  %v9351_v19 = vcombine.high %v965_v30, %v969_v41  ;;  %v9350_v48 = vcombine.low %v965_v30, %v969_v41  ;;  %v813_v2 = vld [vmem:[%s13342_s1 + $0x1850] sm:$0xff]  ;;  %v9327_v11 = vcombine.high %v941_v5, %v945_v6 }
 0x2cc   :  { %v12132_v31 = vadd.f32 %v6928_v24, %v6888_v22  ;;  %7182 = vmatpush1.bf16.msra.mxu0 %v9238_v12  ;;  %v9199_v60 = vcombine.high %v813_v2, %v817_v56  ;;  %v805_v12 = vld [vmem:[%s13342_s1 + $0x1810] sm:$0xff]  ;;  %v9198_v22 = vcombine.low %v813_v2, %v817_v56  ;;  %v9326_v24 = vcombine.low %v941_v5, %v945_v6 }
 0x2cd   :  { %v6930_v28 = vpop.f32.mrf.mxu1  ;;  %v6890_v35 = vpop.f32.mrf.mxu0  ;;  %7183 = vmatprep.subr.bf16.mxu0 %v9231_v17  ;;  %v809_v13 = vld [vmem:[%s13342_s1 + $0x1830] sm:$0xff] }
 0x2ce   :  { %7223 = vmatpush1.bf16.msra.mxu1 %v9366_v3  ;;  %v933_v3 = vld [vmem:[%s13342_s1 + $0x1c10] sm:$0xff]  ;;  %v9190_v28 = vcombine.low %v805_v12, %v809_v13 }
 0x2cf   :  { %v6931_v38 = vpop.f32.mrf.mxu1  ;;  %7224 = vmatprep.subr.bf16.mxu1 %v9359_v25  ;;  %v937_v17 = vld [vmem:[%s13342_s1 + $0x1c30] sm:$0xff]  ;;  %v9191_v25 = vcombine.high %v805_v12, %v809_v13 }
 0x2d0   :  { %7184 = vmatpush1.bf16.msra.mxu0 %v9230_v34  ;;  %v9319_v9 = vcombine.high %v933_v3, %v937_v17  ;;  %v925_v54 = vld [vmem:[%s13342_s1 + $0x1bd0] sm:$0xff]  ;;  %v9318_v34 = vcombine.low %v933_v3, %v937_v17 }
 0x2d1   :  { %7185 = vmatprep.subr.bf16.mxu0 %v9223_v33  ;;  %v929_v27 = vld [vmem:[%s13342_s1 + $0x1bf0] sm:$0xff] }
 0x2d2   :  { %7225 = vmatpush1.bf16.msra.mxu1 %v9358_v15  ;;  %v1053_v30 = vld [vmem:[%s13342_s1 + $0x1fd0] sm:$0xff]  ;;  %v9311_v35 = vcombine.high %v925_v54, %v929_v27  ;;  %v9310_v44 = vcombine.low %v925_v54, %v929_v27 }
 0x2d3   :  { %7226 = vmatprep.subr.bf16.mxu1 %v9351_v19  ;;  %v1057_v41 = vld [vmem:[%s13342_s1 + $0x1ff0] sm:$0xff] }
 0x2d4   :  { %7186 = vmatpush1.bf16.msra.mxu0 %v9222_v47  ;;  %v9439_v15 = vcombine.high %v1053_v30, %v1057_v41  ;;  %v917_v33 = vld [vmem:[%s13342_s1 + $0x1b90] sm:$0xff]  ;;  %v9438_v45 = vcombine.low %v1053_v30, %v1057_v41 }
 0x2d5   :  { %7187 = vmatprep.subr.bf16.mxu0 %v9215_v50  ;;  %v921_v38 = vld [vmem:[%s13342_s1 + $0x1bb0] sm:$0xff] }
 0x2d6   :  { %7227 = vmatpush1.bf16.msra.mxu1 %v9350_v48  ;;  %v1045_v19 = vld [vmem:[%s13342_s1 + $0x1f90] sm:$0xff]  ;;  %v9303_v21 = vcombine.high %v917_v33, %v921_v38  ;;  %v9302_v57 = vcombine.low %v917_v33, %v921_v38 }
 0x2d7   :  { %7228 = vmatprep.subr.bf16.mxu1 %v9343_v51  ;;  %v9431_v47 = vcombine.high %v1045_v19, %v1049_v37  ;;  %v909_v48 = vld [vmem:[%s13342_s1 + $0x1b50] sm:$0xff]  ;;  %v9430_v62 = vcombine.low %v1045_v19, %v1049_v37 }
 0x2d8   :  { %7188 = vmatpush1.bf16.msra.mxu0 %v9214_v7  ;;  %v913_v50 = vld [vmem:[%s13342_s1 + $0x1b70] sm:$0xff] }
 0x2d9   :  { %7189 = vmatprep.subr.bf16.mxu0 %v9207_v0  ;;  %v1037_v51 = vld [vmem:[%s13342_s1 + $0x1f50] sm:$0xff]  ;;  %v9295_v63 = vcombine.high %v909_v48, %v913_v50  ;;  %v9294_v56 = vcombine.low %v909_v48, %v913_v50 }
 0x2da   :  { %7229 = vmatpush1.bf16.msra.mxu1 %v9342_v43  ;;  %v1041_v52 = vld [vmem:[%s13342_s1 + $0x1f70] sm:$0xff] }
 0x2db   :  { %7230 = vmatprep.subr.bf16.mxu1 %v9335_v1  ;;  %v9423_v7 = vcombine.high %v1037_v51, %v1041_v52  ;;  %v901_v43 = vld [vmem:[%s13342_s1 + $0x1b10] sm:$0xff]  ;;  %v9422_v5 = vcombine.low %v1037_v51, %v1041_v52 }
 0x2dc   :  { %7190 = vmatpush1.bf16.msra.mxu0 %v9206_v39  ;;  %v905_v0 = vld [vmem:[%s13342_s1 + $0x1b30] sm:$0xff] }
 0x2dd   :  { %7191 = vmatprep.subr.bf16.mxu0 %v9199_v60  ;;  %v1029_v1 = vld [vmem:[%s13342_s1 + $0x1f10] sm:$0xff]  ;;  %v9287_v6 = vcombine.high %v901_v43, %v905_v0  ;;  %v9286_v13 = vcombine.low %v901_v43, %v905_v0  ;;  %v226_v43 = vld [vmem:[%s13342_s1 + $0x5f8] sm:$0xff] }
 0x2de   :  { %7231 = vmatpush1.bf16.msra.mxu1 %v9334_v10  ;;  %v1033_v2 = vld [vmem:[%s13342_s1 + $0x1f30] sm:$0xff] }
 0x2df   :  { %7232 = vmatprep.subr.bf16.mxu1 %v9327_v11  ;;  %v9415_v39 = vcombine.high %v1029_v1, %v1033_v2  ;;  %v893_v10 = vld [vmem:[%s13342_s1 + $0x1ad0] sm:$0xff]  ;;  %v9414_v3 = vcombine.low %v1029_v1, %v1033_v2  ;;  %v1079_v1 = vsub.s32 4, %v10646_v32 }
 0x2e0   :  { %7192 = vmatpush1.bf16.msra.mxu0 %v9198_v22  ;;  %v897_v60 = vld [vmem:[%s13342_s1 + $0x1af0] sm:$0xff] }
 0x2e1   :  { %7193 = vmatprep.subr.bf16.mxu0 %v9191_v25  ;;  %v1021_v11 = vld [vmem:[%s13342_s1 + $0x1ed0] sm:$0xff]  ;;  %v9279_v17 = vcombine.high %v893_v10, %v897_v60  ;;  %v9278_v27 = vcombine.low %v893_v10, %v897_v60  ;;  %v90_v10 = vld [vmem:[%s13342_s1 + $0x1b8] sm:$0xff] }
 0x2e2   :  { %7233 = vmatpush1.bf16.msra.mxu1 %v9326_v24  ;;  %v1025_v12 = vld [vmem:[%s13342_s1 + $0x1ef0] sm:$0xff]  ;;  %v214_v60 = vld [vmem:[%s13342_s1 + $0x598] sm:$0xff] }
 0x2e3   :  { %7234 = vmatprep.subr.bf16.mxu1 %v9319_v9  ;;  %v9407_v22 = vcombine.high %v1021_v11, %v1025_v12  ;;  %v885_v24 = vld [vmem:[%s13342_s1 + $0x1a90] sm:$0xff]  ;;  %v9406_v30 = vcombine.low %v1021_v11, %v1025_v12  ;;  %v218_v11 = vld [vmem:[%s13342_s1 + $0x5b8] sm:$0xff]  ;;  %v9724_v12 = vld [vmem:[%s13344_s2] sm:$0xff] }
 0x2e4   :  { %7194 = vmatpush1.bf16.msra.mxu0 %v9190_v28  ;;  %v889_v25 = vld [vmem:[%s13342_s1 + $0x1ab0] sm:$0xff] }
 0x2e5   :  { %7195 = vmatprep.subr.bf16.mxu0 %v9311_v35  ;;  %v1013_v9 = vld [vmem:[%s13342_s1 + $0x1e90] sm:$0xff]  ;;  %v9271_v41 = vcombine.high %v885_v24, %v889_v25  ;;  %v9270_v38 = vcombine.low %v885_v24, %v889_v25  ;;  %v8601_v25 = vcombine.high %v214_v60, %v218_v11 }
 0x2e6   :  { %7235 = vmatpush1.bf16.msra.mxu1 %v9318_v34  ;;  %v1017_v54 = vld [vmem:[%s13342_s1 + $0x1eb0] sm:$0xff] }
 0x2e7   :  { %7236 = vmatprep.subr.bf16.mxu1 %v9439_v15  ;;  %v9399_v28 = vcombine.high %v1013_v9, %v1017_v54  ;;  %v877_v34 = vld [vmem:[%s13342_s1 + $0x1a50] sm:$0xff]  ;;  %v9398_v19 = vcombine.low %v1013_v9, %v1017_v54  ;;  %v78_v9 = vld [vmem:[%s13342_s1 + $0x158] sm:$0xff] }
 0x2e8   :  { %7196 = vmatpush2.bf16.msra.mxu0 %v9310_v44  ;;  %v881_v35 = vld [vmem:[%s13342_s1 + $0x1a70] sm:$0xff]  ;;  %v82_v54 = vld [vmem:[%s13342_s1 + $0x178] sm:$0xff] }
 0x2e9   :  { %7197 = vmatprep.subr.bf16.mxu0 %v9303_v21  ;;  %v1005_v15 = vld [vmem:[%s13342_s1 + $0x1e50] sm:$0xff]  ;;  %v9263_v37 = vcombine.high %v877_v34, %v881_v35  ;;  %v9262_v50 = vcombine.low %v877_v34, %v881_v35 }
 0x2ea   :  { %7237 = vmatpush2.bf16.msra.mxu1 %v9438_v45  ;;  %v1009_v33 = vld [vmem:[%s13342_s1 + $0x1e70] sm:$0xff] }
 0x2eb   :  { %7238 = vmatprep.subr.bf16.mxu1 %v9431_v47  ;;  %v9391_v44 = vcombine.high %v1005_v15, %v1009_v33  ;;  %v869_v45 = vld [vmem:[%s13342_s1 + $0x1a10] sm:$0xff]  ;;  %v9390_v51 = vcombine.low %v1005_v15, %v1009_v33  ;;  %v8600_v33 = vcombine.low %v214_v60, %v218_v11  ;;  %v54_v60 = vld [vmem:[%s13342_s1 + $0x98] sm:$0xff] }
 0x2ec   :  { %7198 = vmatpush2.bf16.msra.mxu0 %v9302_v57  ;;  %v873_v21 = vld [vmem:[%s13342_s1 + $0x1a30] sm:$0xff]  ;;  %v58_v11 = vld [vmem:[%s13342_s1 + $0xb8] sm:$0xff] }
 0x2ed   :  { %7199 = vmatprep.subr.bf16.mxu0 %v9295_v63  ;;  %v997_v47 = vld [vmem:[%s13342_s1 + $0x1e10] sm:$0xff]  ;;  %v9255_v52 = vcombine.high %v869_v45, %v873_v21  ;;  %v98_v63 = vld [vmem:[%s13342_s1 + $0x1f8] sm:$0xff]  ;;  %v9254_v0 = vcombine.low %v869_v45, %v873_v21 }
 0x2ee   :  { %7239 = vmatpush2.bf16.msra.mxu1 %v9430_v62  ;;  %v1001_v48 = vld [vmem:[%s13342_s1 + $0x1e30] sm:$0xff]  ;;  %v94_v62 = vld [vmem:[%s13342_s1 + $0x1d8] sm:$0xff] }
 0x2ef   :  { %7240 = vmatprep.subr.bf16.mxu1 %v9423_v7  ;;  %v9383_v57 = vcombine.high %v997_v47, %v1001_v48  ;;  %v222_v7 = vld [vmem:[%s13342_s1 + $0x5d8] sm:$0xff]  ;;  %v9382_v2 = vcombine.low %v997_v47, %v1001_v48 }
 0x2f0   :  { %7200 = vmatpush2.bf16.msra.mxu0 %v9294_v56  ;;  %v8481_v56 = vcombine.high %v94_v62, %v98_v63  ;;  %v70_v21 = vld [vmem:[%s13342_s1 + $0x118] sm:$0xff] }
 0x2f1   :  { %7201 = vmatprep.subr.bf16.mxu0 %v9287_v6  ;;  %v1083_v6 = vsub.s32 5, %v10646_v32  ;;  %v74_v47 = vld [vmem:[%s13342_s1 + $0x138] sm:$0xff] }
 0x2f2   :  { %7241 = vmatpush2.bf16.msra.mxu1 %v9422_v5  ;;  %v8609_v5 = vcombine.high %v222_v7, %v226_v43 }
 0x2f3   :  { %7242 = vmatprep.subr.bf16.mxu1 %v9415_v39  ;;  %v86_v39 = vld [vmem:[%s13342_s1 + $0x198] sm:$0xff]  ;;  %v1084_v24 = vrot.slane %v9724_v12, %v1083_v6 }
 0x2f4   :  { %7202 = vmatpush2.bf16.msra.mxu0 %v9286_v13  ;;  %v1080_v13 = vrot.slane %v9724_v12, %v1079_v1  ;;  %v8472_v35 = vcombine.low %v86_v39, %v90_v10  ;;  %v62_v1 = vld [vmem:[%s13342_s1 + $0xd8] sm:$0xff] }
 0x2f5   :  { %7203 = vmatprep.subr.bf16.mxu0 %v9279_v17  ;;  %v8608_v17 = vcombine.low %v222_v7, %v226_v43  ;;  %v8457_v7 = vcombine.high %v70_v21, %v74_v47  ;;  %v182_v12 = vld [vmem:[%s13342_s1 + $0x498] sm:$0xff] }
 0x2f6   :  { %7243 = vmatpush2.bf16.msra.mxu1 %v9414_v3  ;;  %v8480_v3 = vcombine.low %v94_v62, %v98_v63  ;;  %v8464_v62 = vcombine.low %v78_v9, %v82_v54 }
 0x2f7   :  { %7244 = vmatprep.subr.bf16.mxu1 %v9407_v22  ;;  %v8473_v22 = vcombine.high %v86_v39, %v90_v10 }
 0x2f8   :  { %7204 = vmatpush2.bf16.msra.mxu0 %v9278_v27 }
 0x2f9   :  { %7205 = vmatprep.subr.bf16.mxu0 %v9271_v41  ;;  %v210_v41 = vld [vmem:[%s13342_s1 + $0x578] sm:$0xff] }
 0x2fa   :  { %7245 = vmatpush2.bf16.msra.mxu1 %v9406_v30  ;;  %v206_v30 = vld [vmem:[%s13342_s1 + $0x558] sm:$0xff] }
 0x2fb   :  { %7246 = vmatprep.subr.bf16.mxu1 %v9399_v28  ;;  %v8593_v45 = vcombine.high %v206_v30, %v210_v41 }
 0x2fc   :  { %7206 = vmatpush2.bf16.msra.mxu0 %v9270_v38  ;;  %v8465_v38 = vcombine.high %v78_v9, %v82_v54  ;;  %v50_v9 = vld [vmem:[%s13342_s1 + $0x78] sm:$0xff] }
 0x2fd   :  { %7207 = vmatprep.subr.bf16.mxu0 %v9263_v37  ;;  %v174_v54 = vld [vmem:[%s13342_s1 + $0x458] sm:$0xff] }
 0x2fe   :  { %7247 = vmatpush2.bf16.msra.mxu1 %v9398_v19 }
 0x2ff   :  { %7248 = vmatprep.subr.bf16.mxu1 %v9391_v44 }
 0x300   :  { %7208 = vmatpush2.bf16.msra.mxu0 %v9262_v50  ;;  %v198_v50 = vld [vmem:[%s13342_s1 + $0x518] sm:$0xff] }
 0x301   :  { %7209 = vmatprep.subr.bf16.mxu0 %v9255_v52 }
 0x302   :  { %7249 = vmatpush2.bf16.msra.mxu1 %v9390_v51  ;;  %v202_v51 = vld [vmem:[%s13342_s1 + $0x538] sm:$0xff] }
 0x303   :  { %7250 = vmatprep.subr.bf16.mxu1 %v9383_v57  ;;  %v8584_v6 = vcombine.low %v198_v50, %v202_v51 }
 0x304   :  { %7210 = vmatpush2.bf16.msra.mxu0 %v9254_v0  ;;  %v8585_v0 = vcombine.high %v198_v50, %v202_v51  ;;  %v286_v50 = vld [vmem:[%s13342_s1 + $0x7d8] sm:$0xff] }
 0x305   :  { %7261 = vmatprep.subr.bf16.mxu0 %v8481_v56  ;;  %v194_v56 = vld [vmem:[%s13342_s1 + $0x4f8] sm:$0xff] }
 0x306   :  { %7251 = vmatpush2.bf16.msra.mxu1 %v9382_v2  ;;  %v190_v2 = vld [vmem:[%s13342_s1 + $0x4d8] sm:$0xff] }
 0x307   :  { %7302 = vmatprep.subr.bf16.mxu1 %v8609_v5  ;;  %v6967_v27 = vpop.f32.mrf.mxu0  ;;  %7212 = vmatmul.mubr.bf16.vlgmr.msra.gmra.mxu0 %v10673_v55  ;;  %v8456_v5 = vcombine.low %v70_v21, %v74_v47  ;;  %v8577_v10 = vcombine.high %v190_v2, %v194_v56  ;;  %v158_v47 = vld [vmem:[%s13342_s1 + $0x3d8] sm:$0xff] }
 0x308   :  { %v6968_v28 = vadd.f32 %v6967_v27, %v1080_v13  ;;  %7262 = vmatpush1.bf16.msra.mxu0 %v8480_v3  ;;  %7293 = vmatprep.mubr.bf16.mxu0 %v9870_v58  ;;  %v8592_v58 = vcombine.low %v206_v30, %v210_v41  ;;  %v186_v13 = vld [vmem:[%s13342_s1 + $0x4b8] sm:$0xff]  ;;  %v8440_v30 = vcombine.low %v54_v60, %v58_v11 }
 0x309   :  { %v7008_v34 = vpop.f32.mrf.mxu1  ;;  %7253 = vmatmul.mubr.bf16.vlgmr.msra.gmra.mxu1 %v10683_v61  ;;  %v6969_v15 = vpop.f32.mrf.mxu0  ;;  %7263 = vmatprep.subr.bf16.mxu0 %v8473_v22  ;;  %v8441_v22 = vcombine.high %v54_v60, %v58_v11  ;;  %v178_v27 = vld [vmem:[%s13342_s1 + $0x478] sm:$0xff]  ;;  %v8568_v41 = vcombine.low %v182_v12, %v186_v13 }
 0x30a   :  { %7303 = vmatpush1.bf16.msra.mxu1 %v8608_v17  ;;  %v12321_v19 = vadd.f32 %v7008_v34, %v6968_v28  ;;  %v6970_v37 = vadd.f32 %v6969_v15, %v1084_v24  ;;  %7334 = vmatprep.mubr.bf16.mxu1 %v9874_v59  ;;  %v66_v59 = vld [vmem:[%s13342_s1 + $0xf8] sm:$0xff]  ;;  %v8576_v17 = vcombine.low %v190_v2, %v194_v56 }
 0x30b   :  { %v7010_v44 = vpop.f32.mrf.mxu1  ;;  %7304 = vmatprep.subr.bf16.mxu1 %v8601_v25  ;;  %v6971_v48 = vpop.f32.mrf.mxu0  ;;  %v8449_v39 = vcombine.high %v62_v1, %v66_v59  ;;  %v8448_v3 = vcombine.low %v62_v1, %v66_v59  ;;  %v8569_v24 = vcombine.high %v182_v12, %v186_v13  ;;  %v46_v25 = vld [vmem:[%s13342_s1 + $0x58] sm:$0xff]  ;;  %v8561_v34 = vcombine.high %v174_v54, %v178_v27 }
 0x30c   :  { %v12337_v52 = vadd.f32 %v7010_v44, %v6970_v37  ;;  %7264 = vmatpush1.bf16.msra.mxu0 %v8472_v35  ;;  %v8433_v28 = vcombine.high %v46_v25, %v50_v9  ;;  %v38_v35 = vld [vmem:[%s13342_s1 + $0x18] sm:$0xff]  ;;  %v8432_v37 = vcombine.low %v46_v25, %v50_v9  ;;  %v8560_v44 = vcombine.low %v174_v54, %v178_v27 }
 0x30d   :  { %v7012_v57 = vpop.f32.mrf.mxu1  ;;  %v6972_v63 = vpop.f32.mrf.mxu0  ;;  %7265 = vmatprep.subr.bf16.mxu0 %v8465_v38  ;;  %v42_v15 = vld [vmem:[%s13342_s1 + $0x38] sm:$0xff] }
 0x30e   :  { %7305 = vmatpush1.bf16.msra.mxu1 %v8600_v33  ;;  %v166_v33 = vld [vmem:[%s13342_s1 + $0x418] sm:$0xff]  ;;  %v8424_v57 = vcombine.low %v38_v35, %v42_v15 }
 0x30f   :  { %v7013_v43 = vpop.f32.mrf.mxu1  ;;  %7306 = vmatprep.subr.bf16.mxu1 %v8593_v45  ;;  %v170_v38 = vld [vmem:[%s13342_s1 + $0x438] sm:$0xff]  ;;  %v8425_v45 = vcombine.high %v38_v35, %v42_v15 }
 0x310   :  { %7266 = vmatpush1.bf16.msra.mxu0 %v8464_v62  ;;  %v8553_v21 = vcombine.high %v166_v33, %v170_v38  ;;  %v162_v48 = vld [vmem:[%s13342_s1 + $0x3f8] sm:$0xff]  ;;  %v8552_v62 = vcombine.low %v166_v33, %v170_v38 }
 0x311   :  { %7267 = vmatprep.subr.bf16.mxu0 %v8457_v7  ;;  %v290_v51 = vld [vmem:[%s13342_s1 + $0x7f8] sm:$0xff]  ;;  %v8545_v63 = vcombine.high %v158_v47, %v162_v48  ;;  %v8544_v59 = vcombine.low %v158_v47, %v162_v48 }
 0x312   :  { %7307 = vmatpush1.bf16.msra.mxu1 %v8592_v58  ;;  %v8673_v58 = vcombine.high %v286_v50, %v290_v51  ;;  %v150_v7 = vld [vmem:[%s13342_s1 + $0x398] sm:$0xff]  ;;  %v8672_v2 = vcombine.low %v286_v50, %v290_v51 }
 0x313   :  { %7308 = vmatprep.subr.bf16.mxu1 %v8585_v0  ;;  %v154_v43 = vld [vmem:[%s13342_s1 + $0x3b8] sm:$0xff] }
 0x314   :  { %7268 = vmatpush1.bf16.msra.mxu0 %v8456_v5  ;;  %v278_v0 = vld [vmem:[%s13342_s1 + $0x798] sm:$0xff]  ;;  %v8537_v56 = vcombine.high %v150_v7, %v154_v43  ;;  %v8536_v11 = vcombine.low %v150_v7, %v154_v43 }
 0x315   :  { %7269 = vmatprep.subr.bf16.mxu0 %v8449_v39  ;;  %v282_v1 = vld [vmem:[%s13342_s1 + $0x7b8] sm:$0xff] }
 0x316   :  { %7309 = vmatpush1.bf16.msra.mxu1 %v8584_v6  ;;  %v8665_v5 = vcombine.high %v278_v0, %v282_v1  ;;  %v142_v6 = vld [vmem:[%s13342_s1 + $0x358] sm:$0xff]  ;;  %v8664_v12 = vcombine.low %v278_v0, %v282_v1 }
 0x317   :  { %7310 = vmatprep.subr.bf16.mxu1 %v8577_v10  ;;  %v146_v39 = vld [vmem:[%s13342_s1 + $0x378] sm:$0xff] }
 0x318   :  { %7270 = vmatpush1.bf16.msra.mxu0 %v8448_v3  ;;  %v270_v10 = vld [vmem:[%s13342_s1 + $0x758] sm:$0xff]  ;;  %v8529_v13 = vcombine.high %v142_v6, %v146_v39  ;;  %v8528_v9 = vcombine.low %v142_v6, %v146_v39 }
 0x319   :  { %7271 = vmatprep.subr.bf16.mxu0 %v8441_v22  ;;  %v274_v60 = vld [vmem:[%s13342_s1 + $0x778] sm:$0xff] }
 0x31a   :  { %7311 = vmatpush1.bf16.msra.mxu1 %v8576_v17  ;;  %v8657_v3 = vcombine.high %v270_v10, %v274_v60  ;;  %v134_v17 = vld [vmem:[%s13342_s1 + $0x318] sm:$0xff]  ;;  %v8656_v54 = vcombine.low %v270_v10, %v274_v60 }
 0x31b   :  { %7312 = vmatprep.subr.bf16.mxu1 %v8569_v24  ;;  %v138_v22 = vld [vmem:[%s13342_s1 + $0x338] sm:$0xff] }
 0x31c   :  { %7272 = vmatpush1.bf16.msra.mxu0 %v8440_v30  ;;  %v262_v24 = vld [vmem:[%s13342_s1 + $0x718] sm:$0xff]  ;;  %v8521_v27 = vcombine.high %v134_v17, %v138_v22  ;;  %v8520_v15 = vcombine.low %v134_v17, %v138_v22 }
 0x31d   :  { %7273 = vmatprep.subr.bf16.mxu0 %v8433_v28  ;;  %v266_v25 = vld [vmem:[%s13342_s1 + $0x738] sm:$0xff] }
 0x31e   :  { %7313 = vmatpush1.bf16.msra.mxu1 %v8568_v41  ;;  %v8649_v30 = vcombine.high %v262_v24, %v266_v25  ;;  %v126_v41 = vld [vmem:[%s13342_s1 + $0x2d8] sm:$0xff]  ;;  %v8648_v33 = vcombine.low %v262_v24, %v266_v25 }
 0x31f   :  { %7314 = vmatprep.subr.bf16.mxu1 %v8561_v34  ;;  %v130_v28 = vld [vmem:[%s13342_s1 + $0x2f8] sm:$0xff] }
 0x320   :  { %7274 = vmatpush1.bf16.msra.mxu0 %v8432_v37  ;;  %v254_v34 = vld [vmem:[%s13342_s1 + $0x6d8] sm:$0xff]  ;;  %v8513_v38 = vcombine.high %v126_v41, %v130_v28  ;;  %v8512_v48 = vcombine.low %v126_v41, %v130_v28 }
 0x321   :  { %7275 = vmatprep.subr.bf16.mxu0 %v8425_v45  ;;  %v258_v35 = vld [vmem:[%s13342_s1 + $0x6f8] sm:$0xff] }
 0x322   :  { %7315 = vmatpush1.bf16.msra.mxu1 %v8560_v44  ;;  %v8641_v37 = vcombine.high %v254_v34, %v258_v35  ;;  %v118_v44 = vld [vmem:[%s13342_s1 + $0x298] sm:$0xff]  ;;  %v8640_v50 = vcombine.low %v254_v34, %v258_v35 }
 0x323   :  { %7316 = vmatprep.subr.bf16.mxu1 %v8553_v21  ;;  %v122_v45 = vld [vmem:[%s13342_s1 + $0x2b8] sm:$0xff] }
 0x324   :  { %7276 = vmatpush1.bf16.msra.mxu0 %v8424_v57  ;;  %v246_v21 = vld [vmem:[%s13342_s1 + $0x698] sm:$0xff]  ;;  %v8505_v51 = vcombine.high %v118_v44, %v122_v45  ;;  %v8504_v43 = vcombine.low %v118_v44, %v122_v45 }
 0x325   :  { %7277 = vmatprep.subr.bf16.mxu0 %v8545_v63  ;;  %v250_v47 = vld [vmem:[%s13342_s1 + $0x6b8] sm:$0xff] }
 0x326   :  { %7317 = vmatpush1.bf16.msra.mxu1 %v8552_v62  ;;  %v8633_v57 = vcombine.high %v246_v21, %v250_v47  ;;  %v110_v62 = vld [vmem:[%s13342_s1 + $0x258] sm:$0xff]  ;;  %v8632_v0 = vcombine.low %v246_v21, %v250_v47 }
 0x327   :  { %7318 = vmatprep.subr.bf16.mxu1 %v8673_v58  ;;  %v114_v63 = vld [vmem:[%s13342_s1 + $0x278] sm:$0xff] }
 0x328   :  { %7278 = vmatpush2.bf16.msra.mxu0 %v8544_v59  ;;  %v238_v58 = vld [vmem:[%s13342_s1 + $0x658] sm:$0xff]  ;;  %v8497_v1 = vcombine.high %v110_v62, %v114_v63  ;;  %v8496_v39 = vcombine.low %v110_v62, %v114_v63 }
 0x329   :  { %7279 = vmatprep.subr.bf16.mxu0 %v8537_v56  ;;  %v242_v7 = vld [vmem:[%s13342_s1 + $0x678] sm:$0xff] }
 0x32a   :  { %7319 = vmatpush2.bf16.msra.mxu1 %v8672_v2  ;;  %v8625_v59 = vcombine.high %v238_v58, %v242_v7  ;;  %v102_v2 = vld [vmem:[%s13342_s1 + $0x218] sm:$0xff]  ;;  %v8624_v10 = vcombine.low %v238_v58, %v242_v7 }
 0x32b   :  { %7320 = vmatprep.subr.bf16.mxu1 %v8665_v5  ;;  %v106_v56 = vld [vmem:[%s13342_s1 + $0x238] sm:$0xff] }
 0x32c   :  { %7280 = vmatpush2.bf16.msra.mxu0 %v8536_v11  ;;  %v230_v5 = vld [vmem:[%s13342_s1 + $0x618] sm:$0xff]  ;;  %v8489_v60 = vcombine.high %v102_v2, %v106_v56  ;;  %v8488_v22 = vcombine.low %v102_v2, %v106_v56 }
 0x32d   :  { %7281 = vmatprep.subr.bf16.mxu0 %v8529_v13  ;;  %v234_v6 = vld [vmem:[%s13342_s1 + $0x638] sm:$0xff] }
 0x32e   :  { %7321 = vmatpush2.bf16.msra.mxu1 %v8664_v12  ;;  %v8617_v11 = vcombine.high %v230_v5, %v234_v6  ;;  %v350_v12 = vld [vmem:[%s13342_s1 + $0x9d8] sm:$0xff]  ;;  %v8616_v24 = vcombine.low %v230_v5, %v234_v6 }
 0x32f   :  { %7322 = vmatprep.subr.bf16.mxu1 %v8657_v3  ;;  %v354_v13 = vld [vmem:[%s13342_s1 + $0x9f8] sm:$0xff] }
 0x330   :  { %7282 = vmatpush2.bf16.msra.mxu0 %v8528_v9  ;;  %v478_v3 = vld [vmem:[%s13342_s1 + $0xdd8] sm:$0xff]  ;;  %v8737_v25 = vcombine.high %v350_v12, %v354_v13  ;;  %v8736_v28 = vcombine.low %v350_v12, %v354_v13 }
 0x331   :  { %7283 = vmatprep.subr.bf16.mxu0 %v8521_v27  ;;  %v482_v17 = vld [vmem:[%s13342_s1 + $0xdf8] sm:$0xff] }
 0x332   :  { %7323 = vmatpush2.bf16.msra.mxu1 %v8656_v54  ;;  %v8865_v9 = vcombine.high %v478_v3, %v482_v17  ;;  %v342_v54 = vld [vmem:[%s13342_s1 + $0x998] sm:$0xff]  ;;  %v8864_v34 = vcombine.low %v478_v3, %v482_v17 }
 0x333   :  { %7324 = vmatprep.subr.bf16.mxu1 %v8649_v30  ;;  %v346_v27 = vld [vmem:[%s13342_s1 + $0x9b8] sm:$0xff] }
 0x334   :  { %7284 = vmatpush2.bf16.msra.mxu0 %v8520_v15  ;;  %v470_v30 = vld [vmem:[%s13342_s1 + $0xd98] sm:$0xff]  ;;  %v8729_v35 = vcombine.high %v342_v54, %v346_v27 }
 0x335   :  { %7285 = vmatprep.subr.bf16.mxu0 %v8513_v38  ;;  %v474_v41 = vld [vmem:[%s13342_s1 + $0xdb8] sm:$0xff] }
 0x336   :  { %7325 = vmatpush2.bf16.msra.mxu1 %v8648_v33  ;;  %v8857_v15 = vcombine.high %v470_v30, %v474_v41  ;;  %v334_v33 = vld [vmem:[%s13342_s1 + $0x958] sm:$0xff] }
 0x337   :  { %7326 = vmatprep.subr.bf16.mxu1 %v8641_v37  ;;  %v338_v38 = vld [vmem:[%s13342_s1 + $0x978] sm:$0xff] }
 0x338   :  { %7286 = vmatpush2.bf16.msra.mxu0 %v8512_v48  ;;  %v462_v44 = vld [vmem:[%s13342_s1 + $0xd58] sm:$0xff]  ;;  %v8728_v48 = vcombine.low %v342_v54, %v346_v27 }
 0x339   :  { %7287 = vmatprep.subr.bf16.mxu0 %v8505_v51  ;;  %v466_v45 = vld [vmem:[%s13342_s1 + $0xd78] sm:$0xff]  ;;  %v8856_v51 = vcombine.low %v470_v30, %v474_v41 }
 0x33a   :  { %7327 = vmatpush2.bf16.msra.mxu1 %v8640_v50  ;;  %v8849_v58 = vcombine.high %v462_v44, %v466_v45  ;;  %v310_v17 = vld [vmem:[%s13342_s1 + $0x898] sm:$0xff] }
 0x33b   :  { %7328 = vmatprep.subr.bf16.mxu1 %v8633_v57  ;;  %v302_v41 = vld [vmem:[%s13342_s1 + $0x858] sm:$0xff] }
 0x33c   :  { %7288 = vmatpush2.bf16.msra.mxu0 %v8504_v43  ;;  %v454_v43 = vld [vmem:[%s13342_s1 + $0xd18] sm:$0xff] }
 0x33d   :  { %7289 = vmatprep.subr.bf16.mxu0 %v8497_v1 }
 0x33e   :  { %7329 = vmatpush2.bf16.msra.mxu1 %v8632_v0 }
 0x33f   :  { %7330 = vmatprep.subr.bf16.mxu1 %v8625_v59  ;;  %v8720_v59 = vcombine.low %v334_v33, %v338_v38 }
 0x340   :  { %7290 = vmatpush2.bf16.msra.mxu0 %v8496_v39  ;;  %v318_v39 = vld [vmem:[%s13342_s1 + $0x8d8] sm:$0xff] }
 0x341   :  { %7291 = vmatprep.subr.bf16.mxu0 %v8489_v60  ;;  %v450_v60 = vld [vmem:[%s13342_s1 + $0xcf8] sm:$0xff] }
 0x342   :  { %7331 = vmatpush2.bf16.msra.mxu1 %v8624_v10  ;;  %v446_v10 = vld [vmem:[%s13342_s1 + $0xcd8] sm:$0xff] }
 0x343   :  { %7332 = vmatprep.subr.bf16.mxu1 %v8617_v11  ;;  %v8833_v3 = vcombine.high %v446_v10, %v450_v60  ;;  %v8832_v54 = vcombine.low %v446_v10, %v450_v60  ;;  %v402_v10 = vld [vmem:[%s13342_s1 + $0xb78] sm:$0xff] }
 0x344   :  { %7292 = vmatpush2.bf16.msra.mxu0 %v8488_v22  ;;  %v314_v22 = vld [vmem:[%s13342_s1 + $0x8b8] sm:$0xff] }
 0x345   :  { %7343 = vmatprep.subr.bf16.mxu0 %v8737_v25  ;;  %v442_v25 = vld [vmem:[%s13342_s1 + $0xcb8] sm:$0xff]  ;;  %v8697_v27 = vcombine.high %v310_v17, %v314_v22 }
 0x346   :  { %7333 = vmatpush2.bf16.msra.mxu1 %v8616_v24  ;;  %v438_v24 = vld [vmem:[%s13342_s1 + $0xc98] sm:$0xff] }
 0x347   :  { %7384 = vmatprep.subr.bf16.mxu1 %v8865_v9  ;;  %v7049_v37 = vpop.f32.mrf.mxu0  ;;  %7294 = vmatmul.mubr.bf16.vlgmr.msra.gmra.mxu0 %v10000_v16  ;;  %v8721_v16 = vcombine.high %v334_v33, %v338_v38  ;;  %v8825_v30 = vcombine.high %v438_v24, %v442_v25  ;;  %v8824_v33 = vcombine.low %v438_v24, %v442_v25  ;;  %v526_v60 = vld [vmem:[%s13342_s1 + $0xf58] sm:$0xff] }
 0x348   :  { %v7050_v21 = vadd.f32 %v7049_v37, %v12321_v19  ;;  %7344 = vmatpush1.bf16.msra.mxu0 %v8736_v28  ;;  %v326_v19 = vld [vmem:[%s13342_s1 + $0x918] sm:$0xff]  ;;  %7375 = vmatprep.mubr.bf16.mxu0 %v10030_v26  ;;  %v8848_v26 = vcombine.low %v462_v44, %v466_v45 }
 0x349   :  { %v7090_v47 = vpop.f32.mrf.mxu1  ;;  %7335 = vmatmul.mubr.bf16.vlgmr.msra.gmra.mxu1 %v10015_v20  ;;  %v7051_v50 = vpop.f32.mrf.mxu0  ;;  %7345 = vmatprep.subr.bf16.mxu0 %v8729_v35  ;;  %v330_v20 = vld [vmem:[%s13342_s1 + $0x938] sm:$0xff] }
 0x34a   :  { %7385 = vmatpush1.bf16.msra.mxu1 %v8864_v34  ;;  %v12522_v57 = vadd.f32 %v7090_v47, %v7050_v21  ;;  %v7052_v62 = vadd.f32 %v7051_v50, %v12337_v52  ;;  %v458_v52 = vld [vmem:[%s13342_s1 + $0xd38] sm:$0xff]  ;;  %7416 = vmatprep.mubr.bf16.mxu1 %v10041_v29  ;;  %v8713_v56 = vcombine.high %v326_v19, %v330_v20 }
 0x34b   :  { %v7092_v63 = vpop.f32.mrf.mxu1  ;;  %7386 = vmatprep.subr.bf16.mxu1 %v8857_v15  ;;  %v7053_v7 = vpop.f32.mrf.mxu0  ;;  %v8841_v6 = vcombine.high %v454_v43, %v458_v52  ;;  %v322_v29 = vld [vmem:[%s13342_s1 + $0x8f8] sm:$0xff]  ;;  %v8712_v11 = vcombine.low %v326_v19, %v330_v20  ;;  %v8840_v12 = vcombine.low %v454_v43, %v458_v52  ;;  %v8696_v15 = vcombine.low %v310_v17, %v314_v22 }
 0x34c   :  { %v12539_v0 = vadd.f32 %v7092_v63, %v7052_v62  ;;  %7346 = vmatpush1.bf16.msra.mxu0 %v8728_v48  ;;  %v8705_v13 = vcombine.high %v318_v39, %v322_v29  ;;  %v8704_v9 = vcombine.low %v318_v39, %v322_v29  ;;  %v306_v28 = vld [vmem:[%s13342_s1 + $0x878] sm:$0xff] }
 0x34d   :  { %v7094_v1 = vpop.f32.mrf.mxu1  ;;  %v7054_v2 = vpop.f32.mrf.mxu0  ;;  %7347 = vmatprep.subr.bf16.mxu0 %v8721_v16  ;;  %v430_v34 = vld [vmem:[%s13342_s1 + $0xc58] sm:$0xff]  ;;  %v8689_v38 = vcombine.high %v302_v41, %v306_v28  ;;  %v8688_v48 = vcombine.low %v302_v41, %v306_v28 }
 0x34e   :  { %7387 = vmatpush1.bf16.msra.mxu1 %v8856_v51  ;;  %v434_v35 = vld [vmem:[%s13342_s1 + $0xc78] sm:$0xff] }
 0x34f   :  { %v7095_v5 = vpop.f32.mrf.mxu1  ;;  %7388 = vmatprep.subr.bf16.mxu1 %v8849_v58  ;;  %v8817_v37 = vcombine.high %v430_v34, %v434_v35  ;;  %v294_v44 = vld [vmem:[%s13342_s1 + $0x818] sm:$0xff]  ;;  %v8816_v50 = vcombine.low %v430_v34, %v434_v35 }
 0x350   :  { %7348 = vmatpush1.bf16.msra.mxu0 %v8720_v59  ;;  %v298_v45 = vld [vmem:[%s13342_s1 + $0x838] sm:$0xff] }
 0x351   :  { %7349 = vmatprep.subr.bf16.mxu0 %v8713_v56  ;;  %v422_v21 = vld [vmem:[%s13342_s1 + $0xc18] sm:$0xff]  ;;  %v8681_v51 = vcombine.high %v294_v44, %v298_v45  ;;  %v8680_v20 = vcombine.low %v294_v44, %v298_v45 }
 0x352   :  { %7389 = vmatpush1.bf16.msra.mxu1 %v8848_v26  ;;  %v426_v47 = vld [vmem:[%s13342_s1 + $0xc38] sm:$0xff] }
 0x353   :  { %7390 = vmatprep.subr.bf16.mxu1 %v8841_v6  ;;  %v8809_v16 = vcombine.high %v422_v21, %v426_v47  ;;  %v414_v62 = vld [vmem:[%s13342_s1 + $0xbd8] sm:$0xff]  ;;  %v8808_v7 = vcombine.low %v422_v21, %v426_v47 }
 0x354   :  { %7350 = vmatpush1.bf16.msra.mxu0 %v8712_v11  ;;  %v418_v63 = vld [vmem:[%s13342_s1 + $0xbf8] sm:$0xff] }
 0x355   :  { %7351 = vmatprep.subr.bf16.mxu0 %v8705_v13  ;;  %v542_v58 = vld [vmem:[%s13342_s1 + $0xfd8] sm:$0xff]  ;;  %v8801_v43 = vcombine.high %v414_v62, %v418_v63  ;;  %v8800_v56 = vcombine.low %v414_v62, %v418_v63 }
 0x356   :  { %7391 = vmatpush1.bf16.msra.mxu1 %v8840_v12  ;;  %v546_v19 = vld [vmem:[%s13342_s1 + $0xff8] sm:$0xff] }
 0x357   :  { %7392 = vmatprep.subr.bf16.mxu1 %v8833_v3  ;;  %v8929_v52 = vcombine.high %v542_v58, %v546_v19  ;;  %v406_v1 = vld [vmem:[%s13342_s1 + $0xb98] sm:$0xff]  ;;  %v8928_v5 = vcombine.low %v542_v58, %v546_v19 }
 0x358   :  { %7352 = vmatpush1.bf16.msra.mxu0 %v8704_v9  ;;  %v410_v59 = vld [vmem:[%s13342_s1 + $0xbb8] sm:$0xff] }
 0x359   :  { %7353 = vmatprep.subr.bf16.mxu0 %v8697_v27  ;;  %v534_v2 = vld [vmem:[%s13342_s1 + $0xf98] sm:$0xff]  ;;  %v8793_v6 = vcombine.high %v406_v1, %v410_v59  ;;  %v8792_v12 = vcombine.low %v406_v1, %v410_v59 }
 0x35a   :  { %7393 = vmatpush1.bf16.msra.mxu1 %v8832_v54  ;;  %v538_v26 = vld [vmem:[%s13342_s1 + $0xfb8] sm:$0xff] }
 0x35b   :  { %7394 = vmatprep.subr.bf16.mxu1 %v8825_v30  ;;  %v8921_v39 = vcombine.high %v534_v2, %v538_v26  ;;  %v398_v29 = vld [vmem:[%s13342_s1 + $0xb58] sm:$0xff]  ;;  %v8920_v13 = vcombine.low %v534_v2, %v538_v26 }
 0x35c   :  { %7354 = vmatpush1.bf16.msra.mxu0 %v8696_v15  ;;  %v530_v11 = vld [vmem:[%s13342_s1 + $0xf78] sm:$0xff]  ;;  %v8785_v3 = vcombine.high %v398_v29, %v402_v10  ;;  %v8784_v54 = vcombine.low %v398_v29, %v402_v10 }
 0x35d   :  { %7355 = vmatprep.subr.bf16.mxu0 %v8689_v38  ;;  %v8913_v17 = vcombine.high %v526_v60, %v530_v11  ;;  %v390_v22 = vld [vmem:[%s13342_s1 + $0xb18] sm:$0xff]  ;;  %v8912_v27 = vcombine.low %v526_v60, %v530_v11 }
 0x35e   :  { %7395 = vmatpush1.bf16.msra.mxu1 %v8824_v33  ;;  %v394_v24 = vld [vmem:[%s13342_s1 + $0xb38] sm:$0xff] }
 0x35f   :  { %7396 = vmatprep.subr.bf16.mxu1 %v8817_v37  ;;  %v518_v25 = vld [vmem:[%s13342_s1 + $0xf18] sm:$0xff]  ;;  %v8777_v30 = vcombine.high %v390_v22, %v394_v24  ;;  %v8776_v33 = vcombine.low %v390_v22, %v394_v24 }
 0x360   :  { %7356 = vmatpush1.bf16.msra.mxu0 %v8688_v48  ;;  %v522_v9 = vld [vmem:[%s13342_s1 + $0xf38] sm:$0xff] }
 0x361   :  { %7357 = vmatprep.subr.bf16.mxu0 %v8681_v51  ;;  %v8905_v41 = vcombine.high %v518_v25, %v522_v9  ;;  %v382_v28 = vld [vmem:[%s13342_s1 + $0xad8] sm:$0xff]  ;;  %v8904_v38 = vcombine.low %v518_v25, %v522_v9 }
 0x362   :  { %7397 = vmatpush1.bf16.msra.mxu1 %v8816_v50  ;;  %v386_v34 = vld [vmem:[%s13342_s1 + $0xaf8] sm:$0xff] }
 0x363   :  { %7398 = vmatprep.subr.bf16.mxu1 %v8809_v16  ;;  %v510_v35 = vld [vmem:[%s13342_s1 + $0xed8] sm:$0xff]  ;;  %v8769_v37 = vcombine.high %v382_v28, %v386_v34  ;;  %v8768_v50 = vcombine.low %v382_v28, %v386_v34 }
 0x364   :  { %7358 = vmatpush1.bf16.msra.mxu0 %v8680_v20  ;;  %v514_v15 = vld [vmem:[%s13342_s1 + $0xef8] sm:$0xff] }
 0x365   :  { %7359 = vmatprep.subr.bf16.mxu0 %v8801_v43  ;;  %v8897_v44 = vcombine.high %v510_v35, %v514_v15  ;;  %v374_v45 = vld [vmem:[%s13342_s1 + $0xa98] sm:$0xff]  ;;  %v8896_v51 = vcombine.low %v510_v35, %v514_v15 }
 0x366   :  { %7399 = vmatpush1.bf16.msra.mxu1 %v8808_v7  ;;  %v378_v21 = vld [vmem:[%s13342_s1 + $0xab8] sm:$0xff] }
 0x367   :  { %7400 = vmatprep.subr.bf16.mxu1 %v8929_v52  ;;  %v502_v47 = vld [vmem:[%s13342_s1 + $0xe98] sm:$0xff]  ;;  %v8761_v16 = vcombine.high %v374_v45, %v378_v21  ;;  %v8760_v7 = vcombine.low %v374_v45, %v378_v21 }
 0x368   :  { %7360 = vmatpush2.bf16.msra.mxu0 %v8800_v56  ;;  %v506_v48 = vld [vmem:[%s13342_s1 + $0xeb8] sm:$0xff] }
 0x369   :  { %7361 = vmatprep.subr.bf16.mxu0 %v8793_v6  ;;  %v8889_v62 = vcombine.high %v502_v47, %v506_v48  ;;  %v366_v63 = vld [vmem:[%s13342_s1 + $0xa58] sm:$0xff]  ;;  %v8888_v43 = vcombine.low %v502_v47, %v506_v48 }
 0x36a   :  { %7401 = vmatpush2.bf16.msra.mxu1 %v8928_v5  ;;  %v370_v58 = vld [vmem:[%s13342_s1 + $0xa78] sm:$0xff] }
 0x36b   :  { %7402 = vmatprep.subr.bf16.mxu1 %v8921_v39  ;;  %v494_v19 = vld [vmem:[%s13342_s1 + $0xe58] sm:$0xff]  ;;  %v8753_v52 = vcombine.high %v366_v63, %v370_v58  ;;  %v8752_v5 = vcombine.low %v366_v63, %v370_v58 }
 0x36c   :  { %7362 = vmatpush2.bf16.msra.mxu0 %v8792_v12  ;;  %v498_v20 = vld [vmem:[%s13342_s1 + $0xe78] sm:$0xff] }
 0x36d   :  { %7363 = vmatprep.subr.bf16.mxu0 %v8785_v3  ;;  %v8881_v1 = vcombine.high %v494_v19, %v498_v20  ;;  %v358_v59 = vld [vmem:[%s13342_s1 + $0xa18] sm:$0xff]  ;;  %v8880_v6 = vcombine.low %v494_v19, %v498_v20 }
 0x36e   :  { %7403 = vmatpush2.bf16.msra.mxu1 %v8920_v13  ;;  %v362_v2 = vld [vmem:[%s13342_s1 + $0xa38] sm:$0xff] }
 0x36f   :  { %7404 = vmatprep.subr.bf16.mxu1 %v8913_v17  ;;  %v486_v26 = vld [vmem:[%s13342_s1 + $0xe18] sm:$0xff]  ;;  %v8745_v39 = vcombine.high %v358_v59, %v362_v2  ;;  %v8744_v13 = vcombine.low %v358_v59, %v362_v2 }
 0x370   :  { %7364 = vmatpush2.bf16.msra.mxu0 %v8784_v54  ;;  %v490_v56 = vld [vmem:[%s13342_s1 + $0xe38] sm:$0xff] }
 0x371   :  { %7365 = vmatprep.subr.bf16.mxu0 %v8777_v30  ;;  %v8873_v29 = vcombine.high %v486_v26, %v490_v56  ;;  %v606_v10 = vld [vmem:[%s13342_s1 + $0x11d8] sm:$0xff]  ;;  %v8872_v3 = vcombine.low %v486_v26, %v490_v56 }
 0x372   :  { %7405 = vmatpush2.bf16.msra.mxu1 %v8912_v27  ;;  %v610_v60 = vld [vmem:[%s13342_s1 + $0x11f8] sm:$0xff] }
 0x373   :  { %7406 = vmatprep.subr.bf16.mxu1 %v8905_v41  ;;  %v734_v11 = vld [vmem:[%s13342_s1 + $0x15d8] sm:$0xff]  ;;  %v8993_v17 = vcombine.high %v606_v10, %v610_v60  ;;  %v8992_v27 = vcombine.low %v606_v10, %v610_v60 }
 0x374   :  { %7366 = vmatpush2.bf16.msra.mxu0 %v8776_v33  ;;  %v738_v12 = vld [vmem:[%s13342_s1 + $0x15f8] sm:$0xff] }
 0x375   :  { %7367 = vmatprep.subr.bf16.mxu0 %v8769_v37  ;;  %v9121_v22 = vcombine.high %v734_v11, %v738_v12  ;;  %v598_v24 = vld [vmem:[%s13342_s1 + $0x1198] sm:$0xff]  ;;  %v9120_v30 = vcombine.low %v734_v11, %v738_v12 }
 0x376   :  { %7407 = vmatpush2.bf16.msra.mxu1 %v8904_v38  ;;  %v602_v25 = vld [vmem:[%s13342_s1 + $0x11b8] sm:$0xff] }
 0x377   :  { %7408 = vmatprep.subr.bf16.mxu1 %v8897_v44  ;;  %v726_v9 = vld [vmem:[%s13342_s1 + $0x1598] sm:$0xff]  ;;  %v8985_v41 = vcombine.high %v598_v24, %v602_v25  ;;  %v8984_v45 = vcombine.low %v598_v24, %v602_v25 }
 0x378   :  { %7368 = vmatpush2.bf16.msra.mxu0 %v8768_v50  ;;  %v730_v54 = vld [vmem:[%s13342_s1 + $0x15b8] sm:$0xff] }
 0x379   :  { %7369 = vmatprep.subr.bf16.mxu0 %v8761_v16  ;;  %v590_v28 = vld [vmem:[%s13342_s1 + $0x1158] sm:$0xff]  ;;  %v9113_v35 = vcombine.high %v726_v9, %v730_v54  ;;  %v9112_v48 = vcombine.low %v726_v9, %v730_v54 }
 0x37a   :  { %7409 = vmatpush2.bf16.msra.mxu1 %v8896_v51  ;;  %v594_v34 = vld [vmem:[%s13342_s1 + $0x1178] sm:$0xff] }
 0x37b   :  { %7410 = vmatprep.subr.bf16.mxu1 %v8889_v62  ;;  %v718_v15 = vld [vmem:[%s13342_s1 + $0x1558] sm:$0xff] }
 0x37c   :  { %7370 = vmatpush2.bf16.msra.mxu0 %v8760_v7  ;;  %v722_v38 = vld [vmem:[%s13342_s1 + $0x1578] sm:$0xff] }
 0x37d   :  { %7371 = vmatprep.subr.bf16.mxu0 %v8753_v52  ;;  %v582_v21 = vld [vmem:[%s13342_s1 + $0x1118] sm:$0xff]  ;;  %v9105_v16 = vcombine.high %v718_v15, %v722_v38 }
 0x37e   :  { %7411 = vmatpush2.bf16.msra.mxu1 %v8888_v43  ;;  %v586_v50 = vld [vmem:[%s13342_s1 + $0x1138] sm:$0xff]  ;;  %v9104_v43 = vcombine.low %v718_v15, %v722_v38 }
 0x37f   :  { %7412 = vmatprep.subr.bf16.mxu1 %v8881_v1  ;;  %v710_v63 = vld [vmem:[%s13342_s1 + $0x1518] sm:$0xff]  ;;  %v8969_v52 = vcombine.high %v582_v21, %v586_v50  ;;  %v8968_v56 = vcombine.low %v582_v21, %v586_v50 }
 0x380   :  { %7372 = vmatpush2.bf16.msra.mxu0 %v8752_v5  ;;  %v714_v58 = vld [vmem:[%s13342_s1 + $0x1538] sm:$0xff] }
 0x381   :  { %7373 = vmatprep.subr.bf16.mxu0 %v8745_v39  ;;  %v578_v1 = vld [vmem:[%s13342_s1 + $0x10f8] sm:$0xff] }
 0x382   :  { %7413 = vmatpush2.bf16.msra.mxu1 %v8880_v6  ;;  %v702_v2 = vld [vmem:[%s13342_s1 + $0x14d8] sm:$0xff]  ;;  %v9096_v6 = vcombine.low %v710_v63, %v714_v58 }
 0x383   :  { %7414 = vmatprep.subr.bf16.mxu1 %v8873_v29  ;;  %v706_v26 = vld [vmem:[%s13342_s1 + $0x14f8] sm:$0xff] }
 0x384   :  { %7374 = vmatpush2.bf16.msra.mxu0 %v8744_v13  ;;  %v566_v5 = vld [vmem:[%s13342_s1 + $0x1098] sm:$0xff]  ;;  %v9089_v10 = vcombine.high %v702_v2, %v706_v26 }
 0x385   :  { %7425 = vmatprep.subr.bf16.mxu0 %v8993_v17  ;;  %v570_v29 = vld [vmem:[%s13342_s1 + $0x10b8] sm:$0xff] }
 0x386   :  { %7415 = vmatpush2.bf16.msra.mxu1 %v8872_v3  ;;  %v694_v60 = vld [vmem:[%s13342_s1 + $0x1498] sm:$0xff]  ;;  %v9088_v3 = vcombine.low %v702_v2, %v706_v26  ;;  %v8953_v17 = vcombine.high %v566_v5, %v570_v29  ;;  %v8952_v54 = vcombine.low %v566_v5, %v570_v29 }
 0x387   :  { %7466 = vmatprep.subr.bf16.mxu1 %v9121_v22  ;;  %v7131_v33 = vpop.f32.mrf.mxu0  ;;  %7376 = vmatmul.mubr.bf16.vlgmr.msra.gmra.mxu0 %v10222_v36  ;;  %v8977_v36 = vcombine.high %v590_v28, %v594_v34  ;;  %v698_v11 = vld [vmem:[%s13342_s1 + $0x14b8] sm:$0xff] }
 0x388   :  { %v7132_v37 = vadd.f32 %v7131_v33, %v12522_v57  ;;  %7426 = vmatpush1.bf16.msra.mxu0 %v8992_v27  ;;  %7457 = vmatprep.mubr.bf16.mxu0 %v10252_v46  ;;  %v574_v46 = vld [vmem:[%s13342_s1 + $0x10d8] sm:$0xff]  ;;  %v9081_v24 = vcombine.high %v694_v60, %v698_v11 }
 0x389   :  { %v7172_v44 = vpop.f32.mrf.mxu1  ;;  %7417 = vmatmul.mubr.bf16.vlgmr.msra.gmra.mxu1 %v10237_v40  ;;  %v7133_v47 = vpop.f32.mrf.mxu0  ;;  %7427 = vmatprep.subr.bf16.mxu0 %v8985_v41  ;;  %v8961_v39 = vcombine.high %v574_v46, %v578_v1  ;;  %v8960_v12 = vcombine.low %v574_v46, %v578_v1  ;;  %v558_v13 = vld [vmem:[%s13342_s1 + $0x1058] sm:$0xff] }
 0x38a   :  { %7467 = vmatpush1.bf16.msra.mxu1 %v9120_v30  ;;  %v12730_v51 = vadd.f32 %v7172_v44, %v7132_v37  ;;  %v7134_v57 = vadd.f32 %v7133_v47, %v12539_v0  ;;  %7498 = vmatprep.mubr.bf16.mxu1 %v10263_v49  ;;  %v8976_v0 = vcombine.low %v590_v28, %v594_v34  ;;  %v562_v22 = vld [vmem:[%s13342_s1 + $0x1078] sm:$0xff] }
 0x38b   :  { %v7174_v40 = vpop.f32.mrf.mxu1  ;;  %7468 = vmatprep.subr.bf16.mxu1 %v9113_v35  ;;  %v7135_v62 = vpop.f32.mrf.mxu0  ;;  %v9097_v49 = vcombine.high %v710_v63, %v714_v58  ;;  %v686_v25 = vld [vmem:[%s13342_s1 + $0x1458] sm:$0xff]  ;;  %v9080_v30 = vcombine.low %v694_v60, %v698_v11  ;;  %v8945_v41 = vcombine.high %v558_v13, %v562_v22  ;;  %v8944_v33 = vcombine.low %v558_v13, %v562_v22 }
 0x38c   :  { %v12741_v19 = vadd.f32 %v7174_v40, %v7134_v57  ;;  %7428 = vmatpush1.bf16.msra.mxu0 %v8984_v45  ;;  %v690_v9 = vld [vmem:[%s13342_s1 + $0x1478] sm:$0xff] }
 0x38d   :  { %v7176_v20 = vpop.f32.mrf.mxu1  ;;  %v7136_v7 = vpop.f32.mrf.mxu0  ;;  %7429 = vmatprep.subr.bf16.mxu0 %v8977_v36  ;;  %v550_v27 = vld [vmem:[%s13342_s1 + $0x1018] sm:$0xff]  ;;  %v9073_v34 = vcombine.high %v686_v25, %v690_v9  ;;  %v9072_v37 = vcombine.low %v686_v25, %v690_v9 }
 0x38e   :  { %7469 = vmatpush1.bf16.msra.mxu1 %v9112_v48  ;;  %v554_v28 = vld [vmem:[%s13342_s1 + $0x1038] sm:$0xff] }
 0x38f   :  { %v7177_v59 = vpop.f32.mrf.mxu1  ;;  %7470 = vmatprep.subr.bf16.mxu1 %v9105_v16  ;;  %v678_v35 = vld [vmem:[%s13342_s1 + $0x1418] sm:$0xff]  ;;  %v8937_v44 = vcombine.high %v550_v27, %v554_v28  ;;  %v8936_v36 = vcombine.low %v550_v27, %v554_v28 }
 0x390   :  { %7430 = vmatpush1.bf16.msra.mxu0 %v8976_v0  ;;  %v682_v15 = vld [vmem:[%s13342_s1 + $0x1438] sm:$0xff] }
 0x391   :  { %7431 = vmatprep.subr.bf16.mxu0 %v8969_v52  ;;  %v670_v38 = vld [vmem:[%s13342_s1 + $0x13d8] sm:$0xff]  ;;  %v9065_v21 = vcombine.high %v678_v35, %v682_v15  ;;  %v9064_v57 = vcombine.low %v678_v35, %v682_v15 }
 0x392   :  { %7471 = vmatpush1.bf16.msra.mxu1 %v9104_v43  ;;  %v674_v45 = vld [vmem:[%s13342_s1 + $0x13f8] sm:$0xff] }
 0x393   :  { %7472 = vmatprep.subr.bf16.mxu1 %v9097_v49  ;;  %v798_v47 = vld [vmem:[%s13342_s1 + $0x17d8] sm:$0xff]  ;;  %v9057_v40 = vcombine.high %v670_v38, %v674_v45  ;;  %v9056_v20 = vcombine.low %v670_v38, %v674_v45 }
 0x394   :  { %7432 = vmatpush1.bf16.msra.mxu0 %v8968_v56  ;;  %v802_v48 = vld [vmem:[%s13342_s1 + $0x17f8] sm:$0xff] }
 0x395   :  { %7433 = vmatprep.subr.bf16.mxu0 %v8961_v39  ;;  %v662_v50 = vld [vmem:[%s13342_s1 + $0x1398] sm:$0xff]  ;;  %v9185_v62 = vcombine.high %v798_v47, %v802_v48  ;;  %v9184_v7 = vcombine.low %v798_v47, %v802_v48 }
 0x396   :  { %7473 = vmatpush1.bf16.msra.mxu1 %v9096_v6  ;;  %v666_v16 = vld [vmem:[%s13342_s1 + $0x13b8] sm:$0xff] }
 0x397   :  { %7474 = vmatprep.subr.bf16.mxu1 %v9089_v10  ;;  %v790_v63 = vld [vmem:[%s13342_s1 + $0x1798] sm:$0xff]  ;;  %v9049_v43 = vcombine.high %v662_v50, %v666_v16  ;;  %v9048_v49 = vcombine.low %v662_v50, %v666_v16 }
 0x398   :  { %7434 = vmatpush1.bf16.msra.mxu0 %v8960_v12  ;;  %v794_v58 = vld [vmem:[%s13342_s1 + $0x17b8] sm:$0xff] }
 0x399   :  { %7435 = vmatprep.subr.bf16.mxu0 %v8953_v17  ;;  %v654_v0 = vld [vmem:[%s13342_s1 + $0x1358] sm:$0xff]  ;;  %v9177_v1 = vcombine.high %v790_v63, %v794_v58  ;;  %v9176_v56 = vcombine.low %v790_v63, %v794_v58 }
 0x39a   :  { %7475 = vmatpush1.bf16.msra.mxu1 %v9088_v3  ;;  %v658_v46 = vld [vmem:[%s13342_s1 + $0x1378] sm:$0xff] }
 0x39b   :  { %7476 = vmatprep.subr.bf16.mxu1 %v9081_v24  ;;  %v782_v52 = vld [vmem:[%s13342_s1 + $0x1758] sm:$0xff]  ;;  %v9041_v5 = vcombine.high %v654_v0, %v658_v46  ;;  %v9040_v10 = vcombine.low %v654_v0, %v658_v46 }
 0x39c   :  { %7436 = vmatpush1.bf16.msra.mxu0 %v8952_v54  ;;  %v786_v59 = vld [vmem:[%s13342_s1 + $0x1778] sm:$0xff] }
 0x39d   :  { %7437 = vmatprep.subr.bf16.mxu0 %v8945_v41  ;;  %v646_v2 = vld [vmem:[%s13342_s1 + $0x1318] sm:$0xff]  ;;  %v9169_v29 = vcombine.high %v782_v52, %v786_v59  ;;  %v9168_v12 = vcombine.low %v782_v52, %v786_v59 }
 0x39e   :  { %7477 = vmatpush1.bf16.msra.mxu1 %v9080_v30  ;;  %v650_v26 = vld [vmem:[%s13342_s1 + $0x1338] sm:$0xff] }
 0x39f   :  { %7478 = vmatprep.subr.bf16.mxu1 %v9073_v34  ;;  %v774_v6 = vld [vmem:[%s13342_s1 + $0x1718] sm:$0xff]  ;;  %v9033_v13 = vcombine.high %v646_v2, %v650_v26  ;;  %v9032_v24 = vcombine.low %v646_v2, %v650_v26 }
 0x3a0   :  { %7438 = vmatpush1.bf16.msra.mxu0 %v8944_v33  ;;  %v778_v39 = vld [vmem:[%s13342_s1 + $0x1738] sm:$0xff] }
 0x3a1   :  { %7439 = vmatprep.subr.bf16.mxu0 %v8937_v44  ;;  %v638_v60 = vld [vmem:[%s13342_s1 + $0x12d8] sm:$0xff]  ;;  %v9161_v22 = vcombine.high %v774_v6, %v778_v39  ;;  %v9160_v54 = vcombine.low %v774_v6, %v778_v39 }
 0x3a2   :  { %7479 = vmatpush1.bf16.msra.mxu1 %v9072_v37  ;;  %v642_v11 = vld [vmem:[%s13342_s1 + $0x12f8] sm:$0xff] }
 0x3a3   :  { %7480 = vmatprep.subr.bf16.mxu1 %v9065_v21  ;;  %v766_v3 = vld [vmem:[%s13342_s1 + $0x16d8] sm:$0xff]  ;;  %v9025_v27 = vcombine.high %v638_v60, %v642_v11  ;;  %v9024_v34 = vcombine.low %v638_v60, %v642_v11 }
 0x3a4   :  { %7440 = vmatpush1.bf16.msra.mxu0 %v8936_v36  ;;  %v770_v17 = vld [vmem:[%s13342_s1 + $0x16f8] sm:$0xff] }
 0x3a5   :  { %7441 = vmatprep.subr.bf16.mxu0 %v9057_v40  ;;  %v630_v25 = vld [vmem:[%s13342_s1 + $0x1298] sm:$0xff]  ;;  %v9153_v28 = vcombine.high %v766_v3, %v770_v17  ;;  %v9152_v33 = vcombine.low %v766_v3, %v770_v17 }
 0x3a6   :  { %7481 = vmatpush1.bf16.msra.mxu1 %v9064_v57  ;;  %v634_v9 = vld [vmem:[%s13342_s1 + $0x12b8] sm:$0xff] }
 0x3a7   :  { %7482 = vmatprep.subr.bf16.mxu1 %v9185_v62  ;;  %v758_v30 = vld [vmem:[%s13342_s1 + $0x1698] sm:$0xff]  ;;  %v9017_v38 = vcombine.high %v630_v25, %v634_v9  ;;  %v9016_v21 = vcombine.low %v630_v25, %v634_v9 }
 0x3a8   :  { %7442 = vmatpush2.bf16.msra.mxu0 %v9056_v20  ;;  %v762_v41 = vld [vmem:[%s13342_s1 + $0x16b8] sm:$0xff] }
 0x3a9   :  { %7443 = vmatprep.subr.bf16.mxu0 %v9049_v43  ;;  %v622_v35 = vld [vmem:[%s13342_s1 + $0x1258] sm:$0xff]  ;;  %v9145_v45 = vcombine.high %v758_v30, %v762_v41  ;;  %v9144_v36 = vcombine.low %v758_v30, %v762_v41 }
 0x3aa   :  { %7483 = vmatpush2.bf16.msra.mxu1 %v9184_v7  ;;  %v626_v15 = vld [vmem:[%s13342_s1 + $0x1278] sm:$0xff] }
 0x3ab   :  { %7484 = vmatprep.subr.bf16.mxu1 %v9177_v1  ;;  %v750_v37 = vld [vmem:[%s13342_s1 + $0x1658] sm:$0xff]  ;;  %v9009_v50 = vcombine.high %v622_v35, %v626_v15  ;;  %v9008_v62 = vcombine.low %v622_v35, %v626_v15 }
 0x3ac   :  { %7444 = vmatpush2.bf16.msra.mxu0 %v9048_v49  ;;  %v754_v44 = vld [vmem:[%s13342_s1 + $0x1678] sm:$0xff] }
 0x3ad   :  { %7445 = vmatprep.subr.bf16.mxu0 %v9041_v5  ;;  %v614_v47 = vld [vmem:[%s13342_s1 + $0x1218] sm:$0xff]  ;;  %v9137_v16 = vcombine.high %v750_v37, %v754_v44  ;;  %v9136_v20 = vcombine.low %v750_v37, %v754_v44 }
 0x3ae   :  { %7485 = vmatpush2.bf16.msra.mxu1 %v9176_v56  ;;  %v618_v48 = vld [vmem:[%s13342_s1 + $0x1238] sm:$0xff] }
 0x3af   :  { %7486 = vmatprep.subr.bf16.mxu1 %v9169_v29  ;;  %v742_v57 = vld [vmem:[%s13342_s1 + $0x1618] sm:$0xff]  ;;  %v9001_v0 = vcombine.high %v614_v47, %v618_v48  ;;  %v9000_v52 = vcombine.low %v614_v47, %v618_v48 }
 0x3b0   :  { %7446 = vmatpush2.bf16.msra.mxu0 %v9040_v10  ;;  %v746_v40 = vld [vmem:[%s13342_s1 + $0x1638] sm:$0xff] }
 0x3b1   :  { %7447 = vmatprep.subr.bf16.mxu0 %v9033_v13  ;;  %v862_v63 = vld [vmem:[%s13342_s1 + $0x19d8] sm:$0xff]  ;;  %v9129_v43 = vcombine.high %v742_v57, %v746_v40  ;;  %v9128_v1 = vcombine.low %v742_v57, %v746_v40 }
 0x3b2   :  { %7487 = vmatpush2.bf16.msra.mxu1 %v9168_v12  ;;  %v866_v58 = vld [vmem:[%s13342_s1 + $0x19f8] sm:$0xff] }
 0x3b3   :  { %7488 = vmatprep.subr.bf16.mxu1 %v9161_v22  ;;  %v990_v46 = vld [vmem:[%s13342_s1 + $0x1dd8] sm:$0xff]  ;;  %v9249_v59 = vcombine.high %v862_v63, %v866_v58  ;;  %v9248_v6 = vcombine.low %v862_v63, %v866_v58 }
 0x3b4   :  { %7448 = vmatpush2.bf16.msra.mxu0 %v9032_v24  ;;  %v994_v7 = vld [vmem:[%s13342_s1 + $0x1df8] sm:$0xff] }
 0x3b5   :  { %7449 = vmatprep.subr.bf16.mxu0 %v9025_v27  ;;  %v9377_v49 = vcombine.high %v990_v46, %v994_v7  ;;  %v854_v2 = vld [vmem:[%s13342_s1 + $0x1998] sm:$0xff]  ;;  %v9376_v39 = vcombine.low %v990_v46, %v994_v7 }
 0x3b6   :  { %7489 = vmatpush2.bf16.msra.mxu1 %v9160_v54  ;;  %v858_v26 = vld [vmem:[%s13342_s1 + $0x19b8] sm:$0xff] }
 0x3b7   :  { %7490 = vmatprep.subr.bf16.mxu1 %v9153_v28  ;;  %v982_v56 = vld [vmem:[%s13342_s1 + $0x1d98] sm:$0xff]  ;;  %v9241_v29 = vcombine.high %v854_v2, %v858_v26  ;;  %v9240_v24 = vcombine.low %v854_v2, %v858_v26 }
 0x3b8   :  { %7450 = vmatpush2.bf16.msra.mxu0 %v9024_v34  ;;  %v986_v5 = vld [vmem:[%s13342_s1 + $0x1db8] sm:$0xff] }
 0x3b9   :  { %7451 = vmatprep.subr.bf16.mxu0 %v9017_v38  ;;  %v9369_v10 = vcombine.high %v982_v56, %v986_v5  ;;  %v846_v60 = vld [vmem:[%s13342_s1 + $0x1958] sm:$0xff]  ;;  %v9368_v9 = vcombine.low %v982_v56, %v986_v5 }
 0x3ba   :  { %7491 = vmatpush2.bf16.msra.mxu1 %v9152_v33  ;;  %v850_v11 = vld [vmem:[%s13342_s1 + $0x1978] sm:$0xff] }
 0x3bb   :  { %7492 = vmatprep.subr.bf16.mxu1 %v9145_v45  ;;  %v974_v13 = vld [vmem:[%s13342_s1 + $0x1d58] sm:$0xff]  ;;  %v9232_v33 = vcombine.low %v846_v60, %v850_v11 }
 0x3bc   :  { %7452 = vmatpush2.bf16.msra.mxu0 %v9016_v21  ;;  %v978_v3 = vld [vmem:[%s13342_s1 + $0x1d78] sm:$0xff] }
 0x3bd   :  { %7453 = vmatprep.subr.bf16.mxu0 %v9009_v50  ;;  %v9361_v41 = vcombine.high %v974_v13, %v978_v3  ;;  %v966_v34 = vld [vmem:[%s13342_s1 + $0x1d18] sm:$0xff] }
 0x3be   :  { %7493 = vmatpush2.bf16.msra.mxu1 %v9144_v36  ;;  %v830_v21 = vld [vmem:[%s13342_s1 + $0x18d8] sm:$0xff] }
 0x3bf   :  { %7494 = vmatprep.subr.bf16.mxu1 %v9137_v16  ;;  %v958_v47 = vld [vmem:[%s13342_s1 + $0x1cd8] sm:$0xff] }
 0x3c0   :  { %7454 = vmatpush2.bf16.msra.mxu0 %v9008_v62  ;;  %v962_v48 = vld [vmem:[%s13342_s1 + $0x1cf8] sm:$0xff] }
 0x3c1   :  { %7455 = vmatprep.subr.bf16.mxu0 %v9001_v0  ;;  %v9345_v40 = vcombine.high %v958_v47, %v962_v48  ;;  %v822_v16 = vld [vmem:[%s13342_s1 + $0x1898] sm:$0xff]  ;;  %v9344_v0 = vcombine.low %v958_v47, %v962_v48 }
 0x3c2   :  { %7495 = vmatpush2.bf16.msra.mxu1 %v9136_v20  ;;  %v826_v62 = vld [vmem:[%s13342_s1 + $0x18b8] sm:$0xff] }
 0x3c3   :  { %7496 = vmatprep.subr.bf16.mxu1 %v9129_v43  ;;  %v950_v63 = vld [vmem:[%s13342_s1 + $0x1c98] sm:$0xff]  ;;  %v9209_v46 = vcombine.high %v822_v16, %v826_v62 }
 0x3c4   :  { %7456 = vmatpush2.bf16.msra.mxu0 %v9000_v52  ;;  %v954_v58 = vld [vmem:[%s13342_s1 + $0x1cb8] sm:$0xff] }
 0x3c5   :  { %7507 = vmatprep.subr.bf16.mxu0 %v9249_v59  ;;  %v9337_v7 = vcombine.high %v950_v63, %v954_v58  ;;  %v814_v43 = vld [vmem:[%s13342_s1 + $0x1858] sm:$0xff]  ;;  %v9336_v2 = vcombine.low %v950_v63, %v954_v58 }
 0x3c6   :  { %7497 = vmatpush2.bf16.msra.mxu1 %v9128_v1  ;;  %v818_v52 = vld [vmem:[%s13342_s1 + $0x1878] sm:$0xff] }
 0x3c7   :  { %7548 = vmatprep.subr.bf16.mxu1 %v9377_v49  ;;  %v7213_v12 = vpop.f32.mrf.mxu0  ;;  %7458 = vmatmul.mubr.bf16.vlgmr.msra.gmra.mxu0 %v10444_v4  ;;  %v9233_v4 = vcombine.high %v846_v60, %v850_v11  ;;  %v942_v1 = vld [vmem:[%s13342_s1 + $0x1c58] sm:$0xff]  ;;  %v9208_v49 = vcombine.low %v822_v16, %v826_v62  ;;  %v9201_v26 = vcombine.high %v814_v43, %v818_v52 }
 0x3c8   :  { %v7214_v17 = vadd.f32 %v7213_v12, %v12730_v51  ;;  %7508 = vmatpush1.bf16.msra.mxu0 %v9248_v6  ;;  %v838_v51 = vld [vmem:[%s13342_s1 + $0x1918] sm:$0xff]  ;;  %7539 = vmatprep.mubr.bf16.mxu0 %v10474_v14  ;;  %v9360_v14 = vcombine.low %v974_v13, %v978_v3 }
 0x3c9   :  { %v7254_v22 = vpop.f32.mrf.mxu1  ;;  %7499 = vmatmul.mubr.bf16.vlgmr.msra.gmra.mxu1 %v10459_v8  ;;  %v7215_v25 = vpop.f32.mrf.mxu0  ;;  %7509 = vmatprep.subr.bf16.mxu0 %v9241_v29  ;;  %v842_v8 = vld [vmem:[%s13342_s1 + $0x1938] sm:$0xff] }
 0x3ca   :  { %7549 = vmatpush1.bf16.msra.mxu1 %v9376_v39  ;;  %v12926_v54 = vadd.f32 %v7254_v22, %v7214_v17  ;;  %v7216_v27 = vadd.f32 %v7215_v25, %v12741_v19  ;;  %v970_v19 = vld [vmem:[%s13342_s1 + $0x1d38] sm:$0xff]  ;;  %7580 = vmatprep.mubr.bf16.mxu1 %v10485_v18  ;;  %v9225_v37 = vcombine.high %v838_v51, %v842_v8 }
 0x3cb   :  { %v7256_v30 = vpop.f32.mrf.mxu1  ;;  %7550 = vmatprep.subr.bf16.mxu1 %v9369_v10  ;;  %v7217_v28 = vpop.f32.mrf.mxu0  ;;  %v9353_v45 = vcombine.high %v966_v34, %v970_v19  ;;  %v834_v18 = vld [vmem:[%s13342_s1 + $0x18f8] sm:$0xff]  ;;  %v9224_v36 = vcombine.low %v838_v51, %v842_v8  ;;  %v9352_v50 = vcombine.low %v966_v34, %v970_v19  ;;  %v9200_v10 = vcombine.low %v814_v43, %v818_v52 }
 0x3cc   :  { %v12943_v35 = vadd.f32 %v7256_v30, %v7216_v27  ;;  %7510 = vmatpush1.bf16.msra.mxu0 %v9240_v24  ;;  %v9217_v57 = vcombine.high %v830_v21, %v834_v18  ;;  %v9216_v20 = vcombine.low %v830_v21, %v834_v18  ;;  %v946_v59 = vld [vmem:[%s13342_s1 + $0x1c78] sm:$0xff] }
 0x3cd   :  { %v7258_v15 = vpop.f32.mrf.mxu1  ;;  %v7218_v38 = vpop.f32.mrf.mxu0  ;;  %7511 = vmatprep.subr.bf16.mxu0 %v9233_v4  ;;  %v9329_v56 = vcombine.high %v942_v1, %v946_v59  ;;  %v806_v5 = vld [vmem:[%s13342_s1 + $0x1818] sm:$0xff]  ;;  %v9328_v60 = vcombine.low %v942_v1, %v946_v59 }
 0x3ce   :  { %7551 = vmatpush1.bf16.msra.mxu1 %v9368_v9  ;;  %v810_v6 = vld [vmem:[%s13342_s1 + $0x1838] sm:$0xff] }
 0x3cf   :  { %v7259_v44 = vpop.f32.mrf.mxu1  ;;  %7552 = vmatprep.subr.bf16.mxu1 %v9361_v41  ;;  %v934_v39 = vld [vmem:[%s13342_s1 + $0x1c18] sm:$0xff]  ;;  %v9193_v11 = vcombine.high %v806_v5, %v810_v6  ;;  %v9192_v24 = vcombine.low %v806_v5, %v810_v6 }
 0x3d0   :  { %7512 = vmatpush1.bf16.msra.mxu0 %v9232_v33  ;;  %v938_v29 = vld [vmem:[%s13342_s1 + $0x1c38] sm:$0xff] }
 0x3d1   :  { %7513 = vmatprep.subr.bf16.mxu0 %v9225_v37  ;;  %v9321_v12 = vcombine.high %v934_v39, %v938_v29  ;;  %v926_v13 = vld [vmem:[%s13342_s1 + $0x1bd8] sm:$0xff]  ;;  %v9320_v25 = vcombine.low %v934_v39, %v938_v29 }
 0x3d2   :  { %7553 = vmatpush1.bf16.msra.mxu1 %v9360_v14  ;;  %v930_v3 = vld [vmem:[%s13342_s1 + $0x1bf8] sm:$0xff] }
 0x3d3   :  { %7554 = vmatprep.subr.bf16.mxu1 %v9353_v45  ;;  %v1054_v17 = vld [vmem:[%s13342_s1 + $0x1fd8] sm:$0xff]  ;;  %v9313_v9 = vcombine.high %v926_v13, %v930_v3  ;;  %v9312_v8 = vcombine.low %v926_v13, %v930_v3 }
 0x3d4   :  { %7514 = vmatpush1.bf16.msra.mxu0 %v9224_v36  ;;  %v1058_v22 = vld [vmem:[%s13342_s1 + $0x1ff8] sm:$0xff] }
 0x3d5   :  { %7515 = vmatprep.subr.bf16.mxu0 %v9217_v57  ;;  %v9441_v4 = vcombine.high %v1054_v17, %v1058_v22  ;;  %v918_v27 = vld [vmem:[%s13342_s1 + $0x1b98] sm:$0xff]  ;;  %v9440_v28 = vcombine.low %v1054_v17, %v1058_v22 }
 0x3d6   :  { %7555 = vmatpush1.bf16.msra.mxu1 %v9352_v50  ;;  %v922_v30 = vld [vmem:[%s13342_s1 + $0x1bb8] sm:$0xff] }
 0x3d7   :  { %7556 = vmatprep.subr.bf16.mxu1 %v9345_v40  ;;  %v1046_v41 = vld [vmem:[%s13342_s1 + $0x1f98] sm:$0xff]  ;;  %v9305_v34 = vcombine.high %v918_v27, %v922_v30  ;;  %v9304_v37 = vcombine.low %v918_v27, %v922_v30 }
 0x3d8   :  { %7516 = vmatpush1.bf16.msra.mxu0 %v9216_v20  ;;  %v1050_v51 = vld [vmem:[%s13342_s1 + $0x1fb8] sm:$0xff] }
 0x3d9   :  { %7517 = vmatprep.subr.bf16.mxu0 %v9209_v46  ;;  %v9433_v19 = vcombine.high %v1046_v41, %v1050_v51  ;;  %v910_v15 = vld [vmem:[%s13342_s1 + $0x1b58] sm:$0xff]  ;;  %v9432_v44 = vcombine.low %v1046_v41, %v1050_v51  ;;  %v1087_v41 = vsub.s32 6, %v10646_v32 }
 0x3da   :  { %7557 = vmatpush1.bf16.msra.mxu1 %v9344_v0  ;;  %v914_v33 = vld [vmem:[%s13342_s1 + $0x1b78] sm:$0xff] }
 0x3db   :  { %7558 = vmatprep.subr.bf16.mxu1 %v9337_v7  ;;  %v1038_v38 = vld [vmem:[%s13342_s1 + $0x1f58] sm:$0xff]  ;;  %v9297_v45 = vcombine.high %v910_v15, %v914_v33  ;;  %v9296_v50 = vcombine.low %v910_v15, %v914_v33  ;;  %v7592_v15 = vmax.f32 %v12132_v31, 0.0  ;;  %v9725_v33 = vld [vmem:[%s13344_s2] sm:$0xff]  ;;  %v9655_v31 = vld [vmem:[%s13345_s3 + $0x70] sm:$0xff]  }
 0x3dc   :  { %7518 = vmatpush1.bf16.msra.mxu0 %v9208_v49  ;;  %v1042_v14 = vld [vmem:[%s13342_s1 + $0x1f78] sm:$0xff] }
 0x3dd   :  { %7519 = vmatprep.subr.bf16.mxu0 %v9201_v26  ;;  %v9425_v21 = vcombine.high %v1038_v38, %v1042_v14  ;;  %v902_v18 = vld [vmem:[%s13342_s1 + $0x1b18] sm:$0xff]  ;;  %v9424_v57 = vcombine.low %v1038_v38, %v1042_v14  ;;  %v1088_v38 = vrot.slane %v9725_v33, %v1087_v41  ;;  %v9685_v41 = vld [vmem:[%s13345_s3 + $0x170] sm:$0xff]  }
 0x3de   :  { %7559 = vmatpush1.bf16.msra.mxu1 %v9336_v2  ;;  %v906_v47 = vld [vmem:[%s13342_s1 + $0x1b38] sm:$0xff] }
 0x3df   :  { %7560 = vmatprep.subr.bf16.mxu1 %v9329_v56  ;;  %v1030_v48 = vld [vmem:[%s13342_s1 + $0x1f18] sm:$0xff]  ;;  %v9289_v40 = vcombine.high %v902_v18, %v906_v47  ;;  %v9288_v0 = vcombine.low %v902_v18, %v906_v47 }
 0x3e0   :  { %7520 = vmatpush1.bf16.msra.mxu0 %v9200_v10  ;;  %v1034_v36 = vld [vmem:[%s13342_s1 + $0x1f38] sm:$0xff] }
 0x3e1   :  { %7521 = vmatprep.subr.bf16.mxu0 %v9193_v11  ;;  %v9417_v16 = vcombine.high %v1030_v48, %v1034_v36  ;;  %v894_v62 = vld [vmem:[%s13342_s1 + $0x1ad8] sm:$0xff]  ;;  %v9416_v46 = vcombine.low %v1030_v48, %v1034_v36  ;;  %v9657_v48 = vld [vmem:[%s13345_s3 + $0x30] sm:$0xff]  }
 0x3e2   :  { %7561 = vmatpush1.bf16.msra.mxu1 %v9328_v60  ;;  %v898_v63 = vld [vmem:[%s13342_s1 + $0x1af8] sm:$0xff] }
 0x3e3   :  { %7562 = vmatprep.subr.bf16.mxu1 %v9321_v12  ;;  %v1022_v58 = vld [vmem:[%s13342_s1 + $0x1ed8] sm:$0xff]  ;;  %v9281_v7 = vcombine.high %v894_v62, %v898_v63  ;;  %v9280_v2 = vcombine.low %v894_v62, %v898_v63 }
 0x3e4   :  { %7522 = vmatpush1.bf16.msra.mxu0 %v9192_v24  ;;  %v1026_v20 = vld [vmem:[%s13342_s1 + $0x1ef8] sm:$0xff] }
 0x3e5   :  { %7523 = vmatprep.subr.bf16.mxu0 %v9313_v9  ;;  %v9409_v43 = vcombine.high %v1022_v58, %v1026_v20  ;;  %v886_v52 = vld [vmem:[%s13342_s1 + $0x1a98] sm:$0xff]  ;;  %v9408_v26 = vcombine.low %v1022_v58, %v1026_v20  ;;  %v9661_v20 = vld [vmem:[%s13345_s3 + $0x28] sm:$0xff]  }
 0x3e6   :  { %7563 = vmatpush1.bf16.msra.mxu1 %v9320_v25  ;;  %v890_v1 = vld [vmem:[%s13342_s1 + $0x1ab8] sm:$0xff] }
 0x3e7   :  { %7564 = vmatprep.subr.bf16.mxu1 %v9441_v4  ;;  %v1014_v59 = vld [vmem:[%s13342_s1 + $0x1e98] sm:$0xff]  ;;  %v9273_v56 = vcombine.high %v886_v52, %v890_v1  ;;  %v9272_v60 = vcombine.low %v886_v52, %v890_v1  ;;  %v9664_v52 = vld [vmem:[%s13345_s3 + $0xe0] sm:$0xff]  }
 0x3e8   :  { %7524 = vmatpush2.bf16.msra.mxu0 %v9312_v8  ;;  %v1018_v49 = vld [vmem:[%s13342_s1 + $0x1eb8] sm:$0xff]  ;;  %v9665_v1 = vld [vmem:[%s13345_s3 + $0x20] sm:$0xff]  }
 0x3e9   :  { %7525 = vmatprep.subr.bf16.mxu0 %v9305_v34  ;;  %v9401_v5 = vcombine.high %v1014_v59, %v1018_v49  ;;  %v878_v6 = vld [vmem:[%s13342_s1 + $0x1a58] sm:$0xff]  ;;  %v9400_v11 = vcombine.low %v1014_v59, %v1018_v49  ;;  %v1091_v34 = vsub.s32 7, %v10646_v32  ;;  %v9666_v59 = vld [vmem:[%s13345_s3 + $0xa0] sm:$0xff]  }
 0x3ea   :  { %7565 = vmatpush2.bf16.msra.mxu1 %v9440_v28  ;;  %v882_v39 = vld [vmem:[%s13342_s1 + $0x1a78] sm:$0xff] }
 0x3eb   :  { %7566 = vmatprep.subr.bf16.mxu1 %v9433_v19  ;;  %v1006_v29 = vld [vmem:[%s13342_s1 + $0x1e58] sm:$0xff]  ;;  %v9265_v12 = vcombine.high %v878_v6, %v882_v39  ;;  %v9264_v25 = vcombine.low %v878_v6, %v882_v39  ;;  %v7590_v19 = vmax.f32 %v11321_v42, 0.0  ;;  %v1092_v42 = vrot.slane %v9725_v33, %v1091_v34  ;;  %v9672_v6 = vld [vmem:[%s13345_s3 + $0xd0] sm:$0xff]   ;;  %v9687_v34 = vld [vmem:[%s13345_s3 + $0x168] sm:$0xff]  }
 0x3ec   :  { %7526 = vmatpush2.bf16.msra.mxu0 %v9304_v37  ;;  %v1010_v10 = vld [vmem:[%s13342_s1 + $0x1e78] sm:$0xff]  ;;  %v9673_v39 = vld [vmem:[%s13345_s3 + $0x10] sm:$0xff]   ;;  %v9688_v33 = vld [vmem:[%s13345_s3 + $0x128] sm:$0xff]  }
 0x3ed   :  { %7527 = vmatprep.subr.bf16.mxu0 %v9297_v45  ;;  %v9393_v13 = vcombine.high %v1006_v29, %v1010_v10  ;;  %v870_v3 = vld [vmem:[%s13342_s1 + $0x1a18] sm:$0xff]  ;;  %v9392_v9 = vcombine.low %v1006_v29, %v1010_v10  ;;  %v7598_v37 = vpack.c.bf16 %v7590_v19, %v7590_v19  ;;  %v9656_v45 = vld [vmem:[%s13345_s3 + $0xf0] sm:$0xff]   ;;  %v9675_v10 = vld [vmem:[%s13345_s3 + $0x48] sm:$0xff]  }
 0x3ee   :  { %7567 = vmatpush2.bf16.msra.mxu1 %v9432_v44  ;;  %v874_v17 = vld [vmem:[%s13342_s1 + $0x1a38] sm:$0xff]  ;;  %v9674_v29 = vld [vmem:[%s13345_s3 + $0x90] sm:$0xff]  }
 0x3ef   :  { %7568 = vmatprep.subr.bf16.mxu1 %v9425_v21  ;;  %v998_v22 = vld [vmem:[%s13342_s1 + $0x1e18] sm:$0xff]  ;;  %v9257_v4 = vcombine.high %v870_v3, %v874_v17  ;;  %v9256_v30 = vcombine.low %v870_v3, %v874_v17  ;;  %v7600_v21 = vpack.c.bf16 %v7592_v15, %v7592_v15  ;;  %v9680_v3 = vld [vmem:[%s13345_s3 + $0xc0] sm:$0xff]   ;;  %v9702_v19 = vld [vmem:[%s13345_s3 + $0x1b0] sm:$0xff]  }
 0x3f0   :  { %7528 = vmatpush2.bf16.msra.mxu0 %v9296_v50  ;;  %v1002_v24 = vld [vmem:[%s13342_s1 + $0x1e38] sm:$0xff]  ;;  %v9659_v50 = vld [vmem:[%s13345_s3 + $0x68] sm:$0xff]   ;;  %v9681_v17 = vld [vmem:[%s13345_s3] sm:$0xff]  }
 0x3f1   :  { %7529 = vmatprep.subr.bf16.mxu0 %v9289_v40  ;;  %v9385_v27 = vcombine.high %v998_v22, %v1002_v24  ;;  %v9384_v51 = vcombine.low %v998_v22, %v1002_v24  ;;  %v9651_v8 = vld [vmem:[%s13345_s3 + $0x78] sm:$0xff]   ;;  %v7589_v22 = vmax.f32 %v11304_v23, 0.0  ;;  %v9682_v24 = vld [vmem:[%s13345_s3 + $0x80] sm:$0xff]   ;;  %v9703_v15 = vld [vmem:[%s13345_s3 + $0x1e8] sm:$0xff]  }
 0x3f2   :  { %7569 = vmatpush2.bf16.msra.mxu1 %v9424_v57  ;;  %v9652_v28 = vld [vmem:[%s13345_s3 + $0xf8] sm:$0xff]  }
 0x3f3   :  { %7570 = vmatprep.subr.bf16.mxu1 %v9417_v16  ;;  %v9653_v14 = vld [vmem:[%s13345_s3 + $0x38] sm:$0xff]   ;;  %v9660_v16 = vld [vmem:[%s13345_s3 + $0xe8] sm:$0xff]  }
 0x3f4   :  { %7530 = vmatpush2.bf16.msra.mxu0 %v9288_v0  ;;  %v9654_v32 = vld [vmem:[%s13345_s3 + $0xb8] sm:$0xff]  }
 0x3f5   :  { %7531 = vmatprep.subr.bf16.mxu0 %v9281_v7  ;;  %v9663_v7 = vld [vmem:[%s13345_s3 + $0x60] sm:$0xff]   ;;  %v9667_v49 = vld [vmem:[%s13345_s3 + $0x58] sm:$0xff]  }
 0x3f6   :  { %7571 = vmatpush2.bf16.msra.mxu1 %v9416_v46  ;;  %v9662_v46 = vld [vmem:[%s13345_s3 + $0xa8] sm:$0xff]   ;;  %v9684_v23 = vld [vmem:[%s13345_s3 + $0x138] sm:$0xff]  }
 0x3f7   :  { %7572 = vmatprep.subr.bf16.mxu1 %v9409_v43 }
 0x3f8   :  { %7532 = vmatpush2.bf16.msra.mxu0 %v9280_v2  ;;  %v9668_v2 = vld [vmem:[%s13345_s3 + $0xd8] sm:$0xff]  }
 0x3f9   :  { %7533 = vmatprep.subr.bf16.mxu0 %v9273_v56  ;;  %v9670_v56 = vld [vmem:[%s13345_s3 + $0x98] sm:$0xff]  }
 0x3fa   :  { %7573 = vmatpush2.bf16.msra.mxu1 %v9408_v26  ;;  %v9669_v26 = vld [vmem:[%s13345_s3 + $0x18] sm:$0xff]  }
 0x3fb   :  { %7574 = vmatprep.subr.bf16.mxu1 %v9401_v5  ;;  %v9671_v5 = vld [vmem:[%s13345_s3 + $0x50] sm:$0xff]  }
 0x3fc   :  { %7534 = vmatpush2.bf16.msra.mxu0 %v9272_v60  ;;  %v9676_v60 = vld [vmem:[%s13345_s3 + $0xc8] sm:$0xff]  }
 0x3fd   :  { %7535 = vmatprep.subr.bf16.mxu0 %v9265_v12  ;;  %v9678_v12 = vld [vmem:[%s13345_s3 + $0x88] sm:$0xff]  }
 0x3fe   :  { %7575 = vmatpush2.bf16.msra.mxu1 %v9400_v11  ;;  %v9677_v11 = vld [vmem:[%s13345_s3 + $0x8] sm:$0xff]  }
 0x3ff   :  { %7576 = vmatprep.subr.bf16.mxu1 %v9393_v13  ;;  %v9679_v13 = vld [vmem:[%s13345_s3 + $0x40] sm:$0xff]  }
 0x400   :  { %7536 = vmatpush2.bf16.msra.mxu0 %v9264_v25  ;;  %v9683_v25 = vld [vmem:[%s13345_s3 + $0x178] sm:$0xff]  }
 0x401   :  { %7537 = vmatprep.subr.bf16.mxu0 %v9257_v4  ;;  %v9699_v4 = vld [vmem:[%s13345_s3 + $0x1f8] sm:$0xff]  }
 0x402   :  { %7577 = vmatpush2.bf16.msra.mxu1 %v9392_v9  ;;  %v7591_v9 = vmax.f32 %v12115_v53, 0.0 }
 0x403   :  { %7578 = vmatprep.subr.bf16.mxu1 %v9385_v27  ;;  %v7594_v27 = vmax.f32 %v12943_v35, 0.0  ;;  %v9701_v35 = vld [vmem:[%s13345_s3 + $0x1f0] sm:$0xff]  }
 0x404   :  { %7538 = vmatpush2.bf16.msra.mxu0 %v9256_v30  ;;  %v7597_v30 = vpack.c.bf16 %v7589_v22, %v7589_v22  ;;  %v7599_v53 = vpack.c.bf16 %v7591_v9, %v7591_v9  ;;  %v9715_v22 = vld [vmem:[%s13346_s5 + $0x38] sm:$0xff]   ;;  %v9718_v9 = vld [vmem:[%s13346_s5 + $0x20] sm:$0xff]  }
 0x405   :  { %9516 = vmatprep.subr.bf16.mxu0 %v9651_v8  ;;  %v7602_v8 = vpack.c.bf16 %v7594_v27, %v7594_v27 }
 0x406   :  { %7579 = vmatpush2.bf16.msra.mxu1 %v9384_v51  ;;  %v9700_v51 = vld [vmem:[%s13345_s3 + $0x1b8] sm:$0xff]  }
 0x407   :  { %9538 = vmatprep.subr.bf16.mxu1 %v9652_v28  ;;  %v7295_v44 = vpop.f32.mrf.mxu0  ;;  %7540 = vmatmul.mubr.bf16.vlgmr.msra.gmra.mxu0 %v10673_v55  ;;  %v9658_v55 = vld [vmem:[%s13345_s3 + $0xb0] sm:$0xff]  }
 0x408   :  { %v7296_v18 = vadd.f32 %v7295_v44, %v1088_v38  ;;  %9517 = vmatpush3.bf16.msra.mxu0 %v9653_v14  ;;  %8156 = vmatprep.mubr.bf16.mxu0 %v7598_v37  ;;  %v9686_v28 = vld [vmem:[%s13345_s3 + $0x130] sm:$0xff]   ;;  %v9689_v38 = vld [vmem:[%s13345_s3 + $0x160] sm:$0xff]   ;;  %v9704_v14 = vld [vmem:[%s13345_s3 + $0x1a8] sm:$0xff]  }
 0x409   :  { %v7336_v47 = vpop.f32.mrf.mxu1  ;;  %7581 = vmatmul.mubr.bf16.vlgmr.msra.gmra.mxu1 %v10683_v61  ;;  %v7297_v36 = vpop.f32.mrf.mxu0  ;;  %9518 = vmatprep.subr.bf16.mxu0 %v9655_v31  ;;  %v9691_v31 = vld [vmem:[%s13345_s3 + $0x158] sm:$0xff]   ;;  %v9706_v37 = vld [vmem:[%s13345_s3 + $0x1a0] sm:$0xff]  }
 0x40a   :  { %9539 = vmatpush3.bf16.msra.mxu1 %v9654_v32  ;;  %v13125_v57 = vadd.f32 %v7336_v47, %v7296_v18  ;;  %8196 = vmatprep.mubr.bf16.mxu1 %v7600_v21  ;;  %v7298_v61 = vadd.f32 %v7297_v36, %v1092_v42  ;;  %v9705_v32 = vld [vmem:[%s13345_s3 + $0x1e0] sm:$0xff]   ;;  %v9707_v44 = vld [vmem:[%s13345_s3 + $0x1d8] sm:$0xff]   ;;  %v9693_v21 = vld [vmem:[%s13345_s3 + $0x150] sm:$0xff]  }
 0x40b   :  { %v7338_v40 = vpop.f32.mrf.mxu1  ;;  %v7299_v62 = vpop.f32.mrf.mxu0  ;;  %9540 = vmatprep.subr.bf16.mxu1 %v9656_v45  ;;  %v9690_v42 = vld [vmem:[%s13345_s3 + $0x120] sm:$0xff]   ;;  %v9692_v45 = vld [vmem:[%s13345_s3 + $0x118] sm:$0xff]   ;;  %v9694_v47 = vld [vmem:[%s13345_s3 + $0x110] sm:$0xff]  }
 0x40c   :  { %v13130_v63 = vadd.f32 %v7338_v40, %v7298_v61  ;;  %9519 = vmatpush3.bf16.msra.mxu0 %v9657_v48  ;;  %v9708_v18 = vld [vmem:[%s13345_s3 + $0x198] sm:$0xff]   ;;  %v9695_v48 = vld [vmem:[%s13345_s3 + $0x148] sm:$0xff]   ;;  %v7593_v61 = vmax.f32 %v12926_v54, 0.0  ;;  %v9709_v62 = vld [vmem:[%s13345_s3 + $0x1d0] sm:$0xff]  }
 0x40d   :  { %v7340_v58 = vpop.f32.mrf.mxu1  ;;  %v7300_v0 = vpop.f32.mrf.mxu0  ;;  %9520 = vmatprep.subr.bf16.mxu0 %v9659_v50  ;;  %v9696_v36 = vld [vmem:[%s13345_s3 + $0x108] sm:$0xff]   ;;  %v9698_v50 = vld [vmem:[%s13345_s3 + $0x100] sm:$0xff]  }
 0x40e   :  { %9541 = vmatpush3.bf16.msra.mxu1 %v9658_v55  ;;  %v9697_v55 = vld [vmem:[%s13345_s3 + $0x140] sm:$0xff]   ;;  %v7601_v40 = vpack.c.bf16 %v7593_v61, %v7593_v61  ;;  %v9710_v0 = vld [vmem:[%s13345_s3 + $0x190] sm:$0xff]  }
 0x40f   :  { %v7341_v43 = vpop.f32.mrf.mxu1  ;;  %9542 = vmatprep.subr.bf16.mxu1 %v9660_v16 }
 0x410   :  { %9521 = vmatpush3.bf16.msra.mxu0 %v9661_v20 }
 0x411   :  { %9522 = vmatprep.subr.bf16.mxu0 %v9663_v7 }
 0x412   :  { %9543 = vmatpush3.bf16.msra.mxu1 %v9662_v46 }
 0x413   :  { %9544 = vmatprep.subr.bf16.mxu1 %v9664_v52 }
 0x414   :  { %9523 = vmatpush3.bf16.msra.mxu0 %v9665_v1  ;;  %v9711_v1 = vld [vmem:[%s13345_s3 + $0x1c8] sm:$0xff]  }
 0x415   :  { %9524 = vmatprep.subr.bf16.mxu0 %v9667_v49 }
 0x416   :  { %9545 = vmatpush3.bf16.msra.mxu1 %v9666_v59 }
 0x417   :  { %9546 = vmatprep.subr.bf16.mxu1 %v9668_v2 }
 0x418   :  { %9525 = vmatpush3.bf16.msra.mxu0 %v9669_v26 }
 0x419   :  { %9526 = vmatprep.subr.bf16.mxu0 %v9671_v5 }
 0x41a   :  { %9547 = vmatpush3.bf16.msra.mxu1 %v9670_v56  ;;  %v9714_v56 = vld [vmem:[%s13345_s3 + $0x180] sm:$0xff]  }
 0x41b   :  { %9548 = vmatprep.subr.bf16.mxu1 %v9672_v6 }
 0x41c   :  { %9527 = vmatpush3.bf16.msra.mxu0 %v9673_v39 }
 0x41d   :  { %9528 = vmatprep.subr.bf16.mxu0 %v9675_v10 }
 0x41e   :  { %9549 = vmatpush3.bf16.msra.mxu1 %v9674_v29 }
 0x41f   :  { %9550 = vmatprep.subr.bf16.mxu1 %v9676_v60 }
 0x420   :  { %9529 = vmatpush3.bf16.msra.mxu0 %v9677_v11 }
 0x421   :  { %9530 = vmatprep.subr.bf16.mxu0 %v9679_v13 }
 0x422   :  { %9551 = vmatpush3.bf16.msra.mxu1 %v9678_v12 }
 0x423   :  { %9552 = vmatprep.subr.bf16.mxu1 %v9680_v3 }
 0x424   :  { %9531 = vmatpush3.bf16.msra.mxu0 %v9681_v17  ;;  %v9726_v17 = vmov 0.0  }
 0x425   :  { %9560 = vmatprep.subr.bf16.mxu0 %v9683_v25  ;;  %v9717_v25 = vld [vmem:[%s13346_s5 + $0x28] sm:$0xff]  }
 0x426   :  { %9553 = vmatpush3.bf16.msra.mxu1 %v9682_v24  ;;  %v9716_v24 = vld [vmem:[%s13346_s5 + $0x30] sm:$0xff]  }
 0x427   :  { %9582 = vmatprep.subr.bf16.mxu1 %v9699_v4  ;;  %8157 = vmatmul.mubr.bf16.vlgmr.msra.gmra.mxu0 %v7597_v30  ;;  %v9719_v4 = vld [vmem:[%s13346_s5 + $0x18] sm:$0xff]  }
 0x428   :  { %9561 = vmatpush3.bf16.msra.mxu0 %v9684_v23  ;;  %8236 = vmatprep.mubr.bf16.mxu0 %v7602_v8 }
 0x429   :  { %8197 = vmatmul.mubr.bf16.vlgmr.msra.gmra.mxu1 %v7599_v53  ;;  %9562 = vmatprep.subr.bf16.mxu0 %v9685_v41 }
 0x42a   :  { %9583 = vmatpush3.bf16.msra.mxu1 %v9700_v51 }
 0x42b   :  { %9584 = vmatprep.subr.bf16.mxu1 %v9701_v35 }
 0x42c   :  { %9563 = vmatpush3.bf16.msra.mxu0 %v9686_v28 }
 0x42d   :  { %9564 = vmatprep.subr.bf16.mxu0 %v9687_v34 }
 0x42e   :  { %9585 = vmatpush3.bf16.msra.mxu1 %v9702_v19 }
 0x42f   :  { %9586 = vmatprep.subr.bf16.mxu1 %v9703_v15 }
 0x430   :  { %9565 = vmatpush3.bf16.msra.mxu0 %v9688_v33 }
 0x431   :  { %9566 = vmatprep.subr.bf16.mxu0 %v9689_v38 }
 0x432   :  { %9587 = vmatpush3.bf16.msra.mxu1 %v9704_v14 }
 0x433   :  { %9588 = vmatprep.subr.bf16.mxu1 %v9705_v32 }
 0x434   :  { %9567 = vmatpush3.bf16.msra.mxu0 %v9690_v42 }
 0x435   :  { %9568 = vmatprep.subr.bf16.mxu0 %v9691_v31 }
 0x436   :  { %9589 = vmatpush3.bf16.msra.mxu1 %v9706_v37 }
 0x437   :  { %9590 = vmatprep.subr.bf16.mxu1 %v9707_v44 }
 0x438   :  { %9569 = vmatpush3.bf16.msra.mxu0 %v9692_v45  ;;  %v9442_v45 = vld [vmem:[%s13347_s4] ss:$0 sm:$0xff] }
 0x439   :  { %9570 = vmatprep.subr.bf16.mxu0 %v9693_v21 }
 0x43a   :  { %9591 = vmatpush3.bf16.msra.mxu1 %v9708_v18 }
 0x43b   :  { %9592 = vmatprep.subr.bf16.mxu1 %v9709_v62 }
 0x43c   :  { %9571 = vmatpush3.bf16.msra.mxu0 %v9694_v47 }
 0x43d   :  { %9572 = vmatprep.subr.bf16.mxu0 %v9695_v48 }
 0x43e   :  { %9593 = vmatpush3.bf16.msra.mxu1 %v9710_v0 }
 0x43f   :  { %9594 = vmatprep.subr.bf16.mxu1 %v9711_v1 }
 0x440   :  { %9573 = vmatpush3.bf16.msra.mxu0 %v9696_v36 }
 0x441   :  { %9574 = vmatprep.subr.bf16.mxu0 %v9697_v55 }
 0x444   :  { %9575 = vmatpush3.bf16.msra.mxu0 %v9698_v50 }
 0x445   :  { %9613 = vmatprep.subr.bf16.mxu0 %v9726_v17 }
 0x447   :  { %v7377_v16 = vpop.f32.mrf.mxu0  ;;  %8237 = vmatmul.mubr.bf16.vlgmr.msra.gmra.mxu0 %v7601_v40 }
 0x448   :  { %v7378_v58 = vadd.f32 %v7377_v16, %v13125_v57  ;;  %v9712_v57 = vld [vmem:[%s13345_s3 + $0x188] sm:$0xff]   ;;  %9614 = vmatpush3.bf16.msra.mxu0 %v9715_v22  ;;  %9629 = vmatprep.mubr.msk.bf16.mxu0 %vm9727_vm0, %v9726_v17 }
 0x449   :  { %v7418_v20 = vpop.f32.mrf.mxu1  ;;  %v7379_v46 = vpop.f32.mrf.mxu0  ;;  %9595 = vmatpush3.bf16.msra.mxu1 %v9712_v57  ;;  %9615 = vmatprep.subr.bf16.mxu0 %v9726_v17 }
 0x44a   :  { %v7419_v7 = vadd.f32 %v7418_v20, %v7378_v58  ;;  %v7380_v54 = vadd.f32 %v7379_v46, %v13130_v63  ;;  %v9713_v63 = vld [vmem:[%s13345_s3 + $0x1c0] sm:$0xff]  }
 0x44b   :  { %v7420_v43 = vpop.f32.mrf.mxu1  ;;  %v7381_v52 = vpop.f32.mrf.mxu0  ;;  %9596 = vmatprep.subr.bf16.mxu1 %v9713_v63 }
 0x44c   :  { %v7421_v59 = vadd.f32 %v7420_v43, %v7380_v54  ;;  %9616 = vmatpush3.bf16.msra.mxu0 %v9716_v24  ;;  %v9720_v54 = vld [vmem:[%s13346_s5 + $0x10] sm:$0xff]   ;;  %v9721_v43 = vld [vmem:[%s13346_s5 + $0x8] sm:$0xff]   ;;  %v9722_v52 = vld [vmem:[%s13346_s5] sm:$0xff]  }
 0x44d   :  { %v7422_v49 = vpop.f32.mrf.mxu1  ;;  %v7382_v2 = vpop.f32.mrf.mxu0  ;;  %9597 = vmatpush3.bf16.msra.mxu1 %v9714_v56  ;;  %9617 = vmatprep.subr.bf16.mxu0 %v9726_v17 }
 0x44f   :  { %v7423_v26 = vpop.f32.mrf.mxu1 }
 0x450   :  { %9618 = vmatpush3.bf16.msra.mxu0 %v9717_v25 }
 0x451   :  { %9619 = vmatprep.subr.bf16.mxu0 %v9726_v17 }
 0x454   :  { %9620 = vmatpush3.bf16.msra.mxu0 %v9718_v9 }
 0x455   :  { %9621 = vmatprep.subr.bf16.mxu0 %v9726_v17 }
 0x458   :  { %9622 = vmatpush3.bf16.msra.mxu0 %v9719_v4 }
 0x459   :  { %9623 = vmatprep.subr.bf16.mxu0 %v9726_v17 }
 0x45c   :  { %9624 = vmatpush3.bf16.msra.mxu0 %v9720_v54 }
 0x45d   :  { %9625 = vmatprep.subr.bf16.mxu0 %v9726_v17 }
 0x460   :  { %9626 = vmatpush3.bf16.msra.mxu0 %v9721_v43 }
 0x461   :  { %9627 = vmatprep.subr.bf16.mxu0 %v9726_v17 }
 0x464   :  { %9628 = vmatpush3.bf16.msra.mxu0 %v9722_v52 }
 0x487   :  { %v7459_v5 = vpop.f32.mrf.mxu0 }
 0x488   :  { %v7460_v6 = vadd.f32 %v7459_v5, %v7419_v7  ;;  %v9507_v5 = vld [vmem:[%s13348_s6] ss:$0 sm:$0xff] }
 0x489   :  { %v7500_v39 = vpop.f32.mrf.mxu1  ;;  %v7461_v29 = vpop.f32.mrf.mxu0 }
 0x48a   :  { %v7501_v10 = vadd.f32 %v7500_v39, %v7460_v6  ;;  %v7462_v27 = vadd.f32 %v7461_v29, %v7421_v59 }
 0x48b   :  { %v7502_v60 = vpop.f32.mrf.mxu1  ;;  %v7463_v11 = vpop.f32.mrf.mxu0 }
 0x48c   :  { %v7503_v30 = vadd.f32 %v7502_v60, %v7462_v27 }
 0x48d   :  { %v7504_v12 = vpop.f32.mrf.mxu1  ;;  %v7464_v13 = vpop.f32.mrf.mxu0 }
 0x48f   :  { %v7505_v3 = vpop.f32.mrf.mxu1 }
 0x4c7   :  { %v7541_v23 = vpop.f32.mrf.mxu0 }
 0x4c8   :  { %v7542_v41 = vadd.f32 %v7541_v23, %v7501_v10 }
 0x4c9   :  { %v7582_v53 = vpop.f32.mrf.mxu1  ;;  %v7543_v51 = vpop.f32.mrf.mxu0 }
 0x4ca   :  { %v7583_v8 = vadd.f32 %v7582_v53, %v7542_v41  ;;  %v7544_v35 = vadd.f32 %v7543_v51, %v7503_v30 }
 0x4cb   :  { %v7584_v28 = vpop.f32.mrf.mxu1  ;;  %v7545_v34 = vpop.f32.mrf.mxu0 }
 0x4cc   :  { %v7585_v19 = vadd.f32 %v7584_v28, %v7544_v35  ;;  %v7595_v33 = vmax.f32 %v7583_v8, 0.0 }
 0x4cd   :  { %v7586_v15 = vpop.f32.mrf.mxu1  ;;  %v7546_v38 = vpop.f32.mrf.mxu0 }
 0x4ce   :  { %v7596_v14 = vmax.f32 %v7585_v19, 0.0  ;;  %v7603_v31 = vpack.c.bf16 %v7595_v33, %v7595_v33 }
 0x4cf   :  { %v7587_v32 = vpop.f32.mrf.mxu1 }
 0x4d0   :  { %v7604_v42 = vpack.c.bf16 %v7596_v14, %v7596_v14 }
 0x4d2   :  { %8276 = vmatprep.mubr.bf16.mxu1 %v7604_v42 }
 0x4d3   :  { %8277 = vmatmul.mubr.bf16.vlgmr.msra.gmra.mxu1 %v7603_v31 }
 0x4e7   :  { %v9532_v37 = vpop.f32.mrf.mxu0 }
 0x4e9   :  { %v9554_v44 = vpop.f32.mrf.mxu1  ;;  %v9533_v21 = vpop.f32.mrf.mxu0 }
 0x4ea   :  { %v9534_v18 = vadd.f32 %v9533_v21, %v9532_v37 }
 0x4eb   :  { %v9555_v47 = vpop.f32.mrf.mxu1  ;;  %v9535_v36 = vpop.f32.mrf.mxu0 }
 0x4ec   :  { %v9556_v48 = vadd.f32 %v9555_v47, %v9554_v44  ;;  %v8159_v55 = vadd.f32 %v9534_v18, %v9442_v45 }
 0x4ed   :  { %v9557_v50 = vpop.f32.mrf.mxu1  ;;  %v9536_v61 = vpop.f32.mrf.mxu0 }
 0x4ee   :  { %v8199_v40 = vadd.f32 %v9556_v48, %v8159_v55 }
 0x4ef   :  { %v9558_v16 = vpop.f32.mrf.mxu1 }
 0x507   :  { %v9576_v62 = vpop.f32.mrf.mxu0 }
 0x509   :  { %v9577_v58 = vpop.f32.mrf.mxu0 }
 0x50a   :  { %v9578_v20 = vadd.f32 %v9577_v58, %v9576_v62 }
 0x50b   :  { %v9579_v0 = vpop.f32.mrf.mxu0 }
 0x50c   :  { %v8239_v46 = vadd.f32 %v9578_v20, %v8199_v40 }
 0x50d   :  { %v9580_v7 = vpop.f32.mrf.mxu0 }
 0x593   :  { %v9598_v1 = vpop.f32.mrf.mxu1 }
 0x595   :  { %v9599_v59 = vpop.f32.mrf.mxu1 }
 0x596   :  { %v9600_v49 = vadd.f32 %v9599_v59, %v9598_v1 }
 0x597   :  { %v9601_v57 = vpop.f32.mrf.mxu1 }
 0x598   :  { %v8279_v2 = vadd.f32 %v9600_v49, %v8239_v46 }
 0x599   :  { %v9602_v26 = vpop.f32.mrf.mxu1 }
 0x59a   :  { %v8284_v63 = vmax.f32 %v8279_v2, 0.0 }
 0x59c   :  { %v8285_v56 = vpack.c.bf16 %v8284_v63, %v8284_v63 }
 0x59e   :  { %9630 = vmatmul.mubr.bf16.vlgmr.msra.gmra.mxu0 %v8285_v56 }
 0x65e   :  { %v8391_v6 = vpop.f32.mrf.mxu0 }
 0x65f   :  { %v8392_v39 = vadd.f32 %v9507_v5, %v8391_v6 }
 0x660   :  { %v9631_v29 = vpop.f32.mrf.mxu0 }
 0x661   :  { %8397 = vst [vmem:[%s13349_s7] sm:$0xff] %v8392_v39 }
 0x662   :  { %v8394_v10 = vpop.f32.mrf.mxu0 }
 0x664   :  { %v9632_v60 = vpop.f32.mrf.mxu0 }

</bundles_post_ra>
